<compile_context>
chip_gen: v6e
topology: v6e:2x2x1
jax: 0.10.0
libtpu: 0.0.40
codegen_flags: <defaults>
</compile_context>

<pallas_src>
import numpy as np
import jax
import jax.numpy as jnp
from jax.experimental import pallas as pl
from jax.experimental.pallas import tpu as pltpu

COMPUTE_DTYPE = jnp.bfloat16   # MXU operand / intermediate dtype (accumulation stays f32)
_BN_EPS = 1e-5

# ConvTranspose2d(k=4, s=2, p=1) output-phase decomposition:
#   out[2m+py, 2n+px] = sum_{ta,tb} relu_y[m+SHIFT[py][ta], n+SHIFT[px][tb]]
#                                   @ W_up[:, :, KIDX[py][ta], KIDX[px][tb]]
_UP_KIDX = ((1, 3), (2, 0))    # kernel tap index per (output phase, tap)
_UP_SHIFT = ((0, -1), (0, 1))  # input shift per (output phase, tap)


def _round_up(x, m):
    return (x + m - 1) // m * m


# ---------------------------------------------------------------------------
# Feature probe: single-buffered grid-invariant inputs via pl.Buffered(1).
# Probed with a tiny kernel so an unsupported jax/libtpu falls back to the
# default double-buffered BlockSpecs instead of failing the real kernel.
# ---------------------------------------------------------------------------
def _probe_single_buffer_support():
    def _k(a_ref, w_ref, o_ref):
        o_ref[...] = a_ref[...] + w_ref[...]
    try:
        fn = pl.pallas_call(
            _k,
            out_shape=jax.ShapeDtypeStruct((16, 128), jnp.float32),
            grid=(2,),
            in_specs=[
                pl.BlockSpec((8, 128), lambda i: (i, 0)),
                pl.BlockSpec((8, 128), lambda i: (0, 0),
                             pipeline_mode=pl.Buffered(1)),
            ],
            out_specs=pl.BlockSpec((8, 128), lambda i: (i, 0)),
        )
        jax.block_until_ready(
            fn(jnp.zeros((16, 128), jnp.float32),
               jnp.ones((8, 128), jnp.float32)))
        return True
    except Exception:
        return False


def _pick_vmem_limit():
    # ~3/4 of physical VMEM: ~48 MiB on v7x (64 MiB/TC), ~96 MiB on v5e/v6e.
    try:
        cap = int(pltpu.get_tpu_info().vmem_capacity_bytes)
        return max(32 * 1024 * 1024, min(cap * 3 // 4, 100 * 1024 * 1024))
    except Exception:
        return 48 * 1024 * 1024


_SINGLE_BUFFER_WEIGHTS = _probe_single_buffer_support()
_VMEM_LIMIT = _pick_vmem_limit()


def _fused_unet_inner_kernel(xs_ref, wdn_ref, wup_ref, ypre_ref, stats_ref, ypad):
    """B samples per step: down-conv(k4,s2,p1) + ReLU + conv-transpose(k4,s2,p1), pre-BN."""
    b_blk, hs, ws, c4 = xs_ref.shape
    ho, wo = hs - 1, ws - 1
    inner_p = wdn_ref.shape[2]
    outer_p = wup_ref.shape[2]
    rows = b_blk * ho * wo

    # Input is already LeakyReLU(0.2)-activated bf16 space-to-depth(2) of the
    # zero-padded samples (LeakyReLU(0) = 0, so activating before padding is exact).
    xs = xs_ref[...]                                            # (B, hs, ws, 4*C)

    # ---- down path: Conv2d(k4,s2,p1) == 4 unit-shift taps on the s2d input ----
    # TODO(synk): the shifted-window slices + reshapes relayout in VMEM when wo is
    # not a multiple of 8; a pltpu.roll-based formulation would use the idle XLU slot.
    acc_dn = jnp.zeros((rows, inner_p), jnp.float32)
    for a in (0, 1):
        for b in (0, 1):
            win = xs[:, a:a + ho, b:b + wo, :].reshape(rows, c4)
            acc_dn = acc_dn + jnp.dot(win, wdn_ref[2 * a + b],
                                      preferred_element_type=jnp.float32)

    # ReLU, cast, place into a zero-bordered VMEM scratch.  Only the 1-element
    # border needs zeroing (interior is fully overwritten every step); it is
    # re-zeroed each step because with "parallel" grid semantics each TensorCore
    # owns a separate, uninitialized scratch instance.
    zr = jnp.zeros((b_blk, wo + 2, inner_p), ypad.dtype)
    zc = jnp.zeros((b_blk, ho + 2, inner_p), ypad.dtype)
    ypad[:, 0, :, :] = zr
    ypad[:, ho + 1, :, :] = zr
    ypad[:, :, 0, :] = zc
    ypad[:, :, wo + 1, :] = zc
    ypad[:, 1:ho + 1, 1:wo + 1, :] = (
        jnp.maximum(acc_dn, 0.0).astype(ypad.dtype).reshape(b_blk, ho, wo, inner_p))

    # ---- up path: ConvTranspose2d(k4,s2,p1) as 4 output phases x (2x2 taps) ----
    sum_y = jnp.zeros((1, outer_p), jnp.float32)
    sum_y2 = jnp.zeros((1, outer_p), jnp.float32)
    for py in (0, 1):
        for px in (0, 1):
            acc = jnp.zeros((rows, outer_p), jnp.float32)
            for ta in (0, 1):
                for tb in (0, 1):
                    sa = _UP_SHIFT[py][ta]
                    sb = _UP_SHIFT[px][tb]
                    w_idx = ((py * 2 + px) * 2 + ta) * 2 + tb
                    win = ypad[:, 1 + sa:1 + sa + ho, 1 + sb:1 + sb + wo, :]
                    acc = acc + jnp.dot(win.reshape(rows, inner_p),
                                        wup_ref[w_idx],
                                        preferred_element_type=jnp.float32)
            # one-pass BatchNorm statistics (sum and sum-of-squares), f32
            sum_y = sum_y + jnp.sum(acc, axis=0, keepdims=True)
            sum_y2 = sum_y2 + jnp.sum(acc * acc, axis=0, keepdims=True)
            # phase-interleaved bf16 writeback: halves the HBM traffic of the
            # two-pass BN; the wrapper's NHWC reshape stays a free contiguous reshape.
            ypre_ref[:, py, :, px * outer_p:(px + 1) * outer_p] = (
                acc.astype(ypre_ref.dtype).reshape(b_blk * ho, wo, outer_p))

    stats_ref[0, 0:1, :] = sum_y
    stats_ref[0, 1:2, :] = sum_y2


def _bn_apply_kernel(y_ref, mean_ref, inv_ref, o_ref):
    # Elementwise BatchNorm apply (gamma=1, beta=0); emits only the valid
    # outer_nc lanes of each phase so the XLA epilogue needs no channel slice.
    outer_p = y_ref.shape[1] // 2
    outer_nc = o_ref.shape[1] // 2
    z = (y_ref[...].astype(jnp.float32) - mean_ref[...]) * inv_ref[...]
    if outer_nc == outer_p:
        o_ref[...] = z
    else:
        o_ref[:, :outer_nc] = z[:, :outer_nc]
        o_ref[:, outer_nc:] = z[:, outer_p:outer_p + outer_nc]


def unet_skip_block_innermost(x, w_down, w_up):
    """
    x      : (N, input_nc, H, W)          float32, NCHW (PyTorch layout)
    w_down : (inner_nc, input_nc, 4, 4)   Conv2d weight (PyTorch OIHW)
    w_up   : (inner_nc, outer_nc, 4, 4)   ConvTranspose2d weight (PyTorch layout)
    returns: (N, input_nc + outer_nc, H, W)
    """
    n, c_in, h, w = x.shape
    assert h % 2 == 0 and w % 2 == 0
    inner_nc = w_down.shape[0]
    outer_nc = w_up.shape[1]
    ho, wo = h // 2, w // 2
    hw = ho * wo
    inner_p = _round_up(inner_nc, 128)
    outer_p = _round_up(outer_nc, 128)
    c4 = 4 * c_in

    # ---- batch-block selection: fold B samples into the MXU M dimension ----
    b_blk = max(1, min(n, -(-256 // hw)))                 # aim for B*ho*wo >= 256
    if b_blk == n and n > 1 and ((n + 1) // 2) * hw >= 128:
        b_blk = (n + 1) // 2                              # >=2 grid steps for megacore
    n_pad = _round_up(n, b_blk)    # zero-padded samples contribute exactly 0 to BN sums
    n_steps = n_pad // b_blk

    # ---- layout-only prep (fused by XLA): LeakyReLU -> bf16 -> pad -> s2d(2) ----
    x_nhwc = jnp.transpose(x, (0, 2, 3, 1))
    xa = jnp.where(x_nhwc >= 0.0, x_nhwc, 0.2 * x_nhwc).astype(COMPUTE_DTYPE)
    xp = jnp.pad(xa, ((0, n_pad - n), (1, 1), (1, 1), (0, 0)))
    xs2d = (xp.reshape(n_pad, ho + 1, 2, wo + 1, 2, c_in)
              .transpose(0, 1, 3, 2, 4, 5)
              .reshape(n_pad, ho + 1, wo + 1, c4))

    # ---- one-time weight prep (bf16, lane-padded to 128) ----
    # down: (co, ci, kh, kw) -> taps[(a,b)], columns packed as (p, q, ci) with
    # kh = 2a+p, kw = 2b+q, matching the space-to-depth channel packing.
    wd = jnp.transpose(w_down, (2, 3, 1, 0)).reshape(2, 2, 2, 2, c_in, inner_nc)
    wd = wd.transpose(0, 2, 1, 3, 4, 5).reshape(4, c4, inner_nc)
    wd = jnp.pad(wd, ((0, 0), (0, 0), (0, inner_p - inner_nc))).astype(COMPUTE_DTYPE)

    # up: (ci, co, kh, kw) -> one (inner, outer) matrix per (phase_y, phase_x, tap_y, tap_x)
    wu = jnp.transpose(w_up, (2, 3, 0, 1))                          # (kh, kw, ci, co)
    kidx = jnp.array(_UP_KIDX)
    wu_taps = wu[kidx[:, None, :, None], kidx[None, :, None, :]]    # (2,2,2,2,ci,co)
    wu_taps = wu_taps.reshape(16, inner_nc, outer_nc)
    wu_taps = jnp.pad(
        wu_taps,
        ((0, 0), (0, inner_p - inner_nc), (0, outer_p - outer_nc))
    ).astype(COMPUTE_DTYPE)

    # grid-invariant weights: single-buffer them when supported (halves weight VMEM)
    wspec_kw = ({"pipeline_mode": pl.Buffered(1)} if _SINGLE_BUFFER_WEIGHTS else {})

    # ---- kernel 1: fused down-conv + ReLU + conv-transpose (pre-BN) ----
    y_pre, stats = pl.pallas_call(
        _fused_unet_inner_kernel,
        out_shape=(
            jax.ShapeDtypeStruct((n_pad * ho, 2, wo, 2 * outer_p), COMPUTE_DTYPE),
            jax.ShapeDtypeStruct((n_steps, 2, outer_p), jnp.float32),
        ),
        grid=(n_steps,),
        in_specs=[
            pl.BlockSpec((b_blk, ho + 1, wo + 1, c4), lambda g: (g, 0, 0, 0)),
            pl.BlockSpec((4, c4, inner_p), lambda g: (0, 0, 0), **wspec_kw),
            pl.BlockSpec((16, inner_p, outer_p), lambda g: (0, 0, 0), **wspec_kw),
        ],
        out_specs=(
            pl.BlockSpec((b_blk * ho, 2, wo, 2 * outer_p), lambda g: (g, 0, 0, 0)),
            pl.BlockSpec((1, 2, outer_p), lambda g: (g, 0, 0)),
        ),
        scratch_shapes=[pltpu.VMEM((b_blk, ho + 2, wo + 2, inner_p), COMPUTE_DTYPE)],
        compiler_params=pltpu.CompilerParams(
            dimension_semantics=("parallel",),
            vmem_limit_bytes=_VMEM_LIMIT),
    )(xs2d, wd, wu_taps)

    # ---- finalize BatchNorm statistics (tiny cross-step reduction in XLA) ----
    count = jnp.float32(n * h * w)                   # true sample count (padding contributes 0)
    total = jnp.sum(stats, axis=0)                   # (2, outer_p)
    mean = total[0] / count
    var = jnp.maximum(total[1] / count - mean * mean, 0.0)   # biased variance
    inv_std = jax.lax.rsqrt(var + _BN_EPS)
    mean2 = jnp.tile(mean, 2)[None, :]               # (1, 2*outer_p)
    inv2 = jnp.tile(inv_std, 2)[None, :]

    # ---- kernel 2: row-tiled, pipelined, lane-dense BatchNorm apply ----
    m2 = n_pad * ho * 2 * wo
    c2 = 2 * outer_p
    tm = m2 if m2 <= 1024 else 1024                  # 512-1024-row tiles at scale
    y_flat = y_pre.reshape(m2, c2)                   # free (contiguous) reshape
    y_bn = pl.pallas_call(
        _bn_apply_kernel,
        out_shape=jax.ShapeDtypeStruct((m2, 2 * outer_nc), jnp.float32),
        grid=(-(-m2 // tm),),
        in_specs=[
            pl.BlockSpec((tm, c2), lambda i: (i, 0)),
            pl.BlockSpec((1, c2), lambda i: (0, 0)),
            pl.BlockSpec((1, c2), lambda i: (0, 0)),
        ],
        out_specs=pl.BlockSpec((tm, 2 * outer_nc), lambda i: (i, 0)),
        compiler_params=pltpu.CompilerParams(
            dimension_semantics=("parallel",),
            vmem_limit_bytes=_VMEM_LIMIT),
    )(y_flat, mean2, inv2)

    # ---- module-boundary glue: free un-interleave reshape, drop batch padding,
    #      NCHW transpose + skip concat.  These stay in XLA: writing NCHW from a
    #      kernel is lane-hostile for small W, and XLA fuses transpose+concat.
    y = (y_bn.reshape(n_pad, ho, 2, wo, 2, outer_nc)
             .reshape(n_pad, h, w, outer_nc)[:n])
    y = jnp.transpose(y, (0, 3, 1, 2))
    return jnp.concatenate([x, y], axis=1)


def _reference(x, w_down, w_up):
    """Plain-XLA reference (f32) for the same forward pass."""
    hp = jax.lax.Precision.HIGHEST
    xa = jnp.where(x >= 0.0, x, 0.2 * x)
    y = jax.lax.conv_general_dilated(
        xa, w_down, window_strides=(2, 2), padding=((1, 1), (1, 1)),
        dimension_numbers=("NCHW", "OIHW", "NCHW"), precision=hp)
    y = jnp.maximum(y, 0.0)
    # ConvTranspose2d(k4,s2,p1) == lhs-dilated conv with flipped, channel-swapped weights
    w_eq = jnp.transpose(w_up[:, :, ::-1, ::-1], (1, 0, 2, 3))
    z = jax.lax.conv_general_dilated(
        y, w_eq, window_strides=(1, 1), padding=((2, 2), (2, 2)),
        lhs_dilation=(2, 2), dimension_numbers=("NCHW", "OIHW", "NCHW"),
        precision=hp)
    mean = jnp.mean(z, axis=(0, 2, 3), keepdims=True)
    var = jnp.mean((z - mean) ** 2, axis=(0, 2, 3), keepdims=True)
    z = (z - mean) * jax.lax.rsqrt(var + _BN_EPS)
    return jnp.concatenate([x, z], axis=1)


if __name__ == "__main__":
    # small, deterministic config: input_nc = outer_nc = 4, inner_nc = 8
    N, C, H, W = 2, 4, 16, 16
    inner_nc, outer_nc = 8, C

    key = jax.random.PRNGKey(0)
    kx, kd, ku = jax.random.split(key, 3)
    x = jax.random.normal(kx, (N, C, H, W), dtype=jnp.float32)
    w_down = 0.02 * jax.random.normal(kd, (inner_nc, C, 4, 4), dtype=jnp.float32)
    w_up = 0.02 * jax.random.normal(ku, (inner_nc, outer_nc, 4, 4), dtype=jnp.float32)

    out = jax.jit(unet_skip_block_innermost)(x, w_down, w_up)
    jax.block_until_ready(out)
    assert out.shape == (N, C + outer_nc, H, W), out.shape

    # numerical sanity check vs. plain XLA (loose tolerance: bf16 MXU operands
    # and bf16 pre-BN intermediate)
    ref = _reference(x, w_down, w_up)
    np.testing.assert_allclose(np.asarray(out), np.asarray(ref), atol=0.25, rtol=0.1)

    # TODO(synk): BatchNorm running_mean/running_var buffer updates (training-time
    # side effect) are not modeled; they do not affect the forward output.
    print("KERNEL_OK")
</pallas_src>

<mosaic_0001>
module attributes {stable_mosaic.version = 11 : i64} {
  func.func @_k(%arg0: i32, %arg1: memref<8x128xf32, #tpu.memory_space<vmem>>, %arg2: memref<8x128xf32, #tpu.memory_space<vmem>>, %arg3: memref<8x128xf32, #tpu.memory_space<vmem>>) attributes {dimension_semantics = [#tpu.dimension_semantics<arbitrary>], iteration_bounds = array<i64: 2>, scalar_prefetch = 0 : i64, scratch_operands = 0 : i64, tpu.core_type = #tpu.core_type<tc>, window_params = [{transform_indices = @transform_0, window_bounds = array<i64: 8, 128>}, {pipeline_mode = #tpu.pipeline_mode<synchronous>, transform_indices = @transform_1, window_bounds = array<i64: 8, 128>}, {transform_indices = @transform_2, window_bounds = array<i64: 8, 128>}]} {
    %c0 = arith.constant 0 : index
    %c0_0 = arith.constant 0 : index
    %0 = vector.load %arg1[%c0, %c0_0] : memref<8x128xf32, #tpu.memory_space<vmem>>, vector<8x128xf32>
    %c0_1 = arith.constant 0 : index
    %c0_2 = arith.constant 0 : index
    %1 = vector.load %arg2[%c0_1, %c0_2] : memref<8x128xf32, #tpu.memory_space<vmem>>, vector<8x128xf32>
    %2 = arith.addf %0, %1 : vector<8x128xf32>
    %c0_3 = arith.constant 0 : index
    %c0_4 = arith.constant 0 : index
    %3 = vector.load %arg3[%c0_3, %c0_4] : memref<8x128xf32, #tpu.memory_space<vmem>>, vector<8x128xf32>
    tpu.vector_store %arg3[%c0_3, %c0_4], %2 {strides = array<i32>} : memref<8x128xf32, #tpu.memory_space<vmem>>, vector<8x128xf32>,
    return
  }
  func.func @transform_0(%arg0: i32) -> (i32, i32) {
    %c0_i32 = arith.constant 0 : i32
    %c0_i32_0 = arith.constant 0 : i32
    return %arg0, %c0_i32 : i32, i32
  }
  func.func @transform_1(%arg0: i32) -> (i32, i32) {
    %c0_i32 = arith.constant 0 : i32
    %c0_i32_0 = arith.constant 0 : i32
    %c0_i32_1 = arith.constant 0 : i32
    return %c0_i32, %c0_i32_0 : i32, i32
  }
  func.func @transform_2(%arg0: i32) -> (i32, i32) {
    %c0_i32 = arith.constant 0 : i32
    %c0_i32_0 = arith.constant 0 : i32
    return %arg0, %c0_i32 : i32, i32
  }
}

module attributes {stable_mosaic.version = 11 : i64} {
  func.func @_fused_unet_inner_kernel(%arg0: i32, %arg1: memref<2x9x9x16xbf16, #tpu.memory_space<vmem>>, %arg2: memref<4x16x128xbf16, #tpu.memory_space<vmem>>, %arg3: memref<16x128x128xbf16, #tpu.memory_space<vmem>>, %arg4: memref<16x2x8x256xbf16, #tpu.memory_space<vmem>>, %arg5: memref<1x2x128xf32, #tpu.memory_space<vmem>>, %arg6: memref<2x10x10x128xbf16, #tpu.memory_space<vmem>>) attributes {dimension_semantics = [#tpu.dimension_semantics<parallel>], iteration_bounds = array<i64: 1>, scalar_prefetch = 0 : i64, scratch_operands = 1 : i64, tpu.core_type = #tpu.core_type<tc>, window_params = [{transform_indices = @transform_0, window_bounds = array<i64: 2, 9, 9, 16>}, {pipeline_mode = #tpu.pipeline_mode<synchronous>, transform_indices = @transform_1, window_bounds = array<i64: 4, 16, 128>}, {pipeline_mode = #tpu.pipeline_mode<synchronous>, transform_indices = @transform_2, window_bounds = array<i64: 16, 128, 128>}, {transform_indices = @transform_3, window_bounds = array<i64: 16, 2, 8, 256>}, {transform_indices = @transform_4, window_bounds = array<i64: 1, 2, 128>}]} {
    %c0 = arith.constant 0 : index
    %c0_0 = arith.constant 0 : index
    %c0_1 = arith.constant 0 : index
    %c0_2 = arith.constant 0 : index
    %0 = vector.load %arg1[%c0, %c0_0, %c0_1, %c0_2] : memref<2x9x9x16xbf16, #tpu.memory_space<vmem>>, vector<2x9x9x16xbf16>
    %cst = arith.constant 0.000000e+00 : f32
    %1 = vector.broadcast %cst : f32 to vector<128x128xf32>
    %2 = vector.extract_strided_slice %0 {offsets = [0, 0, 0, 0], sizes = [2, 8, 8, 16], strides = [1, 1, 1, 1]} : vector<2x9x9x16xbf16> to vector<2x8x8x16xbf16>
    %3 = vector.shape_cast %2 : vector<2x8x8x16xbf16> to vector<128x16xbf16>
    %c0_3 = arith.constant 0 : index
    %c0_4 = arith.constant 0 : index
    %c0_5 = arith.constant 0 : index
    %4 = vector.load %arg2[%c0_3, %c0_4, %c0_5] : memref<4x16x128xbf16, #tpu.memory_space<vmem>>, vector<1x16x128xbf16>
    %5 = vector.shape_cast %4 : vector<1x16x128xbf16> to vector<16x128xbf16>
    %cst_6 = arith.constant dense<0.000000e+00> : vector<128x128xf32>
    %6 = tpu.matmul %3, %5, %cst_6 {dimension_numbers = #tpu.dot_dimension_numbers<[1], [0], [0], [1], [0, 0, 1, 1], [], []>} : vector<128x16xbf16>, vector<16x128xbf16>, vector<128x128xf32> -> vector<128x128xf32>
    %7 = arith.addf %1, %6 : vector<128x128xf32>
    %8 = vector.extract_strided_slice %0 {offsets = [0, 0, 1, 0], sizes = [2, 8, 8, 16], strides = [1, 1, 1, 1]} : vector<2x9x9x16xbf16> to vector<2x8x8x16xbf16>
    %9 = vector.shape_cast %8 : vector<2x8x8x16xbf16> to vector<128x16xbf16>
    %c1 = arith.constant 1 : index
    %c0_7 = arith.constant 0 : index
    %c0_8 = arith.constant 0 : index
    %10 = vector.load %arg2[%c1, %c0_7, %c0_8] : memref<4x16x128xbf16, #tpu.memory_space<vmem>>, vector<1x16x128xbf16>
    %11 = vector.shape_cast %10 : vector<1x16x128xbf16> to vector<16x128xbf16>
    %cst_9 = arith.constant dense<0.000000e+00> : vector<128x128xf32>
    %12 = tpu.matmul %9, %11, %cst_9 {dimension_numbers = #tpu.dot_dimension_numbers<[1], [0], [0], [1], [0, 0, 1, 1], [], []>} : vector<128x16xbf16>, vector<16x128xbf16>, vector<128x128xf32> -> vector<128x128xf32>
    %13 = arith.addf %7, %12 : vector<128x128xf32>
    %14 = vector.extract_strided_slice %0 {offsets = [0, 1, 0, 0], sizes = [2, 8, 8, 16], strides = [1, 1, 1, 1]} : vector<2x9x9x16xbf16> to vector<2x8x8x16xbf16>
    %15 = vector.shape_cast %14 : vector<2x8x8x16xbf16> to vector<128x16xbf16>
    %c2 = arith.constant 2 : index
    %c0_10 = arith.constant 0 : index
    %c0_11 = arith.constant 0 : index
    %16 = vector.load %arg2[%c2, %c0_10, %c0_11] : memref<4x16x128xbf16, #tpu.memory_space<vmem>>, vector<1x16x128xbf16>
    %17 = vector.shape_cast %16 : vector<1x16x128xbf16> to vector<16x128xbf16>
    %cst_12 = arith.constant dense<0.000000e+00> : vector<128x128xf32>
    %18 = tpu.matmul %15, %17, %cst_12 {dimension_numbers = #tpu.dot_dimension_numbers<[1], [0], [0], [1], [0, 0, 1, 1], [], []>} : vector<128x16xbf16>, vector<16x128xbf16>, vector<128x128xf32> -> vector<128x128xf32>
    %19 = arith.addf %13, %18 : vector<128x128xf32>
    %20 = vector.extract_strided_slice %0 {offsets = [0, 1, 1, 0], sizes = [2, 8, 8, 16], strides = [1, 1, 1, 1]} : vector<2x9x9x16xbf16> to vector<2x8x8x16xbf16>
    %21 = vector.shape_cast %20 : vector<2x8x8x16xbf16> to vector<128x16xbf16>
    %c3 = arith.constant 3 : index
    %c0_13 = arith.constant 0 : index
    %c0_14 = arith.constant 0 : index
    %22 = vector.load %arg2[%c3, %c0_13, %c0_14] : memref<4x16x128xbf16, #tpu.memory_space<vmem>>, vector<1x16x128xbf16>
    %23 = vector.shape_cast %22 : vector<1x16x128xbf16> to vector<16x128xbf16>
    %cst_15 = arith.constant dense<0.000000e+00> : vector<128x128xf32>
    %24 = tpu.matmul %21, %23, %cst_15 {dimension_numbers = #tpu.dot_dimension_numbers<[1], [0], [0], [1], [0, 0, 1, 1], [], []>} : vector<128x16xbf16>, vector<16x128xbf16>, vector<128x128xf32> -> vector<128x128xf32>
    %25 = arith.addf %19, %24 : vector<128x128xf32>
    %cst_16 = arith.constant 0.000000e+00 : bf16
    %26 = vector.broadcast %cst_16 : bf16 to vector<2x10x128xbf16>
    %cst_17 = arith.constant 0.000000e+00 : bf16
    %27 = vector.broadcast %cst_17 : bf16 to vector<2x10x128xbf16>
    %c0_18 = arith.constant 0 : index
    %c0_19 = arith.constant 0 : index
    %c0_20 = arith.constant 0 : index
    %c0_21 = arith.constant 0 : index
    %28 = vector.load %arg6[%c0_18, %c0_19, %c0_20, %c0_21] : memref<2x10x10x128xbf16, #tpu.memory_space<vmem>>, vector<2x1x10x128xbf16>
    %29 = vector.shape_cast %28 : vector<2x1x10x128xbf16> to vector<2x10x128xbf16>
    %30 = vector.shape_cast %26 : vector<2x10x128xbf16> to vector<2x1x10x128xbf16>
    tpu.vector_store %arg6[%c0_18, %c0_19, %c0_20, %c0_21], %30 {strides = array<i32>} : memref<2x10x10x128xbf16, #tpu.memory_space<vmem>>, vector<2x1x10x128xbf16>,
    %c0_22 = arith.constant 0 : index
    %c9 = arith.constant 9 : index
    %c0_23 = arith.constant 0 : index
    %c0_24 = arith.constant 0 : index
    %31 = vector.load %arg6[%c0_22, %c9, %c0_23, %c0_24] : memref<2x10x10x128xbf16, #tpu.memory_space<vmem>>, vector<2x1x10x128xbf16>
    %32 = vector.shape_cast %31 : vector<2x1x10x128xbf16> to vector<2x10x128xbf16>
    %33 = vector.shape_cast %26 : vector<2x10x128xbf16> to vector<2x1x10x128xbf16>
    tpu.vector_store %arg6[%c0_22, %c9, %c0_23, %c0_24], %33 {strides = array<i32>} : memref<2x10x10x128xbf16, #tpu.memory_space<vmem>>, vector<2x1x10x128xbf16>,
    %c0_25 = arith.constant 0 : index
    %c0_26 = arith.constant 0 : index
    %c0_27 = arith.constant 0 : index
    %c0_28 = arith.constant 0 : index
    %34 = vector.load %arg6[%c0_25, %c0_26, %c0_27, %c0_28] : memref<2x10x10x128xbf16, #tpu.memory_space<vmem>>, vector<2x10x1x128xbf16>
    %35 = vector.shape_cast %34 : vector<2x10x1x128xbf16> to vector<2x10x128xbf16>
    %36 = vector.shape_cast %27 : vector<2x10x128xbf16> to vector<2x10x1x128xbf16>
    tpu.vector_store %arg6[%c0_25, %c0_26, %c0_27, %c0_28], %36 {strides = array<i32>} : memref<2x10x10x128xbf16, #tpu.memory_space<vmem>>, vector<2x10x1x128xbf16>,
    %c0_29 = arith.constant 0 : index
    %c0_30 = arith.constant 0 : index
    %c9_31 = arith.constant 9 : index
    %c0_32 = arith.constant 0 : index
    %37 = vector.load %arg6[%c0_29, %c0_30, %c9_31, %c0_32] : memref<2x10x10x128xbf16, #tpu.memory_space<vmem>>, vector<2x10x1x128xbf16>
    %38 = vector.shape_cast %37 : vector<2x10x1x128xbf16> to vector<2x10x128xbf16>
    %39 = vector.shape_cast %27 : vector<2x10x128xbf16> to vector<2x10x1x128xbf16>
    tpu.vector_store %arg6[%c0_29, %c0_30, %c9_31, %c0_32], %39 {strides = array<i32>} : memref<2x10x10x128xbf16, #tpu.memory_space<vmem>>, vector<2x10x1x128xbf16>,
    %cst_33 = arith.constant 0.000000e+00 : f32
    %40 = vector.broadcast %cst_33 : f32 to vector<128x128xf32>
    %41 = arith.maximumf %25, %40 : vector<128x128xf32>
    %42 = arith.truncf %41 : vector<128x128xf32> to vector<128x128xbf16>
    %43 = vector.shape_cast %42 : vector<128x128xbf16> to vector<2x8x8x128xbf16>
    %c0_34 = arith.constant 0 : index
    %c1_35 = arith.constant 1 : index
    %c1_36 = arith.constant 1 : index
    %c0_37 = arith.constant 0 : index
    %44 = vector.load %arg6[%c0_34, %c1_35, %c1_36, %c0_37] : memref<2x10x10x128xbf16, #tpu.memory_space<vmem>>, vector<2x8x8x128xbf16>
    tpu.vector_store %arg6[%c0_34, %c1_35, %c1_36, %c0_37], %43 {strides = array<i32>} : memref<2x10x10x128xbf16, #tpu.memory_space<vmem>>, vector<2x8x8x128xbf16>,
    %cst_38 = arith.constant 0.000000e+00 : f32
    %45 = vector.broadcast %cst_38 : f32 to vector<1x128xf32>
    %cst_39 = arith.constant 0.000000e+00 : f32
    %46 = vector.broadcast %cst_39 : f32 to vector<1x128xf32>
    %cst_40 = arith.constant 0.000000e+00 : f32
    %47 = vector.broadcast %cst_40 : f32 to vector<128x128xf32>
    %c0_41 = arith.constant 0 : index
    %c1_42 = arith.constant 1 : index
    %c1_43 = arith.constant 1 : index
    %c0_44 = arith.constant 0 : index
    %48 = vector.load %arg6[%c0_41, %c1_42, %c1_43, %c0_44] : memref<2x10x10x128xbf16, #tpu.memory_space<vmem>>, vector<2x8x8x128xbf16>
    %49 = vector.shape_cast %48 : vector<2x8x8x128xbf16> to vector<128x128xbf16>
    %c0_45 = arith.constant 0 : index
    %c0_46 = arith.constant 0 : index
    %c0_47 = arith.constant 0 : index
    %50 = vector.load %arg3[%c0_45, %c0_46, %c0_47] : memref<16x128x128xbf16, #tpu.memory_space<vmem>>, vector<1x128x128xbf16>
    %51 = vector.shape_cast %50 : vector<1x128x128xbf16> to vector<128x128xbf16>
    %cst_48 = arith.constant dense<0.000000e+00> : vector<128x128xf32>
    %52 = tpu.matmul %49, %51, %cst_48 {dimension_numbers = #tpu.dot_dimension_numbers<[1], [0], [0], [1], [0, 0, 1, 1], [], []>} : vector<128x128xbf16>, vector<128x128xbf16>, vector<128x128xf32> -> vector<128x128xf32>
    %53 = arith.addf %47, %52 : vector<128x128xf32>
    %c0_49 = arith.constant 0 : index
    %c1_50 = arith.constant 1 : index
    %c0_51 = arith.constant 0 : index
    %c0_52 = arith.constant 0 : index
    %54 = vector.load %arg6[%c0_49, %c1_50, %c0_51, %c0_52] : memref<2x10x10x128xbf16, #tpu.memory_space<vmem>>, vector<2x8x8x128xbf16>
    %55 = vector.shape_cast %54 : vector<2x8x8x128xbf16> to vector<128x128xbf16>
    %c1_53 = arith.constant 1 : index
    %c0_54 = arith.constant 0 : index
    %c0_55 = arith.constant 0 : index
    %56 = vector.load %arg3[%c1_53, %c0_54, %c0_55] : memref<16x128x128xbf16, #tpu.memory_space<vmem>>, vector<1x128x128xbf16>
    %57 = vector.shape_cast %56 : vector<1x128x128xbf16> to vector<128x128xbf16>
    %cst_56 = arith.constant dense<0.000000e+00> : vector<128x128xf32>
    %58 = tpu.matmul %55, %57, %cst_56 {dimension_numbers = #tpu.dot_dimension_numbers<[1], [0], [0], [1], [0, 0, 1, 1], [], []>} : vector<128x128xbf16>, vector<128x128xbf16>, vector<128x128xf32> -> vector<128x128xf32>
    %59 = arith.addf %53, %58 : vector<128x128xf32>
    %c0_57 = arith.constant 0 : index
    %c0_58 = arith.constant 0 : index
    %c1_59 = arith.constant 1 : index
    %c0_60 = arith.constant 0 : index
    %60 = vector.load %arg6[%c0_57, %c0_58, %c1_59, %c0_60] : memref<2x10x10x128xbf16, #tpu.memory_space<vmem>>, vector<2x8x8x128xbf16>
    %61 = vector.shape_cast %60 : vector<2x8x8x128xbf16> to vector<128x128xbf16>
    %c2_61 = arith.constant 2 : index
    %c0_62 = arith.constant 0 : index
    %c0_63 = arith.constant 0 : index
    %62 = vector.load %arg3[%c2_61, %c0_62, %c0_63] : memref<16x128x128xbf16, #tpu.memory_space<vmem>>, vector<1x128x128xbf16>
    %63 = vector.shape_cast %62 : vector<1x128x128xbf16> to vector<128x128xbf16>
    %cst_64 = arith.constant dense<0.000000e+00> : vector<128x128xf32>
    %64 = tpu.matmul %61, %63, %cst_64 {dimension_numbers = #tpu.dot_dimension_numbers<[1], [0], [0], [1], [0, 0, 1, 1], [], []>} : vector<128x128xbf16>, vector<128x128xbf16>, vector<128x128xf32> -> vector<128x128xf32>
    %65 = arith.addf %59, %64 : vector<128x128xf32>
    %c0_65 = arith.constant 0 : index
    %c0_66 = arith.constant 0 : index
    %c0_67 = arith.constant 0 : index
    %c0_68 = arith.constant 0 : index
    %66 = vector.load %arg6[%c0_65, %c0_66, %c0_67, %c0_68] : memref<2x10x10x128xbf16, #tpu.memory_space<vmem>>, vector<2x8x8x128xbf16>
    %67 = vector.shape_cast %66 : vector<2x8x8x128xbf16> to vector<128x128xbf16>
    %c3_69 = arith.constant 3 : index
    %c0_70 = arith.constant 0 : index
    %c0_71 = arith.constant 0 : index
    %68 = vector.load %arg3[%c3_69, %c0_70, %c0_71] : memref<16x128x128xbf16, #tpu.memory_space<vmem>>, vector<1x128x128xbf16>
    %69 = vector.shape_cast %68 : vector<1x128x128xbf16> to vector<128x128xbf16>
    %cst_72 = arith.constant dense<0.000000e+00> : vector<128x128xf32>
    %70 = tpu.matmul %67, %69, %cst_72 {dimension_numbers = #tpu.dot_dimension_numbers<[1], [0], [0], [1], [0, 0, 1, 1], [], []>} : vector<128x128xbf16>, vector<128x128xbf16>, vector<128x128xf32> -> vector<128x128xf32>
    %71 = arith.addf %65, %70 : vector<128x128xf32>
    %cst_73 = arith.constant dense<0.000000e+00> : vector<128xf32>
    %72 = vector.multi_reduction <add>, %71, %cst_73 [0] : vector<128x128xf32> to vector<128xf32>
    %73 = vector.shape_cast %72 : vector<128xf32> to vector<1x128xf32>
    %74 = arith.addf %45, %73 : vector<1x128xf32>
    %75 = arith.mulf %71, %71 : vector<128x128xf32>
    %cst_74 = arith.constant dense<0.000000e+00> : vector<128xf32>
    %76 = vector.multi_reduction <add>, %75, %cst_74 [0] : vector<128x128xf32> to vector<128xf32>
    %77 = vector.shape_cast %76 : vector<128xf32> to vector<1x128xf32>
    %78 = arith.addf %46, %77 : vector<1x128xf32>
    %79 = arith.truncf %71 : vector<128x128xf32> to vector<128x128xbf16>
    %80 = vector.shape_cast %79 : vector<128x128xbf16> to vector<16x8x128xbf16>
    %c0_75 = arith.constant 0 : index
    %c0_76 = arith.constant 0 : index
    %c0_77 = arith.constant 0 : index
    %c0_78 = arith.constant 0 : index
    %81 = vector.load %arg4[%c0_75, %c0_76, %c0_77, %c0_78] : memref<16x2x8x256xbf16, #tpu.memory_space<vmem>>, vector<16x1x8x128xbf16>
    %82 = vector.shape_cast %81 : vector<16x1x8x128xbf16> to vector<16x8x128xbf16>
    %83 = vector.shape_cast %80 : vector<16x8x128xbf16> to vector<16x1x8x128xbf16>
    tpu.vector_store %arg4[%c0_75, %c0_76, %c0_77, %c0_78], %83 {strides = array<i32>} : memref<16x2x8x256xbf16, #tpu.memory_space<vmem>>, vector<16x1x8x128xbf16>,
    %cst_79 = arith.constant 0.000000e+00 : f32
    %84 = vector.broadcast %cst_79 : f32 to vector<128x128xf32>
    %c0_80 = arith.constant 0 : index
    %c1_81 = arith.constant 1 : index
    %c1_82 = arith.constant 1 : index
    %c0_83 = arith.constant 0 : index
    %85 = vector.load %arg6[%c0_80, %c1_81, %c1_82, %c0_83] : memref<2x10x10x128xbf16, #tpu.memory_space<vmem>>, vector<2x8x8x128xbf16>
    %86 = vector.shape_cast %85 : vector<2x8x8x128xbf16> to vector<128x128xbf16>
    %c4 = arith.constant 4 : index
    %c0_84 = arith.constant 0 : index
    %c0_85 = arith.constant 0 : index
    %87 = vector.load %arg3[%c4, %c0_84, %c0_85] : memref<16x128x128xbf16, #tpu.memory_space<vmem>>, vector<1x128x128xbf16>
    %88 = vector.shape_cast %87 : vector<1x128x128xbf16> to vector<128x128xbf16>
    %cst_86 = arith.constant dense<0.000000e+00> : vector<128x128xf32>
    %89 = tpu.matmul %86, %88, %cst_86 {dimension_numbers = #tpu.dot_dimension_numbers<[1], [0], [0], [1], [0, 0, 1, 1], [], []>} : vector<128x128xbf16>, vector<128x128xbf16>, vector<128x128xf32> -> vector<128x128xf32>
    %90 = arith.addf %84, %89 : vector<128x128xf32>
    %c0_87 = arith.constant 0 : index
    %c1_88 = arith.constant 1 : index
    %c2_89 = arith.constant 2 : index
    %c0_90 = arith.constant 0 : index
    %91 = vector.load %arg6[%c0_87, %c1_88, %c2_89, %c0_90] : memref<2x10x10x128xbf16, #tpu.memory_space<vmem>>, vector<2x8x8x128xbf16>
    %92 = vector.shape_cast %91 : vector<2x8x8x128xbf16> to vector<128x128xbf16>
    %c5 = arith.constant 5 : index
    %c0_91 = arith.constant 0 : index
    %c0_92 = arith.constant 0 : index
    %93 = vector.load %arg3[%c5, %c0_91, %c0_92] : memref<16x128x128xbf16, #tpu.memory_space<vmem>>, vector<1x128x128xbf16>
    %94 = vector.shape_cast %93 : vector<1x128x128xbf16> to vector<128x128xbf16>
    %cst_93 = arith.constant dense<0.000000e+00> : vector<128x128xf32>
    %95 = tpu.matmul %92, %94, %cst_93 {dimension_numbers = #tpu.dot_dimension_numbers<[1], [0], [0], [1], [0, 0, 1, 1], [], []>} : vector<128x128xbf16>, vector<128x128xbf16>, vector<128x128xf32> -> vector<128x128xf32>
    %96 = arith.addf %90, %95 : vector<128x128xf32>
    %c0_94 = arith.constant 0 : index
    %c0_95 = arith.constant 0 : index
    %c1_96 = arith.constant 1 : index
    %c0_97 = arith.constant 0 : index
    %97 = vector.load %arg6[%c0_94, %c0_95, %c1_96, %c0_97] : memref<2x10x10x128xbf16, #tpu.memory_space<vmem>>, vector<2x8x8x128xbf16>
    %98 = vector.shape_cast %97 : vector<2x8x8x128xbf16> to vector<128x128xbf16>
    %c6 = arith.constant 6 : index
    %c0_98 = arith.constant 0 : index
    %c0_99 = arith.constant 0 : index
    %99 = vector.load %arg3[%c6, %c0_98, %c0_99] : memref<16x128x128xbf16, #tpu.memory_space<vmem>>, vector<1x128x128xbf16>
    %100 = vector.shape_cast %99 : vector<1x128x128xbf16> to vector<128x128xbf16>
    %cst_100 = arith.constant dense<0.000000e+00> : vector<128x128xf32>
    %101 = tpu.matmul %98, %100, %cst_100 {dimension_numbers = #tpu.dot_dimension_numbers<[1], [0], [0], [1], [0, 0, 1, 1], [], []>} : vector<128x128xbf16>, vector<128x128xbf16>, vector<128x128xf32> -> vector<128x128xf32>
    %102 = arith.addf %96, %101 : vector<128x128xf32>
    %c0_101 = arith.constant 0 : index
    %c0_102 = arith.constant 0 : index
    %c2_103 = arith.constant 2 : index
    %c0_104 = arith.constant 0 : index
    %103 = vector.load %arg6[%c0_101, %c0_102, %c2_103, %c0_104] : memref<2x10x10x128xbf16, #tpu.memory_space<vmem>>, vector<2x8x8x128xbf16>
    %104 = vector.shape_cast %103 : vector<2x8x8x128xbf16> to vector<128x128xbf16>
    %c7 = arith.constant 7 : index
    %c0_105 = arith.constant 0 : index
    %c0_106 = arith.constant 0 : index
    %105 = vector.load %arg3[%c7, %c0_105, %c0_106] : memref<16x128x128xbf16, #tpu.memory_space<vmem>>, vector<1x128x128xbf16>
    %106 = vector.shape_cast %105 : vector<1x128x128xbf16> to vector<128x128xbf16>
    %cst_107 = arith.constant dense<0.000000e+00> : vector<128x128xf32>
    %107 = tpu.matmul %104, %106, %cst_107 {dimension_numbers = #tpu.dot_dimension_numbers<[1], [0], [0], [1], [0, 0, 1, 1], [], []>} : vector<128x128xbf16>, vector<128x128xbf16>, vector<128x128xf32> -> vector<128x128xf32>
    %108 = arith.addf %102, %107 : vector<128x128xf32>
    %cst_108 = arith.constant dense<0.000000e+00> : vector<128xf32>
    %109 = vector.multi_reduction <add>, %108, %cst_108 [0] : vector<128x128xf32> to vector<128xf32>
    %110 = vector.shape_cast %109 : vector<128xf32> to vector<1x128xf32>
    %111 = arith.addf %74, %110 : vector<1x128xf32>
    %112 = arith.mulf %108, %108 : vector<128x128xf32>
    %cst_109 = arith.constant dense<0.000000e+00> : vector<128xf32>
    %113 = vector.multi_reduction <add>, %112, %cst_109 [0] : vector<128x128xf32> to vector<128xf32>
    %114 = vector.shape_cast %113 : vector<128xf32> to vector<1x128xf32>
    %115 = arith.addf %78, %114 : vector<1x128xf32>
    %116 = arith.truncf %108 : vector<128x128xf32> to vector<128x128xbf16>
    %117 = vector.shape_cast %116 : vector<128x128xbf16> to vector<16x8x128xbf16>
    %c0_110 = arith.constant 0 : index
    %c0_111 = arith.constant 0 : index
    %c0_112 = arith.constant 0 : index
    %c128 = arith.constant 128 : index
    %118 = vector.load %arg4[%c0_110, %c0_111, %c0_112, %c128] : memref<16x2x8x256xbf16, #tpu.memory_space<vmem>>, vector<16x1x8x128xbf16>
    %119 = vector.shape_cast %118 : vector<16x1x8x128xbf16> to vector<16x8x128xbf16>
    %120 = vector.shape_cast %117 : vector<16x8x128xbf16> to vector<16x1x8x128xbf16>
    tpu.vector_store %arg4[%c0_110, %c0_111, %c0_112, %c128], %120 {strides = array<i32>} : memref<16x2x8x256xbf16, #tpu.memory_space<vmem>>, vector<16x1x8x128xbf16>,
    %cst_113 = arith.constant 0.000000e+00 : f32
    %121 = vector.broadcast %cst_113 : f32 to vector<128x128xf32>
    %c0_114 = arith.constant 0 : index
    %c1_115 = arith.constant 1 : index
    %c1_116 = arith.constant 1 : index
    %c0_117 = arith.constant 0 : index
    %122 = vector.load %arg6[%c0_114, %c1_115, %c1_116, %c0_117] : memref<2x10x10x128xbf16, #tpu.memory_space<vmem>>, vector<2x8x8x128xbf16>
    %123 = vector.shape_cast %122 : vector<2x8x8x128xbf16> to vector<128x128xbf16>
    %c8 = arith.constant 8 : index
    %c0_118 = arith.constant 0 : index
    %c0_119 = arith.constant 0 : index
    %124 = vector.load %arg3[%c8, %c0_118, %c0_119] : memref<16x128x128xbf16, #tpu.memory_space<vmem>>, vector<1x128x128xbf16>
    %125 = vector.shape_cast %124 : vector<1x128x128xbf16> to vector<128x128xbf16>
    %cst_120 = arith.constant dense<0.000000e+00> : vector<128x128xf32>
    %126 = tpu.matmul %123, %125, %cst_120 {dimension_numbers = #tpu.dot_dimension_numbers<[1], [0], [0], [1], [0, 0, 1, 1], [], []>} : vector<128x128xbf16>, vector<128x128xbf16>, vector<128x128xf32> -> vector<128x128xf32>
    %127 = arith.addf %121, %126 : vector<128x128xf32>
    %c0_121 = arith.constant 0 : index
    %c1_122 = arith.constant 1 : index
    %c0_123 = arith.constant 0 : index
    %c0_124 = arith.constant 0 : index
    %128 = vector.load %arg6[%c0_121, %c1_122, %c0_123, %c0_124] : memref<2x10x10x128xbf16, #tpu.memory_space<vmem>>, vector<2x8x8x128xbf16>
    %129 = vector.shape_cast %128 : vector<2x8x8x128xbf16> to vector<128x128xbf16>
    %c9_125 = arith.constant 9 : index
    %c0_126 = arith.constant 0 : index
    %c0_127 = arith.constant 0 : index
    %130 = vector.load %arg3[%c9_125, %c0_126, %c0_127] : memref<16x128x128xbf16, #tpu.memory_space<vmem>>, vector<1x128x128xbf16>
    %131 = vector.shape_cast %130 : vector<1x128x128xbf16> to vector<128x128xbf16>
    %cst_128 = arith.constant dense<0.000000e+00> : vector<128x128xf32>
    %132 = tpu.matmul %129, %131, %cst_128 {dimension_numbers = #tpu.dot_dimension_numbers<[1], [0], [0], [1], [0, 0, 1, 1], [], []>} : vector<128x128xbf16>, vector<128x128xbf16>, vector<128x128xf32> -> vector<128x128xf32>
    %133 = arith.addf %127, %132 : vector<128x128xf32>
    %c0_129 = arith.constant 0 : index
    %c2_130 = arith.constant 2 : index
    %c1_131 = arith.constant 1 : index
    %c0_132 = arith.constant 0 : index
    %134 = vector.load %arg6[%c0_129, %c2_130, %c1_131, %c0_132] : memref<2x10x10x128xbf16, #tpu.memory_space<vmem>>, vector<2x8x8x128xbf16>
    %135 = vector.shape_cast %134 : vector<2x8x8x128xbf16> to vector<128x128xbf16>
    %c10 = arith.constant 10 : index
    %c0_133 = arith.constant 0 : index
    %c0_134 = arith.constant 0 : index
    %136 = vector.load %arg3[%c10, %c0_133, %c0_134] : memref<16x128x128xbf16, #tpu.memory_space<vmem>>, vector<1x128x128xbf16>
    %137 = vector.shape_cast %136 : vector<1x128x128xbf16> to vector<128x128xbf16>
    %cst_135 = arith.constant dense<0.000000e+00> : vector<128x128xf32>
    %138 = tpu.matmul %135, %137, %cst_135 {dimension_numbers = #tpu.dot_dimension_numbers<[1], [0], [0], [1], [0, 0, 1, 1], [], []>} : vector<128x128xbf16>, vector<128x128xbf16>, vector<128x128xf32> -> vector<128x128xf32>
    %139 = arith.addf %133, %138 : vector<128x128xf32>
    %c0_136 = arith.constant 0 : index
    %c2_137 = arith.constant 2 : index
    %c0_138 = arith.constant 0 : index
    %c0_139 = arith.constant 0 : index
    %140 = vector.load %arg6[%c0_136, %c2_137, %c0_138, %c0_139] : memref<2x10x10x128xbf16, #tpu.memory_space<vmem>>, vector<2x8x8x128xbf16>
    %141 = vector.shape_cast %140 : vector<2x8x8x128xbf16> to vector<128x128xbf16>
    %c11 = arith.constant 11 : index
    %c0_140 = arith.constant 0 : index
    %c0_141 = arith.constant 0 : index
    %142 = vector.load %arg3[%c11, %c0_140, %c0_141] : memref<16x128x128xbf16, #tpu.memory_space<vmem>>, vector<1x128x128xbf16>
    %143 = vector.shape_cast %142 : vector<1x128x128xbf16> to vector<128x128xbf16>
    %cst_142 = arith.constant dense<0.000000e+00> : vector<128x128xf32>
    %144 = tpu.matmul %141, %143, %cst_142 {dimension_numbers = #tpu.dot_dimension_numbers<[1], [0], [0], [1], [0, 0, 1, 1], [], []>} : vector<128x128xbf16>, vector<128x128xbf16>, vector<128x128xf32> -> vector<128x128xf32>
    %145 = arith.addf %139, %144 : vector<128x128xf32>
    %cst_143 = arith.constant dense<0.000000e+00> : vector<128xf32>
    %146 = vector.multi_reduction <add>, %145, %cst_143 [0] : vector<128x128xf32> to vector<128xf32>
    %147 = vector.shape_cast %146 : vector<128xf32> to vector<1x128xf32>
    %148 = arith.addf %111, %147 : vector<1x128xf32>
    %149 = arith.mulf %145, %145 : vector<128x128xf32>
    %cst_144 = arith.constant dense<0.000000e+00> : vector<128xf32>
    %150 = vector.multi_reduction <add>, %149, %cst_144 [0] : vector<128x128xf32> to vector<128xf32>
    %151 = vector.shape_cast %150 : vector<128xf32> to vector<1x128xf32>
    %152 = arith.addf %115, %151 : vector<1x128xf32>
    %153 = arith.truncf %145 : vector<128x128xf32> to vector<128x128xbf16>
    %154 = vector.shape_cast %153 : vector<128x128xbf16> to vector<16x8x128xbf16>
    %c0_145 = arith.constant 0 : index
    %c1_146 = arith.constant 1 : index
    %c0_147 = arith.constant 0 : index
    %c0_148 = arith.constant 0 : index
    %155 = vector.load %arg4[%c0_145, %c1_146, %c0_147, %c0_148] : memref<16x2x8x256xbf16, #tpu.memory_space<vmem>>, vector<16x1x8x128xbf16>
    %156 = vector.shape_cast %155 : vector<16x1x8x128xbf16> to vector<16x8x128xbf16>
    %157 = vector.shape_cast %154 : vector<16x8x128xbf16> to vector<16x1x8x128xbf16>
    tpu.vector_store %arg4[%c0_145, %c1_146, %c0_147, %c0_148], %157 {strides = array<i32>} : memref<16x2x8x256xbf16, #tpu.memory_space<vmem>>, vector<16x1x8x128xbf16>,
    %cst_149 = arith.constant 0.000000e+00 : f32
    %158 = vector.broadcast %cst_149 : f32 to vector<128x128xf32>
    %c0_150 = arith.constant 0 : index
    %c1_151 = arith.constant 1 : index
    %c1_152 = arith.constant 1 : index
    %c0_153 = arith.constant 0 : index
    %159 = vector.load %arg6[%c0_150, %c1_151, %c1_152, %c0_153] : memref<2x10x10x128xbf16, #tpu.memory_space<vmem>>, vector<2x8x8x128xbf16>
    %160 = vector.shape_cast %159 : vector<2x8x8x128xbf16> to vector<128x128xbf16>
    %c12 = arith.constant 12 : index
    %c0_154 = arith.constant 0 : index
    %c0_155 = arith.constant 0 : index
    %161 = vector.load %arg3[%c12, %c0_154, %c0_155] : memref<16x128x128xbf16, #tpu.memory_space<vmem>>, vector<1x128x128xbf16>
    %162 = vector.shape_cast %161 : vector<1x128x128xbf16> to vector<128x128xbf16>
    %cst_156 = arith.constant dense<0.000000e+00> : vector<128x128xf32>
    %163 = tpu.matmul %160, %162, %cst_156 {dimension_numbers = #tpu.dot_dimension_numbers<[1], [0], [0], [1], [0, 0, 1, 1], [], []>} : vector<128x128xbf16>, vector<128x128xbf16>, vector<128x128xf32> -> vector<128x128xf32>
    %164 = arith.addf %158, %163 : vector<128x128xf32>
    %c0_157 = arith.constant 0 : index
    %c1_158 = arith.constant 1 : index
    %c2_159 = arith.constant 2 : index
    %c0_160 = arith.constant 0 : index
    %165 = vector.load %arg6[%c0_157, %c1_158, %c2_159, %c0_160] : memref<2x10x10x128xbf16, #tpu.memory_space<vmem>>, vector<2x8x8x128xbf16>
    %166 = vector.shape_cast %165 : vector<2x8x8x128xbf16> to vector<128x128xbf16>
    %c13 = arith.constant 13 : index
    %c0_161 = arith.constant 0 : index
    %c0_162 = arith.constant 0 : index
    %167 = vector.load %arg3[%c13, %c0_161, %c0_162] : memref<16x128x128xbf16, #tpu.memory_space<vmem>>, vector<1x128x128xbf16>
    %168 = vector.shape_cast %167 : vector<1x128x128xbf16> to vector<128x128xbf16>
    %cst_163 = arith.constant dense<0.000000e+00> : vector<128x128xf32>
    %169 = tpu.matmul %166, %168, %cst_163 {dimension_numbers = #tpu.dot_dimension_numbers<[1], [0], [0], [1], [0, 0, 1, 1], [], []>} : vector<128x128xbf16>, vector<128x128xbf16>, vector<128x128xf32> -> vector<128x128xf32>
    %170 = arith.addf %164, %169 : vector<128x128xf32>
    %c0_164 = arith.constant 0 : index
    %c2_165 = arith.constant 2 : index
    %c1_166 = arith.constant 1 : index
    %c0_167 = arith.constant 0 : index
    %171 = vector.load %arg6[%c0_164, %c2_165, %c1_166, %c0_167] : memref<2x10x10x128xbf16, #tpu.memory_space<vmem>>, vector<2x8x8x128xbf16>
    %172 = vector.shape_cast %171 : vector<2x8x8x128xbf16> to vector<128x128xbf16>
    %c14 = arith.constant 14 : index
    %c0_168 = arith.constant 0 : index
    %c0_169 = arith.constant 0 : index
    %173 = vector.load %arg3[%c14, %c0_168, %c0_169] : memref<16x128x128xbf16, #tpu.memory_space<vmem>>, vector<1x128x128xbf16>
    %174 = vector.shape_cast %173 : vector<1x128x128xbf16> to vector<128x128xbf16>
    %cst_170 = arith.constant dense<0.000000e+00> : vector<128x128xf32>
    %175 = tpu.matmul %172, %174, %cst_170 {dimension_numbers = #tpu.dot_dimension_numbers<[1], [0], [0], [1], [0, 0, 1, 1], [], []>} : vector<128x128xbf16>, vector<128x128xbf16>, vector<128x128xf32> -> vector<128x128xf32>
    %176 = arith.addf %170, %175 : vector<128x128xf32>
    %c0_171 = arith.constant 0 : index
    %c2_172 = arith.constant 2 : index
    %c2_173 = arith.constant 2 : index
    %c0_174 = arith.constant 0 : index
    %177 = vector.load %arg6[%c0_171, %c2_172, %c2_173, %c0_174] : memref<2x10x10x128xbf16, #tpu.memory_space<vmem>>, vector<2x8x8x128xbf16>
    %178 = vector.shape_cast %177 : vector<2x8x8x128xbf16> to vector<128x128xbf16>
    %c15 = arith.constant 15 : index
    %c0_175 = arith.constant 0 : index
    %c0_176 = arith.constant 0 : index
    %179 = vector.load %arg3[%c15, %c0_175, %c0_176] : memref<16x128x128xbf16, #tpu.memory_space<vmem>>, vector<1x128x128xbf16>
    %180 = vector.shape_cast %179 : vector<1x128x128xbf16> to vector<128x128xbf16>
    %cst_177 = arith.constant dense<0.000000e+00> : vector<128x128xf32>
    %181 = tpu.matmul %178, %180, %cst_177 {dimension_numbers = #tpu.dot_dimension_numbers<[1], [0], [0], [1], [0, 0, 1, 1], [], []>} : vector<128x128xbf16>, vector<128x128xbf16>, vector<128x128xf32> -> vector<128x128xf32>
    %182 = arith.addf %176, %181 : vector<128x128xf32>
    %cst_178 = arith.constant dense<0.000000e+00> : vector<128xf32>
    %183 = vector.multi_reduction <add>, %182, %cst_178 [0] : vector<128x128xf32> to vector<128xf32>
    %184 = vector.shape_cast %183 : vector<128xf32> to vector<1x128xf32>
    %185 = arith.addf %148, %184 : vector<1x128xf32>
    %186 = arith.mulf %182, %182 : vector<128x128xf32>
    %cst_179 = arith.constant dense<0.000000e+00> : vector<128xf32>
    %187 = vector.multi_reduction <add>, %186, %cst_179 [0] : vector<128x128xf32> to vector<128xf32>
    %188 = vector.shape_cast %187 : vector<128xf32> to vector<1x128xf32>
    %189 = arith.addf %152, %188 : vector<1x128xf32>
    %190 = arith.truncf %182 : vector<128x128xf32> to vector<128x128xbf16>
    %191 = vector.shape_cast %190 : vector<128x128xbf16> to vector<16x8x128xbf16>
    %c0_180 = arith.constant 0 : index
    %c1_181 = arith.constant 1 : index
    %c0_182 = arith.constant 0 : index
    %c128_183 = arith.constant 128 : index
    %192 = vector.load %arg4[%c0_180, %c1_181, %c0_182, %c128_183] : memref<16x2x8x256xbf16, #tpu.memory_space<vmem>>, vector<16x1x8x128xbf16>
    %193 = vector.shape_cast %192 : vector<16x1x8x128xbf16> to vector<16x8x128xbf16>
    %194 = vector.shape_cast %191 : vector<16x8x128xbf16> to vector<16x1x8x128xbf16>
    tpu.vector_store %arg4[%c0_180, %c1_181, %c0_182, %c128_183], %194 {strides = array<i32>} : memref<16x2x8x256xbf16, #tpu.memory_space<vmem>>, vector<16x1x8x128xbf16>,
    %c0_184 = arith.constant 0 : index
    %c0_185 = arith.constant 0 : index
    %c0_186 = arith.constant 0 : index
    %195 = vector.load %arg5[%c0_184, %c0_185, %c0_186] : memref<1x2x128xf32, #tpu.memory_space<vmem>>, vector<1x1x128xf32>
    %196 = vector.shape_cast %195 : vector<1x1x128xf32> to vector<1x128xf32>
    %197 = vector.shape_cast %185 : vector<1x128xf32> to vector<1x1x128xf32>
    tpu.vector_store %arg5[%c0_184, %c0_185, %c0_186], %197 {strides = array<i32>} : memref<1x2x128xf32, #tpu.memory_space<vmem>>, vector<1x1x128xf32>,
    %c0_187 = arith.constant 0 : index
    %c1_188 = arith.constant 1 : index
    %c0_189 = arith.constant 0 : index
    %198 = vector.load %arg5[%c0_187, %c1_188, %c0_189] : memref<1x2x128xf32, #tpu.memory_space<vmem>>, vector<1x1x128xf32>
    %199 = vector.shape_cast %198 : vector<1x1x128xf32> to vector<1x128xf32>
    %200 = vector.shape_cast %189 : vector<1x128xf32> to vector<1x1x128xf32>
    tpu.vector_store %arg5[%c0_187, %c1_188, %c0_189], %200 {strides = array<i32>} : memref<1x2x128xf32, #tpu.memory_space<vmem>>, vector<1x1x128xf32>,
    return
  }
  func.func @transform_0(%arg0: i32) -> (i32, i32, i32, i32) {
    %c0_i32 = arith.constant 0 : i32
    %c0_i32_0 = arith.constant 0 : i32
    %c0_i32_1 = arith.constant 0 : i32
    %c0_i32_2 = arith.constant 0 : i32
    return %arg0, %c0_i32, %c0_i32_0, %c0_i32_1 : i32, i32, i32, i32
  }
  func.func @transform_1(%arg0: i32) -> (i32, i32, i32) {
    %c0_i32 = arith.constant 0 : i32
    %c0_i32_0 = arith.constant 0 : i32
    %c0_i32_1 = arith.constant 0 : i32
    %c0_i32_2 = arith.constant 0 : i32
    return %c0_i32, %c0_i32_0, %c0_i32_1 : i32, i32, i32
  }
  func.func @transform_2(%arg0: i32) -> (i32, i32, i32) {
    %c0_i32 = arith.constant 0 : i32
    %c0_i32_0 = arith.constant 0 : i32
    %c0_i32_1 = arith.constant 0 : i32
    %c0_i32_2 = arith.constant 0 : i32
    return %c0_i32, %c0_i32_0, %c0_i32_1 : i32, i32, i32
  }
  func.func @transform_3(%arg0: i32) -> (i32, i32, i32, i32) {
    %c0_i32 = arith.constant 0 : i32
    %c0_i32_0 = arith.constant 0 : i32
    %c0_i32_1 = arith.constant 0 : i32
    %c0_i32_2 = arith.constant 0 : i32
    return %arg0, %c0_i32, %c0_i32_0, %c0_i32_1 : i32, i32, i32, i32
  }
  func.func @transform_4(%arg0: i32) -> (i32, i32, i32) {
    %c0_i32 = arith.constant 0 : i32
    %c0_i32_0 = arith.constant 0 : i32
    %c0_i32_1 = arith.constant 0 : i32
    return %arg0, %c0_i32, %c0_i32_0 : i32, i32, i32
  }
}

module attributes {stable_mosaic.version = 11 : i64} {
  func.func @_bn_apply_kernel(%arg0: i32, %arg1: memref<256x256xbf16, #tpu.memory_space<vmem>>, %arg2: memref<1x256xf32, #tpu.memory_space<vmem>>, %arg3: memref<1x256xf32, #tpu.memory_space<vmem>>, %arg4: memref<256x8xf32, #tpu.memory_space<vmem>>) attributes {dimension_semantics = [#tpu.dimension_semantics<parallel>], iteration_bounds = array<i64: 1>, scalar_prefetch = 0 : i64, scratch_operands = 0 : i64, tpu.core_type = #tpu.core_type<tc>, window_params = [{transform_indices = @transform_0, window_bounds = array<i64: 256, 256>}, {pipeline_mode = #tpu.pipeline_mode<synchronous>, transform_indices = @transform_1, window_bounds = array<i64: 1, 256>}, {pipeline_mode = #tpu.pipeline_mode<synchronous>, transform_indices = @transform_2, window_bounds = array<i64: 1, 256>}, {transform_indices = @transform_3, window_bounds = array<i64: 256, 8>}]} {
    %c0 = arith.constant 0 : index
    %c0_0 = arith.constant 0 : index
    %0 = vector.load %arg1[%c0, %c0_0] : memref<256x256xbf16, #tpu.memory_space<vmem>>, vector<256x256xbf16>
    %1 = arith.extf %0 : vector<256x256xbf16> to vector<256x256xf32>
    %c0_1 = arith.constant 0 : index
    %c0_2 = arith.constant 0 : index
    %2 = vector.load %arg2[%c0_1, %c0_2] : memref<1x256xf32, #tpu.memory_space<vmem>>, vector<1x256xf32>
    %3 = vector.broadcast %2 : vector<1x256xf32> to vector<256x256xf32>
    %4 = arith.subf %1, %3 : vector<256x256xf32>
    %c0_3 = arith.constant 0 : index
    %c0_4 = arith.constant 0 : index
    %5 = vector.load %arg3[%c0_3, %c0_4] : memref<1x256xf32, #tpu.memory_space<vmem>>, vector<1x256xf32>
    %6 = vector.broadcast %5 : vector<1x256xf32> to vector<256x256xf32>
    %7 = arith.mulf %4, %6 : vector<256x256xf32>
    %8 = vector.extract_strided_slice %7 {offsets = [0, 0], sizes = [256, 4], strides = [1, 1]} : vector<256x256xf32> to vector<256x4xf32>
    %c0_5 = arith.constant 0 : index
    %c0_6 = arith.constant 0 : index
    %9 = vector.load %arg4[%c0_5, %c0_6] : memref<256x8xf32, #tpu.memory_space<vmem>>, vector<256x4xf32>
    tpu.vector_store %arg4[%c0_5, %c0_6], %8 {strides = array<i32>} : memref<256x8xf32, #tpu.memory_space<vmem>>, vector<256x4xf32>,
    %10 = vector.extract_strided_slice %7 {offsets = [0, 128], sizes = [256, 4], strides = [1, 1]} : vector<256x256xf32> to vector<256x4xf32>
    %c0_7 = arith.constant 0 : index
    %c4 = arith.constant 4 : index
    %11 = vector.load %arg4[%c0_7, %c4] : memref<256x8xf32, #tpu.memory_space<vmem>>, vector<256x4xf32>
    tpu.vector_store %arg4[%c0_7, %c4], %10 {strides = array<i32>} : memref<256x8xf32, #tpu.memory_space<vmem>>, vector<256x4xf32>,
    return
  }
  func.func @transform_0(%arg0: i32) -> (i32, i32) {
    %c0_i32 = arith.constant 0 : i32
    %c0_i32_0 = arith.constant 0 : i32
    return %arg0, %c0_i32 : i32, i32
  }
  func.func @transform_1(%arg0: i32) -> (i32, i32) {
    %c0_i32 = arith.constant 0 : i32
    %c0_i32_0 = arith.constant 0 : i32
    %c0_i32_1 = arith.constant 0 : i32
    return %c0_i32, %c0_i32_0 : i32, i32
  }
  func.func @transform_2(%arg0: i32) -> (i32, i32) {
    %c0_i32 = arith.constant 0 : i32
    %c0_i32_0 = arith.constant 0 : i32
    %c0_i32_1 = arith.constant 0 : i32
    return %c0_i32, %c0_i32_0 : i32, i32
  }
  func.func @transform_3(%arg0: i32) -> (i32, i32) {
    %c0_i32 = arith.constant 0 : i32
    %c0_i32_0 = arith.constant 0 : i32
    return %arg0, %c0_i32 : i32, i32
  }
}

</mosaic_0001>

<bundles_post_ra>
// kernel: tpu_custom_call.1
= control target key start
LH: loop header
LB: loop body
LE: loop exit
PB: predicated region body
PF: predicated region fallthrough
CT: control target
= control target key end

     0   :  { %7 = vsyncpa [#allocation3], 0  ;;  %s649_s0 = inlined_call_operand.hbm [shape: f32[16,128], index: 0, kind: input, shape index: {}]   ;;  %s650_s1 = inlined_call_operand.hbm [shape: f32[8,128], index: 1, kind: input, shape index: {}]   ;;  %s651_s2 = inlined_call_operand.hbm [shape: f32[16,128], index: 2, kind: output, shape index: {}]  }
   0x1   :  { %9 = vsyncpa [#allocation3 + $0x1], 0 }
   0x2   :  { %10 = vsyncpa [#allocation6], 0 }
   0x3   :  { %11 = vsyncpa [#allocation4], 0 }
   0x4   :  { %13 = vsyncpa [#allocation4 + $0x1], 0  ;;  %s483_s9 = smov 0   ;;  %s485_s10 = smov 0  }
   0x5   :  { %s487_s11 = smov 0   ;;  %s489_s12 = smov 0  }
   0x6 LB: > { %s504_s13 = sadd.s32 4294967295, %s463_s12   ;;  %s270_s14 = sadd.s32 4294967294, %s463_s12   ;;  %s463_s12 = sphi %s489_s12, %s674_s12   ;;  %s459_s11 = sphi %s487_s11, %s673_s11   ;;  %s455_s10 = sphi %s485_s10, %s672_s10   ;;  %s451_s9 = sphi %s483_s9, %s671_s9  }
   0x7   : > { %p39_p0 = scmp.ne.s32.totalorder %s455_s10, %s451_s9  ;;  %p652_p1 = scmp.eq.s32.totalorder %s504_s13, 0 }
   0x8   : > { %p90_p3 = scmp.eq.s32.totalorder %s270_s14, 1  ;;  %p271_p5 = scmp.ge.s32.totalorder %s463_s12, 1 }
   0x9   : > { %p513_p4 = por %p652_p1, %p39_p0  ;;  %p97_p7 = scmp.lt.s32.totalorder %s463_s12, 3 }
   0xa   : > { %p518_p6 = por %p90_p3, %p39_p0  ;;  %s465_s18 = smov [#allocation5]  }
   0xb   : > { %s656_s15 = scalar_select %p513_p4, 1, 0 }
   0xc   : > { %s657_s16 = scalar_select %p518_p6, 1, 0 }
   0xd   : > { %p523_p8 = pnand %p271_p5, %p97_p7  ;;  %s110_s19 = sshll.u32 %s465_s18, 4  ;;  %s111_s19 = int_to_ptr.vmem [resolvable:$true] %s110_s19 }
   0xe   : > { %s531_s20 = sadd.s32 1, %s463_s12   ;;  %s26_s24 = sadd.s32 1, %s459_s11 }
   0xf   : > { %s658_s17 = scalar_select %p523_p8, 1, 0 }
  0x10   : > { %p292_p10 = pneg %p523_p8  ;;  %s23_s22 = ssub.s32 %s463_s12, %s531_s20 }
  0x11   : > { %p541_p12 = scmp.eq.s32.totalorder %s23_s22, 0  ;;  %p33_p13 = scmp.ne.s32.totalorder %s459_s11, %s455_s10 }
  0x12   : > { %p535_p11 = pnand %p292_p10, %p652_p1  ;;  %s352_s25 = scalar_lea.vmem %s111_s19, 128 }
  0x13   : > { %p353_p3 = scmp.ne.s32.totalorder %s111_s19, %s352_s25  ;;  %p360_p9 = scmp.lt.s32.totalorder %s111_s19, %s111_s19 }
  0x14   : > { %p343_p0 = pneg %p535_p11  ;;  %p361_p2 = scmp.lt.s32.totalorder %s352_s25, %s352_s25 }
  0x16   : > { %p355_p5 = pnand %p353_p3, %p343_p0  ;;  %p362_p10 = por %p361_p2, %p360_p9 }
  0x18   : > { %p356_p7 = pneg %p355_p5 }
  0x1a   : > { %p363_p1 = pnand %p362_p10, %p356_p7 }
  0x1c   : > { %366 = shalt.err (!%p363_p1)
}
  0x1d   : > { %295 = dma.hbm_to_vmem [thread:$0]  (!%p535_p11), %s650_s1, 128, %s111_s19, [#allocation6]  }
  0x1e   : > { %s558_s28 = scalar_select %p541_p12, %s459_s11, %s26_s24  }
  0x1f   : > { %p34_p1 = scmp.eq.s32.totalorder %s463_s12, 0  ;;  %p661_p2 = scmp.eq.s32.totalorder %s504_s13, 1 }
  0x20   : > { %p305_p0 = scmp.lt.s32.totalorder %s463_s12, 2  ;;  %s121_s30 = sand.u32 1, %s459_s11  }
  0x21   : > { %p566_p9 = por %p661_p2, %p33_p13  ;;  %p35_p3 = por %p34_p1, %p33_p13 }
  0x22   : > { %s274_s3 = sshll.u32 %s121_s30, 3  ;;  %s275_s4 = sshll.u32 %s463_s12, 7 }
  0x23   : > { %s662_s29 = scalar_select %p566_p9, 1, 0 }
  0x24   : > { %s579_s7 = scalar_lea.hbm %s649_s0, %s275_s4  ;;  %s125_s8 = scalar_lea.vmem [#allocation2], %s274_s3 }
  0x25   : > { %s132_s14 = sshll.u32 %s125_s8, 4  ;;  %p581_p11 = pnand %p305_p0, %p35_p3  ;;  %s133_s14 = int_to_ptr.vmem [resolvable:$true] %s132_s14 }
  0x26   : > { %s122_s19 = scalar_lea.sflag [#allocation3], %s121_s30  ;;  %s367_s21 = scalar_lea.hbm %s579_s7, 128 }
  0x27   : > { %p368_p12 = scmp.ne.s32.totalorder %s579_s7, %s367_s21  ;;  %p369_p13 = pneg %p581_p11 }
  0x28   : > { %s372_s24 = scalar_lea.hbm %s649_s0, 256  ;;  %p373_p10 = scmp.lt.s32.totalorder %s579_s7, %s649_s0 }
  0x29   : > { %p370_p5 = pnand %p369_p13, %p368_p12  ;;  %p374_p1 = scmp.lt.s32.totalorder %s372_s24, %s367_s21 }
  0x2b   : > { %p371_p7 = pneg %p370_p5  ;;  %p375_p2 = por %p374_p1, %p373_p10 }
  0x2d   : > { %p376_p0 = pnand %p375_p2, %p371_p7 }
  0x2f   : > { %379 = shalt.err (!%p376_p0)
}
  0x30   : > { %s380_s27 = scalar_lea.vmem %s133_s14, 128  ;;  %s466_s30 = smov [#allocation2]  }
  0x31   : > { %p381_p3 = scmp.ne.s32.totalorder %s133_s14, %s380_s27  ;;  %s385_s3 = sshll.u32 %s466_s30, 4  ;;  %s386_s3 = int_to_ptr.vmem [resolvable:$false] %s385_s3 }
  0x32   : > { %s387_s4 = scalar_lea.vmem %s386_s3, 256  ;;  %p388_p12 = scmp.lt.s32.totalorder %s133_s14, %s386_s3 }
  0x33   : > { %p383_p6 = pnand %p381_p3, %p369_p13  ;;  %p389_p5 = scmp.lt.s32.totalorder %s387_s4, %s380_s27 }
  0x35   : > { %p384_p9 = pneg %p383_p6  ;;  %p390_p4 = por %p389_p5, %p388_p12 }
  0x37   : > { %p391_p8 = pnand %p390_p4, %p384_p9 }
  0x39   : > { %394 = shalt.err (!%p391_p8)
}
  0x3a   : > { %299 = dma.hbm_to_vmem [thread:$0]  (!%p581_p11), %s579_s7, 128, %s133_s14, %s122_s19  }
  0x3b   : > { %p664_p7 = scmp.ne.s32.totalorder %s658_s17, 0 }
  0x3c   : > { %s602_s5 = sand.u32 (!%p664_p7), 1, %s455_s10   ;;  %p665_p6 = scmp.ne.s32.totalorder (!%p664_p7), %s656_s15, 0 }
  0x3d   : > { %141 = sbr.rel (%p664_p7) target bundleno = 95 (0x5f), region = 28  ;;  %s277_s6 = sshll.u32 (!%p664_p7), %s602_s5, 3 }
  0x3e   : > { %s144_s8 = scalar_lea.sflag (!%p664_p7), [#allocation3], %s602_s5  ;;  %s147_s21 = scalar_lea.vmem (!%p664_p7), [#allocation2], %s277_s6 }
  0x42   : > { %438 = dma.done.wait (%p665_p6), %s144_s8, 128  }
  0x43   : > { %440 = vsyncadd (%p665_p6), %s144_s8, 4294967168  ;;  %p666_p4 = scmp.eq.s32.totalorder %s504_s13, 0 }
  0x45   : > { %442 = dma.done.wait (%p666_p4), [#allocation6], 128   ;;  %p667_p8 = pmov %p666_p4 }
  0x46   : > { %s171_s17 = scalar_lea.vmem [#allocation7], %s277_s6  ;;  %s281_s14 = sshll.u32 %s504_s13, 7  ;;  %v172_v0 = vld [vmem:[%s147_s21] sm:$0xff]  ;;  %v173_v1 = vld [vmem:[#allocation5] sm:$0xff] }
  0x47   : > { %444 = vsyncadd (%p667_p8), [#allocation6], 4294967168  ;;  %s190_s7 = sshll.u32 %s171_s17, 4  ;;  %v174_v2 = vadd.f32 %v173_v1, %v172_v0  ;;  %s188_s15 = scalar_lea.hbm %s651_s2, %s281_s14  ;;  %s191_s7 = int_to_ptr.vmem [resolvable:$true] %s190_s7 }
  0x48   : > { %s177_s22 = scalar_lea.sflag [#allocation4], %s602_s5  ;;  %s395_s23 = scalar_lea.vmem %s191_s7, 128 }
  0x49   : > { %175 = vst [vmem:[%s171_s17] sm:$0xff] %v174_v2  ;;  %p396_p9 = scmp.ne.s32.totalorder %s191_s7, %s395_s23  ;;  %p668_p11 = scmp.ne.s32.totalorder %s662_s29, 0 }
  0x4a   : > { %s467_s24 = smov [#allocation7]  }
  0x4b   : > { %p397_p13 = pnand %p396_p9, %p668_p11  ;;  %s399_s25 = sshll.u32 %s467_s24, 4  ;;  %s400_s25 = int_to_ptr.vmem [resolvable:$false] %s399_s25 }
  0x4c   : > { %s401_s26 = scalar_lea.vmem %s400_s25, 256  ;;  %p402_p1 = scmp.lt.s32.totalorder %s191_s7, %s400_s25 }
  0x4d   : > { %p398_p10 = pneg %p397_p13  ;;  %p403_p2 = scmp.lt.s32.totalorder %s401_s26, %s395_s23 }
  0x4f   : > { %p404_p0 = por %p403_p2, %p402_p1 }
  0x51   : > { %p405_p3 = pnand %p404_p0, %p398_p10 }
  0x53   : > { %408 = shalt.err (!%p405_p3)
}
  0x54   : > { %s409_s13 = scalar_lea.hbm %s188_s15, 128  ;;  %s413_s3 = scalar_lea.hbm %s651_s2, 256 }
  0x55   : > { %p410_p12 = scmp.ne.s32.totalorder %s188_s15, %s409_s13  ;;  %p414_p6 = scmp.lt.s32.totalorder %s188_s15, %s651_s2 }
  0x56   : > { %p415_p4 = scmp.lt.s32.totalorder %s413_s3, %s409_s13 }
  0x57   : > { %p411_p5 = pnand %p410_p12, %p668_p11 }
  0x58   : > { %p416_p8 = por %p415_p4, %p414_p6 }
  0x59   : > { %p412_p7 = pneg %p411_p5 }
  0x5b   : > { %p417_p9 = pnand %p416_p8, %p412_p7 }
  0x5d   : > { %420 = shalt.err (!%p417_p9)
}
  0x5e   : > { %290 = dma.vmem_to_hbm [thread:$0]  (%p668_p11), %s191_s7, 128, %s188_s15, %s177_s22  }
  0x5f PF: > { %s202_s6 = sand.u32 1, %s451_s9   ;;  %p669_p13 = scmp.ne.s32.totalorder %s657_s16, 0 }
  0x60   : > { %p670_p10 = scmp.ge.s32.totalorder %s463_s12, 2  ;;  %s203_s8 = scalar_lea.sflag [#allocation4], %s202_s6 }
  0x62   : > { %p301_p1 = pnand %p670_p10, %p669_p13 }
  0x64   : > { %p302_p2 = pneg %p301_p1 }
  0x66   : > { %446 = dma.done.wait (%p302_p2), %s203_s8, 128  }
  0x67   : > { %448 = vsyncadd (%p302_p2), %s203_s8, 4294967168  ;;  %p16_p0 = scmp.ge.s32.totalorder %s531_s20, 4   ;;  %s671_s9 = smov %s455_s10 }
  0x68   : > { %s672_s10 = smov %s459_s11  ;;  %s673_s11 = smov %s558_s28 }
  0x69   : > { %s674_s12 = smov %s531_s20  ;;  %18 = sbr.rel (!%p16_p0) target bundleno = 6 (0x6), region = 77 }
  0x6e   :  { %208 = vsyncpa [#allocation3], 1 }
  0x6f   :  { %210 = vsyncpa [#allocation3 + $0x1], 1 }
  0x70   :  { %211 = vsyncpa [#allocation6], 1 }
  0x71   :  { %212 = vsyncpa [#allocation4], 1 }
  0x72   :  { %214 = vsyncpa [#allocation4 + $0x1], 1 }

// kernel: tile.13
= control target key start
LH: loop header
LB: loop body
LE: loop exit
PB: predicated region body
PF: predicated region fallthrough
CT: control target
= control target key end

     0   :  { %s22_s0 = inlined_call_operand.vmem [shape: f32[128], index: 0, kind: input, shape index: {}]   ;;  %s23_s1 = inlined_call_operand.vmem [shape: f32[2,128], index: 1, kind: output, shape index: {}]  }
   0x1   :  { %v4_v0 = vld [vmem:[%s22_s0] ss:$0 sm:$0xff] }
   0x2   :  { %5 = vst [vmem:[%s23_s1] sm:$0x3] %v4_v0 }

// kernel: unet_skip_block_innermost.3
= control target key start
LH: loop header
LB: loop body
LE: loop exit
PB: predicated region body
PF: predicated region fallthrough
CT: control target
= control target key end

     0   :  { %v112_v0 = vlaneseq  ;;  %vm262_vm0 = vcmask 31744   ;;  %s461_s30 = smov 4   ;;  %vm423_vm1 = vcmask 64544   ;;  %s1131_s0 = inlined_call_operand.vmem [shape: bf16[256,256], index: 0, kind: input, shape index: {}]   ;;  %s1132_s1 = inlined_call_operand.vmem [shape: f32[1,256], index: 1, kind: input, shape index: {}]   ;;  %s1133_s2 = inlined_call_operand.vmem [shape: f32[1,256], index: 2, kind: input, shape index: {}]   ;;  %s1134_s3 = inlined_call_operand.vmem [shape: f32[256,8], index: 3, kind: output, shape index: {}]  }
   0x1   :  { %v16_v1 = vld [vmem:[%s1131_s0 + $0x10] sm:$0xff]  ;;  %v14_v3 = vld [vmem:[%s1131_s0] sm:$0xff]  ;;  %v491_v4 = vld [vmem:[%s1131_s0 + $0x18] sm:$0xff] }
   0x2   :  { %v113_v2 = vshrl.u32 %v112_v0, 7  ;;  %v496_v5 = vld [vmem:[%s1131_s0 + $0x8] sm:$0xff]  ;;  %v51_v6 = vunpack.c.h.bf16 %v16_v1  ;;  %v110_v7 = vld [vmem:[%s1132_s1] sm:$0x3]  ;;  %v50_v9 = vunpack.c.l.bf16 %v16_v1  ;;  %v47_v12 = vunpack.c.h.bf16 %v14_v3  ;;  %v21_v28 = vld [vmem:[%s1131_s0 + $0x38] sm:$0xff] }
   0x3   :  { %v186_v8 = vld [vmem:[%s1133_s2] sm:$0x3]  ;;  %v46_v13 = vunpack.c.l.bf16 %v14_v3  ;;  %v507_v14 = vld [vmem:[%s1131_s0 + $0x28] sm:$0xff]  ;;  %v53_v16 = vunpack.c.h.bf16 %v491_v4  ;;  %v49_v17 = vunpack.c.h.bf16 %v496_v5  ;;  %v20_v31 = vld [vmem:[%s1131_s0 + $0x30] sm:$0xff]  ;;  %v61_v37 = vunpack.c.h.bf16 %v21_v28 }
   0x4   :  { %v114_v10 = vsub.s32 0, %v113_v2  ;;  %v118_v11 = vsub.s32 1, %v113_v2  ;;  %v512_v15 = vld [vmem:[%s1131_s0 + $0x20] sm:$0xff]  ;;  %v57_v22 = vunpack.c.h.bf16 %v507_v14  ;;  %v59_v41 = vunpack.c.h.bf16 %v20_v31  ;;  %v23_v42 = vld [vmem:[%s1131_s0 + $0x48] sm:$0xff]  ;;  %v25_v53 = vld [vmem:[%s1131_s0 + $0x58] sm:$0xff] }
   0x5   :  { %v55_v23 = vunpack.c.h.bf16 %v512_v15  ;;  %v22_v43 = vld [vmem:[%s1131_s0 + $0x40] sm:$0xff]  ;;  %v52_v44 = vunpack.c.l.bf16 %v491_v4  ;;  %v48_v45 = vunpack.c.l.bf16 %v496_v5  ;;  %v65_v47 = vunpack.c.h.bf16 %v23_v42  ;;  %v24_v54 = vld [vmem:[%s1131_s0 + $0x50] sm:$0xff]  ;;  %v27_v58 = vld [vmem:[%s1131_s0 + $0x68] sm:$0xff] }
   0x6   :  { %v516_v18 = vrot.slane %v110_v7, %v114_v10  ;;  %v518_v19 = vrot.slane %v110_v7, %v118_v11  ;;  %v520_v20 = vrot.slane %v186_v8, %v114_v10  ;;  %v522_v21 = vrot.slane %v186_v8, %v118_v11  ;;  %v26_v3 = vld [vmem:[%s1131_s0 + $0x60] sm:$0xff]  ;;  %v29_v8 = vld [vmem:[%s1131_s0 + $0x78] sm:$0xff] }
   0x7   :  { %v63_v51 = vunpack.c.h.bf16 %v22_v43  ;;  %v56_v52 = vunpack.c.l.bf16 %v507_v14  ;;  %v54_v55 = vunpack.c.l.bf16 %v512_v15  ;;  %v60_v56 = vunpack.c.l.bf16 %v21_v28 }
   0x8   :  { %v127_v24 = vsub.f32 %v51_v6, %v518_v19  ;;  %v126_v25 = vsub.f32 %v50_v9, %v516_v18  ;;  %v123_v26 = vsub.f32 %v47_v12, %v518_v19  ;;  %v122_v27 = vsub.f32 %v46_v13, %v516_v18 }
   0x9   :  { %v129_v29 = vsub.f32 %v53_v16, %v518_v19  ;;  %v125_v30 = vsub.f32 %v49_v17, %v518_v19  ;;  %v133_v39 = vsub.f32 %v57_v22, %v518_v19  ;;  %v131_v40 = vsub.f32 %v55_v23, %v518_v19  ;;  %v28_v17 = vld [vmem:[%s1131_s0 + $0x70] sm:$0xff] }
   0xa   :  { %v203_v32 = vmul.f32 %v522_v21, %v127_v24  ;;  %v202_v33 = vmul.f32 %v520_v20, %v126_v25  ;;  %v199_v34 = vmul.f32 %v522_v21, %v123_v26  ;;  %v198_v35 = vmul.f32 %v520_v20, %v122_v27  ;;  %v31_v26 = vld [vmem:[%s1131_s0 + $0x88] sm:$0xff] }
   0xb   :  { %v205_v36 = vmul.f32 %v522_v21, %v129_v29  ;;  %v201_v38 = vmul.f32 %v522_v21, %v125_v30  ;;  %v137_v46 = vsub.f32 %v61_v37, %v518_v19  ;;  %v209_v48 = vmul.f32 %v522_v21, %v133_v39 }
   0xc   :  { %331 = vrot.lane.b32.xlu1 %v203_v32, %s461_s30  ;;  %327 = vrot.lane.b32.xlu0 %v199_v34, %s461_s30  ;;  %265 = vst.msk [vmem:[%s1134_s3 + $0x10] sm:$0xff] %vm262_vm0, %v202_v33  ;;  %263 = vst.msk [vmem:[%s1134_s3] sm:$0xff] %vm262_vm0, %v198_v35  ;;  %v207_v49 = vmul.f32 %v522_v21, %v131_v40  ;;  %v135_v50 = vsub.f32 %v59_v41, %v518_v19  ;;  %v58_v57 = vunpack.c.l.bf16 %v20_v31 }
   0xd   :  { %v582_v59 = vsub.f32 %v52_v44, %v516_v18  ;;  %v585_v60 = vsub.f32 %v48_v45, %v516_v18  ;;  %v213_v61 = vmul.f32 %v522_v21, %v137_v46  ;;  %v141_v62 = vsub.f32 %v65_v47, %v518_v19  ;;  %v30_v31 = vld [vmem:[%s1131_s0 + $0x80] sm:$0xff]  ;;  %v32_v45 = vld [vmem:[%s1131_s0 + $0x90] sm:$0xff] }
   0xe   :  { %v211_v63 = vmul.f32 %v522_v21, %v135_v50  ;;  %v139_v0 = vsub.f32 %v63_v51, %v518_v19  ;;  %v69_v1 = vunpack.c.h.bf16 %v25_v53  ;;  %v67_v2 = vunpack.c.h.bf16 %v24_v54  ;;  %v35_v50 = vld [vmem:[%s1131_s0 + $0xa8] sm:$0xff] }
   0xf   :  { %v597_v4 = vsub.f32 %v56_v52, %v516_v18  ;;  %v64_v5 = vunpack.c.l.bf16 %v23_v42  ;;  %v62_v6 = vunpack.c.l.bf16 %v22_v43  ;;  %v73_v7 = vunpack.c.h.bf16 %v27_v58 }
  0x10   :  { %333 = vrot.lane.b32.xlu1 %v205_v36, %s461_s30  ;;  %329 = vrot.lane.b32.xlu0 %v201_v38, %s461_s30  ;;  %v603_v9 = vsub.f32 %v54_v55, %v516_v18  ;;  %v606_v10 = vsub.f32 %v60_v56, %v516_v18  ;;  %v609_v11 = vsub.f32 %v58_v57, %v516_v18  ;;  %v68_v12 = vunpack.c.l.bf16 %v25_v53  ;;  %v33_v36 = vld [vmem:[%s1131_s0 + $0x98] sm:$0xff]  ;;  %v34_v55 = vld [vmem:[%s1131_s0 + $0xa0] sm:$0xff] }
  0x11   :  { %v217_v13 = vmul.f32 %v522_v21, %v141_v62  ;;  %v66_v14 = vunpack.c.l.bf16 %v24_v54  ;;  %v72_v15 = vunpack.c.l.bf16 %v27_v58  ;;  %v71_v16 = vunpack.c.h.bf16 %v26_v3  ;;  %v37_v56 = vld [vmem:[%s1131_s0 + $0xb8] sm:$0xff] }
  0x12   :  { %v215_v22 = vmul.f32 %v522_v21, %v139_v0  ;;  %v145_v23 = vsub.f32 %v69_v1, %v518_v19  ;;  %v143_v24 = vsub.f32 %v67_v2, %v518_v19  ;;  %v77_v25 = vunpack.c.h.bf16 %v29_v8 }
  0x13   :  { %v624_v27 = vsub.f32 %v64_v5, %v516_v18  ;;  %v627_v28 = vsub.f32 %v62_v6, %v516_v18  ;;  %v149_v29 = vsub.f32 %v73_v7, %v518_v19  ;;  %v70_v30 = vunpack.c.l.bf16 %v26_v3 }
  0x14   :  { %337 = vrot.lane.b32.xlu1 %v209_v48, %s461_s30  ;;  %335 = vrot.lane.b32.xlu0 %v207_v49, %s461_s30  ;;  %v634_v32 = vsub.f32 %v68_v12, %v516_v18  ;;  %v76_v33 = vunpack.c.l.bf16 %v29_v8  ;;  %v74_v34 = vunpack.c.l.bf16 %v28_v17  ;;  %v75_v35 = vunpack.c.h.bf16 %v28_v17 }
  0x15   :  { %v640_v37 = vsub.f32 %v66_v14, %v516_v18  ;;  %v643_v38 = vsub.f32 %v72_v15, %v516_v18  ;;  %v147_v39 = vsub.f32 %v71_v16, %v518_v19  ;;  %v81_v40 = vunpack.c.h.bf16 %v31_v26 }
  0x16   :  { %v221_v41 = vmul.f32 %v522_v21, %v145_v23  ;;  %v219_v42 = vmul.f32 %v522_v21, %v143_v24  ;;  %v153_v43 = vsub.f32 %v77_v25, %v518_v19  ;;  %v79_v44 = vunpack.c.h.bf16 %v30_v31  ;;  %v39_v24 = vld [vmem:[%s1131_s0 + $0xc8] sm:$0xff] }
  0x17   :  { %v225_v46 = vmul.f32 %v522_v21, %v149_v29  ;;  %v656_v47 = vsub.f32 %v70_v30, %v516_v18  ;;  %v80_v48 = vunpack.c.l.bf16 %v31_v26  ;;  %v85_v49 = vunpack.c.h.bf16 %v33_v36 }
  0x18   :  { %341 = vrot.lane.b32.xlu1 %v213_v61, %s461_s30  ;;  %339 = vrot.lane.b32.xlu0 %v211_v63, %s461_s30  ;;  %v662_v51 = vsub.f32 %v76_v33, %v516_v18  ;;  %v665_v52 = vsub.f32 %v74_v34, %v516_v18  ;;  %v151_v53 = vsub.f32 %v75_v35, %v518_v19  ;;  %v78_v54 = vunpack.c.l.bf16 %v30_v31  ;;  %v36_v63 = vld [vmem:[%s1131_s0 + $0xb0] sm:$0xff] }
  0x19   :  { %v223_v57 = vmul.f32 %v522_v21, %v147_v39  ;;  %v157_v58 = vsub.f32 %v81_v40, %v518_v19  ;;  %v84_v61 = vunpack.c.l.bf16 %v33_v36  ;;  %v83_v62 = vunpack.c.h.bf16 %v32_v45 }
  0x1a   :  { %v229_v0 = vmul.f32 %v522_v21, %v153_v43  ;;  %v155_v1 = vsub.f32 %v79_v44, %v518_v19  ;;  %v82_v2 = vunpack.c.l.bf16 %v32_v45  ;;  %v89_v3 = vunpack.c.h.bf16 %v35_v50  ;;  %v721_v43 = vld [vmem:[%s1131_s0 + $0xd8] sm:$0xff] }
  0x1b   :  { %v684_v5 = vsub.f32 %v80_v48, %v516_v18  ;;  %v161_v6 = vsub.f32 %v85_v49, %v518_v19  ;;  %v87_v7 = vunpack.c.h.bf16 %v34_v55  ;;  %v93_v8 = vunpack.c.h.bf16 %v37_v56  ;;  %v732_v49 = vld [vmem:[%s1131_s0 + $0xd0] sm:$0xff] }
  0x1c   :  { %345 = vrot.lane.b32.xlu1 %v217_v13, %s461_s30  ;;  %343 = vrot.lane.b32.xlu0 %v215_v22, %s461_s30  ;;  %v227_v12 = vmul.f32 %v522_v21, %v151_v53  ;;  %v689_v13 = vsub.f32 %v78_v54, %v516_v18  ;;  %v88_v14 = vunpack.c.l.bf16 %v35_v50  ;;  %v91_v15 = vunpack.c.h.bf16 %v36_v63  ;;  %v737_v50 = vld [vmem:[%s1131_s0 + $0xe8] sm:$0xff] }
  0x1d   :  { %v233_v16 = vmul.f32 %v522_v21, %v157_v58  ;;  %v693_v17 = vsub.f32 %v84_v61, %v516_v18  ;;  %v159_v22 = vsub.f32 %v83_v62, %v518_v19  ;;  %v86_v23 = vunpack.c.l.bf16 %v34_v55 }
  0x1e   :  { %v231_v25 = vmul.f32 %v522_v21, %v155_v1  ;;  %v703_v26 = vsub.f32 %v82_v2, %v516_v18  ;;  %v165_v29 = vsub.f32 %v89_v3, %v518_v19  ;;  %v92_v30 = vunpack.c.l.bf16 %v37_v56 }
  0x1f   :  { %v237_v31 = vmul.f32 %v522_v21, %v161_v6  ;;  %v163_v33 = vsub.f32 %v87_v7, %v518_v19  ;;  %v169_v34 = vsub.f32 %v93_v8, %v518_v19  ;;  %v90_v35 = vunpack.c.l.bf16 %v36_v63  ;;  %v758_v63 = vld [vmem:[%s1131_s0 + $0xe0] sm:$0xff] }
  0x20   :  { %349 = vrot.lane.b32.xlu1 %v221_v41, %s461_s30  ;;  %347 = vrot.lane.b32.xlu0 %v219_v42, %s461_s30  ;;  %v710_v36 = vsub.f32 %v88_v14, %v516_v18  ;;  %v167_v39 = vsub.f32 %v91_v15, %v518_v19  ;;  %v96_v40 = vunpack.c.l.bf16 %v39_v24  ;;  %v97_v41 = vunpack.c.h.bf16 %v39_v24  ;;  %v716_v42 = vld [vmem:[%s1131_s0 + $0xc0] sm:$0xff] }
  0x21   :  { %v235_v44 = vmul.f32 %v522_v21, %v159_v22  ;;  %v725_v45 = vsub.f32 %v86_v23, %v516_v18  ;;  %v100_v48 = vunpack.c.l.bf16 %v721_v43  ;;  %v742_v53 = vmul.f32 %v522_v21, %v165_v29  ;;  %v782_v23 = vld [vmem:[%s1131_s0 + $0xf8] sm:$0xff] }
  0x22   :  { %v168_v54 = vsub.f32 %v92_v30, %v516_v18  ;;  %v98_v55 = vunpack.c.l.bf16 %v732_v49  ;;  %v104_v56 = vunpack.c.l.bf16 %v737_v50  ;;  %v751_v58 = vmul.f32 %v522_v21, %v169_v34 }
  0x23   :  { %v166_v61 = vsub.f32 %v90_v35, %v516_v18  ;;  %v95_v62 = vunpack.c.h.bf16 %v716_v42  ;;  %v172_v1 = vsub.f32 %v96_v40, %v516_v18  ;;  %v765_v2 = vsub.f32 %v97_v41, %v518_v19 }
  0x24   :  { %353 = vrot.lane.b32.xlu1 %v225_v46, %s461_s30  ;;  %351 = vrot.lane.b32.xlu0 %v223_v57, %s461_s30  ;;  %v94_v46 = vunpack.c.l.bf16 %v716_v42  ;;  %v748_v57 = vmul.f32 %v522_v21, %v163_v33  ;;  %v102_v3 = vunpack.c.l.bf16 %v758_v63  ;;  %v176_v7 = vsub.f32 %v100_v48, %v516_v18 }
  0x25   :  { %v204_v8 = vmul.f32 %v520_v20, %v582_v59  ;;  %v101_v14 = vunpack.c.h.bf16 %v721_v43  ;;  %v174_v15 = vsub.f32 %v98_v55, %v516_v18  ;;  %v180_v22 = vsub.f32 %v104_v56, %v516_v18 }
  0x26   :  { %v170_v6 = vsub.f32 %v94_v46, %v516_v18  ;;  %v208_v59 = vmul.f32 %v520_v20, %v597_v4  ;;  %v212_v24 = vmul.f32 %v520_v20, %v606_v10  ;;  %v210_v4 = vmul.f32 %v520_v20, %v609_v11  ;;  %v815_v10 = vld [vmem:[%s1131_s0 + $0xf0] sm:$0xff] }
  0x27   :  { %266 = vst.msk [vmem:[%s1134_s3 + $0x18] sm:$0xff] %vm262_vm0, %v204_v8  ;;  %v216_v29 = vmul.f32 %v520_v20, %v624_v27  ;;  %v214_v30 = vmul.f32 %v520_v20, %v627_v28  ;;  %v218_v11 = vmul.f32 %v520_v20, %v640_v37  ;;  %v224_v27 = vmul.f32 %v520_v20, %v643_v38 }
  0x28   :  { %357 = vrot.lane.b32.xlu1 %v229_v0, %s461_s30  ;;  %355 = vrot.lane.b32.xlu0 %v227_v12, %s461_s30  ;;  %v761_v0 = vmul.f32 %v522_v21, %v167_v39  ;;  %v200_v12 = vmul.f32 %v520_v20, %v585_v60  ;;  %v108_v60 = vunpack.c.l.bf16 %v782_v23  ;;  %268 = vst.msk [vmem:[%s1134_s3 + $0x28] sm:$0xff] %vm262_vm0, %v208_v59  ;;  %270 = vst.msk [vmem:[%s1134_s3 + $0x38] sm:$0xff] %vm262_vm0, %v212_v24 }
  0x29   :  { %269 = vst.msk [vmem:[%s1134_s3 + $0x30] sm:$0xff] %vm262_vm0, %v210_v4  ;;  %v222_v28 = vmul.f32 %v520_v20, %v656_v47  ;;  %v106_v33 = vunpack.c.l.bf16 %v815_v10  ;;  %272 = vst.msk [vmem:[%s1134_s3 + $0x48] sm:$0xff] %vm262_vm0, %v216_v29  ;;  %v226_v37 = vmul.f32 %v520_v20, %v665_v52  ;;  %v232_v38 = vmul.f32 %v520_v20, %v684_v5 }
  0x2a   :  { %264 = vst.msk [vmem:[%s1134_s3 + $0x8] sm:$0xff] %vm262_vm0, %v200_v12  ;;  %271 = vst.msk [vmem:[%s1134_s3 + $0x40] sm:$0xff] %vm262_vm0, %v214_v30  ;;  %v230_v47 = vmul.f32 %v520_v20, %v689_v13  ;;  %v234_v52 = vmul.f32 %v520_v20, %v703_v26  ;;  %v240_v5 = vmul.f32 %v520_v20, %v710_v36  ;;  %v105_v48 = vunpack.c.h.bf16 %v737_v50 }
  0x2b   :  { %273 = vst.msk [vmem:[%s1134_s3 + $0x50] sm:$0xff] %vm262_vm0, %v218_v11  ;;  %276 = vst.msk [vmem:[%s1134_s3 + $0x68] sm:$0xff] %vm262_vm0, %v224_v27  ;;  %v238_v13 = vmul.f32 %v520_v20, %v725_v45  ;;  %v242_v26 = vmul.f32 %v520_v20, %v166_v61  ;;  %v246_v34 = vmul.f32 %v520_v20, %v170_v6  ;;  %v103_v55 = vunpack.c.h.bf16 %v758_v63 }
  0x2c   :  { %361 = vrot.lane.b32.xlu1 %v233_v16, %s461_s30  ;;  %359 = vrot.lane.b32.xlu0 %v231_v25, %s461_s30  ;;  %v206_v16 = vmul.f32 %v520_v20, %v603_v9  ;;  %v178_v25 = vsub.f32 %v102_v3, %v516_v18  ;;  %v220_v9 = vmul.f32 %v520_v20, %v634_v32  ;;  %v107_v61 = vunpack.c.h.bf16 %v815_v10 }
  0x2d   :  { %v228_v32 = vmul.f32 %v520_v20, %v662_v51  ;;  %275 = vst.msk [vmem:[%s1134_s3 + $0x60] sm:$0xff] %vm262_vm0, %v222_v28  ;;  %v236_v51 = vmul.f32 %v520_v20, %v693_v17  ;;  %277 = vst.msk [vmem:[%s1134_s3 + $0x70] sm:$0xff] %vm262_vm0, %v226_v37  ;;  %v244_v17 = vmul.f32 %v520_v20, %v168_v54 }
  0x2e   :  { %267 = vst.msk [vmem:[%s1134_s3 + $0x20] sm:$0xff] %vm262_vm0, %v206_v16  ;;  %274 = vst.msk [vmem:[%s1134_s3 + $0x58] sm:$0xff] %vm262_vm0, %v220_v9  ;;  %v184_v35 = vsub.f32 %v108_v60, %v516_v18  ;;  %v252_v36 = vmul.f32 %v520_v20, %v176_v7  ;;  %v250_v39 = vmul.f32 %v520_v20, %v174_v15 }
  0x2f   :  { %278 = vst.msk [vmem:[%s1134_s3 + $0x78] sm:$0xff] %vm262_vm0, %v228_v32  ;;  %280 = vst.msk [vmem:[%s1134_s3 + $0x88] sm:$0xff] %vm262_vm0, %v232_v38  ;;  %v256_v40 = vmul.f32 %v520_v20, %v180_v22  ;;  %v171_v41 = vsub.f32 %v95_v62, %v518_v19  ;;  %v182_v45 = vsub.f32 %v106_v33, %v516_v18 }
  0x30   :  { %365 = vrot.lane.b32.xlu1 %v237_v31, %s461_s30  ;;  %363 = vrot.lane.b32.xlu0 %v235_v44, %s461_s30  ;;  %279 = vst.msk [vmem:[%s1134_s3 + $0x80] sm:$0xff] %vm262_vm0, %v230_v47  ;;  %v248_v31 = vmul.f32 %v520_v20, %v172_v1  ;;  %282 = vst.msk [vmem:[%s1134_s3 + $0x98] sm:$0xff] %vm262_vm0, %v236_v51  ;;  %v99_v44 = vunpack.c.h.bf16 %v732_v49  ;;  %v254_v18 = vmul.f32 %v520_v20, %v178_v25 }
  0x31   :  { %281 = vst.msk [vmem:[%s1134_s3 + $0x90] sm:$0xff] %vm262_vm0, %v234_v52  ;;  %284 = vst.msk [vmem:[%s1134_s3 + $0xa8] sm:$0xff] %vm262_vm0, %v240_v5  ;;  %v249_v42 = vmul.f32 %v522_v21, %v765_v2  ;;  %v177_v46 = vsub.f32 %v101_v14, %v518_v19  ;;  %v260_v49 = vmul.f32 %v520_v20, %v184_v35 }
  0x32   :  { %283 = vst.msk [vmem:[%s1134_s3 + $0xa0] sm:$0xff] %vm262_vm0, %v238_v13  ;;  %286 = vst.msk [vmem:[%s1134_s3 + $0xb8] sm:$0xff] %vm262_vm0, %v244_v17  ;;  %v175_v54 = vsub.f32 %v99_v44, %v518_v19  ;;  %v258_v56 = vmul.f32 %v520_v20, %v182_v45  ;;  %v181_v50 = vsub.f32 %v105_v48, %v518_v19 }
  0x33   :  { %285 = vst.msk [vmem:[%s1134_s3 + $0xb0] sm:$0xff] %vm262_vm0, %v242_v26  ;;  %288 = vst.msk [vmem:[%s1134_s3 + $0xc8] sm:$0xff] %vm262_vm0, %v248_v31  ;;  %v253_v43 = vmul.f32 %v522_v21, %v177_v46  ;;  %v183_v1 = vsub.f32 %v107_v61, %v518_v19 }
  0x34   :  { %369 = vrot.lane.b32.xlu1 %v742_v53, %s461_s30  ;;  %367 = vrot.lane.b32.xlu0 %v748_v57, %s461_s30  ;;  %287 = vst.msk [vmem:[%s1134_s3 + $0xc0] sm:$0xff] %vm262_vm0, %v246_v34  ;;  %290 = vst.msk [vmem:[%s1134_s3 + $0xd8] sm:$0xff] %vm262_vm0, %v252_v36  ;;  %v247_v53 = vmul.f32 %v522_v21, %v171_v41  ;;  %v251_v20 = vmul.f32 %v522_v21, %v175_v54 }
  0x35   :  { %289 = vst.msk [vmem:[%s1134_s3 + $0xd0] sm:$0xff] %vm262_vm0, %v250_v39  ;;  %292 = vst.msk [vmem:[%s1134_s3 + $0xe8] sm:$0xff] %vm262_vm0, %v256_v40  ;;  %v179_v57 = vsub.f32 %v103_v55, %v518_v19  ;;  %v257_v62 = vmul.f32 %v522_v21, %v181_v50  ;;  %v259_v3 = vmul.f32 %v522_v21, %v183_v1 }
  0x36   :  { %291 = vst.msk [vmem:[%s1134_s3 + $0xe0] sm:$0xff] %vm262_vm0, %v254_v18  ;;  %294 = vst.msk [vmem:[%s1134_s3 + $0xf8] sm:$0xff] %vm262_vm0, %v260_v49 }
  0x37   :  { %293 = vst.msk [vmem:[%s1134_s3 + $0xf0] sm:$0xff] %vm262_vm0, %v258_v56  ;;  %v255_v63 = vmul.f32 %v522_v21, %v179_v57 }
  0x38   :  { %373 = vrot.lane.b32.xlu1 %v751_v58, %s461_s30  ;;  %371 = vrot.lane.b32.xlu0 %v761_v0, %s461_s30  ;;  %v109_v58 = vunpack.c.h.bf16 %v782_v23 }
  0x3a   :  { %v185_v0 = vsub.f32 %v109_v58, %v518_v19 }
  0x3c   :  { %377 = vrot.lane.b32.xlu1 %v249_v42, %s461_s30  ;;  %375 = vrot.lane.b32.xlu0 %v247_v53, %s461_s30  ;;  %v261_v2 = vmul.f32 %v522_v21, %v185_v0 }
  0x40   :  { %381 = vrot.lane.b32.xlu1 %v253_v43, %s461_s30  ;;  %379 = vrot.lane.b32.xlu0 %v251_v20, %s461_s30 }
  0x44   :  { %385 = vrot.lane.b32.xlu1 %v257_v62, %s461_s30  ;;  %383 = vrot.lane.b32.xlu0 %v255_v63, %s461_s30 }
  0x48   :  { %389 = vrot.lane.b32.xlu1 %v261_v2, %s461_s30  ;;  %387 = vrot.lane.b32.xlu0 %v259_v3, %s461_s30 }
  0x7e   :  { %v332_v6 = vpop.permute.xlu1 %331  ;;  %v328_v7 = vpop.permute.xlu0 %327 }
  0x7f   :  { %426 = vst.msk [vmem:[%s1134_s3 + $0x10] sm:$0xff] %vm423_vm1, %v332_v6  ;;  %424 = vst.msk [vmem:[%s1134_s3] sm:$0xff] %vm423_vm1, %v328_v7 }
  0x82   :  { %v334_v19 = vpop.permute.xlu1 %333  ;;  %v330_v8 = vpop.permute.xlu0 %329 }
  0x83   :  { %427 = vst.msk [vmem:[%s1134_s3 + $0x18] sm:$0xff] %vm423_vm1, %v334_v19  ;;  %425 = vst.msk [vmem:[%s1134_s3 + $0x8] sm:$0xff] %vm423_vm1, %v330_v8 }
  0x86   :  { %v338_v21 = vpop.permute.xlu1 %337  ;;  %v336_v12 = vpop.permute.xlu0 %335 }
  0x87   :  { %429 = vst.msk [vmem:[%s1134_s3 + $0x28] sm:$0xff] %vm423_vm1, %v338_v21  ;;  %428 = vst.msk [vmem:[%s1134_s3 + $0x20] sm:$0xff] %vm423_vm1, %v336_v12 }
  0x8a   :  { %v342_v14 = vpop.permute.xlu1 %341  ;;  %v340_v15 = vpop.permute.xlu0 %339 }
  0x8b   :  { %431 = vst.msk [vmem:[%s1134_s3 + $0x38] sm:$0xff] %vm423_vm1, %v342_v14  ;;  %430 = vst.msk [vmem:[%s1134_s3 + $0x30] sm:$0xff] %vm423_vm1, %v340_v15 }
  0x8e   :  { %v346_v22 = vpop.permute.xlu1 %345  ;;  %v344_v23 = vpop.permute.xlu0 %343 }
  0x8f   :  { %433 = vst.msk [vmem:[%s1134_s3 + $0x48] sm:$0xff] %vm423_vm1, %v346_v22  ;;  %432 = vst.msk [vmem:[%s1134_s3 + $0x40] sm:$0xff] %vm423_vm1, %v344_v23 }
  0x92   :  { %v350_v59 = vpop.permute.xlu1 %349  ;;  %v348_v60 = vpop.permute.xlu0 %347 }
  0x93   :  { %435 = vst.msk [vmem:[%s1134_s3 + $0x58] sm:$0xff] %vm423_vm1, %v350_v59  ;;  %434 = vst.msk [vmem:[%s1134_s3 + $0x50] sm:$0xff] %vm423_vm1, %v348_v60 }
  0x96   :  { %v354_v16 = vpop.permute.xlu1 %353  ;;  %v352_v24 = vpop.permute.xlu0 %351 }
  0x97   :  { %437 = vst.msk [vmem:[%s1134_s3 + $0x68] sm:$0xff] %vm423_vm1, %v354_v16  ;;  %436 = vst.msk [vmem:[%s1134_s3 + $0x60] sm:$0xff] %vm423_vm1, %v352_v24 }
  0x9a   :  { %v358_v4 = vpop.permute.xlu1 %357  ;;  %v356_v25 = vpop.permute.xlu0 %355 }
  0x9b   :  { %439 = vst.msk [vmem:[%s1134_s3 + $0x78] sm:$0xff] %vm423_vm1, %v358_v4  ;;  %438 = vst.msk [vmem:[%s1134_s3 + $0x70] sm:$0xff] %vm423_vm1, %v356_v25 }
  0x9e   :  { %v362_v29 = vpop.permute.xlu1 %361  ;;  %v360_v30 = vpop.permute.xlu0 %359 }
  0x9f   :  { %441 = vst.msk [vmem:[%s1134_s3 + $0x88] sm:$0xff] %vm423_vm1, %v362_v29  ;;  %440 = vst.msk [vmem:[%s1134_s3 + $0x80] sm:$0xff] %vm423_vm1, %v360_v30 }
  0xa2   :  { %v366_v9 = vpop.permute.xlu1 %365  ;;  %v364_v10 = vpop.permute.xlu0 %363 }
  0xa3   :  { %443 = vst.msk [vmem:[%s1134_s3 + $0x98] sm:$0xff] %vm423_vm1, %v366_v9  ;;  %442 = vst.msk [vmem:[%s1134_s3 + $0x90] sm:$0xff] %vm423_vm1, %v364_v10 }
  0xa6   :  { %v370_v11 = vpop.permute.xlu1 %369  ;;  %v368_v27 = vpop.permute.xlu0 %367 }
  0xa7   :  { %445 = vst.msk [vmem:[%s1134_s3 + $0xa8] sm:$0xff] %vm423_vm1, %v370_v11  ;;  %444 = vst.msk [vmem:[%s1134_s3 + $0xa0] sm:$0xff] %vm423_vm1, %v368_v27 }
  0xaa   :  { %v374_v28 = vpop.permute.xlu1 %373  ;;  %v372_v32 = vpop.permute.xlu0 %371 }
  0xab   :  { %447 = vst.msk [vmem:[%s1134_s3 + $0xb8] sm:$0xff] %vm423_vm1, %v374_v28  ;;  %446 = vst.msk [vmem:[%s1134_s3 + $0xb0] sm:$0xff] %vm423_vm1, %v372_v32 }
  0xae   :  { %v378_v33 = vpop.permute.xlu1 %377  ;;  %v376_v37 = vpop.permute.xlu0 %375 }
  0xaf   :  { %449 = vst.msk [vmem:[%s1134_s3 + $0xc8] sm:$0xff] %vm423_vm1, %v378_v33  ;;  %448 = vst.msk [vmem:[%s1134_s3 + $0xc0] sm:$0xff] %vm423_vm1, %v376_v37 }
  0xb2   :  { %v382_v38 = vpop.permute.xlu1 %381  ;;  %v380_v47 = vpop.permute.xlu0 %379 }
  0xb3   :  { %451 = vst.msk [vmem:[%s1134_s3 + $0xd8] sm:$0xff] %vm423_vm1, %v382_v38  ;;  %450 = vst.msk [vmem:[%s1134_s3 + $0xd0] sm:$0xff] %vm423_vm1, %v380_v47 }
  0xb6   :  { %v386_v51 = vpop.permute.xlu1 %385  ;;  %v384_v52 = vpop.permute.xlu0 %383 }
  0xb7   :  { %453 = vst.msk [vmem:[%s1134_s3 + $0xe8] sm:$0xff] %vm423_vm1, %v386_v51  ;;  %452 = vst.msk [vmem:[%s1134_s3 + $0xe0] sm:$0xff] %vm423_vm1, %v384_v52 }
  0xba   :  { %v390_v5 = vpop.permute.xlu1 %389  ;;  %v388_v13 = vpop.permute.xlu0 %387 }
  0xbb   :  { %455 = vst.msk [vmem:[%s1134_s3 + $0xf8] sm:$0xff] %vm423_vm1, %v390_v5  ;;  %454 = vst.msk [vmem:[%s1134_s3 + $0xf0] sm:$0xff] %vm423_vm1, %v388_v13 }

// kernel: unet_skip_block_innermost.2
= control target key start
LH: loop header
LB: loop body
LE: loop exit
PB: predicated region body
PF: predicated region fallthrough
CT: control target
= control target key end

     0   :  { %vm55_vm0 = vsmask.f32 3328  ;;  %vm315_vm1 = vcmask 130048   ;;  %vm56_vm2 = vsmask.f32 7440  ;;  %vm955_vm4 = vcmask 1040384   ;;  %s12643_s1 = inlined_call_operand.vmem [shape: bf16[4,16,128], index: 1, kind: input, shape index: {}]   ;;  %s12644_s0 = inlined_call_operand.vmem [shape: bf16[2,9,9,16], index: 0, kind: input, shape index: {}]   ;;  %s12645_s2 = inlined_call_operand.vmem [shape: bf16[16,128,128], index: 2, kind: input, shape index: {}]   ;;  %s12646_s3 = inlined_call_operand.vmem [shape: bf16[16,2,8,256], index: 3, kind: output, shape index: {0}]   ;;  %s12647_s4 = inlined_call_operand.vmem [shape: f32[1,2,128], index: 4, kind: output, shape index: {1}]  }
   0x1   :  { %v9504_v0 = vld [vmem:[%s12643_s1] sm:$0xff]   ;;  %v9505_v1 = vld [vmem:[%s12643_s1 + $0x8] sm:$0xff]   ;;  %v9729_v4 = vld [vmem:[%s12644_s0 + $0x10] sm:$0xf]  ;;  %vm956_vm5 = vsmask.f32 256 }
   0x2   :  { %8937 = vmatprep.subr.bf16.mxu1 %v9504_v0  ;;  %v17_v2 = vld [vmem:[%s12644_s0] sm:$0xf]  ;;  %v9724_v3 = vld [vmem:[%s12644_s0 + $0x8] sm:$0xf]  ;;  %8919 = vmatprep.subr.bf16.mxu0 %v9505_v1  ;;  %v9736_v9 = vld [vmem:[%s12644_s0 + $0x18] sm:$0xf] }
   0x3   :  { %8938 = vmatpush3.bf16.msra.mxu1 %v9504_v0  ;;  %v59_v5 = vshrl.u32 %v17_v2, 16  ;;  %v62_v6 = vshll.u32 %v17_v2, 16  ;;  %v73_v7 = vshrl.u32 %v9724_v3, 16  ;;  %v76_v8 = vshll.u32 %v9724_v3, 16  ;;  %8920 = vmatpush3.bf16.msra.mxu0 %v9505_v1  ;;  %v18_v12 = vld [vmem:[%s12644_s0 + $0x4] sm:$0x1]  ;;  %vm9771_vm3 = vmor %vm55_vm0, %vm56_vm2 }
   0x4   :  { %v7820_v10 = vcombine.low %v17_v2, %v9724_v3  ;;  %v7821_v11 = vcombine.low %v9729_v4, %v9736_v9  ;;  %v20_v13 = vld [vmem:[%s12644_s0 + $0xc] sm:$0x1]  ;;  %v22_v14 = vld [vmem:[%s12644_s0 + $0x14] sm:$0x1]  ;;  %v24_v17 = vld [vmem:[%s12644_s0 + $0x1c] sm:$0x1] }
   0x5   :  { %v61_v15 = vrot.slane %v59_v5, 4  ;;  %v64_v16 = vrot.slane %v62_v6, 5  ;;  %v9757_v18 = vld [vmem:[%s12644_s0 + $0x20] sm:$0xf]  ;;  %v68_v19 = vshll.u32 %v18_v12, 16  ;;  %v75_v20 = vrot.slane %v73_v7, 4  ;;  %vm10039_vm6 = vmand %vm955_vm4, %vm956_vm5 }
   0x6   :  { %8939 = vmatprep.mubr.msk.bf16.mxu1 %vm315_vm1, %v7820_v10  ;;  %v78_v21 = vrot.slane %v76_v8, 5  ;;  %v82_v22 = vshll.u32 %v20_v13, 16  ;;  %v26_v23 = vld [vmem:[%s12644_s0 + $0x24] sm:$0x1]  ;;  %v87_v25 = vshrl.u32 %v9729_v4, 16  ;;  %v90_v26 = vshll.u32 %v9729_v4, 16 }
   0x7   :  { %8940 = vmatmul.mubr.msk.bf16.vlgmr.msra.gmra.mxu1 %vm315_vm1, %v7821_v11  ;;  %v65_v24 = vor.u32 %v64_v16, %v61_v15  ;;  %v96_v27 = vshll.u32 %v22_v14, 16  ;;  %v9768_v28 = vld [vmem:[%s12643_s1 + $0x10] sm:$0xff]   ;;  %v70_v30 = vrot.slane %v68_v19, 5  ;;  %v101_v33 = vshrl.u32 %v9736_v9, 16  ;;  %v9509_v34 = vld [vmem:[%s12643_s1 + $0x18] sm:$0xff]  }
   0x8   :  { %v79_v31 = vor.u32 %v78_v21, %v75_v20  ;;  %v84_v32 = vrot.slane %v82_v22, 5  ;;  %v89_v36 = vrot.slane %v87_v25, 4  ;;  %v92_v37 = vrot.slane %v90_v26, 5  ;;  %8955 = vmatprep.subr.bf16.mxu0 %v9768_v28  ;;  %8973 = vmatprep.subr.bf16.mxu1 %v9509_v34  ;;  %v9788_v46 = vld [vmem:[%s12644_s0 + $0x28] sm:$0xf] }
   0x9   :  { %v66_v35 = vrot.slane %v65_v24, 4  ;;  %v103_v39 = vrot.slane %v101_v33, 4  ;;  %v104_v40 = vshll.u32 %v9736_v9, 16  ;;  %v110_v41 = vshll.u32 %v24_v17, 16  ;;  %8974 = vmatpush3.bf16.msra.mxu1 %v9509_v34  ;;  %v9797_v51 = vld [vmem:[%s12644_s0 + $0x30] sm:$0xf] }
   0xa   :  { %v80_v38 = vrot.slane %v79_v31, 4  ;;  %v93_v43 = vor.u32 %v92_v37, %v89_v36  ;;  %v115_v44 = vshrl.u32 %v9757_v18, 16  ;;  %v118_v45 = vshll.u32 %v9757_v18, 16  ;;  %v9803_v56 = vld [vmem:[%s12644_s0 + $0x38] sm:$0xf] }
   0xb   :  { %v71_v42 = vsel %vm9771_vm3, %v66_v35, %v70_v30  ;;  %v98_v48 = vrot.slane %v96_v27, 5  ;;  %v106_v49 = vrot.slane %v104_v40, 5  ;;  %v124_v50 = vshll.u32 %v26_v23, 16  ;;  %v28_v1 = vld [vmem:[%s12644_s0 + $0x2c] sm:$0x1] }
   0xc   :  { %v9792_v47 = vsel %vm9771_vm3, %v80_v38, %v84_v32  ;;  %v94_v52 = vrot.slane %v93_v43, 4  ;;  %v117_v53 = vrot.slane %v115_v44, 4  ;;  %v120_v54 = vrot.slane %v118_v45, 5  ;;  %v30_v8 = vld [vmem:[%s12644_s0 + $0x34] sm:$0x1] }
   0xd   :  { %v7803_v55 = vcombine.low %v71_v42, %v9792_v47  ;;  %v107_v57 = vor.u32 %v106_v49, %v103_v39  ;;  %v112_v58 = vrot.slane %v110_v41, 5  ;;  %v129_v59 = vshrl.u32 %v9788_v46, 16  ;;  %v32_v17 = vld [vmem:[%s12644_s0 + $0x3c] sm:$0x1]  ;;  %v35_v24 = vld [vmem:[%s12644_s0 + $0x48] sm:$0xf] }
   0xe   :  { %v132_v60 = vshll.u32 %v9788_v46, 16  ;;  %v121_v61 = vor.u32 %v120_v54, %v117_v53  ;;  %v126_v62 = vrot.slane %v124_v50, 5  ;;  %v7822_v63 = vcombine.low %v9757_v18, %v9788_v46  ;;  %v9845_v25 = vld [vmem:[%s12644_s0 + $0x50] sm:$0xf]  ;;  %v9857_v40 = vld [vmem:[%s12644_s0 + $0x58] sm:$0xf] }
   0xf   :  { %8921 = vmatprep.mubr.msk.bf16.mxu0 %vm315_vm1, %v7803_v55  ;;  %v143_v0 = vshrl.u32 %v9797_v51, 16  ;;  %v9816_v2 = vsel %vm9771_vm3, %v94_v52, %v98_v48  ;;  %v108_v5 = vrot.slane %v107_v57, 4  ;;  %v146_v6 = vshll.u32 %v9797_v51, 16  ;;  %v9863_v45 = vld [vmem:[%s12644_s0 + $0x60] sm:$0xf] }
  0x10   :  { %v157_v7 = vshrl.u32 %v9803_v56, 16  ;;  %v122_v10 = vrot.slane %v121_v61, 4  ;;  %8943 = vmatprep.mubr.msk.bf16.mxu1 %vm315_vm1, %v7822_v63  ;;  %v160_v11 = vshll.u32 %v9803_v56, 16  ;;  %v7823_v12 = vcombine.low %v9797_v51, %v9803_v56  ;;  %v36_v52 = vld [vmem:[%s12644_s0 + $0x4c] sm:$0x1] }
  0x11   :  { %v131_v13 = vrot.slane %v129_v59, 4  ;;  %v9829_v14 = vsel %vm9771_vm3, %v108_v5, %v112_v58  ;;  %v134_v15 = vrot.slane %v132_v60, 5  ;;  %v138_v16 = vshll.u32 %v28_v1, 16  ;;  %v38_v58 = vld [vmem:[%s12644_s0 + $0x54] sm:$0x1] }
  0x12   :  { %v145_v19 = vrot.slane %v143_v0, 4  ;;  %v7804_v20 = vcombine.low %v9816_v2, %v9829_v14  ;;  %v7858_v21 = vcombine.low %v9792_v47, %v9816_v2  ;;  %8944 = vmatmul.mubr.msk.bf16.gmra.mxu1 %vm315_vm1, %v7823_v12  ;;  %v148_v22 = vrot.slane %v146_v6, 5  ;;  %v40_v63 = vld [vmem:[%s12644_s0 + $0x5c] sm:$0x1]  ;;  %v34_v47 = vld [vmem:[%s12644_s0 + $0x44] sm:$0x1] }
  0x13   :  { %v152_v23 = vshll.u32 %v30_v8, 16  ;;  %v9849_v26 = vsel %vm9771_vm3, %v122_v10, %v126_v62  ;;  %v135_v27 = vor.u32 %v134_v15, %v131_v13  ;;  %v140_v30 = vrot.slane %v138_v16, 5 }
  0x14   :  { %v159_v31 = vrot.slane %v157_v7, 4  ;;  %8922 = vmatmul.mubr.msk.bf16.vlgmr.msra.gmra.mxu0 %vm315_vm1, %v7804_v20  ;;  %v149_v32 = vor.u32 %v148_v22, %v145_v19  ;;  %v162_v34 = vrot.slane %v160_v11, 5  ;;  %v166_v35 = vshll.u32 %v32_v17, 16  ;;  %v42_v11 = vld [vmem:[%s12644_s0 + $0x64] sm:$0x1] }
  0x15   :  { %v154_v33 = vrot.slane %v152_v23, 5  ;;  %8956 = vmatpush3.bf16.msra.mxu0 %v9768_v28  ;;  %v136_v36 = vrot.slane %v135_v27, 4  ;;  %v171_v37 = vshrl.u32 %v35_v24, 16  ;;  %v174_v38 = vshll.u32 %v35_v24, 16  ;;  %v9906_v19 = vld [vmem:[%s12644_s0 + $0x68] sm:$0xf] }
  0x16   :  { %v185_v39 = vshrl.u32 %v9845_v25, 16  ;;  %v150_v41 = vrot.slane %v149_v32, 4  ;;  %v163_v42 = vor.u32 %v162_v34, %v159_v31  ;;  %v168_v43 = vrot.slane %v166_v35, 5  ;;  %v9912_v27 = vld [vmem:[%s12644_s0 + $0x70] sm:$0xf] }
  0x17   :  { %v188_v44 = vshll.u32 %v9845_v25, 16  ;;  %v9867_v28 = vsel %vm9771_vm3, %v136_v36, %v140_v30  ;;  %v173_v48 = vrot.slane %v171_v37, 4  ;;  %v176_v49 = vrot.slane %v174_v38, 5  ;;  %v9919_v34 = vld [vmem:[%s12644_s0 + $0x78] sm:$0xf] }
  0x18   :  { %v7824_v50 = vcombine.low %v35_v24, %v9845_v25  ;;  %v7805_v53 = vcombine.low %v9849_v26, %v9867_v28  ;;  %v9877_v54 = vsel %vm9771_vm3, %v150_v41, %v154_v33  ;;  %v164_v55 = vrot.slane %v163_v42, 4 }
  0x19   :  { %v199_v57 = vshrl.u32 %v9857_v40, 16  ;;  %v202_v59 = vshll.u32 %v9857_v40, 16  ;;  %v213_v60 = vshrl.u32 %v9863_v45, 16  ;;  %v216_v61 = vshll.u32 %v9863_v45, 16 }
  0x1a   :  { %8947 = vmatprep.mubr.msk.bf16.mxu1 %vm315_vm1, %v7824_v50  ;;  %v7825_v62 = vcombine.low %v9857_v40, %v9863_v45  ;;  %8925 = vmatprep.mubr.msk.bf16.mxu0 %vm315_vm1, %v7805_v53  ;;  %v9895_v0 = vsel %vm9771_vm3, %v164_v55, %v168_v43  ;;  %v177_v1 = vor.u32 %v176_v49, %v173_v48  ;;  %v180_v5 = vshll.u32 %v36_v52, 16  ;;  %v44_v53 = vld [vmem:[%s12644_s0 + $0x6c] sm:$0x1] }
  0x1b   :  { %v187_v6 = vrot.slane %v185_v39, 4  ;;  %v7806_v7 = vcombine.low %v9877_v54, %v9895_v0  ;;  %v190_v8 = vrot.slane %v188_v44, 5  ;;  %v194_v10 = vshll.u32 %v38_v58, 16  ;;  %v9926_v39 = vld [vmem:[%s12644_s0 + $0x80] sm:$0xf] }
  0x1c   :  { %8948 = vmatmul.mubr.msk.bf16.gmra.mxu1 %vm315_vm1, %v7825_v62  ;;  %v201_v12 = vrot.slane %v199_v57, 4  ;;  %v178_v13 = vrot.slane %v177_v1, 4  ;;  %v182_v15 = vrot.slane %v180_v5, 5  ;;  %v204_v16 = vrot.slane %v202_v59, 5  ;;  %v48_v5 = vld [vmem:[%s12644_s0 + $0x7c] sm:$0x1] }
  0x1d   :  { %v208_v17 = vshll.u32 %v40_v63, 16  ;;  %8926 = vmatmul.mubr.msk.bf16.gmra.mxu0 %vm315_vm1, %v7806_v7  ;;  %v191_v20 = vor.u32 %v190_v8, %v187_v6  ;;  %v196_v22 = vrot.slane %v194_v10, 5  ;;  %v215_v23 = vrot.slane %v213_v60, 4  ;;  %v46_v60 = vld [vmem:[%s12644_s0 + $0x74] sm:$0x1] }
  0x1e   :  { %v218_v24 = vrot.slane %v216_v61, 5  ;;  %v183_v30 = vsel %vm9771_vm3, %v178_v13, %v182_v15  ;;  %v205_v31 = vor.u32 %v204_v16, %v201_v12  ;;  %v222_v33 = vshll.u32 %v42_v11, 16  ;;  %v50_v13 = vld [vmem:[%s12644_s0 + $0x84] sm:$0x1] }
  0x1f   :  { %v210_v32 = vrot.slane %v208_v17, 5  ;;  %v192_v35 = vrot.slane %v191_v20, 4  ;;  %v227_v37 = vshrl.u32 %v9906_v19, 16  ;;  %v230_v38 = vshll.u32 %v9906_v19, 16 }
  0x20   :  { %v219_v36 = vor.u32 %v218_v24, %v215_v23  ;;  %v206_v41 = vrot.slane %v205_v31, 4  ;;  %v224_v42 = vrot.slane %v222_v33, 5  ;;  %v241_v43 = vshrl.u32 %v9912_v27, 16  ;;  %v33_v33 = vld [vmem:[%s12644_s0 + $0x40] sm:$0xf] }
  0x21   :  { %v244_v44 = vshll.u32 %v9912_v27, 16  ;;  %v9932_v48 = vsel %vm9771_vm3, %v192_v35, %v196_v22  ;;  %v7826_v50 = vcombine.low %v9906_v19, %v9912_v27  ;;  %v255_v52 = vshrl.u32 %v9919_v34, 16 }
  0x22   :  { %v220_v49 = vrot.slane %v219_v36, 4  ;;  %v7807_v55 = vcombine.low %v183_v30, %v9932_v48  ;;  %v9943_v57 = vsel %vm9771_vm3, %v206_v41, %v210_v32  ;;  %v258_v58 = vshll.u32 %v9919_v34, 16 }
  0x23   :  { %v269_v59 = vshrl.u32 %v9926_v39, 16  ;;  %8951 = vmatprep.mubr.msk.bf16.mxu1 %vm315_vm1, %v7826_v50  ;;  %v272_v62 = vshll.u32 %v9926_v39, 16  ;;  %v7827_v63 = vcombine.low %v9919_v34, %v9926_v39  ;;  %v229_v1 = vrot.slane %v227_v37, 4 }
  0x24   :  { %v9952_v61 = vsel %vm9771_vm3, %v220_v49, %v224_v42  ;;  %8929 = vmatprep.mubr.msk.bf16.mxu0 %vm315_vm1, %v7807_v55  ;;  %v232_v7 = vrot.slane %v230_v38, 5  ;;  %v236_v8 = vshll.u32 %v44_v53, 16  ;;  %v243_v10 = vrot.slane %v241_v43, 4  ;;  %v51_v55 = vld [vmem:[%s12644_s0 + $0x88] sm:$0xf] }
  0x25   :  { %v7808_v6 = vcombine.low %v9943_v57, %v9952_v61  ;;  %8952 = vmatmul.mubr.msk.bf16.gmra.mxu1 %vm315_vm1, %v7827_v63  ;;  %v246_v11 = vrot.slane %v244_v44, 5  ;;  %v250_v12 = vshll.u32 %v46_v60, 16  ;;  %v257_v15 = vrot.slane %v255_v52, 4 }
  0x26   :  { %v260_v16 = vrot.slane %v258_v58, 5  ;;  %v233_v17 = vor.u32 %v232_v7, %v229_v1  ;;  %v238_v20 = vrot.slane %v236_v8, 5  ;;  %v264_v22 = vshll.u32 %v48_v5, 16  ;;  %8975 = vmatprep.mubr.msk.bf16.mxu1 %vm315_vm1, %v7858_v21 }
  0x27   :  { %8930 = vmatmul.mubr.msk.bf16.gmra.mxu0 %vm315_vm1, %v7808_v6  ;;  %v271_v23 = vrot.slane %v269_v59, 4  ;;  %v247_v24 = vor.u32 %v246_v11, %v243_v10  ;;  %v252_v30 = vrot.slane %v250_v12, 5  ;;  %v274_v32 = vrot.slane %v272_v62, 5  ;;  %v52_v12 = vld [vmem:[%s12644_s0 + $0x8c] sm:$0x1] }
  0x28   :  { %v261_v31 = vor.u32 %v260_v16, %v257_v15  ;;  %v7859_v35 = vcombine.low %v9829_v14, %v9849_v26  ;;  %v234_v36 = vrot.slane %v233_v17, 4  ;;  %v266_v37 = vrot.slane %v264_v22, 5 }
  0x29   :  { %v278_v38 = vshll.u32 %v50_v13, 16  ;;  %v248_v2 = vrot.slane %v247_v24, 4  ;;  %v275_v41 = vor.u32 %v274_v32, %v271_v23  ;;  %v7860_v42 = vcombine.low %v9867_v28, %v9877_v54  ;;  %v961_v24 = vld [vmem:[#allocation2 + $0x8] sm:$0x1] }
  0x2a   :  { %v262_v21 = vrot.slane %v261_v31, 4  ;;  %v239_v43 = vsel %vm9771_vm3, %v234_v36, %v238_v20  ;;  %v763_v49 = vshrl.u32 %v33_v33, 16  ;;  %v766_v50 = vshll.u32 %v33_v33, 16  ;;  %v9526_v36 = vld [vmem:[%s12645_s2 + $0x68] sm:$0xff]  }
  0x2b   :  { %v280_v44 = vrot.slane %v278_v38, 5  ;;  %v253_v14 = vsel %vm9771_vm3, %v248_v2, %v252_v30  ;;  %v276_v52 = vrot.slane %v275_v41, 4  ;;  %v772_v53 = vshll.u32 %v34_v47, 16  ;;  %v1023_v30 = vld [vmem:[#allocation2 + $0xc] sm:$0x1]  ;;  %v9527_v47 = vld [vmem:[%s12645_s2 + $0x38] sm:$0xff]  }
  0x2c   :  { %v267_v26 = vsel %vm9771_vm3, %v262_v21, %v266_v37  ;;  %v7809_v58 = vcombine.low %v239_v43, %v253_v14  ;;  %v765_v28 = vrot.slane %v763_v49, 4  ;;  %v768_v54 = vrot.slane %v766_v50, 5  ;;  %v964_v2 = vld [vmem:[#allocation2 + $0x10] sm:$0x1]  ;;  %v1026_v21 = vld [vmem:[#allocation2 + $0x14] sm:$0x1]  ;;  %9023 = vmatprep.subr.bf16.mxu1 %v9527_v47 }
  0x2d   :  { %v281_v59 = vsel %vm9771_vm3, %v276_v52, %v280_v44  ;;  %8976 = vmatmul.mubr.msk.bf16.vlgmr.msra.gmra.mxu1 %vm315_vm1, %v7859_v35  ;;  %v7839_v60 = vcombine.low %v9724_v3, %v9729_v4  ;;  %v774_v1 = vrot.slane %v772_v53, 5  ;;  %v777_v5 = vshrl.u32 %v51_v55, 16  ;;  %v1032_v35 = vld [vmem:[#allocation2 + $0x24] sm:$0x1]  ;;  %v1041_v49 = vld [vmem:[#allocation2 + $0x3c] sm:$0x1] }
  0x2e   :  { %8933 = vmatprep.mubr.msk.bf16.mxu0 %vm315_vm1, %v7809_v58  ;;  %v7810_v62 = vcombine.low %v267_v26, %v281_v59  ;;  %8979 = vmatprep.mubr.msk.bf16.mxu1 %vm315_vm1, %v7860_v42  ;;  %v769_v63 = vor.u32 %v768_v54, %v765_v28  ;;  %v780_v6 = vshll.u32 %v51_v55, 16  ;;  %v7862_v3 = vcombine.low %v9932_v48, %v9943_v57  ;;  %v1035_v52 = vld [vmem:[#allocation2 + $0x2c] sm:$0x1]  ;;  %v9529_v53 = vld [vmem:[%s12645_s2 + $0x30] sm:$0xff]   ;;  %v982_v28 = vld [vmem:[#allocation2 + $0x40] sm:$0x1] }
  0x2f   :  { %v779_v4 = vrot.slane %v777_v5, 4  ;;  %v7840_v13 = vcombine.low %v9736_v9, %v9757_v18  ;;  %v7841_v15 = vcombine.low %v9788_v46, %v9797_v51  ;;  %v786_v48 = vshll.u32 %v52_v12, 16  ;;  %9024 = vmatpush3.bf16.msra.mxu1 %v9527_v47  ;;  %v1038_v5 = vld [vmem:[#allocation2 + $0x34] sm:$0x1] }
  0x30   :  { %8934 = vmatmul.mubr.msk.bf16.gmra.mxu0 %vm315_vm1, %v7810_v62  ;;  %v770_v7 = vrot.slane %v769_v63, 4  ;;  %v782_v10 = vrot.slane %v780_v6, 5  ;;  %v7864_v57 = vcombine.low %v253_v14, %v267_v26  ;;  %v7842_v9 = vcombine.low %v9803_v56, %v33_v33  ;;  %v970_v33 = vld [vmem:[#allocation2 + $0x20] sm:$0x1]  ;;  %v973_v26 = vld [vmem:[#allocation2 + $0x28] sm:$0x1]  ;;  %9025 = vmatprep.subr.bf16.mxu1 %v9529_v53 }
  0x31   :  { %8957 = vmatprep.mubr.msk.bf16.mxu0 %vm315_vm1, %v7839_v60  ;;  %v788_v20 = vrot.slane %v786_v48, 5  ;;  %v7843_v18 = vcombine.low %v9845_v25, %v9857_v40  ;;  %v7845_v56 = vcombine.low %v9912_v27, %v9919_v34  ;;  %v7846_v25 = vcombine.low %v9926_v39, %v51_v55  ;;  %v9524_v40 = vld [vmem:[%s12645_s2 + $0x78] sm:$0xff]   ;;  %v9525_v34 = vld [vmem:[%s12645_s2 + $0x70] sm:$0xff]   ;;  %v9528_v14 = vld [vmem:[%s12645_s2 + $0x60] sm:$0xff]  }
  0x32   :  { %v775_v8 = vsel %vm9771_vm3, %v770_v7, %v774_v1  ;;  %v783_v16 = vor.u32 %v782_v10, %v779_v4  ;;  %8991 = vmatprep.subr.bf16.mxu0 %v9524_v40  ;;  %vm1018_vm7 = vsmask.f32 7938  ;;  %v1029_v27 = vld [vmem:[#allocation2 + $0x1c] sm:$0x1]  ;;  %v962_v31 = vsel %vm10039_vm6, 0, %v961_v24  ;;  %v9531_v62 = vld [vmem:[%s12645_s2 + $0x28] sm:$0xff]  }
  0x33   :  { %v7861_v11 = vcombine.low %v9895_v0, %v775_v8  ;;  %v7863_v0 = vcombine.low %v9952_v61, %v239_v43  ;;  %v7844_v61 = vcombine.low %v9863_v45, %v9906_v19  ;;  %v967_v45 = vld [vmem:[#allocation2 + $0x18] sm:$0x1]  ;;  %vm10049_vm8 = vmand %vm955_vm4, %vm1018_vm7  ;;  %963 = vst [vmem:[#allocation2 + $0x8] sm:$0x1] %v962_v31  ;;  %v971_v37 = vsel %vm10039_vm6, 0, %v970_v33  ;;  %9026 = vmatpush3.bf16.msra.mxu1 %v9529_v53  ;;  %v9532_v8 = vld [vmem:[%s12645_s2 + $0x50] sm:$0xff]  }
  0x34   :  { %v784_v17 = vrot.slane %v783_v16, 4  ;;  %v968_v39 = vsel %vm10039_vm6, 0, %v967_v45  ;;  %v1030_v23 = vsel %vm10049_vm8, 0, %v1029_v27  ;;  %v1024_v32 = vsel %vm10049_vm8, 0, %v1023_v30  ;;  %972 = vst [vmem:[#allocation2 + $0x20] sm:$0x1] %v971_v37  ;;  %9027 = vmatprep.subr.bf16.mxu1 %v9531_v62 }
  0x35   :  { %8980 = vmatmul.mubr.msk.bf16.gmra.mxu1 %vm315_vm1, %v7861_v11  ;;  %969 = vst [vmem:[#allocation2 + $0x18] sm:$0x1] %v968_v39  ;;  %1031 = vst [vmem:[#allocation2 + $0x1c] sm:$0x1] %v1030_v23  ;;  %v1033_v38 = vsel %vm10049_vm8, 0, %v1032_v35  ;;  %v965_v41 = vsel %vm10039_vm6, 0, %v964_v2 }
  0x36   :  { %8983 = vmatprep.mubr.msk.bf16.mxu1 %vm315_vm1, %v7862_v3  ;;  %v789_v46 = vsel %vm9771_vm3, %v784_v17, %v788_v20  ;;  %1025 = vst [vmem:[#allocation2 + $0xc] sm:$0x1] %v1024_v32  ;;  %1034 = vst [vmem:[#allocation2 + $0x24] sm:$0x1] %v1033_v38  ;;  %v1027_v42 = vsel %vm10049_vm8, 0, %v1026_v21  ;;  %v1042_v50 = vsel %vm10049_vm8, 0, %v1041_v49 }
  0x37   :  { %v7865_v51 = vcombine.low %v281_v59, %v789_v46  ;;  %966 = vst [vmem:[#allocation2 + $0x10] sm:$0x1] %v965_v41  ;;  %1028 = vst [vmem:[#allocation2 + $0x14] sm:$0x1] %v1027_v42  ;;  %v979_v43 = vld [vmem:[#allocation2 + $0x38] sm:$0x1]  ;;  %9028 = vmatpush3.bf16.msra.mxu1 %v9531_v62 }
  0x38   :  { %8958 = vmatmul.mubr.msk.bf16.vlgmr.msra.gmra.mxu0 %vm315_vm1, %v7840_v13  ;;  %v980_v44 = vsel %vm10039_vm6, 0, %v979_v43  ;;  %1043 = vst [vmem:[#allocation2 + $0x3c] sm:$0x1] %v1042_v50  ;;  %v974_v55 = vsel %vm10039_vm6, 0, %v973_v26  ;;  %v1036_v58 = vsel %vm10049_vm8, 0, %v1035_v52  ;;  %v983_v54 = vsel %vm10039_vm6, 0, %v982_v28 }
  0x39   :  { %8961 = vmatprep.mubr.msk.bf16.mxu0 %vm315_vm1, %v7841_v15  ;;  %8992 = vmatpush3.bf16.msra.mxu0 %v9524_v40  ;;  %981 = vst [vmem:[#allocation2 + $0x38] sm:$0x1] %v980_v44  ;;  %975 = vst [vmem:[#allocation2 + $0x28] sm:$0x1] %v974_v55  ;;  %v1044_v59 = vld [vmem:[#allocation2 + $0x44] sm:$0x1] }
  0x3a   :  { %8993 = vmatprep.subr.bf16.mxu0 %v9525_v34  ;;  %1037 = vst [vmem:[#allocation2 + $0x2c] sm:$0x1] %v1036_v58  ;;  %v9530_v60 = vld [vmem:[%s12645_s2 + $0x58] sm:$0xff]   ;;  %984 = vst [vmem:[#allocation2 + $0x40] sm:$0x1] %v983_v54  ;;  %v1045_v63 = vsel %vm10049_vm8, 0, %v1044_v59 }
  0x3b   :  { %1046 = vst [vmem:[#allocation2 + $0x44] sm:$0x1] %v1045_v63  ;;  %v976_v1 = vld [vmem:[#allocation2 + $0x30] sm:$0x1]  ;;  %v1039_v7 = vsel %vm10049_vm8, 0, %v1038_v5  ;;  %v9533_v11 = vld [vmem:[%s12645_s2 + $0x20] sm:$0xff]  }
  0x3c   :  { %v977_v6 = vsel %vm10039_vm6, 0, %v976_v1  ;;  %1040 = vst [vmem:[#allocation2 + $0x34] sm:$0x1] %v1039_v7  ;;  %v997_v3 = vld [vmem:[#allocation2 + $0x68] sm:$0x1]  ;;  %9029 = vmatprep.subr.bf16.mxu1 %v9533_v11  ;;  %v9686_v21 = vmov 0  }
  0x3d   :  { %8984 = vmatmul.mubr.msk.bf16.gmra.mxu1 %vm315_vm1, %v7863_v0  ;;  %8994 = vmatpush3.bf16.msra.mxu0 %v9525_v34  ;;  %978 = vst [vmem:[#allocation2 + $0x30] sm:$0x1] %v977_v6  ;;  %v998_v4 = vsel %vm10039_vm6, 0, %v997_v3  ;;  %v1059_v10 = vld [vmem:[#allocation2 + $0x6c] sm:$0x1]  ;;  %v9537_v34 = vld [vmem:[%s12645_s2 + $0x10] sm:$0xff]  }
  0x3e   :  { %8987 = vmatprep.mubr.msk.bf16.mxu1 %vm315_vm1, %v7864_v57  ;;  %8995 = vmatprep.subr.bf16.mxu0 %v9526_v36  ;;  %999 = vst [vmem:[#allocation2 + $0x68] sm:$0x1] %v998_v4  ;;  %v1060_v12 = vsel %vm10049_vm8, 0, %v1059_v10  ;;  %v991_v13 = vld [vmem:[#allocation2 + $0x58] sm:$0x1]  ;;  %v9540_v41 = vld [vmem:[%s12645_s2 + $0x8] sm:$0xff]  }
  0x3f   :  { %1061 = vst [vmem:[#allocation2 + $0x6c] sm:$0x1] %v1060_v12  ;;  %v1053_v15 = vld [vmem:[#allocation2 + $0x5c] sm:$0x1]  ;;  %v992_v16 = vsel %vm10039_vm6, 0, %v991_v13  ;;  %9030 = vmatpush3.bf16.msra.mxu1 %v9533_v11  ;;  %v9542_v43 = vld [vmem:[%s12645_s2] sm:$0xff]  }
  0x40   :  { %8962 = vmatmul.mubr.msk.bf16.gmra.mxu0 %vm315_vm1, %v7842_v9  ;;  %v1054_v48 = vsel %vm10049_vm8, 0, %v1053_v15  ;;  %993 = vst [vmem:[#allocation2 + $0x58] sm:$0x1] %v992_v16  ;;  %v1000_v0 = vld [vmem:[#allocation2 + $0x70] sm:$0x1]  ;;  %v9541_v42 = vld [vmem:[%s12645_s2 + $0xb8] sm:$0xff]  }
  0x41   :  { %8965 = vmatprep.mubr.msk.bf16.mxu0 %vm315_vm1, %v7843_v18  ;;  %8996 = vmatpush3.bf16.msra.mxu0 %v9526_v36  ;;  %1055 = vst [vmem:[#allocation2 + $0x5c] sm:$0x1] %v1054_v48  ;;  %v1062_v57 = vld [vmem:[#allocation2 + $0x74] sm:$0x1]  ;;  %v1001_v17 = vsel %vm10039_vm6, 0, %v1000_v0  ;;  %v9547_v26 = vld [vmem:[%s12645_s2 + $0xf8] sm:$0xff]  }
  0x42   :  { %8997 = vmatprep.subr.bf16.mxu0 %v9528_v14  ;;  %v1063_v20 = vsel %vm10049_vm8, 0, %v1062_v57  ;;  %1002 = vst [vmem:[#allocation2 + $0x70] sm:$0x1] %v1001_v17  ;;  %v994_v9 = vld [vmem:[#allocation2 + $0x60] sm:$0x1]  ;;  %vm1305_vm9 = vcmask 1043456  }
  0x43   :  { %1064 = vst [vmem:[#allocation2 + $0x74] sm:$0x1] %v1063_v20  ;;  %v995_v18 = vsel %vm10039_vm6, 0, %v994_v9  ;;  %v1056_v46 = vld [vmem:[#allocation2 + $0x64] sm:$0x1]  ;;  %vm10255_vm10 = vmand %vm1305_vm9, %vm1018_vm7  ;;  %vm3231_vm11 = vcmask 1042432  }
  0x44   :  { %996 = vst [vmem:[#allocation2 + $0x60] sm:$0x1] %v995_v18  ;;  %v1009_v40 = vld [vmem:[#allocation2 + $0x88] sm:$0x1]  ;;  %v1071_v27 = vld [vmem:[#allocation2 + $0x8c] sm:$0x1] }
  0x45   :  { %8988 = vmatmul.mubr.msk.bf16.gmra.mxu1 %vm315_vm1, %v7865_v51  ;;  %8998 = vmatpush3.bf16.msra.mxu0 %v9528_v14  ;;  %v9534_v51 = vld [vmem:[%s12645_s2 + $0x48] sm:$0xff]   ;;  %v1010_v45 = vsel %vm10039_vm6, 0, %v1009_v40  ;;  %v1072_v39 = vsel %vm10049_vm8, 0, %v1071_v27  ;;  %v1003_v23 = vld [vmem:[#allocation2 + $0x78] sm:$0x1]  ;;  %vm3232_vm12 = vcmask 1046532  }
  0x46   :  { %8999 = vmatprep.subr.bf16.mxu0 %v9530_v60  ;;  %1011 = vst [vmem:[#allocation2 + $0x88] sm:$0x1] %v1010_v45  ;;  %1073 = vst [vmem:[#allocation2 + $0x8c] sm:$0x1] %v1072_v39  ;;  %v1065_v24 = vld [vmem:[#allocation2 + $0x7c] sm:$0x1] }
  0x47   :  { %v1004_v30 = vsel %vm10039_vm6, 0, %v1003_v23  ;;  %v1066_v31 = vsel %vm10049_vm8, 0, %v1065_v24  ;;  %v1012_v32 = vld [vmem:[#allocation2 + $0x90] sm:$0x1]  ;;  %v1074_v33 = vld [vmem:[#allocation2 + $0x94] sm:$0x1]  ;;  %vm10604_vm13 = vmor %vm3231_vm11, %vm3232_vm12 }
  0x48   :  { %8966 = vmatmul.mubr.msk.bf16.gmra.mxu0 %vm315_vm1, %v7844_v61  ;;  %v9535_v61 = vld [vmem:[%s12645_s2 + $0x18] sm:$0xff]   ;;  %1005 = vst [vmem:[#allocation2 + $0x78] sm:$0x1] %v1004_v30  ;;  %1067 = vst [vmem:[#allocation2 + $0x7c] sm:$0x1] %v1066_v31  ;;  %v1013_v35 = vsel %vm10039_vm6, 0, %v1012_v32 }
  0x49   :  { %8969 = vmatprep.mubr.msk.bf16.mxu0 %vm315_vm1, %v7845_v56  ;;  %9000 = vmatpush3.bf16.msra.mxu0 %v9530_v60  ;;  %v1057_v56 = vsel %vm10049_vm8, 0, %v1056_v46  ;;  %v1075_v36 = vsel %vm10049_vm8, 0, %v1074_v33  ;;  %1014 = vst [vmem:[#allocation2 + $0x90] sm:$0x1] %v1013_v35  ;;  %v1006_v37 = vld [vmem:[#allocation2 + $0x80] sm:$0x1] }
  0x4a   :  { %9001 = vmatprep.subr.bf16.mxu0 %v9532_v8  ;;  %1058 = vst [vmem:[#allocation2 + $0x64] sm:$0x1] %v1057_v56  ;;  %9031 = vmatprep.subr.bf16.mxu1 %v9535_v61  ;;  %1076 = vst [vmem:[#allocation2 + $0x94] sm:$0x1] %v1075_v36  ;;  %v1068_v38 = vld [vmem:[#allocation2 + $0x84] sm:$0x1] }
  0x4b   :  { %9032 = vmatpush3.bf16.msra.mxu1 %v9535_v61  ;;  %v1007_v47 = vsel %vm10039_vm6, 0, %v1006_v37  ;;  %v1069_v2 = vsel %vm10049_vm8, 0, %v1068_v38  ;;  %946 = vst [vmem:[#allocation2] sm:$0xf] %v9686_v21  ;;  %947 = vst [vmem:[#allocation2 + $0x4] sm:$0x1] %v9686_v21 }
  0x4c   :  { %9033 = vmatprep.subr.bf16.mxu1 %v9537_v34  ;;  %1008 = vst [vmem:[#allocation2 + $0x80] sm:$0x1] %v1007_v47  ;;  %1070 = vst [vmem:[#allocation2 + $0x84] sm:$0x1] %v1069_v2 }
  0x4d   :  { %9002 = vmatpush3.bf16.msra.mxu0 %v9532_v8  ;;  %948 = vst [vmem:[#allocation2 + $0x50] sm:$0xf] %v9686_v21  ;;  %949 = vst [vmem:[#allocation2 + $0x54] sm:$0x1] %v9686_v21 }
  0x4e   :  { %9003 = vmatprep.subr.bf16.mxu0 %v9534_v51  ;;  %951 = vst [vmem:[#allocation2 + $0x48] sm:$0xf] %v9686_v21  ;;  %952 = vst [vmem:[#allocation2 + $0x4c] sm:$0x1] %v9686_v21 }
  0x4f   :  { %9034 = vmatpush3.bf16.msra.mxu1 %v9537_v34  ;;  %953 = vst [vmem:[#allocation2 + $0x98] sm:$0xf] %v9686_v21  ;;  %954 = vst [vmem:[#allocation2 + $0x9c] sm:$0x1] %v9686_v21 }
  0x50   :  { %8970 = vmatmul.mubr.msk.bf16.gmra.mxu0 %vm315_vm1, %v7846_v25  ;;  %v9536_v25 = vld [vmem:[%s12645_s2 + $0x40] sm:$0xff]   ;;  %9035 = vmatprep.subr.bf16.mxu1 %v9540_v41 }
  0x51   :  { %9004 = vmatpush3.bf16.msra.mxu0 %v9534_v51 }
  0x52   :  { %9005 = vmatprep.subr.bf16.mxu0 %v9536_v25  ;;  %v958_v44 = vld [vmem:[#allocation2] sm:$0x1]  ;;  %v1020_v49 = vld [vmem:[#allocation2 + $0x4] sm:$0x1] }
  0x53   :  { %v959_v50 = vsel %vm10039_vm6, 0, %v958_v44  ;;  %v1021_v14 = vsel %vm10049_vm8, 0, %v1020_v49  ;;  %9036 = vmatpush3.bf16.msra.mxu1 %v9540_v41 }
  0x54   :  { %960 = vst [vmem:[#allocation2] sm:$0x1] %v959_v50  ;;  %1022 = vst [vmem:[#allocation2 + $0x4] sm:$0x1] %v1021_v14  ;;  %9037 = vmatprep.subr.bf16.mxu1 %v9542_v43  ;;  %v988_v10 = vld [vmem:[#allocation2 + $0x50] sm:$0x1] }
  0x55   :  { %9006 = vmatpush3.bf16.msra.mxu0 %v9536_v25  ;;  %v989_v11 = vsel %vm10039_vm6, 0, %v988_v10  ;;  %v1050_v12 = vld [vmem:[#allocation2 + $0x54] sm:$0x1] }
  0x56   :  { %9055 = vmatprep.subr.bf16.mxu0 %v9541_v42  ;;  %990 = vst [vmem:[#allocation2 + $0x50] sm:$0x1] %v989_v11  ;;  %v1051_v16 = vsel %vm10049_vm8, 0, %v1050_v12 }
  0x57   :  { %9038 = vmatpush3.bf16.msra.mxu1 %v9542_v43  ;;  %1052 = vst [vmem:[#allocation2 + $0x54] sm:$0x1] %v1051_v16 }
  0x58   :  { %9087 = vmatprep.subr.bf16.mxu1 %v9547_v26 }
  0x5b   :  { %v2062_v17 = vld [vmem:[#allocation2] sm:$0xf]  ;;  %v2063_v25 = vld [vmem:[#allocation2 + $0x4] sm:$0x1] }
  0x5c   :  { %v2095_v46 = vshrl.u32 %v2062_v17, 16  ;;  %v2098_v40 = vshll.u32 %v2062_v17, 16  ;;  %v2104_v31 = vshll.u32 %v2063_v25, 16 }
  0x5d   :  { %v2078_v61 = vld [vmem:[#allocation2 + $0x50] sm:$0xf] }
  0x5e   :  { %v2097_v34 = vrot.slane %v2095_v46, 4  ;;  %v2207_v39 = vshrl.u32 %v2078_v61, 16  ;;  %v2210_v23 = vshll.u32 %v2078_v61, 16  ;;  %v2100_v30 = vrot.slane %v2098_v40, 5  ;;  %v2079_v36 = vld [vmem:[#allocation2 + $0x54] sm:$0x1] }
  0x5f   :  { %v10201_v49 = vrot.slane %v2104_v31, 5  ;;  %v2216_v50 = vshll.u32 %v2079_v36, 16 }
  0x60   :  { %v2209_v37 = vrot.slane %v2207_v39, 4  ;;  %v2212_v38 = vrot.slane %v2210_v23, 5  ;;  %v2101_v2 = vor.u32 %v2100_v30, %v2097_v34 }
  0x62   :  { %v10199_v44 = vrot.slane %v2101_v2, 4  ;;  %v2213_v26 = vor.u32 %v2212_v38, %v2209_v37 }
  0x64   :  { %v10210_v34 = vrot.slane %v2213_v26, 4 }
  0xc7   :  { %v8941_v52 = vpop.f32.mrf.mxu1 }
  0xc9   :  { %v541_v53 = vpop.f32.mrf.mxu1 }
  0xcb   :  { %v10167_v55 = vpop.f32.mrf.mxu1 }
  0xcd   :  { %v10169_v58 = vpop.f32.mrf.mxu1 }
  0xd2   :  { %v10171_v28 = vpop.f32.mrf.mxu1 }
  0xd4   :  { %v8923_v54 = vpop.f32.mrf.mxu0  ;;  %v10173_v59 = vpop.f32.mrf.mxu1 }
  0xd5   :  { %v550_v43 = vadd.f32 %v8941_v52, %v8923_v54  ;;  %v2107_v52 = vsel %vm9771_vm3, %v10199_v44, %v10201_v49 }
  0xd6   :  { %v374_v60 = vpop.f32.mrf.mxu0  ;;  %v10175_v62 = vpop.f32.mrf.mxu1 }
  0xd7   :  { %v542_v10 = vadd.f32 %v541_v53, %v374_v60  ;;  %v10212_v53 = vrot.slane %v2216_v50, 5 }
  0xd8   :  { %v8924_v63 = vpop.f32.mrf.mxu0  ;;  %v10177_v1 = vpop.f32.mrf.mxu1 }
  0xd9   :  { %v553_v17 = vadd.f32 %v10167_v55, %v8924_v63 }
  0xda   :  { %v377_v5 = vpop.f32.mrf.mxu0 }
  0xdb   :  { %v545_v54 = vadd.f32 %v10169_v58, %v377_v5 }
  0xdc   :  { %v10179_v6 = vpop.f32.mrf.mxu1 }
  0xdd   :  { %v8927_v7 = vpop.f32.mrf.mxu0 }
  0xde   :  { %v10181_v8 = vpop.f32.mrf.mxu1  ;;  %v566_v25 = vadd.f32 %v10171_v28, %v8927_v7 }
  0xdf   :  { %v390_v3 = vpop.f32.mrf.mxu0 }
  0xe0   :  { %v10183_v4 = vpop.f32.mrf.mxu1  ;;  %v558_v60 = vadd.f32 %v10173_v59, %v390_v3 }
  0xe1   :  { %v8928_v13 = vpop.f32.mrf.mxu0 }
  0xe2   :  { %v10187_v15 = vpop.f32.mrf.mxu1 }
  0xe3   :  { %v393_v48 = vpop.f32.mrf.mxu0 }
  0xe4   :  { %v10219_v23 = vadd.f32 %v10177_v1, %v393_v48 }
  0xe5   :  { %v10191_v0 = vpop.f32.mrf.mxu1 }
  0xe7   :  { %v8931_v57 = vpop.f32.mrf.mxu0  ;;  %v10193_v20 = vpop.f32.mrf.mxu1 }
  0xe8   :  { %v10222_v58 = vadd.f32 %v10179_v6, %v8931_v57 }
  0xe9   :  { %v406_v9 = vpop.f32.mrf.mxu0  ;;  %v10195_v18 = vpop.f32.mrf.mxu1 }
  0xea   :  { %v10225_v28 = vadd.f32 %v10181_v8, %v406_v9  ;;  %v2219_v8 = vsel %vm9771_vm3, %v10210_v34, %v10212_v53 }
  0xeb   :  { %v8932_v51 = vpop.f32.mrf.mxu0  ;;  %v10197_v56 = vpop.f32.mrf.mxu1 }
  0xec   :  { %v10230_v31 = vadd.f32 %v10183_v4, %v8932_v51 }
  0xed   :  { %v409_v45 = vpop.f32.mrf.mxu0  ;;  %v8977_v27 = vpop.f32.mrf.mxu1 }
  0xef   :  { %v867_v24 = vpop.f32.mrf.mxu1 }
  0xf0   :  { %v8935_v32 = vpop.f32.mrf.mxu0 }
  0xf1   :  { %v8978_v33 = vpop.f32.mrf.mxu1  ;;  %v10236_v1 = vadd.f32 %v10191_v0, %v8935_v32 }
  0xf2   :  { %v422_v35 = vpop.f32.mrf.mxu0 }
  0xf3   :  { %v870_v47 = vpop.f32.mrf.mxu1 }
  0xf4   :  { %v8936_v21 = vpop.f32.mrf.mxu0 }
  0xf5   :  { %v8981_v42 = vpop.f32.mrf.mxu1  ;;  %v10246_v4 = vadd.f32 %v10195_v18, %v8936_v21  ;;  %v1319_v18 = vld [vmem:[#allocation2 + $0x18] sm:$0xf] }
  0xf6   :  { %v425_v41 = vpop.f32.mrf.mxu0 }
  0xf7   :  { %v883_v16 = vpop.f32.mrf.mxu1 }
  0xf8   :  { %v8959_v14 = vpop.f32.mrf.mxu0 }
  0xf9   :  { %v748_v11 = vadd.f32 %v8959_v14, %v550_v43  ;;  %v10227_v7 = vpop.f32.mrf.mxu1 }
  0xfa   :  { %v683_v12 = vpop.f32.mrf.mxu0 }
  0xfb   :  { %v932_v46 = vadd.f32 %v8977_v27, %v748_v11  ;;  %v746_v61 = vadd.f32 %v683_v12, %v542_v10  ;;  %v10216_v27 = vadd.f32 %v10175_v62, %v8928_v13  ;;  %v10233_v62 = vadd.f32 %v10187_v15, %v409_v45  ;;  %v10251_v32 = vpop.f32.mrf.mxu1  ;;  %v1307_v10 = vld [vmem:[#allocation2 + $0x8] sm:$0xf]  ;;  %v1310_v11 = vld [vmem:[#allocation2 + $0xc] sm:$0x1] }
  0xfc   :  { %v8960_v40 = vpop.f32.mrf.mxu0  ;;  %v10243_v13 = vadd.f32 %v10193_v20, %v422_v35  ;;  %v10249_v15 = vadd.f32 %v10197_v56, %v425_v41  ;;  %v1322_v35 = vld [vmem:[#allocation2 + $0x1c] sm:$0x1] }
  0xfd   :  { %v1082_v39 = vmax.f32 %v932_v46, 0.0  ;;  %v930_v55 = vadd.f32 %v867_v24, %v746_v61  ;;  %v749_v63 = vadd.f32 %v8960_v40, %v553_v17 }
  0xfe   :  { %v686_v5 = vpop.f32.mrf.mxu0 }
  0xff   :  { %v8549_v30 = vpack.c.bf16 %v1082_v39, %v1082_v39  ;;  %v1080_v59 = vmax.f32 %v930_v55, 0.0  ;;  %v933_v3 = vadd.f32 %v8978_v33, %v749_v63  ;;  %v747_v24 = vadd.f32 %v686_v5, %v545_v54  ;;  %v8985_v54 = vpop.f32.mrf.mxu1 }
 0x100   :  { %v8963_v6 = vpop.f32.mrf.mxu0 }
 0x101   :  { %v1161_v48 = vshrl.u32 %v8549_v30, 16  ;;  %v8547_v57 = vpack.c.bf16 %v1080_v59, %v1080_v59  ;;  %v1083_v9 = vmax.f32 %v933_v3, 0.0  ;;  %v931_v0 = vadd.f32 %v870_v47, %v747_v24  ;;  %v1325_v24 = vld [vmem:[#allocation2 + $0x20] sm:$0xf] }
 0x102   :  { %v752_v51 = vadd.f32 %v8963_v6, %v566_v25  ;;  %v699_v45 = vpop.f32.mrf.mxu0  ;;  %v1164_v36 = vshll.u32 %v8549_v30, 16  ;;  %v1328_v6 = vld [vmem:[#allocation2 + $0x24] sm:$0x1] }
 0x103   :  { %v1163_v33 = vrot.slane %v1161_v48, 7  ;;  %v1145_v37 = vshrl.u32 %v8547_v57, 16  ;;  %v8550_v38 = vpack.c.bf16 %v1083_v9, %v1083_v9  ;;  %v1148_v2 = vshll.u32 %v8547_v57, 16 }
 0x104   :  { %v1081_v56 = vmax.f32 %v931_v0, 0.0  ;;  %v936_v21 = vadd.f32 %v8981_v42, %v752_v51  ;;  %v750_v47 = vadd.f32 %v699_v45, %v558_v60  ;;  %v8964_v41 = vpop.f32.mrf.mxu0 }
 0x105   :  { %v1166_v43 = vor.u32 %v1164_v36, %v1163_v33  ;;  %v1167_v50 = vrot.slane %v1163_v33, 4  ;;  %v1147_v14 = vrot.slane %v1145_v37, 7  ;;  %v1169_v26 = vshrl.u32 %v8550_v38, 16  ;;  %v899_v33 = vpop.f32.mrf.mxu1  ;;  %v1313_v37 = vld [vmem:[#allocation2 + $0x10] sm:$0xf] }
 0x106   :  { %v1172_v12 = vshll.u32 %v8550_v38, 16  ;;  %v8548_v17 = vpack.c.bf16 %v1081_v56, %v1081_v56  ;;  %v1086_v46 = vmax.f32 %v936_v21, 0.0  ;;  %v934_v61 = vadd.f32 %v883_v16, %v750_v47  ;;  %v702_v25 = vpop.f32.mrf.mxu0  ;;  %v1316_v38 = vld [vmem:[#allocation2 + $0x14] sm:$0x1] }
 0x107   :  { %v1320_v40 = vsel %vm10255_vm10, %v1166_v43, %v1319_v18  ;;  %v1323_v42 = vsel %vm10039_vm6, %v1167_v50, %v1322_v35  ;;  %v1150_v60 = vor.u32 %v1148_v2, %v1147_v14  ;;  %v1151_v39 = vrot.slane %v1147_v14, 4 }
 0x108   :  { %1321 = vst [vmem:[#allocation2 + $0x18] sm:$0xf] %v1320_v40  ;;  %1324 = vst [vmem:[#allocation2 + $0x1c] sm:$0x1] %v1323_v42  ;;  %v1171_v55 = vrot.slane %v1169_v26, 7  ;;  %v1153_v63 = vshrl.u32 %v8548_v17, 16  ;;  %v8553_v30 = vpack.c.bf16 %v1086_v46, %v1086_v46  ;;  %v8967_v59 = vpop.f32.mrf.mxu0  ;;  %v753_v57 = vadd.f32 %v8964_v41, %v10216_v27 }
 0x109   :  { %v1156_v5 = vshll.u32 %v8548_v17, 16  ;;  %v1308_v16 = vsel %vm10255_vm10, %v1150_v60, %v1307_v10  ;;  %v1311_v3 = vsel %vm10039_vm6, %v1151_v39, %v1310_v11  ;;  %v1084_v48 = vmax.f32 %v934_v61, 0.0  ;;  %v1343_v11 = vld [vmem:[#allocation2 + $0x38] sm:$0xf]  ;;  %v8986_v61 = vpop.f32.mrf.mxu1 }
 0x10a   :  { %1309 = vst [vmem:[#allocation2 + $0x8] sm:$0xf] %v1308_v16  ;;  %1312 = vst [vmem:[#allocation2 + $0xc] sm:$0x1] %v1311_v3  ;;  %v1174_v9 = vor.u32 %v1172_v12, %v1171_v55  ;;  %v1175_v0 = vrot.slane %v1171_v55, 4  ;;  %v1155_v51 = vrot.slane %v1153_v63, 7  ;;  %v715_v36 = vpop.f32.mrf.mxu0  ;;  %v937_v2 = vadd.f32 %v10227_v7, %v753_v57 }
 0x10b   :  { %v1193_v45 = vshrl.u32 %v8553_v30, 16  ;;  %v1196_v18 = vshll.u32 %v8553_v30, 16  ;;  %v8551_v35 = vpack.c.bf16 %v1084_v48, %v1084_v48  ;;  %v751_v56 = vadd.f32 %v702_v25, %v10219_v23  ;;  %v1346_v12 = vld [vmem:[#allocation2 + $0x3c] sm:$0x1]  ;;  %v1331_v55 = vld [vmem:[#allocation2 + $0x28] sm:$0xf] }
 0x10c   :  { %v1326_v21 = vsel %vm10255_vm10, %v1174_v9, %v1325_v24  ;;  %v1329_v27 = vsel %vm10039_vm6, %v1175_v0, %v1328_v6  ;;  %v1158_v47 = vor.u32 %v1156_v5, %v1155_v51  ;;  %v1159_v41 = vrot.slane %v1155_v51, 4  ;;  %v8968_v43 = vpop.f32.mrf.mxu0  ;;  %v1334_v63 = vld [vmem:[#allocation2 + $0x2c] sm:$0x1] }
 0x10d   :  { %1327 = vst [vmem:[#allocation2 + $0x20] sm:$0xf] %v1326_v21  ;;  %1330 = vst [vmem:[#allocation2 + $0x24] sm:$0x1] %v1329_v27  ;;  %v1195_v50 = vrot.slane %v1193_v45, 7  ;;  %v1177_v14 = vshrl.u32 %v8551_v35, 16  ;;  %v935_v17 = vadd.f32 %v10251_v32, %v751_v56  ;;  %v756_v46 = vadd.f32 %v8967_v59, %v10222_v58 }
 0x10e   :  { %v1180_v26 = vshll.u32 %v8551_v35, 16  ;;  %v1087_v10 = vmax.f32 %v937_v2, 0.0  ;;  %v1314_v7 = vsel %vm10255_vm10, %v1158_v47, %v1313_v37  ;;  %v1317_v23 = vsel %vm10039_vm6, %v1159_v41, %v1316_v38  ;;  %v718_v25 = vpop.f32.mrf.mxu0  ;;  %v1349_v35 = vld [vmem:[#allocation2 + $0x40] sm:$0xf]  ;;  %v1352_v2 = vld [vmem:[#allocation2 + $0x44] sm:$0x1] }
 0x10f   :  { %1315 = vst [vmem:[#allocation2 + $0x10] sm:$0xf] %v1314_v7  ;;  %1318 = vst [vmem:[#allocation2 + $0x14] sm:$0x1] %v1317_v23  ;;  %v1198_v40 = vor.u32 %v1196_v18, %v1195_v50  ;;  %v1199_v42 = vrot.slane %v1195_v50, 4  ;;  %v1179_v60 = vrot.slane %v1177_v14, 7  ;;  %v940_v30 = vadd.f32 %v8985_v54, %v756_v46  ;;  %v902_v54 = vpop.f32.mrf.mxu1 }
 0x110   :  { %v8554_v39 = vpack.c.bf16 %v1087_v10, %v1087_v10  ;;  %v1085_v5 = vmax.f32 %v935_v17, 0.0  ;;  %v754_v16 = vadd.f32 %v715_v36, %v10225_v28  ;;  %v757_v3 = vadd.f32 %v8968_v43, %v10230_v31  ;;  %v8971_v6 = vpop.f32.mrf.mxu0  ;;  %v1337_v10 = vld [vmem:[#allocation2 + $0x30] sm:$0xf]  ;;  %v1340_v7 = vld [vmem:[#allocation2 + $0x34] sm:$0x1] }
 0x111   :  { %v1344_v32 = vsel %vm10255_vm10, %v1198_v40, %v1343_v11  ;;  %v1347_v58 = vsel %vm10039_vm6, %v1199_v42, %v1346_v12  ;;  %v1182_v59 = vor.u32 %v1180_v26, %v1179_v60  ;;  %v1183_v24 = vrot.slane %v1179_v60, 4  ;;  %v8989_v26 = vpop.f32.mrf.mxu1  ;;  %v6382_v22 = vld [vmem:[#allocation2 + $0x18] sm:$0xe] }
 0x112   :  { %1345 = vst [vmem:[#allocation2 + $0x38] sm:$0xf] %v1344_v32  ;;  %1348 = vst [vmem:[#allocation2 + $0x3c] sm:$0x1] %v1347_v58  ;;  %v1201_v48 = vshrl.u32 %v8554_v39, 16  ;;  %v1204_v57 = vshll.u32 %v8554_v39, 16  ;;  %v8552_v9 = vpack.c.bf16 %v1085_v5, %v1085_v5  ;;  %v938_v51 = vadd.f32 %v899_v33, %v754_v16  ;;  %v731_v41 = vpop.f32.mrf.mxu0 }
 0x113   :  { %v1090_v0 = vmax.f32 %v940_v30, 0.0  ;;  %v1332_v28 = vsel %vm10255_vm10, %v1182_v59, %v1331_v55  ;;  %v1335_v31 = vsel %vm10039_vm6, %v1183_v24, %v1334_v63  ;;  %v941_v45 = vadd.f32 %v8986_v61, %v757_v3  ;;  %v1367_v5 = vld [vmem:[#allocation2 + $0x68] sm:$0xf]  ;;  %v1370_v30 = vld [vmem:[#allocation2 + $0x6c] sm:$0x1]  ;;  %v915_v32 = vpop.f32.mrf.mxu1 }
 0x114   :  { %1333 = vst [vmem:[#allocation2 + $0x28] sm:$0xf] %v1332_v28  ;;  %1336 = vst [vmem:[#allocation2 + $0x2c] sm:$0x1] %v1335_v31  ;;  %v1203_v36 = vrot.slane %v1201_v48, 7  ;;  %v1185_v37 = vshrl.u32 %v8552_v9, 16  ;;  %v755_v27 = vadd.f32 %v718_v25, %v10233_v62  ;;  %v760_v47 = vadd.f32 %v8971_v6, %v10236_v1  ;;  %v8972_v39 = vpop.f32.mrf.mxu0 }
 0x115   :  { %v1188_v38 = vshll.u32 %v8552_v9, 16  ;;  %v8557_v18 = vpack.c.bf16 %v1090_v0, %v1090_v0  ;;  %v1088_v56 = vmax.f32 %v938_v51, 0.0  ;;  %v1091_v21 = vmax.f32 %v941_v45, 0.0  ;;  %v1355_v6 = vld [vmem:[#allocation2 + $0x58] sm:$0xf] }
 0x116   :  { %v1206_v43 = vor.u32 %v1204_v57, %v1203_v36  ;;  %v1207_v50 = vrot.slane %v1203_v36, 4  ;;  %v1187_v14 = vrot.slane %v1185_v37, 7  ;;  %v939_v17 = vadd.f32 %v902_v54, %v755_v27  ;;  %v1358_v57 = vld [vmem:[#allocation2 + $0x5c] sm:$0x1]  ;;  %v1373_v9 = vld [vmem:[#allocation2 + $0x70] sm:$0xf]  ;;  %v8990_v27 = vpop.f32.mrf.mxu1 }
 0x117   :  { %v1225_v33 = vshrl.u32 %v8557_v18, 16  ;;  %v1228_v23 = vshll.u32 %v8557_v18, 16  ;;  %v8555_v11 = vpack.c.bf16 %v1088_v56, %v1088_v56  ;;  %v8558_v12 = vpack.c.bf16 %v1091_v21, %v1091_v21  ;;  %v1376_v0 = vld [vmem:[#allocation2 + $0x74] sm:$0x1]  ;;  %v10306_v18 = vld [vmem:[#allocation2 + $0x8] sm:$0xf] }
 0x118   :  { %v1350_v46 = vsel %vm10255_vm10, %v1206_v43, %v1349_v35  ;;  %v1353_v62 = vsel %vm10039_vm6, %v1207_v50, %v1352_v2  ;;  %v1190_v61 = vor.u32 %v1188_v38, %v1187_v14  ;;  %v1191_v1 = vrot.slane %v1187_v14, 4 }
 0x119   :  { %1351 = vst [vmem:[#allocation2 + $0x40] sm:$0xf] %v1350_v46  ;;  %1354 = vst [vmem:[#allocation2 + $0x44] sm:$0x1] %v1353_v62  ;;  %v1227_v25 = vrot.slane %v1225_v33, 7  ;;  %v1209_v40 = vshrl.u32 %v8555_v11, 16  ;;  %v944_v28 = vadd.f32 %v8989_v26, %v760_v47  ;;  %v758_v31 = vadd.f32 %v731_v41, %v10243_v13  ;;  %v734_v13 = vpop.f32.mrf.mxu0 }
 0x11a   :  { %v1212_v42 = vshll.u32 %v8555_v11, 16  ;;  %v1233_v60 = vshrl.u32 %v8558_v12, 16  ;;  %v1338_v55 = vsel %vm10255_vm10, %v1190_v61, %v1337_v10  ;;  %v1341_v63 = vsel %vm10039_vm6, %v1191_v1, %v1340_v7  ;;  %v1361_v26 = vld [vmem:[#allocation2 + $0x60] sm:$0xf]  ;;  %v1364_v7 = vld [vmem:[#allocation2 + $0x64] sm:$0x1]  ;;  %v918_v61 = vpop.f32.mrf.mxu1 }
 0x11b   :  { %v1236_v16 = vshll.u32 %v8558_v12, 16  ;;  %v1089_v3 = vmax.f32 %v939_v17, 0.0  ;;  %1339 = vst [vmem:[#allocation2 + $0x30] sm:$0xf] %v1338_v55  ;;  %1342 = vst [vmem:[#allocation2 + $0x34] sm:$0x1] %v1341_v63  ;;  %v1230_v58 = vor.u32 %v1228_v23, %v1227_v25  ;;  %v761_v51 = vadd.f32 %v8972_v39, %v10246_v4 }
 0x11c   :  { %v1231_v59 = vrot.slane %v1227_v25, 4  ;;  %v1211_v24 = vrot.slane %v1209_v40, 7  ;;  %v1235_v48 = vrot.slane %v1233_v60, 7  ;;  %v1094_v41 = vmax.f32 %v944_v28, 0.0  ;;  %v1405_v55 = vld [vmem:[#allocation2 + $0x10] sm:$0xf] }
 0x11d   :  { %v8556_v54 = vpack.c.bf16 %v1089_v3, %v1089_v3  ;;  %v1368_v45 = vsel %vm10255_vm10, %v1230_v58, %v1367_v5  ;;  %v942_v43 = vadd.f32 %v915_v32, %v758_v31  ;;  %v945_v10 = vadd.f32 %v8990_v27, %v761_v51  ;;  %v1391_v3 = vld [vmem:[#allocation2 + $0x88] sm:$0xf]  ;;  %v1379_v31 = vld [vmem:[#allocation2 + $0x78] sm:$0xf]  ;;  %v1382_v51 = vld [vmem:[#allocation2 + $0x7c] sm:$0x1] }
 0x11e   :  { %v1371_v36 = vsel %vm10039_vm6, %v1231_v59, %v1370_v30  ;;  %v1214_v37 = vor.u32 %v1212_v42, %v1211_v24  ;;  %v1215_v38 = vrot.slane %v1211_v24, 4  ;;  %1369 = vst [vmem:[#allocation2 + $0x68] sm:$0xf] %v1368_v45  ;;  %v1238_v35 = vor.u32 %v1236_v16, %v1235_v48  ;;  %v1394_v24 = vld [vmem:[#allocation2 + $0x8c] sm:$0x1] }
 0x11f   :  { %1372 = vst [vmem:[#allocation2 + $0x6c] sm:$0x1] %v1371_v36  ;;  %v1239_v2 = vrot.slane %v1235_v48, 4  ;;  %v1217_v56 = vshrl.u32 %v8556_v54, 16  ;;  %v1220_v21 = vshll.u32 %v8556_v54, 16  ;;  %v8561_v23 = vpack.c.bf16 %v1094_v41, %v1094_v41 }
 0x120   :  { %v1356_v4 = vsel %vm10255_vm10, %v1214_v37, %v1355_v6  ;;  %v1359_v47 = vsel %vm10039_vm6, %v1215_v38, %v1358_v57  ;;  %v1374_v50 = vsel %vm10255_vm10, %v1238_v35, %v1373_v9  ;;  %v1092_v11 = vmax.f32 %v942_v43, 0.0 }
 0x121   :  { %1357 = vst [vmem:[#allocation2 + $0x58] sm:$0xf] %v1356_v4  ;;  %1360 = vst [vmem:[#allocation2 + $0x5c] sm:$0x1] %v1359_v47  ;;  %v1377_v14 = vsel %vm10039_vm6, %v1239_v2, %v1376_v0  ;;  %v1219_v33 = vrot.slane %v1217_v56, 7  ;;  %v759_v12 = vadd.f32 %v734_v13, %v10249_v15  ;;  %v1436_v17 = vshrl.u32 %v10306_v18, 16 }
 0x122   :  { %1375 = vst [vmem:[#allocation2 + $0x70] sm:$0xf] %v1374_v50  ;;  %1378 = vst [vmem:[#allocation2 + $0x74] sm:$0x1] %v1377_v14  ;;  %v1095_v1 = vmax.f32 %v945_v10, 0.0  ;;  %v1439_v25 = vshll.u32 %v10306_v18, 16  ;;  %v8559_v60 = vpack.c.bf16 %v1092_v11, %v1092_v11  ;;  %v7907_v35 = vcombine.low %v10306_v18, %v1405_v55 }
 0x123   :  { %v1222_v46 = vor.u32 %v1220_v21, %v1219_v33  ;;  %v1223_v62 = vrot.slane %v1219_v33, 4  ;;  %v1257_v40 = vshrl.u32 %v8561_v23, 16  ;;  %v1260_v42 = vshll.u32 %v8561_v23, 16  ;;  %v1407_v2 = vld [vmem:[#allocation2 + $0x18] sm:$0xf] }
 0x124   :  { %v943_v39 = vadd.f32 %v918_v61, %v759_v12  ;;  %v8562_v15 = vpack.c.bf16 %v1095_v1, %v1095_v1  ;;  %v10323_v30 = vrot.slane %v1436_v17, 4  ;;  %v1241_v32 = vshrl.u32 %v8559_v60, 16  ;;  %v1397_v4 = vld [vmem:[#allocation2 + $0x90] sm:$0xf]  ;;  %v1400_v47 = vld [vmem:[#allocation2 + $0x94] sm:$0x1]  ;;  %9007 = vmatprep.mubr.bf16.mxu0 %v7907_v35 }
 0x125   :  { %v1362_v63 = vsel %vm10255_vm10, %v1222_v46, %v1361_v26  ;;  %v1365_v5 = vsel %vm10039_vm6, %v1223_v62, %v1364_v7  ;;  %v1259_v16 = vrot.slane %v1257_v40, 7  ;;  %v1244_v58 = vshll.u32 %v8559_v60, 16  ;;  %v1409_v33 = vld [vmem:[#allocation2 + $0x20] sm:$0xf]  ;;  %v1411_v23 = vld [vmem:[#allocation2 + $0x28] sm:$0xf] }
 0x126   :  { %1363 = vst [vmem:[#allocation2 + $0x60] sm:$0xf] %v1362_v63  ;;  %1366 = vst [vmem:[#allocation2 + $0x64] sm:$0x1] %v1365_v5  ;;  %v1093_v59 = vmax.f32 %v943_v39, 0.0  ;;  %v1265_v6 = vshrl.u32 %v8562_v15, 16  ;;  %v7908_v60 = vcombine.low %v1407_v2, %v1409_v33 }
 0x127   :  { %v1268_v48 = vshll.u32 %v8562_v15, 16  ;;  %v10325_v57 = vrot.slane %v1439_v25, 5  ;;  %v1450_v9 = vshrl.u32 %v1405_v55, 16  ;;  %v1262_v0 = vor.u32 %v1260_v42, %v1259_v16  ;;  %v1385_v46 = vld [vmem:[#allocation2 + $0x80] sm:$0xf]  ;;  %v9543_v39 = vld [vmem:[%s12645_s2 + $0xb0] sm:$0xff]  }
 0x128   :  { %v1263_v54 = vrot.slane %v1259_v16, 4  ;;  %v1243_v28 = vrot.slane %v1241_v32, 7  ;;  %v8560_v45 = vpack.c.bf16 %v1093_v59, %v1093_v59  ;;  %v1267_v36 = vrot.slane %v1265_v6, 7  ;;  %v1413_v61 = vld [vmem:[#allocation2 + $0x30] sm:$0xf]  ;;  %9008 = vmatmul.mubr.bf16.vlgmr.msra.gmra.mxu0 %v7908_v60 }
 0x129   :  { %v10327_v37 = vrot.slane %v1450_v9, 4  ;;  %v1453_v38 = vshll.u32 %v1405_v55, 16  ;;  %v1392_v56 = vsel %vm10255_vm10, %v1262_v0, %v1391_v3  ;;  %v1464_v7 = vshrl.u32 %v1407_v2, 16  ;;  %v1388_v1 = vld [vmem:[#allocation2 + $0x84] sm:$0x1]  ;;  %v9684_v9 = vld [vmem:[%s12645_s2 + $0xb8] sm:$0xff]  }
 0x12a   :  { %v1395_v21 = vsel %vm10039_vm6, %v1263_v54, %v1394_v24  ;;  %v1246_v27 = vor.u32 %v1244_v58, %v1243_v28  ;;  %v1247_v13 = vrot.slane %v1243_v28, 4  ;;  %1393 = vst [vmem:[#allocation2 + $0x88] sm:$0xf] %v1392_v56  ;;  %v1270_v41 = vor.u32 %v1268_v48, %v1267_v36  ;;  %v1415_v16 = vld [vmem:[#allocation2 + $0x38] sm:$0xf]  ;;  %9056 = vmatpush3.bf16.msra.mxu0 %v9684_v9 }
 0x12b   :  { %1396 = vst [vmem:[#allocation2 + $0x8c] sm:$0x1] %v1395_v21  ;;  %v1271_v43 = vrot.slane %v1267_v36, 4  ;;  %v1249_v50 = vshrl.u32 %v8560_v45, 16  ;;  %v1252_v14 = vshll.u32 %v8560_v45, 16  ;;  %v10338_v10 = vrot.slane %v1453_v38, 5  ;;  %9057 = vmatprep.subr.bf16.mxu0 %v9543_v39 }
 0x12c   :  { %v1380_v18 = vsel %vm10255_vm10, %v1246_v27, %v1379_v31  ;;  %v1383_v26 = vsel %vm10039_vm6, %v1247_v13, %v1382_v51  ;;  %v1398_v11 = vsel %vm10255_vm10, %v1270_v41, %v1397_v4  ;;  %v1467_v62 = vshll.u32 %v1407_v2, 16  ;;  %v1417_v24 = vld [vmem:[#allocation2 + $0x40] sm:$0xf]  ;;  %v1404_v28 = vld [vmem:[#allocation2 + $0xc] sm:$0x1] }
 0x12d   :  { %1381 = vst [vmem:[#allocation2 + $0x78] sm:$0xf] %v1380_v18  ;;  %1384 = vst [vmem:[#allocation2 + $0x7c] sm:$0x1] %v1383_v26  ;;  %v1401_v12 = vsel %vm10039_vm6, %v1271_v43, %v1400_v47  ;;  %v1251_v17 = vrot.slane %v1249_v50, 7  ;;  %v10344_v25 = vrot.slane %v1464_v7, 4  ;;  %v7909_v20 = vcombine.low %v1411_v23, %v1413_v61 }
 0x12e   :  { %1399 = vst [vmem:[#allocation2 + $0x90] sm:$0xf] %v1398_v11  ;;  %1402 = vst [vmem:[#allocation2 + $0x94] sm:$0x1] %v1401_v12  ;;  %v1478_v40 = vshrl.u32 %v1409_v33, 16  ;;  %v1481_v42 = vshll.u32 %v1409_v33, 16  ;;  %v7910_v13 = vcombine.low %v1415_v16, %v1417_v24  ;;  %v1442_v4 = vor.u32 %v10325_v57, %v10323_v30  ;;  %9058 = vmatpush3.bf16.msra.mxu0 %v9543_v39 }
 0x12f   :  { %v1254_v55 = vor.u32 %v1252_v14, %v1251_v17  ;;  %v1255_v63 = vrot.slane %v1251_v17, 4  ;;  %v1469_v5 = vrot.slane %v1467_v62, 5  ;;  %v1492_v15 = vshrl.u32 %v1411_v23, 16  ;;  %v9546_v36 = vld [vmem:[%s12645_s2 + $0xa8] sm:$0xff]   ;;  %v1406_v21 = vld [vmem:[#allocation2 + $0x14] sm:$0x1]  ;;  %9011 = vmatprep.mubr.bf16.mxu0 %v7909_v20 }
 0x130   :  { %v1480_v3 = vrot.slane %v1478_v40, 4  ;;  %v1483_v32 = vrot.slane %v1481_v42, 5  ;;  %v1495_v58 = vshll.u32 %v1411_v23, 16  ;;  %v1506_v59 = vshrl.u32 %v1413_v61, 16  ;;  %v1408_v41 = vld [vmem:[#allocation2 + $0x1c] sm:$0x1]  ;;  %9059 = vmatprep.subr.bf16.mxu0 %v9546_v36  ;;  %9012 = vmatmul.mubr.bf16.gmra.mxu0 %v7910_v13 }
 0x131   :  { %v1386_v6 = vsel %vm10255_vm10, %v1254_v55, %v1385_v46  ;;  %v1389_v48 = vsel %vm10039_vm6, %v1255_v63, %v1388_v1  ;;  %v10356_v0 = vrot.slane %v1492_v15, 4  ;;  %v1509_v54 = vshll.u32 %v1413_v61, 16  ;;  %v1410_v43 = vld [vmem:[#allocation2 + $0x24] sm:$0x1]  ;;  %v1419_v26 = vld [vmem:[#allocation2 + $0x58] sm:$0xf] }
 0x132   :  { %1387 = vst [vmem:[#allocation2 + $0x80] sm:$0xf] %v1386_v6  ;;  %1390 = vst [vmem:[#allocation2 + $0x84] sm:$0x1] %v1389_v48  ;;  %v10358_v31 = vrot.slane %v1495_v58, 5  ;;  %v10360_v51 = vrot.slane %v1506_v59, 4  ;;  %v1456_v18 = vor.u32 %v10338_v10, %v10327_v37  ;;  %v1470_v30 = vor.u32 %v1469_v5, %v10344_v25  ;;  %9060 = vmatpush3.bf16.msra.mxu0 %v9546_v36 }
 0x133   :  { %v1520_v45 = vshrl.u32 %v1415_v16, 16  ;;  %v10365_v38 = vrot.slane %v1509_v54, 5  ;;  %v1523_v35 = vshll.u32 %v1415_v16, 16  ;;  %v1534_v2 = vshrl.u32 %v1417_v24, 16  ;;  %v9548_v57 = vld [vmem:[%s12645_s2 + $0xa0] sm:$0xff]   ;;  %v9552_v48 = vld [vmem:[%s12645_s2 + $0x98] sm:$0xff]  }
 0x134   :  { %v1537_v56 = vshll.u32 %v1417_v24, 16  ;;  %v1445_v47 = vshll.u32 %v1404_v28, 16  ;;  %v1443_v7 = vrot.slane %v1442_v4, 4  ;;  %v1459_v11 = vshll.u32 %v1406_v21, 16  ;;  %v1421_v61 = vld [vmem:[#allocation2 + $0x60] sm:$0xf]  ;;  %9061 = vmatprep.subr.bf16.mxu0 %v9548_v57 }
 0x135   :  { %v10367_v27 = vrot.slane %v1520_v45, 4  ;;  %v10371_v50 = vrot.slane %v1523_v35, 5  ;;  %v10373_v14 = vrot.slane %v1534_v2, 4  ;;  %v1457_v12 = vrot.slane %v1456_v18, 4  ;;  %v1423_v55 = vld [vmem:[#allocation2 + $0x68] sm:$0xf] }
 0x136   :  { %v10375_v33 = vrot.slane %v1537_v56, 5  ;;  %v1447_v23 = vrot.slane %v1445_v47, 5  ;;  %v1473_v17 = vshll.u32 %v1408_v41, 16  ;;  %v1484_v46 = vor.u32 %v1483_v32, %v1480_v3  ;;  %v1425_v3 = vld [vmem:[#allocation2 + $0x70] sm:$0xf]  ;;  %9062 = vmatpush3.bf16.msra.mxu0 %v9548_v57  ;;  %v9553_v18 = vld [vmem:[%s12645_s2 + $0xe8] sm:$0xff]  }
 0x137   :  { %v1487_v62 = vshll.u32 %v1410_v43, 16  ;;  %v1461_v10 = vrot.slane %v1459_v11, 5  ;;  %v1471_v1 = vrot.slane %v1470_v30, 4  ;;  %v1548_v40 = vshrl.u32 %v1419_v26, 16  ;;  %v1412_v6 = vld [vmem:[#allocation2 + $0x2c] sm:$0x1]  ;;  %9063 = vmatprep.subr.bf16.mxu0 %v9552_v48 }
 0x138   :  { %v1448_v37 = vsel %vm9771_vm3, %v1443_v7, %v1447_v23  ;;  %v1475_v42 = vrot.slane %v1473_v17, 5  ;;  %v1485_v60 = vrot.slane %v1484_v46, 4  ;;  %v1551_v25 = vshll.u32 %v1419_v26, 16  ;;  %v9549_v54 = vld [vmem:[%s12645_s2 + $0xf0] sm:$0xff]   ;;  %v1416_v36 = vld [vmem:[#allocation2 + $0x3c] sm:$0x1] }
 0x139   :  { %v1489_v39 = vrot.slane %v1487_v62, 5  ;;  %v1462_v63 = vsel %vm9771_vm3, %v1457_v12, %v1461_v10  ;;  %v10387_v5 = vrot.slane %v1548_v40, 4  ;;  %v1562_v15 = vshrl.u32 %v1421_v61, 16  ;;  %v1414_v13 = vld [vmem:[#allocation2 + $0x34] sm:$0x1]  ;;  %v9685_v11 = vld [vmem:[%s12645_s2 + $0xf8] sm:$0xff]  }
 0x13a   :  { %v1565_v16 = vshll.u32 %v1421_v61, 16  ;;  %v7923_v32 = vcombine.low %v1448_v37, %v1462_v63  ;;  %v1476_v58 = vsel %vm9771_vm3, %v1471_v1, %v1475_v42  ;;  %v10393_v24 = vrot.slane %v1551_v25, 5  ;;  %v9554_v7 = vld [vmem:[%s12645_s2 + $0x90] sm:$0xff]   ;;  %v10415_v23 = vld [vmem:[#allocation2 + $0x78] sm:$0xf]  ;;  %9064 = vmatpush3.bf16.msra.mxu0 %v9552_v48 }
 0x13b   :  { %v1490_v59 = vsel %vm9771_vm3, %v1485_v60, %v1489_v39  ;;  %v10401_v28 = vrot.slane %v1562_v15, 4  ;;  %v7911_v45 = vcombine.low %v1419_v26, %v1421_v61  ;;  %v1576_v35 = vshrl.u32 %v1423_v55, 16  ;;  %v1418_v26 = vld [vmem:[#allocation2 + $0x44] sm:$0x1]  ;;  %v1429_v10 = vld [vmem:[#allocation2 + $0x80] sm:$0xf]  ;;  %9065 = vmatprep.subr.bf16.mxu0 %v9554_v7 }
 0x13c   :  { %v7924_v9 = vcombine.low %v1476_v58, %v1490_v59  ;;  %v10403_v20 = vrot.slane %v1565_v16, 5  ;;  %9039 = vmatprep.mubr.bf16.mxu1 %v7923_v32  ;;  %v1579_v2 = vshll.u32 %v1423_v55, 16  ;;  %v1590_v56 = vshrl.u32 %v1425_v3, 16  ;;  %v1431_v25 = vld [vmem:[#allocation2 + $0x88] sm:$0xf]  ;;  %v9555_v15 = vld [vmem:[%s12645_s2 + $0xe0] sm:$0xff]  }
 0x13d   :  { %v1593_v21 = vshll.u32 %v1425_v3, 16  ;;  %9015 = vmatprep.mubr.bf16.mxu0 %v7911_v45  ;;  %v7912_v4 = vcombine.low %v1423_v55, %v1425_v3  ;;  %v1498_v47 = vor.u32 %v10358_v31, %v10356_v0  ;;  %v1501_v41 = vshll.u32 %v1412_v6, 16  ;;  %v1420_v55 = vld [vmem:[#allocation2 + $0x5c] sm:$0x1]  ;;  %v1433_v58 = vld [vmem:[#allocation2 + $0x90] sm:$0xf] }
 0x13e   :  { %9040 = vmatmul.mubr.bf16.vlgmr.msra.gmra.mxu1 %v7924_v9  ;;  %v1512_v43 = vor.u32 %v10365_v38, %v10360_v51  ;;  %v10420_v0 = vrot.slane %v1576_v35, 4  ;;  %v10422_v31 = vrot.slane %v1579_v2, 5  ;;  %v10424_v51 = vrot.slane %v1590_v56, 4  ;;  %9066 = vmatpush3.bf16.msra.mxu0 %v9554_v7  ;;  %v9559_v2 = vld [vmem:[%s12645_s2 + $0xd8] sm:$0xff]   ;;  %v9560_v56 = vld [vmem:[%s12645_s2 + $0x80] sm:$0xff]  }
 0x13f   :  { %9088 = vmatpush3.bf16.msra.mxu1 %v9685_v11  ;;  %v10426_v38 = vrot.slane %v1593_v21, 5  ;;  %9016 = vmatmul.mubr.bf16.gmra.mxu0 %v7912_v4  ;;  %v1499_v30 = vrot.slane %v1498_v47, 4  ;;  %v1503_v57 = vrot.slane %v1501_v41, 5  ;;  %v1515_v17 = vshll.u32 %v1414_v13, 16  ;;  %v1422_v41 = vld [vmem:[#allocation2 + $0x64] sm:$0x1] }
 0x140   :  { %9089 = vmatprep.subr.bf16.mxu1 %v9549_v54  ;;  %v1513_v12 = vrot.slane %v1512_v43, 4  ;;  %v1526_v46 = vor.u32 %v10371_v50, %v10367_v27  ;;  %v1529_v62 = vshll.u32 %v1416_v36, 16  ;;  %v1540_v61 = vor.u32 %v10375_v33, %v10373_v14  ;;  %v9558_v27 = vld [vmem:[%s12645_s2 + $0x88] sm:$0xff]  }
 0x141   :  { %v1543_v37 = vshll.u32 %v1418_v26, 16  ;;  %v1504_v1 = vsel %vm9771_vm3, %v1499_v30, %v1503_v57  ;;  %v1517_v40 = vrot.slane %v1515_v17, 5  ;;  %v1604_v42 = vshrl.u32 %v10415_v23, 16  ;;  %9067 = vmatprep.subr.bf16.mxu0 %v9558_v27  ;;  %v2064_v43 = vld [vmem:[#allocation2 + $0x8] sm:$0xf] }
 0x142   :  { %v1607_v60 = vshll.u32 %v10415_v23, 16  ;;  %v1527_v50 = vrot.slane %v1526_v46, 4  ;;  %v1531_v39 = vrot.slane %v1529_v62, 5  ;;  %v1541_v14 = vrot.slane %v1540_v61, 4  ;;  %v1424_v30 = vld [vmem:[#allocation2 + $0x6c] sm:$0x1]  ;;  %9068 = vmatpush3.bf16.msra.mxu0 %v9558_v27 }
 0x143   :  { %9090 = vmatpush3.bf16.msra.mxu1 %v9549_v54  ;;  %v1545_v33 = vrot.slane %v1543_v37, 5  ;;  %v1518_v63 = vsel %vm9771_vm3, %v1513_v12, %v1517_v40  ;;  %v10444_v16 = vrot.slane %v1604_v42, 4  ;;  %v1618_v32 = vshrl.u32 %v1429_v10, 16  ;;  %v1426_v57 = vld [vmem:[#allocation2 + $0x74] sm:$0x1]  ;;  %9069 = vmatprep.subr.bf16.mxu0 %v9560_v56 }
 0x144   :  { %9091 = vmatprep.subr.bf16.mxu1 %v9553_v18  ;;  %v10446_v3 = vrot.slane %v1607_v60, 5  ;;  %v7925_v59 = vcombine.low %v1504_v1, %v1518_v63  ;;  %v1532_v6 = vsel %vm9771_vm3, %v1527_v50, %v1531_v39  ;;  %v1621_v9 = vshll.u32 %v1429_v10, 16  ;;  %v2065_v40 = vld [vmem:[#allocation2 + $0xc] sm:$0x1]  ;;  %v9561_v27 = vld [vmem:[%s12645_s2 + $0xd0] sm:$0xff]  }
 0x145   :  { %v1546_v48 = vsel %vm9771_vm3, %v1541_v14, %v1545_v33  ;;  %v10452_v45 = vrot.slane %v1618_v32, 4  ;;  %v7913_v36 = vcombine.low %v10415_v23, %v1429_v10  ;;  %v1632_v35 = vshrl.u32 %v1431_v25, 16  ;;  %v1430_v63 = vld [vmem:[#allocation2 + $0x84] sm:$0x1]  ;;  %v2066_v32 = vld [vmem:[#allocation2 + $0x10] sm:$0xf] }
 0x146   :  { %v7926_v54 = vcombine.low %v1532_v6, %v1546_v48  ;;  %9043 = vmatprep.mubr.bf16.mxu1 %v7925_v59  ;;  %v10461_v21 = vrot.slane %v1621_v9, 5  ;;  %v1635_v13 = vshll.u32 %v1431_v25, 16  ;;  %v1646_v4 = vshrl.u32 %v1433_v58, 16  ;;  %9070 = vmatpush3.bf16.msra.mxu0 %v9560_v56  ;;  %v2067_v9 = vld [vmem:[#allocation2 + $0x14] sm:$0x1] }
 0x147   :  { %9092 = vmatpush3.bf16.msra.mxu1 %v9553_v18  ;;  %v1649_v47 = vshll.u32 %v1433_v58, 16  ;;  %v10463_v26 = vrot.slane %v1632_v35, 4  ;;  %v7914_v7 = vcombine.low %v1431_v25, %v1433_v58  ;;  %v1554_v23 = vor.u32 %v10393_v24, %v10387_v5  ;;  %9019 = vmatprep.mubr.bf16.mxu0 %v7913_v36  ;;  %v10480_v24 = vld [vmem:[%s12645_s2 + $0x178] sm:$0xff]  }
 0x148   :  { %9044 = vmatmul.mubr.bf16.gmra.mxu1 %v7926_v54  ;;  %9093 = vmatprep.subr.bf16.mxu1 %v9555_v15  ;;  %v1557_v11 = vshll.u32 %v1420_v55, 16  ;;  %v10467_v18 = vrot.slane %v1635_v13, 5  ;;  %v10469_v12 = vrot.slane %v1646_v4, 4  ;;  %v1568_v46 = vor.u32 %v10403_v20, %v10401_v28  ;;  %v1428_v25 = vld [vmem:[#allocation2 + $0x7c] sm:$0x1] }
 0x149   :  { %v10471_v17 = vrot.slane %v1649_v47, 5  ;;  %9020 = vmatmul.mubr.bf16.gmra.mxu0 %v7914_v7  ;;  %v1555_v62 = vrot.slane %v1554_v23, 4  ;;  %v1571_v37 = vshll.u32 %v1422_v41, 16  ;;  %v1582_v5 = vor.u32 %v10422_v31, %v10420_v0  ;;  %9119 = vmatprep.subr.bf16.mxu0 %v10480_v24  ;;  %v2068_v54 = vld [vmem:[#allocation2 + $0x18] sm:$0xf] }
 0x14a   :  { %v1559_v61 = vrot.slane %v1557_v11, 5  ;;  %v1569_v10 = vrot.slane %v1568_v46, 4  ;;  %v1585_v1 = vshll.u32 %v1424_v30, 16  ;;  %v1596_v28 = vor.u32 %v10426_v38, %v10424_v51 }
 0x14b   :  { %9094 = vmatpush3.bf16.msra.mxu1 %v9555_v15  ;;  %v1599_v20 = vshll.u32 %v1426_v57, 16  ;;  %v1573_v60 = vrot.slane %v1571_v37, 5  ;;  %v1583_v0 = vrot.slane %v1582_v5, 4  ;;  %v2109_v31 = vshrl.u32 %v2064_v43, 16 }
 0x14c   :  { %v1560_v42 = vsel %vm9771_vm3, %v1555_v62, %v1559_v61  ;;  %9095 = vmatprep.subr.bf16.mxu1 %v9559_v2  ;;  %v1587_v50 = vrot.slane %v1585_v1, 5  ;;  %v1597_v39 = vrot.slane %v1596_v28, 4  ;;  %v2112_v33 = vshll.u32 %v2064_v43, 16  ;;  %v2069_v43 = vld [vmem:[#allocation2 + $0x1c] sm:$0x1] }
 0x14d   :  { %v1601_v14 = vrot.slane %v1599_v20, 5  ;;  %v1574_v51 = vsel %vm9771_vm3, %v1569_v10, %v1573_v60  ;;  %v2111_v38 = vrot.slane %v2109_v31, 4  ;;  %v2118_v55 = vshll.u32 %v2065_v40, 16  ;;  %v2070_v60 = vld [vmem:[#allocation2 + $0x20] sm:$0xf] }
 0x14e   :  { %v1610_v15 = vor.u32 %v10446_v3, %v10444_v16  ;;  %v7927_v58 = vcombine.low %v1560_v42, %v1574_v51  ;;  %v1588_v59 = vsel %vm9771_vm3, %v1583_v0, %v1587_v50  ;;  %v2114_v48 = vrot.slane %v2112_v33, 5  ;;  %v9562_v16 = vld [vmem:[%s12645_s2 + $0xc8] sm:$0xff]   ;;  %v1434_v42 = vld [vmem:[#allocation2 + $0x94] sm:$0x1]  ;;  %v2071_v51 = vld [vmem:[#allocation2 + $0x24] sm:$0x1] }
 0x14f   :  { %v1602_v6 = vsel %vm9771_vm3, %v1597_v39, %v1601_v14  ;;  %9096 = vmatpush3.bf16.msra.mxu1 %v9559_v2  ;;  %v2120_v35 = vrot.slane %v2118_v55, 5  ;;  %v1613_v13 = vshll.u32 %v1428_v25, 16  ;;  %v1624_v4 = vor.u32 %v10461_v21, %v10452_v45  ;;  %v1432_v45 = vld [vmem:[#allocation2 + $0x8c] sm:$0x1]  ;;  %v9565_v21 = vld [vmem:[%s12645_s2 + $0xc0] sm:$0xff]  }
 0x150   :  { %v7928_v36 = vcombine.low %v1588_v59, %v1602_v6  ;;  %9097 = vmatprep.subr.bf16.mxu1 %v9561_v27  ;;  %v1611_v56 = vrot.slane %v1610_v15, 4  ;;  %9047 = vmatprep.mubr.bf16.mxu1 %v7927_v58  ;;  %v2115_v3 = vor.u32 %v2114_v48, %v2111_v38  ;;  %v1627_v47 = vshll.u32 %v1430_v63, 16  ;;  %v10524_v38 = vld [vmem:[%s12645_s2 + $0x138] sm:$0xff]   ;;  %v2072_v55 = vld [vmem:[#allocation2 + $0x28] sm:$0xf] }
 0x151   :  { %v2123_v41 = vshrl.u32 %v2066_v32, 16  ;;  %v1615_v2 = vrot.slane %v1613_v13, 5  ;;  %v2126_v7 = vshll.u32 %v2066_v32, 16  ;;  %v2132_v23 = vshll.u32 %v2067_v9, 16  ;;  %v2073_v32 = vld [vmem:[#allocation2 + $0x2c] sm:$0x1] }
 0x152   :  { %9048 = vmatmul.mubr.bf16.gmra.mxu1 %v7928_v36  ;;  %v2137_v11 = vshrl.u32 %v2068_v54, 16  ;;  %v2116_v30 = vrot.slane %v2115_v3, 4  ;;  %v1625_v57 = vrot.slane %v1624_v4, 4  ;;  %v1629_v46 = vrot.slane %v1627_v47, 5  ;;  %v2076_v48 = vld [vmem:[#allocation2 + $0x38] sm:$0xf] }
 0x153   :  { %9098 = vmatpush3.bf16.msra.mxu1 %v9561_v27  ;;  %v2125_v62 = vrot.slane %v2123_v41, 4  ;;  %v1616_v61 = vsel %vm9771_vm3, %v1611_v56, %v1615_v2  ;;  %v2128_v37 = vrot.slane %v2126_v7, 5  ;;  %v2134_v5 = vrot.slane %v2132_v23, 5  ;;  %v2074_v56 = vld [vmem:[#allocation2 + $0x30] sm:$0xf] }
 0x154   :  { %v2139_v10 = vrot.slane %v2137_v11, 4  ;;  %9099 = vmatprep.subr.bf16.mxu1 %v9562_v16  ;;  %v2121_v1 = vsel %vm9771_vm3, %v2116_v30, %v2120_v35  ;;  %v1630_v28 = vsel %vm9771_vm3, %v1625_v57, %v1629_v46  ;;  %v2140_v20 = vshll.u32 %v2068_v54, 16  ;;  %v2075_v47 = vld [vmem:[#allocation2 + $0x34] sm:$0x1]  ;;  %v9564_v23 = vld [vmem:[#allocation2] ss:$8 sps:$4 sm:$0xff]  }
 0x155   :  { %v2146_v40 = vshll.u32 %v2069_v43, 16  ;;  %v7955_v0 = vcombine.low %v2107_v52, %v2121_v1  ;;  %v7929_v31 = vcombine.low %v1616_v61, %v1630_v28  ;;  %v2129_v27 = vor.u32 %v2128_v37, %v2125_v62  ;;  %v2077_v11 = vld [vmem:[#allocation2 + $0x3c] sm:$0x1]  ;;  %v9566_v62 = vld [vmem:[%s12645_s2 + $0x170] sm:$0xff]   ;;  %v2080_v37 = vld [vmem:[#allocation2 + $0x58] sm:$0xf] }
 0x156   :  { %v1638_v50 = vor.u32 %v10467_v18, %v10463_v26  ;;  %v2142_v39 = vrot.slane %v2140_v20, 5  ;;  %v1641_v33 = vshll.u32 %v1432_v45, 16  ;;  %v1652_v25 = vor.u32 %v10471_v17, %v10469_v12  ;;  %v2081_v1 = vld [vmem:[#allocation2 + $0x5c] sm:$0x1] }
 0x157   :  { %v2148_v14 = vrot.slane %v2146_v40, 5  ;;  %9100 = vmatpush3.bf16.msra.mxu1 %v9562_v16  ;;  %9071 = vmatprep.mubr.bf16.mxu0 %v7955_v0  ;;  %v2130_v44 = vrot.slane %v2129_v27, 4  ;;  %v1655_v52 = vshll.u32 %v1434_v42, 16  ;;  %v2151_v26 = vshrl.u32 %v2070_v60, 16 }
 0x158   :  { %9051 = vmatprep.mubr.bf16.mxu1 %v7929_v31  ;;  %v1639_v49 = vrot.slane %v1638_v50, 4  ;;  %v2143_v18 = vor.u32 %v2142_v39, %v2139_v10  ;;  %v1643_v63 = vrot.slane %v1641_v33, 5  ;;  %v1653_v15 = vrot.slane %v1652_v25, 4  ;;  %9101 = vmatprep.subr.bf16.mxu1 %v9565_v21  ;;  %v9567_v25 = vld [vmem:[%s12645_s2 + $0x168] sm:$0xff]  }
 0x159   :  { %v2154_v58 = vshll.u32 %v2070_v60, 16  ;;  %v2135_v12 = vsel %vm9771_vm3, %v2130_v44, %v2134_v5  ;;  %v1657_v17 = vrot.slane %v1655_v52, 5  ;;  %v2153_v59 = vrot.slane %v2151_v26, 4  ;;  %v2082_v60 = vld [vmem:[#allocation2 + $0x60] sm:$0xf] }
 0x15a   :  { %v2160_v6 = vshll.u32 %v2071_v51, 16  ;;  %v2144_v9 = vrot.slane %v2143_v18, 4  ;;  %v1644_v54 = vsel %vm9771_vm3, %v1639_v49, %v1643_v63  ;;  %v2165_v35 = vshrl.u32 %v2072_v55, 16 }
 0x15b   :  { %v2156_v36 = vrot.slane %v2154_v58, 5  ;;  %9102 = vmatpush3.bf16.msra.mxu1 %v9565_v21  ;;  %v1658_v13 = vsel %vm9771_vm3, %v1653_v15, %v1657_v17  ;;  %v2168_v3 = vshll.u32 %v2072_v55, 16  ;;  %v2174_v4 = vshll.u32 %v2073_v32, 16  ;;  %v2083_v55 = vld [vmem:[#allocation2 + $0x64] sm:$0x1] }
 0x15c   :  { %v2162_v16 = vrot.slane %v2160_v6, 5  ;;  %9151 = vmatprep.subr.bf16.mxu1 %v10524_v38  ;;  %v2149_v41 = vsel %vm9771_vm3, %v2144_v9, %v2148_v14  ;;  %v7930_v2 = vcombine.low %v1644_v54, %v1658_v13  ;;  %v2167_v7 = vrot.slane %v2165_v35, 4  ;;  %v9569_v15 = vld [vmem:[#allocation2 + $0x10] ss:$8 sps:$4 sm:$0xff]   ;;  %v9571_v32 = vld [vmem:[%s12645_s2 + $0x160] sm:$0xff]  }
 0x15d   :  { %v2157_v43 = vor.u32 %v2156_v36, %v2153_v59  ;;  %v7956_v30 = vcombine.low %v2135_v12, %v2149_v41  ;;  %v2170_v57 = vrot.slane %v2168_v3, 5  ;;  %v2176_v46 = vrot.slane %v2174_v4, 5  ;;  %v2084_v58 = vld [vmem:[#allocation2 + $0x68] sm:$0xf]  ;;  %v9572_v9 = vld [vmem:[%s12645_s2 + $0x130] sm:$0xff]  }
 0x15e   :  { %v2179_v61 = vshrl.u32 %v2074_v56, 16  ;;  %9052 = vmatmul.mubr.bf16.gmra.mxu1 %v7930_v2  ;;  %v2182_v10 = vshll.u32 %v2074_v56, 16  ;;  %v2188_v45 = vshll.u32 %v2075_v47, 16  ;;  %v2193_v21 = vshrl.u32 %v2076_v48, 16  ;;  %v2085_v54 = vld [vmem:[#allocation2 + $0x6c] sm:$0x1] }
 0x15f   :  { %v2158_v5 = vrot.slane %v2157_v43, 4  ;;  %9072 = vmatmul.mubr.bf16.vlgmr.msra.gmra.mxu0 %v7956_v30  ;;  %v2171_v28 = vor.u32 %v2170_v57, %v2167_v7  ;;  %9103 = vmatprep.mubr.bf16.mxu1 %v9564_v23  ;;  %v2196_v40 = vshll.u32 %v2076_v48, 16  ;;  %v2202_v42 = vshll.u32 %v2077_v11, 16  ;;  %v9570_v35 = vld [vmem:[#allocation2 + $0x20] ss:$8 sps:$4 sm:$0xff]  }
 0x160   :  { %v2181_v20 = vrot.slane %v2179_v61, 4  ;;  %9120 = vmatpush3.bf16.msra.mxu0 %v10480_v24  ;;  %v2184_v31 = vrot.slane %v2182_v10, 5  ;;  %v2190_v27 = vrot.slane %v2188_v45, 5  ;;  %v2195_v50 = vrot.slane %v2193_v21, 4  ;;  %v2086_v2 = vld [vmem:[#allocation2 + $0x70] sm:$0xf] }
 0x161   :  { %v2163_v0 = vsel %vm9771_vm3, %v2158_v5, %v2162_v16  ;;  %v2172_v39 = vrot.slane %v2171_v28, 4  ;;  %9121 = vmatprep.subr.bf16.mxu0 %v9566_v62  ;;  %v2198_v14 = vrot.slane %v2196_v40, 5  ;;  %v2204_v33 = vrot.slane %v2202_v42, 5  ;;  %v2087_v30 = vld [vmem:[#allocation2 + $0x74] sm:$0x1]  ;;  %v9573_v5 = vld [vmem:[%s12645_s2 + $0x158] sm:$0xff]  }
 0x162   :  { %v2221_v51 = vshrl.u32 %v2080_v37, 16  ;;  %v2185_v44 = vor.u32 %v2184_v31, %v2181_v20  ;;  %v2224_v49 = vshll.u32 %v2080_v37, 16  ;;  %v2230_v52 = vshll.u32 %v2081_v1, 16  ;;  %v2088_v57 = vld [vmem:[#allocation2 + $0x78] sm:$0xf]  ;;  %v9578_v31 = vld [vmem:[%s12645_s2 + $0x120] sm:$0xff]  }
 0x163   :  { %v2235_v26 = vshrl.u32 %v2082_v60, 16  ;;  %v2177_v24 = vsel %vm9771_vm3, %v2172_v39, %v2176_v46  ;;  %v2199_v18 = vor.u32 %v2198_v14, %v2195_v50  ;;  %v2238_v12 = vshll.u32 %v2082_v60, 16  ;;  %v2089_v21 = vld [vmem:[#allocation2 + $0x7c] sm:$0x1] }
 0x164   :  { %v2223_v63 = vrot.slane %v2221_v51, 4  ;;  %v7957_v17 = vcombine.low %v2163_v0, %v2177_v24  ;;  %9122 = vmatpush3.bf16.msra.mxu0 %v9566_v62  ;;  %v2186_v59 = vrot.slane %v2185_v44, 4  ;;  %v2226_v6 = vrot.slane %v2224_v49, 5  ;;  %v9575_v0 = vld [vmem:[#allocation2 + $0x30] ss:$8 sps:$4 sm:$0xff]  }
 0x165   :  { %v2232_v48 = vrot.slane %v2230_v52, 5  ;;  %v2200_v36 = vrot.slane %v2199_v18, 4  ;;  %9123 = vmatprep.subr.bf16.mxu0 %v9567_v25  ;;  %v2237_v56 = vrot.slane %v2235_v26, 4  ;;  %v2240_v13 = vrot.slane %v2238_v12, 5  ;;  %v2091_v51 = vld [vmem:[#allocation2 + $0x84] sm:$0x1] }
 0x166   :  { %v2244_v16 = vshll.u32 %v2083_v55, 16  ;;  %9075 = vmatprep.mubr.bf16.mxu0 %v7957_v17  ;;  %v2191_v3 = vsel %vm9771_vm3, %v2186_v59, %v2190_v27  ;;  %v2227_v4 = vor.u32 %v2226_v6, %v2223_v63  ;;  %9104 = vmatmul.mubr.bf16.vlgmr.msra.gmra.mxu1 %v9569_v15  ;;  %v2249_v47 = vshrl.u32 %v2084_v58, 16  ;;  %v2090_v27 = vld [vmem:[#allocation2 + $0x80] sm:$0xf]  ;;  %v2092_v44 = vld [vmem:[#allocation2 + $0x88] sm:$0xf] }
 0x167   :  { %v2252_v41 = vshll.u32 %v2084_v58, 16  ;;  %v2205_v43 = vsel %vm9771_vm3, %v2200_v36, %v2204_v33  ;;  %9152 = vmatpush3.bf16.msra.mxu1 %v10524_v38  ;;  %9107 = vmatprep.mubr.bf16.mxu1 %v9570_v35  ;;  %v2241_v7 = vor.u32 %v2240_v13, %v2237_v56  ;;  %v2258_v11 = vshll.u32 %v2085_v54, 16  ;;  %v9574_v38 = vld [vmem:[%s12645_s2 + $0x128] sm:$0xff]   ;;  %v10584_v6 = vld [vmem:[#allocation2 + $0x14] sm:$0x1] }
 0x168   :  { %v2246_v23 = vrot.slane %v2244_v16, 5  ;;  %v7958_v46 = vcombine.low %v2191_v3, %v2205_v43  ;;  %v2228_v62 = vrot.slane %v2227_v4, 4  ;;  %9124 = vmatpush3.bf16.msra.mxu0 %v9567_v25  ;;  %9153 = vmatprep.subr.bf16.mxu1 %v9572_v9  ;;  %v2251_v61 = vrot.slane %v2249_v47, 4  ;;  %v9576_v25 = vld [vmem:[#allocation2 + $0x50] ss:$8 sps:$4 sm:$0xff]  }
 0x169   :  { %v2254_v37 = vrot.slane %v2252_v41, 5  ;;  %9125 = vmatprep.subr.bf16.mxu0 %v9571_v32  ;;  %v2242_v10 = vrot.slane %v2241_v7, 4  ;;  %v2260_v45 = vrot.slane %v2258_v11, 5  ;;  %v2263_v1 = vshrl.u32 %v2086_v2, 16  ;;  %v2093_v24 = vld [vmem:[#allocation2 + $0x8c] sm:$0x1] }
 0x16a   :  { %v2266_v28 = vshll.u32 %v2086_v2, 16  ;;  %9076 = vmatmul.mubr.bf16.gmra.mxu0 %v7958_v46  ;;  %v2233_v20 = vsel %vm9771_vm3, %v2228_v62, %v2232_v48  ;;  %v2272_v42 = vshll.u32 %v2087_v30, 16  ;;  %v2277_v60 = vshrl.u32 %v2088_v57, 16  ;;  %v10580_v15 = vld [vmem:[#allocation2 + $0xc] sm:$0x1]  ;;  %v9580_v47 = vld [vmem:[%s12645_s2 + $0x118] sm:$0xff]  }
 0x16b   :  { %v2255_v40 = vor.u32 %v2254_v37, %v2251_v61  ;;  %v7959_v50 = vcombine.low %v2219_v8, %v2233_v20  ;;  %9154 = vmatpush3.bf16.msra.mxu1 %v9572_v9  ;;  %v2247_v39 = vsel %vm9771_vm3, %v2242_v10, %v2246_v23  ;;  %v2265_v14 = vrot.slane %v2263_v1, 4  ;;  %v9577_v8 = vld [vmem:[%s12645_s2 + $0x150] sm:$0xff]   ;;  %v10586_v56 = vld [vmem:[#allocation2 + $0x1c] sm:$0x1]  ;;  %v3185_v41 = vld [vmem:[#allocation2 + $0x18] sm:$0xe] }
 0x16c   :  { %v2268_v33 = vrot.slane %v2266_v28, 5  ;;  %9126 = vmatpush3.bf16.msra.mxu0 %v9571_v32  ;;  %9155 = vmatprep.subr.bf16.mxu1 %v9574_v38  ;;  %v10575_v52 = vrot.slane %v2272_v42, 5  ;;  %v2279_v55 = vrot.slane %v2277_v60, 4  ;;  %v2280_v26 = vshll.u32 %v2088_v57, 16  ;;  %v3183_v32 = vld [vmem:[#allocation2 + $0x8] sm:$0xe] }
 0x16d   :  { %v2256_v49 = vrot.slane %v2255_v40, 4  ;;  %9079 = vmatprep.mubr.bf16.mxu0 %v7959_v50  ;;  %9127 = vmatprep.subr.bf16.mxu0 %v9573_v5  ;;  %v2286_v53 = vshll.u32 %v2089_v21, 16  ;;  %v2291_v18 = vshrl.u32 %v2090_v27, 16  ;;  %v2294_v63 = vshll.u32 %v2090_v27, 16  ;;  %v3184_v48 = vld [vmem:[#allocation2 + $0x10] sm:$0xe] }
 0x16e   :  { %v2269_v34 = vor.u32 %v2268_v33, %v2265_v14  ;;  %v2282_v12 = vrot.slane %v2280_v26, 5  ;;  %9108 = vmatmul.mubr.bf16.gmra.mxu1 %v9575_v0  ;;  %v2300_v17 = vshll.u32 %v2091_v51, 16  ;;  %v2305_v59 = vshrl.u32 %v2092_v44, 16  ;;  %v9579_v23 = vld [vmem:[%s12645_s2 + $0x148] sm:$0xff]   ;;  %v10599_v30 = vld [vmem:[#allocation2 + $0x24] sm:$0x1] }
 0x16f   :  { %v2261_v58 = vsel %vm9771_vm3, %v2256_v49, %v2260_v45  ;;  %v2288_v36 = vrot.slane %v2286_v53, 5  ;;  %9156 = vmatpush3.bf16.msra.mxu1 %v9574_v38  ;;  %9111 = vmatprep.mubr.bf16.mxu1 %v9576_v25  ;;  %v2293_v35 = vrot.slane %v2291_v18, 4  ;;  %v2296_v16 = vrot.slane %v2294_v63, 5  ;;  %v9581_v62 = vld [vmem:[#allocation2 + $0x60] ss:$8 sps:$4 sm:$0xff]   ;;  %v9584_v33 = vld [vmem:[%s12645_s2 + $0x110] sm:$0xff]  }
 0x170   :  { %v7960_v9 = vcombine.low %v2247_v39, %v2261_v58  ;;  %v2270_v54 = vrot.slane %v2269_v34, 4  ;;  %v2283_v13 = vor.u32 %v2282_v12, %v2279_v55  ;;  %9128 = vmatpush3.bf16.msra.mxu0 %v9573_v5  ;;  %9157 = vmatprep.subr.bf16.mxu1 %v9578_v31  ;;  %v10588_v3 = vrot.slane %v2300_v17, 5  ;;  %v3186_v5 = vld [vmem:[#allocation2 + $0x20] sm:$0xe]  ;;  %v10614_v20 = vld [vmem:[#allocation2 + $0x2c] sm:$0x1] }
 0x171   :  { %v2307_v4 = vrot.slane %v2305_v59, 4  ;;  %9129 = vmatprep.subr.bf16.mxu0 %v9577_v8  ;;  %v2308_v43 = vshll.u32 %v2092_v44, 16  ;;  %v2314_v7 = vshll.u32 %v2093_v24, 16  ;;  %v8035_v11 = vrot.slane %v3183_v32, 9  ;;  %v10612_v1 = vld [vmem:[%s12645_s2 + $0x140] sm:$0xff]   ;;  %v9585_v58 = vld [vmem:[%s12645_s2 + $0x108] sm:$0xff]  }
 0x172   :  { %v2275_v2 = vsel %vm9771_vm3, %v2270_v54, %v10575_v52  ;;  %9080 = vmatmul.mubr.bf16.gmra.mxu0 %v7960_v9  ;;  %v2284_v57 = vrot.slane %v2283_v13, 4  ;;  %v2297_v46 = vor.u32 %v2296_v16, %v2293_v35  ;;  %v3236_v61 = vrot.slane %v10580_v15, 5  ;;  %v3188_v27 = vld [vmem:[#allocation2 + $0x30] sm:$0xe]  ;;  %v10628_v51 = vld [vmem:[#allocation2 + $0x34] sm:$0x1] }
 0x173   :  { %v8036_v37 = vrot.slane %v3184_v48, 9  ;;  %9158 = vmatpush3.bf16.msra.mxu1 %v9578_v31  ;;  %v2310_v38 = vrot.slane %v2308_v43, 5  ;;  %v2316_v10 = vrot.slane %v2314_v7, 5  ;;  %v3240_v21 = vrot.slane %v10584_v6, 5  ;;  %v3187_v31 = vld [vmem:[#allocation2 + $0x28] sm:$0xe] }
 0x174   :  { %v8037_v28 = vrot.slane %v3185_v41, 9  ;;  %v2289_v40 = vsel %vm9771_vm3, %v2284_v57, %v2288_v36  ;;  %9130 = vmatpush3.bf16.msra.mxu0 %v9577_v8  ;;  %v2298_v42 = vrot.slane %v2297_v46, 4  ;;  %9159 = vmatprep.subr.bf16.mxu1 %v9580_v47  ;;  %v10620_v60 = vsel %vm10604_vm13, %v8035_v11, %v3236_v61  ;;  %v2910_v44 = vld [vmem:[#allocation2 + $0x8] sm:$0xf]  ;;  %v9582_v55 = vld [vmem:[#allocation2 + $0x70] ss:$8 sps:$4 sm:$0xff]  }
 0x175   :  { %v3244_v0 = vrot.slane %v10586_v56, 5  ;;  %v7961_v50 = vcombine.low %v2275_v2, %v2289_v40  ;;  %v2311_v39 = vor.u32 %v2310_v38, %v2307_v4  ;;  %9131 = vmatprep.subr.bf16.mxu0 %v9579_v23  ;;  %v3241_v14 = vsel %vm10604_vm13, %v8036_v37, %v3240_v21  ;;  %v2912_v63 = vld [vmem:[#allocation2 + $0x10] sm:$0xf]  ;;  %v10648_v48 = vld [vmem:[#allocation2 + $0x3c] sm:$0x1]  ;;  %v9588_v38 = vld [vmem:[%s12645_s2 + $0x100] sm:$0xff]  }
 0x176   :  { %v8038_v25 = vrot.slane %v3186_v5, 9  ;;  %v2303_v49 = vsel %vm9771_vm3, %v2298_v42, %v10588_v3  ;;  %9112 = vmatmul.mubr.bf16.gmra.mxu1 %v9581_v62  ;;  %v8067_v52 = vcombine.low %v10620_v60, %v3241_v14  ;;  %v3248_v24 = vrot.slane %v10599_v30, 5  ;;  %v10658_v36 = vld [vmem:[%s12645_s2 + $0x1b8] sm:$0xff]   ;;  %v10665_v16 = vld [vmem:[#allocation2 + $0x44] sm:$0x1] }
 0x177   :  { %v10636_v26 = vsel %vm10604_vm13, %v8037_v28, %v3244_v0  ;;  %9083 = vmatprep.mubr.bf16.mxu0 %v7961_v50  ;;  %v2312_v34 = vrot.slane %v2311_v39, 4  ;;  %9160 = vmatpush3.bf16.msra.mxu1 %v9580_v47  ;;  %v8039_v53 = vrot.slane %v3187_v31, 9  ;;  %v3252_v8 = vrot.slane %v10614_v20, 5  ;;  %v3189_v3 = vld [vmem:[#allocation2 + $0x38] sm:$0xe] }
 0x178   :  { %v8040_v18 = vrot.slane %v3188_v27, 9  ;;  %9132 = vmatpush3.bf16.msra.mxu0 %v9579_v23  ;;  %9115 = vmatprep.mubr.bf16.mxu1 %v9582_v55  ;;  %v10642_v32 = vsel %vm10604_vm13, %v8038_v25, %v3248_v24  ;;  %v3256_v12 = vrot.slane %v10628_v51, 5  ;;  %v2943_v17 = vshrl.u32 %v2910_v44, 16  ;;  %v9587_v47 = vld [vmem:[#allocation2 + $0x80] ss:$8 sps:$4 sm:$0xff]   ;;  %v10701_v55 = vld [vmem:[%s12645_s2 + $0x1f8] sm:$0xff]  }
 0x179   :  { %v2946_v59 = vshll.u32 %v2910_v44, 16  ;;  %v2317_v9 = vsel %vm9771_vm3, %v2312_v34, %v2316_v10  ;;  %9133 = vmatprep.subr.bf16.mxu0 %v10612_v1  ;;  %9161 = vmatprep.subr.bf16.mxu1 %v9584_v33  ;;  %v8068_v54 = vcombine.low %v10636_v26, %v10642_v32  ;;  %v10662_v35 = vsel %vm10604_vm13, %v8039_v53, %v3252_v8  ;;  %v3190_v7 = vld [vmem:[#allocation2 + $0x40] sm:$0xe]  ;;  %v10671_v23 = vld [vmem:[#allocation2 + $0x5c] sm:$0x1]  ;;  %v9590_v26 = vld [vmem:[%s12645_s2 + $0x1a8] sm:$0xff]  }
 0x17a   :  { %v2952_v13 = vshll.u32 %v10580_v15, 16  ;;  %v7962_v4 = vcombine.low %v2303_v49, %v2317_v9  ;;  %v10669_v41 = vsel %vm10604_vm13, %v8040_v18, %v3256_v12  ;;  %v2945_v2 = vrot.slane %v2943_v17, 4  ;;  %v10675_v62 = vld [vmem:[#allocation2 + $0x64] sm:$0x1]  ;;  %v3191_v61 = vld [vmem:[#allocation2 + $0x58] sm:$0xe] }
 0x17b   :  { %v2948_v43 = vrot.slane %v2946_v59, 5  ;;  %9162 = vmatpush3.bf16.msra.mxu1 %v9584_v33  ;;  %v8069_v11 = vcombine.low %v10662_v35, %v10669_v41  ;;  %v2957_v15 = vshrl.u32 %v2912_v63, 16  ;;  %v2960_v46 = vshll.u32 %v2912_v63, 16  ;;  %v3192_v28 = vld [vmem:[#allocation2 + $0x60] sm:$0xe] }
 0x17c   :  { %v2954_v57 = vrot.slane %v2952_v13, 5  ;;  %9084 = vmatmul.mubr.bf16.gmra.mxu0 %v7962_v4  ;;  %9163 = vmatprep.subr.bf16.mxu1 %v9585_v58  ;;  %v2966_v5 = vshll.u32 %v10584_v6, 16  ;;  %v8041_v10 = vrot.slane %v3189_v3, 9  ;;  %v3260_v21 = vrot.slane %v10648_v48, 5  ;;  %v2914_v31 = vld [vmem:[#allocation2 + $0x18] sm:$0xf] }
 0x17d   :  { %v2949_v37 = vor.u32 %v2948_v43, %v2945_v2  ;;  %9135 = vmatprep.mubr.bf16.mxu0 %v8067_v52  ;;  %9134 = vmatpush3.bf16.msra.mxu0 %v10612_v1  ;;  %v2959_v40 = vrot.slane %v2957_v15, 4  ;;  %v2962_v42 = vrot.slane %v2960_v46, 5  ;;  %v8042_v60 = vrot.slane %v3190_v7, 9  ;;  %v2916_v44 = vld [vmem:[#allocation2 + $0x20] sm:$0xf] }
 0x17e   :  { %v3264_v0 = vrot.slane %v10665_v16, 5  ;;  %9183 = vmatprep.subr.bf16.mxu0 %v10658_v36  ;;  %9116 = vmatmul.mubr.bf16.gmra.mxu1 %v9587_v47  ;;  %v2968_v27 = vrot.slane %v2966_v5, 5  ;;  %v10687_v50 = vsel %vm10604_vm13, %v8041_v10, %v3260_v21  ;;  %v8043_v39 = vrot.slane %v3191_v61, 9  ;;  %v2918_v35 = vld [vmem:[#allocation2 + $0x28] sm:$0xf] }
 0x17f   :  { %v2950_v6 = vrot.slane %v2949_v37, 4  ;;  %9164 = vmatpush3.bf16.msra.mxu1 %v9585_v58  ;;  %v2963_v14 = vor.u32 %v2962_v42, %v2959_v40  ;;  %v3268_v33 = vrot.slane %v10671_v23, 5  ;;  %v8044_v25 = vrot.slane %v3192_v28, 9  ;;  %v9589_v58 = vld [vmem:[%s12645_s2 + $0x1b0] sm:$0xff]   ;;  %v10727_v37 = vld [vmem:[#allocation2 + $0x6c] sm:$0x1] }
 0x180   :  { %v10691_v1 = vsel %vm10604_vm13, %v8042_v60, %v3264_v0  ;;  %9165 = vmatprep.subr.bf16.mxu1 %v9588_v38  ;;  %v3272_v24 = vrot.slane %v10675_v62, 5  ;;  %v2971_v34 = vshrl.u32 %v2914_v31, 16  ;;  %v2974_v18 = vshll.u32 %v2914_v31, 16  ;;  %v2920_v47 = vld [vmem:[#allocation2 + $0x30] sm:$0xf] }
 0x181   :  { %v2955_v49 = vsel %vm9771_vm3, %v2950_v6, %v2954_v57  ;;  %v8070_v52 = vcombine.low %v10687_v50, %v10691_v1  ;;  %v2964_v53 = vrot.slane %v2963_v14, 4  ;;  %v10706_v8 = vsel %vm10604_vm13, %v8043_v39, %v3268_v33  ;;  %v10735_v31 = vld [vmem:[#allocation2 + $0x7c] sm:$0x1]  ;;  %v3195_v33 = vld [vmem:[#allocation2 + $0x78] sm:$0xe] }
 0x182   :  { %v2980_v63 = vshll.u32 %v10586_v56, 16  ;;  %v10714_v12 = vsel %vm10604_vm13, %v8044_v25, %v3272_v24  ;;  %v2973_v17 = vrot.slane %v2971_v34, 4  ;;  %v2985_v59 = vshrl.u32 %v2916_v44, 16  ;;  %v3196_v25 = vld [vmem:[#allocation2 + $0x80] sm:$0xe] }
 0x183   :  { %v2988_v9 = vshll.u32 %v2916_v44, 16  ;;  %v2969_v13 = vsel %vm9771_vm3, %v2964_v53, %v2968_v27  ;;  %9166 = vmatpush3.bf16.msra.mxu1 %v9588_v38  ;;  %v8071_v3 = vcombine.low %v10706_v8, %v10714_v12  ;;  %v2976_v56 = vrot.slane %v2974_v18, 5  ;;  %v2922_v53 = vld [vmem:[#allocation2 + $0x38] sm:$0xf] }
 0x184   :  { %v2982_v4 = vrot.slane %v2980_v63, 5  ;;  %9136 = vmatmul.mubr.bf16.vlgmr.msra.gmra.mxu0 %v8068_v54  ;;  %v8083_v41 = vcombine.low %v2955_v49, %v2969_v13  ;;  %9215 = vmatprep.subr.bf16.mxu1 %v10701_v55  ;;  %v2987_v2 = vrot.slane %v2985_v59, 4  ;;  %v2994_v7 = vshll.u32 %v10599_v30, 16  ;;  %v9592_v63 = vld [vmem:[%s12645_s2 + $0x1a0] sm:$0xff]  }
 0x185   :  { %v2990_v43 = vrot.slane %v2988_v9, 5  ;;  %9139 = vmatprep.mubr.bf16.mxu0 %v8069_v11  ;;  %9184 = vmatpush3.bf16.msra.mxu0 %v10658_v36  ;;  %v2977_v57 = vor.u32 %v2976_v56, %v2973_v17  ;;  %v2999_v15 = vshrl.u32 %v2918_v35, 16  ;;  %v3002_v46 = vshll.u32 %v2918_v35, 16  ;;  %v10732_v11 = vld [vmem:[#allocation2 + $0x74] sm:$0x1] }
 0x186   :  { %v3008_v61 = vshll.u32 %v10614_v20, 16  ;;  %9167 = vmatprep.mubr.bf16.mxu1 %v8083_v41  ;;  %9185 = vmatprep.subr.bf16.mxu0 %v9589_v58  ;;  %v2996_v54 = vrot.slane %v2994_v7, 5  ;;  %v3013_v5 = vshrl.u32 %v2920_v47, 16  ;;  %v3016_v30 = vshll.u32 %v2920_v47, 16  ;;  %v3193_v36 = vld [vmem:[#allocation2 + $0x68] sm:$0xe] }
 0x187   :  { %v2991_v32 = vor.u32 %v2990_v43, %v2987_v2  ;;  %v2978_v38 = vrot.slane %v2977_v57, 4  ;;  %v3001_v10 = vrot.slane %v2999_v15, 4  ;;  %v3004_v21 = vrot.slane %v3002_v46, 5  ;;  %v3194_v20 = vld [vmem:[#allocation2 + $0x70] sm:$0xe]  ;;  %v9594_v57 = vld [vmem:[%s12645_s2 + $0x198] sm:$0xff]  }
 0x188   :  { %v3010_v28 = vrot.slane %v3008_v61, 5  ;;  %v3015_v42 = vrot.slane %v3013_v5, 4  ;;  %v3018_v60 = vrot.slane %v3016_v30, 5  ;;  %v3022_v0 = vshll.u32 %v10628_v51, 16  ;;  %v10742_v51 = vld [vmem:[#allocation2 + $0x84] sm:$0x1] }
 0x189   :  { %v2992_v40 = vrot.slane %v2991_v32, 4  ;;  %9186 = vmatpush3.bf16.msra.mxu0 %v9589_v58  ;;  %v2983_v6 = vsel %vm9771_vm3, %v2978_v38, %v2982_v4  ;;  %v3005_v27 = vor.u32 %v3004_v21, %v3001_v10  ;;  %v8045_v39 = vrot.slane %v3193_v36, 9  ;;  %v9593_v58 = vld [vmem:[%s12645_s2 + $0x1f0] sm:$0xff]   ;;  %v2924_v41 = vld [vmem:[#allocation2 + $0x40] sm:$0xf] }
 0x18a   :  { %v3276_v14 = vrot.slane %v10727_v37, 5  ;;  %9187 = vmatprep.subr.bf16.mxu0 %v9590_v26  ;;  %v3019_v49 = vor.u32 %v3018_v60, %v3015_v42  ;;  %v3024_v24 = vrot.slane %v3022_v0, 5  ;;  %v8046_v34 = vrot.slane %v3194_v20, 9  ;;  %v2926_v43 = vld [vmem:[#allocation2 + $0x58] sm:$0xf]  ;;  %v9597_v0 = vld [vmem:[%s12645_s2 + $0x1e0] sm:$0xff]  }
 0x18b   :  { %v2997_v44 = vsel %vm9771_vm3, %v2992_v40, %v2996_v54  ;;  %v3006_v18 = vrot.slane %v3005_v27, 4  ;;  %v3280_v17 = vrot.slane %v10732_v11, 5  ;;  %v8047_v9 = vrot.slane %v3195_v33, 9  ;;  %v2928_v30 = vld [vmem:[#allocation2 + $0x60] sm:$0xf] }
 0x18c   :  { %v8084_v8 = vcombine.low %v2983_v6, %v2997_v44  ;;  %v3277_v12 = vsel %vm10604_vm13, %v8045_v39, %v3276_v14  ;;  %9140 = vmatmul.mubr.bf16.gmra.mxu0 %v8070_v52  ;;  %v3020_v59 = vrot.slane %v3019_v49, 4  ;;  %v3284_v35 = vrot.slane %v10735_v31, 5  ;;  %v10780_v20 = vld [vmem:[#allocation2 + $0x8c] sm:$0x1]  ;;  %v10786_v33 = vld [vmem:[#allocation2 + $0x94] sm:$0x1] }
 0x18d   :  { %v8048_v13 = vrot.slane %v3196_v25, 9  ;;  %9143 = vmatprep.mubr.bf16.mxu0 %v8071_v3  ;;  %v3011_v56 = vsel %vm9771_vm3, %v3006_v18, %v3010_v28  ;;  %v3281_v4 = vsel %vm10604_vm13, %v8046_v34, %v3280_v17  ;;  %v3288_v47 = vrot.slane %v10742_v51, 5  ;;  %9188 = vmatpush3.bf16.msra.mxu0 %v9590_v26  ;;  %v9596_v28 = vld [vmem:[%s12645_s2 + $0x190] sm:$0xff]  }
 0x18e   :  { %9168 = vmatmul.mubr.bf16.vlgmr.msra.gmra.mxu1 %v8084_v8  ;;  %v3027_v2 = vshrl.u32 %v2922_v53, 16  ;;  %v3025_v50 = vsel %vm9771_vm3, %v3020_v59, %v3024_v24  ;;  %v8072_v1 = vcombine.low %v3277_v12, %v3281_v4  ;;  %v3285_v52 = vsel %vm10604_vm13, %v8047_v9, %v3284_v35  ;;  %9189 = vmatprep.subr.bf16.mxu0 %v9592_v63  ;;  %v3198_v34 = vld [vmem:[#allocation2 + $0x90] sm:$0xe] }
 0x18f   :  { %9216 = vmatpush3.bf16.msra.mxu1 %v10701_v55  ;;  %v3030_v3 = vshll.u32 %v2922_v53, 16  ;;  %v8085_v7 = vcombine.low %v3011_v56, %v3025_v50  ;;  %v9595_v55 = vld [vmem:[%s12645_s2 + $0x1e8] sm:$0xff]   ;;  %v3289_v15 = vsel %vm10604_vm13, %v8048_v13, %v3288_v47  ;;  %v3036_v61 = vshll.u32 %v10648_v48, 16  ;;  %v2932_v50 = vld [vmem:[#allocation2 + $0x70] sm:$0xf] }
 0x190   :  { %9217 = vmatprep.subr.bf16.mxu1 %v9593_v58  ;;  %v3029_v46 = vrot.slane %v3027_v2, 4  ;;  %v8073_v26 = vcombine.low %v3285_v52, %v3289_v15  ;;  %v3041_v54 = vshrl.u32 %v2924_v41, 16  ;;  %v3044_v5 = vshll.u32 %v2924_v41, 16  ;;  %v9599_v2 = vld [vmem:[%s12645_s2 + $0x1d8] sm:$0xff]  }
 0x191   :  { %v3032_v32 = vrot.slane %v3030_v3, 5  ;;  %9171 = vmatprep.mubr.bf16.mxu1 %v8085_v7  ;;  %v3038_v36 = vrot.slane %v3036_v61, 5  ;;  %v3050_v38 = vshll.u32 %v10665_v16, 16  ;;  %v3055_v10 = vshrl.u32 %v2926_v43, 16  ;;  %9190 = vmatpush3.bf16.msra.mxu0 %v9592_v63  ;;  %v3197_v16 = vld [vmem:[#allocation2 + $0x88] sm:$0xe] }
 0x192   :  { %v3058_v21 = vshll.u32 %v2926_v43, 16  ;;  %v3043_v40 = vrot.slane %v3041_v54, 4  ;;  %v3046_v42 = vrot.slane %v3044_v5, 5  ;;  %v3064_v60 = vshll.u32 %v10671_v23, 16  ;;  %9191 = vmatprep.subr.bf16.mxu0 %v9594_v57  ;;  %v2930_v63 = vld [vmem:[#allocation2 + $0x68] sm:$0xf] }
 0x193   :  { %9218 = vmatpush3.bf16.msra.mxu1 %v9593_v58  ;;  %v3033_v48 = vor.u32 %v3032_v32, %v3029_v46  ;;  %v3052_v6 = vrot.slane %v3050_v38, 5  ;;  %v3057_v27 = vrot.slane %v3055_v10, 4  ;;  %v3069_v14 = vshrl.u32 %v2928_v30, 16 }
 0x194   :  { %9219 = vmatprep.subr.bf16.mxu1 %v9595_v55  ;;  %v3060_v39 = vrot.slane %v3058_v21, 5  ;;  %9144 = vmatmul.mubr.bf16.gmra.mxu0 %v8072_v1  ;;  %v3047_v44 = vor.u32 %v3046_v42, %v3043_v40  ;;  %v3066_v49 = vrot.slane %v3064_v60, 5  ;;  %v3072_v24 = vshll.u32 %v2928_v30, 16  ;;  %v10809_v30 = vld [vmem:[#allocation2 + $0x4] sm:$0x1] }
 0x195   :  { %v3034_v25 = vrot.slane %v3033_v48, 4  ;;  %9147 = vmatprep.mubr.bf16.mxu0 %v8073_v26  ;;  %v3071_v53 = vrot.slane %v3069_v14, 4  ;;  %v3078_v8 = vshll.u32 %v10675_v62, 16  ;;  %v8049_v18 = vrot.slane %v3197_v16, 9  ;;  %9192 = vmatpush3.bf16.msra.mxu0 %v9594_v57  ;;  %v9598_v62 = vld [vmem:[%s12645_s2 + $0x188] sm:$0xff]   ;;  %v9601_v48 = vld [vmem:[%s12645_s2 + $0x1d0] sm:$0xff]  }
 0x196   :  { %v3061_v23 = vor.u32 %v3060_v39, %v3057_v27  ;;  %v3048_v12 = vrot.slane %v3047_v44, 4  ;;  %v3074_v17 = vrot.slane %v3072_v24, 5  ;;  %v3292_v59 = vrot.slane %v10780_v20, 5  ;;  %9193 = vmatprep.subr.bf16.mxu0 %v9596_v28  ;;  %v3669_v57 = vld [vmem:[#allocation2] sm:$0xf] }
 0x197   :  { %v3039_v58 = vsel %vm9771_vm3, %v3034_v25, %v3038_v36  ;;  %9220 = vmatpush3.bf16.msra.mxu1 %v9595_v55  ;;  %v3080_v35 = vrot.slane %v3078_v8, 5  ;;  %v8050_v13 = vrot.slane %v3198_v34, 9  ;;  %v3296_v56 = vrot.slane %v10786_v33, 5  ;;  %v9600_v36 = vld [vmem:[%s12645_s2 + $0x180] sm:$0xff]   ;;  %v2934_v16 = vld [vmem:[#allocation2 + $0x78] sm:$0xf] }
 0x198   :  { %v3062_v9 = vrot.slane %v3061_v23, 4  ;;  %9221 = vmatprep.subr.bf16.mxu1 %v9597_v0  ;;  %v3053_v4 = vsel %vm9771_vm3, %v3048_v12, %v3052_v6  ;;  %v3075_v47 = vor.u32 %v3074_v17, %v3071_v53  ;;  %v3293_v41 = vsel %vm10604_vm13, %v8049_v18, %v3292_v59  ;;  %v9602_v34 = vld [vmem:[%s12645_s2 + $0x1c8] sm:$0xff]   ;;  %v10828_v23 = vld [vmem:[%s12645_s2 + $0x278] sm:$0xff]  }
 0x199   :  { %v3083_v1 = vshrl.u32 %v2930_v63, 16  ;;  %v8086_v52 = vcombine.low %v3039_v58, %v3053_v4  ;;  %v3297_v43 = vsel %vm10604_vm13, %v8050_v13, %v3296_v56  ;;  %v3086_v7 = vshll.u32 %v2930_v63, 16  ;;  %9194 = vmatpush3.bf16.msra.mxu0 %v9596_v28  ;;  %v2936_v63 = vld [vmem:[#allocation2 + $0x80] sm:$0xf] }
 0x19a   :  { %v3067_v3 = vsel %vm9771_vm3, %v3062_v9, %v3066_v49  ;;  %v3076_v55 = vrot.slane %v3075_v47, 4  ;;  %v8074_v15 = vcombine.low %v3293_v41, %v3297_v43  ;;  %v3092_v61 = vshll.u32 %v10727_v37, 16  ;;  %9195 = vmatprep.subr.bf16.mxu0 %v9598_v62  ;;  %v3671_v37 = vld [vmem:[#allocation2 + $0x8] sm:$0xf] }
 0x19b   :  { %9222 = vmatpush3.bf16.msra.mxu1 %v9597_v0  ;;  %v3085_v46 = vrot.slane %v3083_v1, 4  ;;  %v3088_v26 = vrot.slane %v3086_v7, 5  ;;  %v3097_v32 = vshrl.u32 %v2932_v50, 16  ;;  %v3100_v54 = vshll.u32 %v2932_v50, 16  ;;  %v10819_v0 = vld [vmem:[#allocation2 + $0xc] sm:$0x1] }
 0x19c   :  { %9172 = vmatmul.mubr.bf16.gmra.mxu1 %v8086_v52  ;;  %v3106_v5 = vshll.u32 %v10732_v11, 16  ;;  %v3081_v38 = vsel %vm9771_vm3, %v3076_v55, %v3080_v35  ;;  %9148 = vmatmul.mubr.bf16.gmra.mxu0 %v8074_v15  ;;  %v3094_v10 = vrot.slane %v3092_v61, 5  ;;  %v3702_v21 = vshrl.u32 %v3669_v57, 16  ;;  %v3673_v50 = vld [vmem:[#allocation2 + $0x10] sm:$0xf]  ;;  %v9604_v1 = vld [vmem:[%s12645_s2 + $0x1c0] sm:$0xff]  }
 0x19d   :  { %9223 = vmatprep.subr.bf16.mxu1 %v9599_v2  ;;  %v3705_v28 = vshll.u32 %v3669_v57, 16  ;;  %v8087_v11 = vcombine.low %v3067_v3, %v3081_v38  ;;  %v3089_v40 = vor.u32 %v3088_v26, %v3085_v46  ;;  %v3099_v42 = vrot.slane %v3097_v32, 4  ;;  %9196 = vmatpush3.bf16.msra.mxu0 %v9598_v62  ;;  %v10842_v57 = vld [vmem:[#allocation2 + $0x14] sm:$0x1]  ;;  %v3675_v55 = vld [vmem:[#allocation2 + $0x18] sm:$0xf] }
 0x19e   :  { %v3102_v60 = vrot.slane %v3100_v54, 5  ;;  %v3108_v6 = vrot.slane %v3106_v5, 5  ;;  %v3704_v27 = vrot.slane %v3702_v21, 4  ;;  %v3711_v14 = vshll.u32 %v10809_v30, 16  ;;  %9197 = vmatprep.subr.bf16.mxu0 %v9600_v36  ;;  %v10845_v54 = vld [vmem:[#allocation2 + $0x1c] sm:$0x1] }
 0x19f   :  { %v3707_v39 = vrot.slane %v3705_v28, 5  ;;  %9224 = vmatpush3.bf16.msra.mxu1 %v9599_v2  ;;  %9175 = vmatprep.mubr.bf16.mxu1 %v8087_v11  ;;  %v3090_v25 = vrot.slane %v3089_v40, 4  ;;  %v3716_v49 = vshrl.u32 %v3671_v37, 16  ;;  %v3719_v24 = vshll.u32 %v3671_v37, 16  ;;  %v2938_v28 = vld [vmem:[#allocation2 + $0x88] sm:$0xf] }
 0x1a0   :  { %v3103_v44 = vor.u32 %v3102_v60, %v3099_v42  ;;  %v3713_v8 = vrot.slane %v3711_v14, 5  ;;  %v3725_v18 = vshll.u32 %v10819_v0, 16  ;;  %v3111_v58 = vshrl.u32 %v2934_v16, 16  ;;  %9225 = vmatprep.subr.bf16.mxu1 %v9601_v48  ;;  %v10853_v42 = vld [vmem:[%s12645_s2 + $0x238] sm:$0xff]  }
 0x1a1   :  { %v3708_v53 = vor.u32 %v3707_v39, %v3704_v27  ;;  %v3095_v12 = vsel %vm9771_vm3, %v3090_v25, %v3094_v10  ;;  %v3718_v59 = vrot.slane %v3716_v49, 4  ;;  %v3721_v9 = vrot.slane %v3719_v24, 5  ;;  %9198 = vmatpush3.bf16.msra.mxu0 %v9600_v36  ;;  %v2940_v39 = vld [vmem:[#allocation2 + $0x90] sm:$0xf] }
 0x1a2   :  { %v3104_v17 = vrot.slane %v3103_v44, 4  ;;  %v3727_v13 = vrot.slane %v3725_v18, 5  ;;  %v3113_v56 = vrot.slane %v3111_v58, 4  ;;  %v3114_v62 = vshll.u32 %v2934_v16, 16  ;;  %9247 = vmatprep.subr.bf16.mxu0 %v10828_v23  ;;  %v3677_v18 = vld [vmem:[#allocation2 + $0x20] sm:$0xf] }
 0x1a3   :  { %v3709_v35 = vrot.slane %v3708_v53, 4  ;;  %9226 = vmatpush3.bf16.msra.mxu1 %v9601_v48  ;;  %v3722_v47 = vor.u32 %v3721_v9, %v3718_v59  ;;  %v3120_v41 = vshll.u32 %v10735_v31, 16  ;;  %v3125_v2 = vshrl.u32 %v2936_v63, 16  ;;  %v10861_v59 = vld [vmem:[#allocation2 + $0x24] sm:$0x1] }
 0x1a4   :  { %v3109_v4 = vsel %vm9771_vm3, %v3104_v17, %v3108_v6  ;;  %9227 = vmatprep.subr.bf16.mxu1 %v9602_v34  ;;  %v3116_v43 = vrot.slane %v3114_v62, 5  ;;  %v3128_v7 = vshll.u32 %v2936_v63, 16  ;;  %v3134_v61 = vshll.u32 %v10742_v51, 16 }
 0x1a5   :  { %v8088_v52 = vcombine.low %v3095_v12, %v3109_v4  ;;  %v3714_v3 = vsel %vm9771_vm3, %v3709_v35, %v3713_v8  ;;  %v3723_v15 = vrot.slane %v3722_v47, 4  ;;  %v3122_v31 = vrot.slane %v3120_v41, 5  ;;  %v3679_v41 = vld [vmem:[#allocation2 + $0x28] sm:$0xf] }
 0x1a6   :  { %v3127_v46 = vrot.slane %v3125_v2, 4  ;;  %v3117_v26 = vor.u32 %v3116_v43, %v3113_v56  ;;  %v3130_v32 = vrot.slane %v3128_v7, 5  ;;  %v3730_v5 = vshrl.u32 %v3673_v50, 16  ;;  %v10867_v7 = vld [vmem:[#allocation2 + $0x2c] sm:$0x1] }
 0x1a7   :  { %9176 = vmatmul.mubr.bf16.gmra.mxu1 %v8088_v52  ;;  %v3733_v36 = vshll.u32 %v3673_v50, 16  ;;  %v3728_v38 = vsel %vm9771_vm3, %v3723_v15, %v3727_v13  ;;  %v3136_v10 = vrot.slane %v3134_v61, 5  ;;  %v3739_v37 = vshll.u32 %v10842_v57, 16 }
 0x1a8   :  { %v3744_v21 = vshrl.u32 %v3675_v55, 16  ;;  %9228 = vmatpush3.bf16.msra.mxu1 %v9602_v34  ;;  %v8115_v48 = vcombine.low %v3714_v3, %v3728_v38  ;;  %v3118_v11 = vrot.slane %v3117_v26, 4  ;;  %v3131_v40 = vor.u32 %v3130_v32, %v3127_v46  ;;  %v4135_v26 = vld [vmem:[#allocation2] sm:$0xe]  ;;  %v9605_v32 = vld [vmem:[%s12645_s2 + $0x270] sm:$0xff]  }
 0x1a9   :  { %v3732_v51 = vrot.slane %v3730_v5, 4  ;;  %9229 = vmatprep.subr.bf16.mxu1 %v9604_v1  ;;  %v3735_v60 = vrot.slane %v3733_v36, 5  ;;  %v3741_v16 = vrot.slane %v3739_v37, 5  ;;  %v3747_v27 = vshll.u32 %v3675_v55, 16  ;;  %v4136_v37 = vld [vmem:[#allocation2 + $0x8] sm:$0xe] }
 0x1aa   :  { %v3746_v6 = vrot.slane %v3744_v21, 4  ;;  %9199 = vmatprep.mubr.bf16.mxu0 %v8115_v48  ;;  %v3123_v14 = vsel %vm9771_vm3, %v3118_v11, %v3122_v31  ;;  %v3132_v25 = vrot.slane %v3131_v40, 4  ;;  %v3753_v44 = vshll.u32 %v10845_v54, 16  ;;  %v3681_v21 = vld [vmem:[#allocation2 + $0x30] sm:$0xf] }
 0x1ab   :  { %v3139_v49 = vshrl.u32 %v2938_v28, 16  ;;  %v3736_v24 = vor.u32 %v3735_v60, %v3732_v51  ;;  %v3749_v34 = vrot.slane %v3747_v27, 5  ;;  %v3142_v53 = vshll.u32 %v2938_v28, 16  ;;  %v10878_v51 = vld [vmem:[#allocation2 + $0x34] sm:$0x1] }
 0x1ac   :  { %v3148_v8 = vshll.u32 %v10780_v20, 16  ;;  %9230 = vmatpush3.bf16.msra.mxu1 %v9604_v1  ;;  %v3137_v63 = vsel %vm9771_vm3, %v3132_v25, %v3136_v10  ;;  %v3755_v58 = vrot.slane %v3753_v44, 5  ;;  %v3153_v17 = vshrl.u32 %v2940_v39, 16 }
 0x1ad   :  { %v3141_v12 = vrot.slane %v3139_v49, 4  ;;  %9279 = vmatprep.subr.bf16.mxu1 %v10853_v42  ;;  %v8089_v9 = vcombine.low %v3123_v14, %v3137_v63  ;;  %v3737_v35 = vrot.slane %v3736_v24, 4  ;;  %v3750_v13 = vor.u32 %v3749_v34, %v3746_v6  ;;  %v9606_v14 = vld [vmem:[%s12645_s2 + $0x268] sm:$0xff]   ;;  %v10886_v34 = vld [vmem:[#allocation2 + $0x3c] sm:$0x1] }
 0x1ae   :  { %v3144_v56 = vrot.slane %v3142_v53, 5  ;;  %v3150_v62 = vrot.slane %v3148_v8, 5  ;;  %v3155_v4 = vrot.slane %v3153_v17, 4  ;;  %v3156_v47 = vshll.u32 %v2940_v39, 16  ;;  %v3683_v39 = vld [vmem:[#allocation2 + $0x38] sm:$0xf] }
 0x1af   :  { %v3162_v20 = vshll.u32 %v10786_v33, 16  ;;  %9179 = vmatprep.mubr.bf16.mxu1 %v8089_v9  ;;  %v3742_v2 = vsel %vm9771_vm3, %v3737_v35, %v3741_v16  ;;  %v3751_v50 = vrot.slane %v3750_v13, 4  ;;  %v3758_v52 = vshrl.u32 %v3677_v18, 16  ;;  %v3685_v63 = vld [vmem:[#allocation2 + $0x50] sm:$0xf] }
 0x1b0   :  { %v3145_v1 = vor.u32 %v3144_v56, %v3141_v12  ;;  %v3158_v3 = vrot.slane %v3156_v47, 5  ;;  %v3761_v55 = vshll.u32 %v3677_v18, 16  ;;  %v3767_v15 = vshll.u32 %v10861_v59, 16 }
 0x1b1   :  { %v3164_v43 = vrot.slane %v3162_v20, 5  ;;  %v3756_v31 = vsel %vm9771_vm3, %v3751_v50, %v3755_v58  ;;  %v3760_v33 = vrot.slane %v3758_v52, 4  ;;  %v3772_v61 = vshrl.u32 %v3679_v41, 16  ;;  %v9608_v20 = vld [vmem:[%s12645_s2 + $0x260] sm:$0xff]   ;;  %v10901_v50 = vld [vmem:[#allocation2 + $0x54] sm:$0x1] }
 0x1b2   :  { %v3146_v46 = vrot.slane %v3145_v1, 4  ;;  %v8116_v5 = vcombine.low %v3742_v2, %v3756_v31  ;;  %v3159_v36 = vor.u32 %v3158_v3, %v3155_v4  ;;  %v3763_v38 = vrot.slane %v3761_v55, 5  ;;  %v3687_v1 = vld [vmem:[#allocation2 + $0x58] sm:$0xf] }
 0x1b3   :  { %v3769_v10 = vrot.slane %v3767_v15, 5  ;;  %v3774_v48 = vrot.slane %v3772_v61, 4  ;;  %v3775_v11 = vshll.u32 %v3679_v41, 16  ;;  %v3781_v40 = vshll.u32 %v10867_v7, 16 }
 0x1b4   :  { %v3151_v28 = vsel %vm9771_vm3, %v3146_v46, %v3150_v62  ;;  %9200 = vmatmul.mubr.bf16.vlgmr.msra.gmra.mxu0 %v8116_v5  ;;  %v3160_v60 = vrot.slane %v3159_v36, 4  ;;  %v3764_v16 = vor.u32 %v3763_v38, %v3760_v33  ;;  %v8131_v6 = vrot.slane %v4135_v26, 9  ;;  %v10905_v46 = vld [vmem:[#allocation2 + $0x5c] sm:$0x1]  ;;  %v4137_v33 = vld [vmem:[#allocation2 + $0x10] sm:$0xe] }
 0x1b5   :  { %v4185_v27 = vrot.slane %v10809_v30, 5  ;;  %v3777_v25 = vrot.slane %v3775_v11, 5  ;;  %v3783_v44 = vrot.slane %v3781_v40, 5  ;;  %9248 = vmatpush3.bf16.msra.mxu0 %v10828_v23  ;;  %v8132_v49 = vrot.slane %v4136_v37, 9  ;;  %v4138_v36 = vld [vmem:[#allocation2 + $0x18] sm:$0xe] }
 0x1b6   :  { %v4189_v24 = vrot.slane %v10819_v0, 5  ;;  %v3165_v53 = vsel %vm9771_vm3, %v3160_v60, %v3164_v43  ;;  %v3765_v8 = vrot.slane %v3764_v16, 4  ;;  %9249 = vmatprep.subr.bf16.mxu0 %v9605_v32  ;;  %v3786_v18 = vshrl.u32 %v3681_v21, 16  ;;  %v4140_v16 = vld [vmem:[#allocation2 + $0x28] sm:$0xe] }
 0x1b7   :  { %v4186_v30 = vsel %vm10604_vm13, %v8131_v6, %v4185_v27  ;;  %v8090_v58 = vcombine.low %v3151_v28, %v3165_v53  ;;  %v3778_v12 = vor.u32 %v3777_v25, %v3774_v48  ;;  %v3789_v17 = vshll.u32 %v3681_v21, 16  ;;  %v4139_v28 = vld [vmem:[#allocation2 + $0x20] sm:$0xe]  ;;  %v9610_v6 = vld [vmem:[%s12645_s2 + $0x258] sm:$0xff]  }
 0x1b8   :  { %v4190_v23 = vsel %vm10604_vm13, %v8132_v49, %v4189_v24  ;;  %v3770_v0 = vsel %vm9771_vm3, %v3765_v8, %v3769_v10  ;;  %v3788_v35 = vrot.slane %v3786_v18, 4  ;;  %v3795_v13 = vshll.u32 %v10878_v51, 16 }
 0x1b9   :  { %v8163_v9 = vcombine.low %v4186_v30, %v4190_v23  ;;  %9180 = vmatmul.mubr.bf16.gmra.mxu1 %v8090_v58  ;;  %v3779_v56 = vrot.slane %v3778_v12, 4  ;;  %9250 = vmatpush3.bf16.msra.mxu0 %v9605_v32  ;;  %v3791_v62 = vrot.slane %v3789_v17, 5  ;;  %v3800_v4 = vshrl.u32 %v3683_v39, 16 }
 0x1ba   :  { %v3803_v47 = vshll.u32 %v3683_v39, 16  ;;  %v3797_v41 = vrot.slane %v3795_v13, 5  ;;  %v3809_v2 = vshll.u32 %v10886_v34, 16  ;;  %9251 = vmatprep.subr.bf16.mxu0 %v9606_v14  ;;  %v3814_v52 = vshrl.u32 %v3685_v63, 16 }
 0x1bb   :  { %9231 = vmatprep.mubr.bf16.mxu1 %v8163_v9  ;;  %v3817_v3 = vshll.u32 %v3685_v63, 16  ;;  %v3784_v43 = vsel %vm9771_vm3, %v3779_v56, %v3783_v44  ;;  %v3792_v55 = vor.u32 %v3791_v62, %v3788_v35  ;;  %v3802_v15 = vrot.slane %v3800_v4, 4  ;;  %v10922_v9 = vld [vmem:[#allocation2 + $0x64] sm:$0x1]  ;;  %v3691_v35 = vld [vmem:[#allocation2 + $0x68] sm:$0xf] }
 0x1bc   :  { %v3805_v31 = vrot.slane %v3803_v47, 5  ;;  %v8117_v61 = vcombine.low %v3770_v0, %v3784_v43  ;;  %v3811_v26 = vrot.slane %v3809_v2, 5  ;;  %v3816_v32 = vrot.slane %v3814_v52, 4  ;;  %v9609_v4 = vld [vmem:[%s12645_s2 + $0x230] sm:$0xff]   ;;  %v10934_v47 = vld [vmem:[#allocation2 + $0x6c] sm:$0x1] }
 0x1bd   :  { %v3819_v5 = vrot.slane %v3817_v3, 5  ;;  %v3793_v38 = vrot.slane %v3792_v55, 4  ;;  %v3823_v37 = vshll.u32 %v10901_v50, 16  ;;  %v3828_v21 = vshrl.u32 %v3687_v1, 16  ;;  %9252 = vmatpush3.bf16.msra.mxu0 %v9606_v14  ;;  %v3689_v14 = vld [vmem:[#allocation2 + $0x60] sm:$0xf] }
 0x1be   :  { %v3806_v10 = vor.u32 %v3805_v31, %v3802_v15  ;;  %9203 = vmatprep.mubr.bf16.mxu0 %v8117_v61  ;;  %v3831_v11 = vshll.u32 %v3687_v1, 16  ;;  %v3837_v40 = vshll.u32 %v10905_v46, 16  ;;  %v8133_v60 = vrot.slane %v4137_v33, 9  ;;  %9253 = vmatprep.subr.bf16.mxu0 %v9608_v20  ;;  %v3693_v52 = vld [vmem:[#allocation2 + $0x70] sm:$0xf]  ;;  %v9614_v3 = vld [vmem:[%s12645_s2 + $0x248] sm:$0xff]  }
 0x1bf   :  { %v3820_v48 = vor.u32 %v3819_v5, %v3816_v32  ;;  %v3798_v27 = vsel %vm9771_vm3, %v3793_v38, %v3797_v41  ;;  %v3825_v25 = vrot.slane %v3823_v37, 5  ;;  %v3830_v44 = vrot.slane %v3828_v21, 4  ;;  %v3695_v32 = vld [vmem:[#allocation2 + $0x78] sm:$0xf]  ;;  %v9611_v37 = vld [vmem:[%s12645_s2 + $0x228] sm:$0xff]  }
 0x1c0   :  { %v3807_v39 = vrot.slane %v3806_v10, 4  ;;  %v3833_v24 = vrot.slane %v3831_v11, 5  ;;  %v3839_v53 = vrot.slane %v3837_v40, 5  ;;  %v4193_v8 = vrot.slane %v10842_v57, 5  ;;  %v9612_v57 = vld [vmem:[%s12645_s2 + $0x250] sm:$0xff]  }
 0x1c1   :  { %v3821_v49 = vrot.slane %v3820_v48, 4  ;;  %v8134_v18 = vrot.slane %v4138_v36, 9  ;;  %v4197_v63 = vrot.slane %v10845_v54, 5  ;;  %v8135_v58 = vrot.slane %v4139_v28, 9  ;;  %9254 = vmatpush3.bf16.msra.mxu0 %v9608_v20  ;;  %v10952_v21 = vld [vmem:[#allocation2 + $0x7c] sm:$0x1] }
 0x1c2   :  { %v3812_v30 = vsel %vm9771_vm3, %v3807_v39, %v3811_v26  ;;  %v3834_v17 = vor.u32 %v3833_v24, %v3830_v44  ;;  %v4194_v0 = vsel %vm10604_vm13, %v8133_v60, %v4193_v8  ;;  %9255 = vmatprep.subr.bf16.mxu0 %v9610_v6  ;;  %v4201_v13 = vrot.slane %v10861_v59, 5  ;;  %v10946_v26 = vld [vmem:[#allocation2 + $0x74] sm:$0x1]  ;;  %v4141_v28 = vld [vmem:[#allocation2 + $0x30] sm:$0xe] }
 0x1c3   :  { %v8118_v12 = vcombine.low %v3798_v27, %v3812_v30  ;;  %v3826_v23 = vsel %vm9771_vm3, %v3821_v49, %v3825_v25  ;;  %v4198_v54 = vsel %vm10604_vm13, %v8134_v18, %v4197_v63  ;;  %v8136_v56 = vrot.slane %v4140_v16, 9  ;;  %v4142_v16 = vld [vmem:[#allocation2 + $0x38] sm:$0xe]  ;;  %v4143_v44 = vld [vmem:[#allocation2 + $0x50] sm:$0xe] }
 0x1c4   :  { %v4205_v62 = vrot.slane %v10867_v7, 5  ;;  %v3835_v20 = vrot.slane %v3834_v17, 4  ;;  %v8164_v41 = vcombine.low %v4194_v0, %v4198_v54  ;;  %v3842_v2 = vshrl.u32 %v3689_v14, 16  ;;  %v9613_v0 = vld [vmem:[%s12645_s2 + $0x220] sm:$0xff]  }
 0x1c5   :  { %9204 = vmatmul.mubr.bf16.gmra.mxu0 %v8118_v12  ;;  %v3845_v1 = vshll.u32 %v3689_v14, 16  ;;  %v4202_v59 = vsel %vm10604_vm13, %v8135_v58, %v4201_v13  ;;  %v3851_v43 = vshll.u32 %v10922_v9, 16  ;;  %v3856_v55 = vshrl.u32 %v3691_v35, 16 }
 0x1c6   :  { %v4206_v7 = vsel %vm10604_vm13, %v8136_v56, %v4205_v62  ;;  %9256 = vmatpush3.bf16.msra.mxu0 %v9610_v6  ;;  %v3840_v15 = vsel %vm9771_vm3, %v3835_v20, %v3839_v53  ;;  %9232 = vmatmul.mubr.bf16.vlgmr.msra.gmra.mxu1 %v8164_v41  ;;  %v3844_v33 = vrot.slane %v3842_v2, 4  ;;  %v3859_v10 = vshll.u32 %v3691_v35, 16  ;;  %v4144_v56 = vld [vmem:[#allocation2 + $0x58] sm:$0xe] }
 0x1c7   :  { %v8165_v31 = vcombine.low %v4202_v59, %v4206_v7  ;;  %v3847_v61 = vrot.slane %v3845_v1, 5  ;;  %9257 = vmatprep.subr.bf16.mxu0 %v9612_v57  ;;  %v8119_v5 = vcombine.low %v3826_v23, %v3840_v15  ;;  %9280 = vmatpush3.bf16.msra.mxu1 %v10853_v42  ;;  %v3853_v36 = vrot.slane %v3851_v43, 5  ;;  %v9617_v42 = vld [vmem:[%s12645_s2 + $0x240] sm:$0xff]   ;;  %v10969_v62 = vld [vmem:[%s12645_s2 + $0x2b8] sm:$0xff]  }
 0x1c8   :  { %v3858_v38 = vrot.slane %v3856_v55, 4  ;;  %9281 = vmatprep.subr.bf16.mxu1 %v9609_v4  ;;  %v3865_v11 = vshll.u32 %v10934_v47, 16  ;;  %v3870_v40 = vshrl.u32 %v3693_v52, 16  ;;  %v3873_v60 = vshll.u32 %v3693_v52, 16  ;;  %v3697_v1 = vld [vmem:[#allocation2 + $0x80] sm:$0xf] }
 0x1c9   :  { %9235 = vmatprep.mubr.bf16.mxu1 %v8165_v31  ;;  %v3848_v48 = vor.u32 %v3847_v61, %v3844_v33  ;;  %9207 = vmatprep.mubr.bf16.mxu0 %v8119_v5  ;;  %v3861_v6 = vrot.slane %v3859_v10, 5  ;;  %v3879_v27 = vshll.u32 %v10946_v26, 16  ;;  %v3884_v39 = vshrl.u32 %v3695_v32, 16  ;;  %v10977_v7 = vld [vmem:[#allocation2 + $0x84] sm:$0x1] }
 0x1ca   :  { %v3887_v25 = vshll.u32 %v3695_v32, 16  ;;  %9258 = vmatpush3.bf16.msra.mxu0 %v9612_v57  ;;  %v3867_v49 = vrot.slane %v3865_v11, 5  ;;  %v3872_v24 = vrot.slane %v3870_v40, 4  ;;  %v3875_v53 = vrot.slane %v3873_v60, 5  ;;  %v3699_v31 = vld [vmem:[#allocation2 + $0x88] sm:$0xf] }
 0x1cb   :  { %v3849_v14 = vrot.slane %v3848_v48, 4  ;;  %9259 = vmatprep.subr.bf16.mxu0 %v9614_v3  ;;  %9282 = vmatpush3.bf16.msra.mxu1 %v9609_v4  ;;  %v3862_v8 = vor.u32 %v3861_v6, %v3858_v38  ;;  %v3881_v30 = vrot.slane %v3879_v27, 5  ;;  %v3886_v18 = vrot.slane %v3884_v39, 4  ;;  %v10988_v5 = vld [vmem:[#allocation2 + $0x8c] sm:$0x1] }
 0x1cc   :  { %v3889_v63 = vrot.slane %v3887_v25, 5  ;;  %9283 = vmatprep.subr.bf16.mxu1 %v9611_v37  ;;  %v3876_v12 = vor.u32 %v3875_v53, %v3872_v24  ;;  %v3893_v23 = vshll.u32 %v10952_v21, 16  ;;  %v8137_v17 = vrot.slane %v4141_v28, 9  ;;  %v4145_v48 = vld [vmem:[#allocation2 + $0x60] sm:$0xe]  ;;  %v9618_v53 = vld [vmem:[%s12645_s2 + $0x210] sm:$0xff]  }
 0x1cd   :  { %v3854_v58 = vsel %vm9771_vm3, %v3849_v14, %v3853_v36  ;;  %v3863_v35 = vrot.slane %v3862_v8, 4  ;;  %v4209_v54 = vrot.slane %v10878_v51, 5  ;;  %v8138_v13 = vrot.slane %v4142_v16, 9  ;;  %v9615_v36 = vld [vmem:[%s12645_s2 + $0x218] sm:$0xff]   ;;  %v4146_v60 = vld [vmem:[#allocation2 + $0x68] sm:$0xe] }
 0x1ce   :  { %v3890_v57 = vor.u32 %v3889_v63, %v3886_v18  ;;  %9260 = vmatpush3.bf16.msra.mxu0 %v9614_v3  ;;  %v3877_v4 = vrot.slane %v3876_v12, 4  ;;  %v3895_v20 = vrot.slane %v3893_v23, 5  ;;  %v4213_v41 = vrot.slane %v10886_v34, 5  ;;  %v10997_v16 = vld [vmem:[#allocation2 + $0x8] sm:$0xf] }
 0x1cf   :  { %v8139_v2 = vrot.slane %v4143_v44, 9  ;;  %9261 = vmatprep.subr.bf16.mxu0 %v9617_v42  ;;  %v3868_v52 = vsel %vm9771_vm3, %v3863_v35, %v3867_v49  ;;  %v4210_v51 = vsel %vm10604_vm13, %v8137_v17, %v4209_v54  ;;  %9284 = vmatpush3.bf16.msra.mxu1 %v9611_v37  ;;  %v4217_v3 = vrot.slane %v10901_v50, 5  ;;  %v4599_v25 = vld [vmem:[#allocation2 + $0x10] sm:$0xf] }
 0x1d0   :  { %v3891_v59 = vrot.slane %v3890_v57, 4  ;;  %v8120_v43 = vcombine.low %v3854_v58, %v3868_v52  ;;  %v3882_v55 = vsel %vm9771_vm3, %v3877_v4, %v3881_v30  ;;  %v4214_v34 = vsel %vm10604_vm13, %v8138_v13, %v4213_v41  ;;  %9285 = vmatprep.subr.bf16.mxu1 %v9613_v0  ;;  %v4147_v13 = vld [vmem:[#allocation2 + $0x70] sm:$0xe]  ;;  %v11013_v41 = vld [vmem:[#allocation2 + $0x18] sm:$0xf] }
 0x1d1   :  { %v8140_v15 = vrot.slane %v4144_v56, 9  ;;  %v8166_v61 = vcombine.low %v4210_v51, %v4214_v34  ;;  %v4218_v32 = vsel %vm10604_vm13, %v8139_v2, %v4217_v3  ;;  %v4221_v50 = vrot.slane %v10905_v46, 5  ;;  %v9620_v2 = vld [vmem:[%s12645_s2 + $0x208] sm:$0xff]   ;;  %v11024_v3 = vld [vmem:[#allocation2 + $0x20] sm:$0xf] }
 0x1d2   :  { %v3896_v33 = vsel %vm9771_vm3, %v3891_v59, %v3895_v20  ;;  %9262 = vmatpush3.bf16.msra.mxu0 %v9617_v42  ;;  %v3898_v10 = vshrl.u32 %v3697_v1, 16  ;;  %v3901_v37 = vshll.u32 %v3697_v1, 16  ;;  %v3907_v28 = vshll.u32 %v10977_v7, 16 }
 0x1d3   :  { %9208 = vmatmul.mubr.bf16.gmra.mxu0 %v8120_v43  ;;  %v8121_v38 = vcombine.low %v3882_v55, %v3896_v33  ;;  %9311 = vmatprep.subr.bf16.mxu0 %v10969_v62  ;;  %v4222_v46 = vsel %vm10604_vm13, %v8140_v15, %v4221_v50  ;;  %v3912_v11 = vshrl.u32 %v3699_v31, 16  ;;  %v3915_v40 = vshll.u32 %v3699_v31, 16  ;;  %v4149_v31 = vld [vmem:[#allocation2 + $0x80] sm:$0xe] }
 0x1d4   :  { %9236 = vmatmul.mubr.bf16.gmra.mxu1 %v8166_v61  ;;  %v8167_v42 = vcombine.low %v4218_v32, %v4222_v46  ;;  %v3900_v6 = vrot.slane %v3898_v10, 4  ;;  %v3903_v27 = vrot.slane %v3901_v37, 5  ;;  %v3921_v39 = vshll.u32 %v10988_v5, 16 }
 0x1d5   :  { %9211 = vmatprep.mubr.bf16.mxu0 %v8121_v38  ;;  %9286 = vmatpush3.bf16.msra.mxu1 %v9613_v0  ;;  %v3909_v44 = vrot.slane %v3907_v28, 5  ;;  %v3914_v14 = vrot.slane %v3912_v11, 4  ;;  %v3917_v49 = vrot.slane %v3915_v40, 5  ;;  %v8141_v24 = vrot.slane %v4145_v48, 9  ;;  %v4605_v28 = vld [vmem:[#allocation2 + $0x28] sm:$0xf] }
 0x1d6   :  { %9287 = vmatprep.subr.bf16.mxu1 %v9615_v36  ;;  %9239 = vmatprep.mubr.bf16.mxu1 %v8167_v42  ;;  %v3904_v8 = vor.u32 %v3903_v27, %v3900_v6  ;;  %v4225_v30 = vrot.slane %v10922_v9, 5  ;;  %v8142_v18 = vrot.slane %v4146_v60, 9  ;;  %v4229_v63 = vrot.slane %v10934_v47, 5  ;;  %v4148_v9 = vld [vmem:[#allocation2 + $0x78] sm:$0xe] }
 0x1d7   :  { %v3918_v58 = vor.u32 %v3917_v49, %v3914_v14  ;;  %v4630_v12 = vshrl.u32 %v10997_v16, 16  ;;  %v4633_v23 = vshll.u32 %v10997_v16, 16  ;;  %v4644_v17 = vshrl.u32 %v4599_v25, 16  ;;  %v4607_v60 = vld [vmem:[#allocation2 + $0x30] sm:$0xf] }
 0x1d8   :  { %v3905_v0 = vrot.slane %v3904_v8, 4  ;;  %v4226_v35 = vsel %vm10604_vm13, %v8141_v24, %v4225_v30  ;;  %v4230_v57 = vsel %vm10604_vm13, %v8142_v18, %v4229_v63  ;;  %v4647_v54 = vshll.u32 %v4599_v25, 16  ;;  %v4600_v24 = vld [vmem:[#allocation2 + $0x14] sm:$0x1]  ;;  %v11056_v63 = vld [vmem:[#allocation2 + $0x38] sm:$0xf] }
 0x1d9   :  { %9288 = vmatpush3.bf16.msra.mxu1 %v9615_v36  ;;  %v3919_v56 = vrot.slane %v3918_v58, 4  ;;  %v3923_v4 = vrot.slane %v3921_v39, 5  ;;  %v8168_v47 = vcombine.low %v4226_v35, %v4230_v57  ;;  %v11011_v20 = vrot.slane %v4630_v12, 4  ;;  %v9623_v36 = vld [vmem:[%s12645_s2 + $0x200] sm:$0xff]   ;;  %v4598_v39 = vld [vmem:[#allocation2 + $0xc] sm:$0x1] }
 0x1da   :  { %9289 = vmatprep.subr.bf16.mxu1 %v9618_v53  ;;  %v3910_v1 = vsel %vm9771_vm3, %v3905_v0, %v3909_v44  ;;  %v4635_v52 = vrot.slane %v4633_v23, 5  ;;  %v11020_v59 = vrot.slane %v4644_v17, 4  ;;  %v11022_v51 = vrot.slane %v4647_v54, 5  ;;  %v11068_v17 = vld [vmem:[#allocation2 + $0x40] sm:$0xf] }
 0x1db   :  { %v3924_v43 = vsel %vm9771_vm3, %v3919_v56, %v3923_v4  ;;  %v8143_v55 = vrot.slane %v4147_v13, 9  ;;  %v4233_v34 = vrot.slane %v10946_v26, 5  ;;  %v8144_v15 = vrot.slane %v4148_v9, 9  ;;  %v9624_v4 = vld [vmem:[%s12645_s2 + $0x2b0] sm:$0xff]  }
 0x1dc   :  { %9240 = vmatmul.mubr.bf16.gmra.mxu1 %v8168_v47  ;;  %v8122_v33 = vcombine.low %v3910_v1, %v3924_v43  ;;  %v4237_v61 = vrot.slane %v10952_v21, 5  ;;  %v4658_v32 = vshrl.u32 %v11013_v41, 16  ;;  %v4661_v50 = vshll.u32 %v11013_v41, 16  ;;  %v4150_v21 = vld [vmem:[#allocation2 + $0x88] sm:$0xe] }
 0x1dd   :  { %9290 = vmatpush3.bf16.msra.mxu1 %v9618_v53  ;;  %v8227_v38 = vcombine.low %v10997_v16, %v4599_v25  ;;  %v4234_v10 = vsel %vm10604_vm13, %v8143_v55, %v4233_v34  ;;  %v4672_v26 = vshrl.u32 %v11024_v3, 16  ;;  %v4675_v37 = vshll.u32 %v11024_v3, 16 }
 0x1de   :  { %9291 = vmatprep.subr.bf16.mxu1 %v9620_v2  ;;  %9212 = vmatmul.mubr.bf16.gmra.mxu0 %v8122_v33  ;;  %v4238_v48 = vsel %vm10604_vm13, %v8144_v15, %v4237_v61  ;;  %v11042_v46 = vrot.slane %v4658_v32, 4  ;;  %v8228_v11 = vcombine.low %v11013_v41, %v11024_v3  ;;  %v8145_v40 = vrot.slane %v4149_v31, 9  ;;  %v4602_v61 = vld [vmem:[#allocation2 + $0x1c] sm:$0x1] }
 0x1df   :  { %9263 = vmatprep.mubr.bf16.mxu0 %v8227_v38  ;;  %v8169_v16 = vcombine.low %v4234_v10, %v4238_v48  ;;  %v11046_v42 = vrot.slane %v4661_v50, 5  ;;  %v11048_v6 = vrot.slane %v4672_v26, 4  ;;  %v4241_v27 = vrot.slane %v10977_v7, 5  ;;  %v11061_v7 = vld [vmem:[%s12645_s2 + $0x2f8] sm:$0xff]   ;;  %v9626_v50 = vld [vmem:[%s12645_s2 + $0x2a8] sm:$0xff]  }
 0x1e0   :  { %v8146_v25 = vrot.slane %v4150_v21, 9  ;;  %v4245_v44 = vrot.slane %v10988_v5, 5  ;;  %v4686_v14 = vshrl.u32 %v4605_v28, 16  ;;  %v4689_v49 = vshll.u32 %v4605_v28, 16  ;;  %v4604_v10 = vld [vmem:[#allocation2 + $0x24] sm:$0x1] }
 0x1e1   :  { %9292 = vmatpush3.bf16.msra.mxu1 %v9620_v2  ;;  %9243 = vmatprep.mubr.bf16.mxu1 %v8169_v16  ;;  %v11052_v53 = vrot.slane %v4675_v37, 5  ;;  %v4242_v8 = vsel %vm10604_vm13, %v8145_v40, %v4241_v27  ;;  %v4700_v30 = vshrl.u32 %v4607_v60, 16  ;;  %v4703_v18 = vshll.u32 %v4607_v60, 16  ;;  %v4606_v48 = vld [vmem:[#allocation2 + $0x2c] sm:$0x1] }
 0x1e2   :  { %9293 = vmatprep.subr.bf16.mxu1 %v9623_v36  ;;  %v4246_v5 = vsel %vm10604_vm13, %v8146_v25, %v4245_v44  ;;  %v11065_v58 = vrot.slane %v4686_v14, 4  ;;  %v8229_v12 = vcombine.low %v4605_v28, %v4607_v60  ;;  %v4636_v23 = vor.u32 %v4635_v52, %v11011_v20  ;;  %v4613_v20 = vld [vmem:[#allocation2 + $0x58] sm:$0xf] }
 0x1e3   :  { %v8170_v0 = vcombine.low %v4242_v8, %v4246_v5  ;;  %v11070_v35 = vrot.slane %v4689_v49, 5  ;;  %v11072_v57 = vrot.slane %v4700_v30, 4  ;;  %v4639_v54 = vshll.u32 %v4598_v39, 16  ;;  %v11108_v39 = vld [vmem:[#allocation2 + $0x68] sm:$0xf]  ;;  %v9629_v30 = vld [vmem:[%s12645_s2 + $0x2a0] sm:$0xff]  }
 0x1e4   :  { %v4637_v13 = vrot.slane %v4636_v23, 4  ;;  %v4650_v9 = vor.u32 %v11022_v51, %v11020_v59  ;;  %v4653_v56 = vshll.u32 %v4600_v24, 16  ;;  %v4714_v47 = vshrl.u32 %v11056_v63, 16  ;;  %v4615_v59 = vld [vmem:[#allocation2 + $0x60] sm:$0xf] }
 0x1e5   :  { %9294 = vmatpush3.bf16.msra.mxu1 %v9623_v36  ;;  %v4641_v41 = vrot.slane %v4639_v54, 5  ;;  %v4717_v2 = vshll.u32 %v11056_v63, 16  ;;  %v4728_v1 = vshrl.u32 %v11068_v17, 16  ;;  %v4731_v52 = vshll.u32 %v11068_v17, 16 }
 0x1e6   :  { %9244 = vmatmul.mubr.bf16.gmra.mxu1 %v8170_v0  ;;  %9343 = vmatprep.subr.bf16.mxu1 %v11061_v7  ;;  %v4705_v51 = vrot.slane %v4703_v18, 5  ;;  %v4651_v3 = vrot.slane %v4650_v9, 4  ;;  %v4655_v43 = vrot.slane %v4653_v56, 5  ;;  %v11084_v55 = vrot.slane %v4714_v47, 4  ;;  %v4621_v0 = vld [vmem:[#allocation2 + $0x78] sm:$0xf] }
 0x1e7   :  { %9264 = vmatmul.mubr.bf16.vlgmr.msra.gmra.mxu0 %v8228_v11  ;;  %v4642_v34 = vsel %vm9771_vm3, %v4637_v13, %v4641_v41  ;;  %v11089_v15 = vrot.slane %v4717_v2, 5  ;;  %v11091_v31 = vrot.slane %v4728_v1, 4  ;;  %v8230_v33 = vcombine.low %v11056_v63, %v11068_v17  ;;  %v4608_v11 = vld [vmem:[#allocation2 + $0x34] sm:$0x1]  ;;  %v11135_v2 = vld [vmem:[#allocation2 + $0x80] sm:$0xf] }
 0x1e8   :  { %9267 = vmatprep.mubr.bf16.mxu0 %v8229_v12  ;;  %9312 = vmatpush3.bf16.msra.mxu0 %v10969_v62  ;;  %v4656_v32 = vsel %vm9771_vm3, %v4651_v3, %v4655_v43  ;;  %v4742_v62 = vshrl.u32 %v4613_v20, 16  ;;  %v4745_v36 = vshll.u32 %v4613_v20, 16  ;;  %v4756_v38 = vshrl.u32 %v4615_v59, 16  ;;  %v4619_v12 = vld [vmem:[#allocation2 + $0x70] sm:$0xf]  ;;  %v11128_v9 = vpop.f32.mrf.mxu0 }
 0x1e9   :  { %9313 = vmatprep.subr.bf16.mxu0 %v9624_v4  ;;  %v8243_v26 = vcombine.low %v4642_v34, %v4656_v32  ;;  %v11100_v37 = vrot.slane %v4731_v52, 5  ;;  %v4759_v21 = vshll.u32 %v4615_v59, 16  ;;  %v4664_v28 = vor.u32 %v11046_v42, %v11042_v46  ;;  %v4610_v43 = vld [vmem:[#allocation2 + $0x3c] sm:$0x1] }
 0x1ea   :  { %v11104_v40 = vrot.slane %v4742_v62, 4  ;;  %v11106_v60 = vrot.slane %v4745_v36, 5  ;;  %v8231_v16 = vcombine.low %v4613_v20, %v4615_v59  ;;  %v4667_v27 = vshll.u32 %v4602_v61, 16  ;;  %v11146_v34 = vpop.f32.mrf.mxu0  ;;  %v4612_v62 = vld [vmem:[#allocation2 + $0x44] sm:$0x1] }
 0x1eb   :  { %9295 = vmatprep.mubr.bf16.mxu1 %v8243_v26  ;;  %v11110_v25 = vrot.slane %v4756_v38, 4  ;;  %v4665_v44 = vrot.slane %v4664_v28, 4  ;;  %v4678_v14 = vor.u32 %v11052_v53, %v11048_v6  ;;  %v4681_v49 = vshll.u32 %v4604_v10, 16 }
 0x1ec   :  { %9314 = vmatpush3.bf16.msra.mxu0 %v9624_v4  ;;  %v4669_v46 = vrot.slane %v4667_v27, 5  ;;  %v4692_v42 = vor.u32 %v11070_v35, %v11065_v58  ;;  %v4695_v24 = vshll.u32 %v4606_v48, 16  ;;  %v4706_v8 = vor.u32 %v4705_v51, %v11072_v57  ;;  %v9630_v4 = vld [vmem:[%s12645_s2 + $0x2f0] sm:$0xff]   ;;  %v9632_v51 = vld [vmem:[%s12645_s2 + $0x298] sm:$0xff]   ;;  %v11158_v28 = vpop.f32.mrf.mxu0  ;;  %v9633_v48 = vld [vmem:[%s12645_s2 + $0x2e8] sm:$0xff]  }
 0x1ed   :  { %9315 = vmatprep.subr.bf16.mxu0 %v9626_v50  ;;  %v4679_v18 = vrot.slane %v4678_v14, 4  ;;  %v4683_v63 = vrot.slane %v4681_v49, 5  ;;  %v4709_v5 = vshll.u32 %v4608_v11, 16  ;;  %v4770_v23 = vshrl.u32 %v11108_v39, 16 }
 0x1ee   :  { %v11121_v6 = vrot.slane %v4759_v21, 5  ;;  %v4670_v53 = vsel %vm9771_vm3, %v4665_v44, %v4669_v46  ;;  %v4693_v58 = vrot.slane %v4692_v42, 4  ;;  %v4707_v17 = vrot.slane %v4706_v8, 4  ;;  %v4614_v21 = vld [vmem:[#allocation2 + $0x5c] sm:$0x1]  ;;  %v9635_v42 = vld [vmem:[%s12645_s2 + $0x290] sm:$0xff]  }
 0x1ef   :  { %9268 = vmatmul.mubr.bf16.gmra.mxu0 %v8230_v33  ;;  %v4684_v35 = vsel %vm9771_vm3, %v4679_v18, %v4683_v63  ;;  %v4697_v57 = vrot.slane %v4695_v24, 5  ;;  %v4711_v54 = vrot.slane %v4709_v5, 5  ;;  %v4773_v13 = vshll.u32 %v11108_v39, 16  ;;  %v4625_v24 = vld [vmem:[#allocation2 + $0x88] sm:$0xf] }
 0x1f0   :  { %9271 = vmatprep.mubr.bf16.mxu0 %v8231_v16  ;;  %9316 = vmatpush3.bf16.msra.mxu0 %v9626_v50  ;;  %v8244_v56 = vcombine.low %v4670_v53, %v4684_v35  ;;  %v11133_v47 = vrot.slane %v4770_v23, 4  ;;  %v4784_v20 = vshrl.u32 %v4619_v12, 16  ;;  %v4787_v41 = vshll.u32 %v4619_v12, 16  ;;  %v9636_v53 = vld [vmem:[%s12645_s2 + $0x2e0] sm:$0xff]  }
 0x1f1   :  { %9317 = vmatprep.subr.bf16.mxu0 %v9629_v30  ;;  %v4698_v1 = vsel %vm9771_vm3, %v4693_v58, %v4697_v57  ;;  %v4712_v52 = vsel %vm9771_vm3, %v4707_v17, %v4711_v54  ;;  %v11141_v59 = vrot.slane %v4773_v13, 5  ;;  %v4798_v3 = vshrl.u32 %v4621_v0, 16  ;;  %v4618_v57 = vld [vmem:[#allocation2 + $0x6c] sm:$0x1] }
 0x1f2   :  { %9296 = vmatmul.mubr.bf16.vlgmr.msra.gmra.mxu1 %v8244_v56  ;;  %v8245_v33 = vcombine.low %v4698_v1, %v4712_v52  ;;  %v11148_v61 = vrot.slane %v4784_v20, 4  ;;  %v8232_v32 = vcombine.low %v11108_v39, %v4619_v12  ;;  %v4801_v50 = vshll.u32 %v4621_v0, 16  ;;  %v4616_v39 = vld [vmem:[#allocation2 + $0x64] sm:$0x1] }
 0x1f3   :  { %9344 = vmatpush3.bf16.msra.mxu1 %v11061_v7  ;;  %v11152_v36 = vrot.slane %v4787_v41, 5  ;;  %v11154_v38 = vrot.slane %v4798_v3, 4  ;;  %v4812_v10 = vshrl.u32 %v11135_v2, 16  ;;  %v4815_v26 = vshll.u32 %v11135_v2, 16  ;;  %v4620_v41 = vld [vmem:[#allocation2 + $0x74] sm:$0x1] }
 0x1f4   :  { %9318 = vmatpush3.bf16.msra.mxu0 %v9629_v30  ;;  %9299 = vmatprep.mubr.bf16.mxu1 %v8245_v33  ;;  %v8233_v7 = vcombine.low %v4621_v0, %v11135_v2  ;;  %v4720_v11 = vor.u32 %v11089_v15, %v11084_v55  ;;  %v4723_v16 = vshll.u32 %v4610_v43, 16  ;;  %v4734_v27 = vor.u32 %v11100_v37, %v11091_v31  ;;  %v11177_v55 = vpop.f32.mrf.mxu0  ;;  %v11179_v30 = vld [vmem:[#allocation2 + $0x90] sm:$0xf]  ;;  %v9638_v43 = vld [vmem:[%s12645_s2 + $0x288] sm:$0xff]   ;;  %v5259_v33 = vld [vmem:[#allocation2 + $0x14] sm:$0x1] }
 0x1f5   :  { %9345 = vmatprep.subr.bf16.mxu1 %v9630_v4  ;;  %9319 = vmatprep.subr.bf16.mxu0 %v9632_v51  ;;  %v11168_v44 = vrot.slane %v4801_v50, 5  ;;  %v11170_v14 = vrot.slane %v4812_v10, 4  ;;  %v4737_v49 = vshll.u32 %v4612_v62, 16  ;;  %v4748_v46 = vor.u32 %v11106_v60, %v11104_v40  ;;  %v5258_v2 = vld [vmem:[#allocation2 + $0x10] sm:$0xf]  ;;  %v9639_v62 = vld [vmem:[%s12645_s2 + $0x2d8] sm:$0xff]  }
 0x1f6   :  { %v4721_v15 = vrot.slane %v4720_v11, 4  ;;  %v4725_v31 = vrot.slane %v4723_v16, 5  ;;  %v4735_v37 = vrot.slane %v4734_v27, 4  ;;  %v4751_v8 = vshll.u32 %v4614_v21, 16  ;;  %v11183_v5 = vpop.f32.mrf.mxu0  ;;  %v5261_v16 = vld [vmem:[#allocation2 + $0x1c] sm:$0x1] }
 0x1f7   :  { %9272 = vmatmul.mubr.bf16.gmra.mxu0 %v8232_v32  ;;  %9346 = vmatpush3.bf16.msra.mxu1 %v9630_v4  ;;  %v4739_v18 = vrot.slane %v4737_v49, 5  ;;  %v4749_v63 = vrot.slane %v4748_v46, 4  ;;  %v4762_v40 = vor.u32 %v11121_v6, %v11110_v25  ;;  %v4765_v60 = vshll.u32 %v4616_v39, 16 }
 0x1f8   :  { %9275 = vmatprep.mubr.bf16.mxu0 %v8233_v7  ;;  %9347 = vmatprep.subr.bf16.mxu1 %v9633_v48  ;;  %v4726_v12 = vsel %vm9771_vm3, %v4721_v15, %v4725_v31  ;;  %v4753_v23 = vrot.slane %v4751_v8, 5  ;;  %v4826_v58 = vshrl.u32 %v4625_v24, 16  ;;  %v4829_v17 = vshll.u32 %v4625_v24, 16  ;;  %v11193_v54 = vpop.f32.mrf.mxu0  ;;  %v4622_v8 = vld [vmem:[#allocation2 + $0x7c] sm:$0x1] }
 0x1f9   :  { %9320 = vmatpush3.bf16.msra.mxu0 %v9632_v51  ;;  %v4740_v0 = vsel %vm9771_vm3, %v4735_v37, %v4739_v18  ;;  %v4763_v35 = vrot.slane %v4762_v40, 4  ;;  %v4767_v25 = vrot.slane %v4765_v60, 5  ;;  %v4840_v6 = vshrl.u32 %v11179_v30, 16 }
 0x1fa   :  { %9321 = vmatprep.subr.bf16.mxu0 %v9635_v42  ;;  %v11195_v13 = vrot.slane %v4815_v26, 5  ;;  %v8246_v56 = vcombine.low %v4726_v12, %v4740_v0  ;;  %v4754_v4 = vsel %vm9771_vm3, %v4749_v63, %v4753_v23  ;;  %v11199_v20 = vrot.slane %v4826_v58, 4  ;;  %v11210_v32 = vpop.f32.mrf.mxu0  ;;  %v4624_v23 = vld [vmem:[#allocation2 + $0x84] sm:$0x1] }
 0x1fb   :  { %9348 = vmatpush3.bf16.msra.mxu1 %v9633_v48  ;;  %v4768_v1 = vsel %vm9771_vm3, %v4763_v35, %v4767_v25  ;;  %v11203_v52 = vrot.slane %v4829_v17, 5  ;;  %v4843_v51 = vshll.u32 %v11179_v30, 16  ;;  %v8234_v3 = vcombine.low %v4625_v24, %v11179_v30  ;;  %v5260_v48 = vld [vmem:[#allocation2 + $0x18] sm:$0xf]  ;;  %v5262_v25 = vld [vmem:[#allocation2 + $0x20] sm:$0xf] }
 0x1fc   :  { %9300 = vmatmul.mubr.bf16.gmra.mxu1 %v8246_v56  ;;  %v8247_v50 = vcombine.low %v4754_v4, %v4768_v1  ;;  %9349 = vmatprep.subr.bf16.mxu1 %v9636_v53  ;;  %v4776_v10 = vor.u32 %v11141_v59, %v11133_v47  ;;  %v4779_v26 = vshll.u32 %v4618_v57, 16  ;;  %v4790_v21 = vor.u32 %v11152_v36, %v11148_v61  ;;  %v11223_v46 = vpop.f32.mrf.mxu0  ;;  %v9640_v61 = vld [vmem:[%s12645_s2 + $0x280] sm:$0xff]  }
 0x1fd   :  { %9322 = vmatpush3.bf16.msra.mxu0 %v9635_v42  ;;  %v11219_v7 = vrot.slane %v4840_v6, 4  ;;  %v4793_v11 = vshll.u32 %v4620_v41, 16  ;;  %v5291_v27 = vshrl.u32 %v5258_v2, 16  ;;  %v5294_v39 = vshll.u32 %v5258_v2, 16  ;;  %v11248_v2 = vld [vmem:[%s12645_s2 + $0x378] sm:$0xff]  }
 0x1fe   :  { %v11221_v49 = vpop.f32.mrf.mxu1  ;;  %9303 = vmatprep.mubr.bf16.mxu1 %v8247_v50  ;;  %v4777_v24 = vrot.slane %v4776_v10, 4  ;;  %v4781_v47 = vrot.slane %v4779_v26, 5  ;;  %v4791_v59 = vrot.slane %v4790_v21, 4  ;;  %v5300_v15 = vshll.u32 %v5259_v33, 16  ;;  %9323 = vmatprep.subr.bf16.mxu0 %v9638_v43  ;;  %v5264_v26 = vld [vmem:[#allocation2 + $0x28] sm:$0xf] }
 0x1ff   :  { %9276 = vmatmul.mubr.bf16.gmra.mxu0 %v8234_v3  ;;  %9350 = vmatpush3.bf16.msra.mxu1 %v9636_v53  ;;  %v4795_v36 = vrot.slane %v4793_v11, 5  ;;  %v5293_v42 = vrot.slane %v5291_v27, 4  ;;  %v5296_v31 = vrot.slane %v5294_v39, 5  ;;  %v5305_v37 = vshrl.u32 %v5260_v48, 16  ;;  %v11230_v18 = vpop.f32.mrf.mxu0  ;;  %v9641_v53 = vld [vmem:[%s12645_s2 + $0x2d0] sm:$0xff]  }
 0x200   :  { %v11228_v30 = vpop.f32.mrf.mxu1  ;;  %v11232_v63 = vrot.slane %v4843_v51, 5  ;;  %9351 = vmatprep.subr.bf16.mxu1 %v9639_v62  ;;  %v4782_v40 = vsel %vm9771_vm3, %v4777_v24, %v4781_v47  ;;  %v5308_v60 = vshll.u32 %v5260_v48, 16  ;;  %v5314_v12 = vshll.u32 %v5261_v16, 16  ;;  %v5265_v27 = vld [vmem:[#allocation2 + $0x2c] sm:$0x1] }
 0x201   :  { %v4796_v58 = vsel %vm9771_vm3, %v4791_v59, %v4795_v36  ;;  %9324 = vmatpush3.bf16.msra.mxu0 %v9638_v43  ;;  %v5297_v17 = vor.u32 %v5296_v31, %v5293_v42  ;;  %v5307_v0 = vrot.slane %v5305_v37, 4  ;;  %v4804_v35 = vor.u32 %v11168_v44, %v11154_v38  ;;  %v5263_v44 = vld [vmem:[#allocation2 + $0x24] sm:$0x1]  ;;  %v11254_v33 = vpop.f32.mrf.mxu0  ;;  %v4626_v37 = vld [vmem:[#allocation2 + $0x8c] sm:$0x1] }
 0x202   :  { %v11243_v6 = vpop.f32.mrf.mxu1  ;;  %v8248_v57 = vcombine.low %v4782_v40, %v4796_v58  ;;  %v5302_v56 = vrot.slane %v5300_v15, 5  ;;  %v5310_v4 = vrot.slane %v5308_v60, 5  ;;  %v4807_v41 = vshll.u32 %v4622_v8, 16  ;;  %9325 = vmatprep.subr.bf16.mxu0 %v9640_v61  ;;  %v4628_v58 = vld [vmem:[#allocation2 + $0x94] sm:$0x1] }
 0x203   :  { %v5298_v1 = vrot.slane %v5297_v17, 4  ;;  %9352 = vmatpush3.bf16.msra.mxu1 %v9639_v62  ;;  %v4805_v51 = vrot.slane %v4804_v35, 4  ;;  %v4818_v3 = vor.u32 %v11195_v13, %v11170_v14  ;;  %v4821_v38 = vshll.u32 %v4624_v23, 16  ;;  %v9642_v62 = vld [vmem:[%s12645_s2 + $0x2c8] sm:$0xff]   ;;  %v5266_v17 = vld [vmem:[#allocation2 + $0x30] sm:$0xf] }
 0x204   :  { %v11252_v43 = vpop.f32.mrf.mxu1  ;;  %9304 = vmatmul.mubr.bf16.gmra.mxu1 %v8248_v57  ;;  %v5311_v50 = vor.u32 %v5310_v4, %v5307_v0  ;;  %v5316_v10 = vrot.slane %v5314_v12, 5  ;;  %9353 = vmatprep.subr.bf16.mxu1 %v9641_v53  ;;  %v5319_v21 = vshrl.u32 %v5262_v25, 16  ;;  %v5322_v48 = vshll.u32 %v5262_v25, 16 }
 0x205   :  { %v5303_v14 = vsel %vm9771_vm3, %v5298_v1, %v5302_v56  ;;  %v4809_v13 = vrot.slane %v4807_v41, 5  ;;  %v4819_v11 = vrot.slane %v4818_v3, 4  ;;  %v4823_v16 = vrot.slane %v4821_v38, 5  ;;  %9326 = vmatpush3.bf16.msra.mxu0 %v9640_v61  ;;  %v11268_v61 = vpop.f32.mrf.mxu0  ;;  %v5267_v3 = vld [vmem:[#allocation2 + $0x34] sm:$0x1] }
 0x206   :  { %v5312_v39 = vrot.slane %v5311_v50, 4  ;;  %v5321_v24 = vrot.slane %v5319_v21, 4  ;;  %v5324_v47 = vrot.slane %v5322_v48, 5  ;;  %v5328_v59 = vshll.u32 %v5263_v44, 16  ;;  %9375 = vmatprep.subr.bf16.mxu0 %v11248_v2 }
 0x207   :  { %v4810_v15 = vsel %vm9771_vm3, %v4805_v51, %v4809_v13  ;;  %v4824_v36 = vsel %vm9771_vm3, %v4819_v11, %v4823_v16  ;;  %9354 = vmatpush3.bf16.msra.mxu1 %v9641_v53  ;;  %v5333_v42 = vshrl.u32 %v5264_v26, 16  ;;  %v5336_v31 = vshll.u32 %v5264_v26, 16  ;;  %v9645_v53 = vld [vmem:[%s12645_s2 + $0x2c0] sm:$0xff]   ;;  %v11288_v21 = vpop.f32.mrf.mxu0 }
 0x208   :  { %v11266_v8 = vpop.f32.mrf.mxu1  ;;  %v5317_v40 = vsel %vm9771_vm3, %v5312_v39, %v5316_v10  ;;  %v8249_v60 = vcombine.low %v4810_v15, %v4824_v36  ;;  %v5325_v12 = vor.u32 %v5324_v47, %v5321_v24  ;;  %v5342_v23 = vshll.u32 %v5265_v27, 16  ;;  %9355 = vmatprep.subr.bf16.mxu1 %v9642_v62  ;;  %v5268_v10 = vld [vmem:[#allocation2 + $0x38] sm:$0xf] }
 0x209   :  { %v8275_v0 = vcombine.low %v5303_v14, %v5317_v40  ;;  %v5335_v35 = vrot.slane %v5333_v42, 4  ;;  %v5338_v25 = vrot.slane %v5336_v31, 5  ;;  %v4832_v57 = vor.u32 %v11203_v52, %v11199_v20  ;;  %v11284_v20 = vld [vmem:[%s12645_s2 + $0x338] sm:$0xff]   ;;  %v1047_v42 = vld [vmem:[#allocation2 + $0x4c] sm:$0x1] }
 0x20a   :  { %v11277_v56 = vpop.f32.mrf.mxu1  ;;  %9307 = vmatprep.mubr.bf16.mxu1 %v8249_v60  ;;  %v5326_v4 = vrot.slane %v5325_v12, 4  ;;  %v5330_v41 = vrot.slane %v5328_v59, 5  ;;  %v4835_v1 = vshll.u32 %v4626_v37, 16  ;;  %v4846_v51 = vor.u32 %v11232_v63, %v11219_v7  ;;  %v5269_v63 = vld [vmem:[#allocation2 + $0x3c] sm:$0x1] }
 0x20b   :  { %9327 = vmatprep.mubr.bf16.mxu0 %v8275_v0  ;;  %v5339_v38 = vor.u32 %v5338_v25, %v5335_v35  ;;  %v4833_v44 = vrot.slane %v4832_v57, 4  ;;  %v4849_v50 = vshll.u32 %v4628_v58, 16  ;;  %v5347_v26 = vshrl.u32 %v5266_v17, 16  ;;  %9356 = vmatpush3.bf16.msra.mxu1 %v9642_v62  ;;  %v985_v62 = vld [vmem:[#allocation2 + $0x48] sm:$0x1]  ;;  %v11300_v58 = vpop.f32.mrf.mxu0 }
 0x20c   :  { %v11286_v52 = vpop.f32.mrf.mxu1  ;;  %v5344_v48 = vrot.slane %v5342_v23, 5  ;;  %v4837_v14 = vrot.slane %v4835_v1, 5  ;;  %v4847_v7 = vrot.slane %v4846_v51, 4  ;;  %v5350_v13 = vshll.u32 %v5266_v17, 16  ;;  %9357 = vmatprep.subr.bf16.mxu1 %v9645_v53  ;;  %v5270_v12 = vld [vmem:[#allocation2 + $0x40] sm:$0xf] }
 0x20d   :  { %v5340_v11 = vrot.slane %v5339_v38, 4  ;;  %v4851_v16 = vrot.slane %v4849_v50, 5  ;;  %v5349_v27 = vrot.slane %v5347_v26, 4  ;;  %v5356_v39 = vshll.u32 %v5267_v3, 16  ;;  %v5271_v23 = vld [vmem:[#allocation2 + $0x44] sm:$0x1] }
 0x20e   :  { %v11290_v24 = vpop.f32.mrf.mxu1  ;;  %v5331_v47 = vsel %vm9771_vm3, %v5326_v4, %v5330_v41  ;;  %v5352_v59 = vrot.slane %v5350_v13, 5  ;;  %v5361_v15 = vshrl.u32 %v5268_v10, 16  ;;  %v5364_v36 = vshll.u32 %v5268_v10, 16  ;;  %12658 = vst [vmem:[#allocation3_spill] sm:$0xff] %v11300_v58  ;;  %v9644_v57 = vld [vmem:[#allocation2 + $0x10] ss:$8 sps:$4 sm:$0xff]  }
 0x20f   :  { %v5345_v31 = vsel %vm9771_vm3, %v5340_v11, %v5344_v48  ;;  %v4838_v37 = vsel %vm9771_vm3, %v4833_v44, %v4837_v14  ;;  %v4852_v40 = vsel %vm9771_vm3, %v4847_v7, %v4851_v16  ;;  %v5370_v60 = vshll.u32 %v5269_v63, 16  ;;  %9358 = vmatpush3.bf16.msra.mxu1 %v9645_v53  ;;  %v9646_v4 = vld [vmem:[%s12645_s2 + $0x370] sm:$0xff]   ;;  %v5274_v41 = vld [vmem:[#allocation2 + $0x60] sm:$0xf]  ;;  %v5275_v38 = vld [vmem:[#allocation2 + $0x64] sm:$0x1] }
 0x210   :  { %v8276_v17 = vcombine.low %v5331_v47, %v5345_v31  ;;  %v8250_v0 = vcombine.low %v4838_v37, %v4852_v40  ;;  %v5353_v35 = vor.u32 %v5352_v59, %v5349_v27  ;;  %v5363_v25 = vrot.slane %v5361_v15, 4  ;;  %9407 = vmatprep.subr.bf16.mxu1 %v11284_v20  ;;  %v5276_v14 = vld [vmem:[#allocation2 + $0x68] sm:$0xf]  ;;  %v5277_v13 = vld [vmem:[#allocation2 + $0x6c] sm:$0x1]  ;;  %v11313_v27 = vpop.f32.mrf.mxu0 }
 0x211   :  { %v5358_v1 = vrot.slane %v5356_v39, 5  ;;  %v5366_v51 = vrot.slane %v5364_v36, 5  ;;  %v986_v53 = vsel %vm10039_vm6, 0, %v985_v62  ;;  %v1048_v3 = vsel %vm10049_vm8, 0, %v1047_v42  ;;  %12659 = vst [vmem:[#allocation4_spill] sm:$0xff] %v11313_v27  ;;  %v9647_v15 = vld [vmem:[%s12645_s2 + $0x368] sm:$0xff]  }
 0x212   :  { %v11310_v44 = vpop.f32.mrf.mxu1  ;;  %9328 = vmatmul.mubr.bf16.vlgmr.msra.gmra.mxu0 %v8276_v17  ;;  %9308 = vmatmul.mubr.bf16.gmra.mxu1 %v8250_v0  ;;  %v5354_v50 = vrot.slane %v5353_v35, 4  ;;  %987 = vst [vmem:[#allocation2 + $0x48] sm:$0x1] %v986_v53  ;;  %1049 = vst [vmem:[#allocation2 + $0x4c] sm:$0x1] %v1048_v3  ;;  %v5375_v10 = vshrl.u32 %v5270_v12, 16  ;;  %v11333_v3 = vpop.f32.mrf.mxu0 }
 0x213   :  { %v5378_v26 = vshll.u32 %v5270_v12, 16  ;;  %v5384_v48 = vshll.u32 %v5271_v23, 16  ;;  %v5367_v7 = vor.u32 %v5366_v51, %v5363_v25  ;;  %v5372_v63 = vrot.slane %v5370_v60, 5  ;;  %9376 = vmatpush3.bf16.msra.mxu0 %v11248_v2  ;;  %9359 = vmatprep.mubr.bf16.mxu1 %v9644_v57  ;;  %v5278_v2 = vld [vmem:[#allocation2 + $0x70] sm:$0xf]  ;;  %v9651_v0 = vld [vmem:[%s12645_s2 + $0x360] sm:$0xff]  }
 0x214   :  { %v5403_v11 = vshrl.u32 %v5274_v41, 16  ;;  %v5406_v16 = vshll.u32 %v5274_v41, 16  ;;  %v11315_v39 = vpop.f32.mrf.mxu1  ;;  %v5359_v62 = vsel %vm9771_vm3, %v5354_v50, %v5358_v1  ;;  %9377 = vmatprep.subr.bf16.mxu0 %v9646_v4  ;;  %v5377_v47 = vrot.slane %v5375_v10, 4  ;;  %v9649_v41 = vld [vmem:[#allocation2 + $0x20] ss:$8 sps:$4 sm:$0xff]   ;;  %12660 = vst [vmem:[#allocation5_spill] sm:$0xff] %v11333_v3 }
 0x215   :  { %v5380_v59 = vrot.slane %v5378_v26, 5  ;;  %v5412_v36 = vshll.u32 %v5275_v38, 16  ;;  %v5368_v42 = vrot.slane %v5367_v7, 4  ;;  %v11322_v31 = vrot.slane %v5384_v48, 5  ;;  %v11331_v1 = vld [vmem:[#allocation2 + $0x74] sm:$0x1] }
 0x216   :  { %v5405_v37 = vrot.slane %v5403_v11, 4  ;;  %v5408_v40 = vrot.slane %v5406_v16, 5  ;;  %v5417_v12 = vshrl.u32 %v5276_v14, 16  ;;  %v5420_v23 = vshll.u32 %v5276_v14, 16  ;;  %v11327_v35 = vpop.f32.mrf.mxu1  ;;  %v9650_v48 = vld [vmem:[#allocation2 + $0x30] ss:$8 sps:$4 sm:$0xff]  }
 0x217   :  { %v5381_v60 = vor.u32 %v5380_v59, %v5377_v47  ;;  %v5426_v17 = vshll.u32 %v5277_v13, 16  ;;  %v5373_v25 = vsel %vm9771_vm3, %v5368_v42, %v5372_v63  ;;  %9378 = vmatpush3.bf16.msra.mxu0 %v9646_v4  ;;  %v5431_v51 = vshrl.u32 %v5278_v2, 16  ;;  %v9652_v14 = vld [vmem:[%s12645_s2 + $0x330] sm:$0xff]   ;;  %v5280_v7 = vld [vmem:[#allocation2 + $0x78] sm:$0xf] }
 0x218   :  { %v5409_v57 = vor.u32 %v5408_v40, %v5405_v37  ;;  %v5434_v53 = vshll.u32 %v5278_v2, 16  ;;  %v8277_v38 = vcombine.low %v5359_v62, %v5373_v25  ;;  %9379 = vmatprep.subr.bf16.mxu0 %v9647_v15  ;;  %v5414_v50 = vrot.slane %v5412_v36, 5  ;;  %v11344_v2 = vpop.f32.mrf.mxu1  ;;  %v5281_v37 = vld [vmem:[#allocation2 + $0x7c] sm:$0x1] }
 0x219   :  { %v5419_v10 = vrot.slane %v5417_v12, 4  ;;  %v5422_v26 = vrot.slane %v5420_v23, 5  ;;  %v5272_v4 = vld [vmem:[#allocation2 + $0x48] sm:$0xf]  ;;  %v5273_v63 = vld [vmem:[#allocation2 + $0x4c] sm:$0x1]  ;;  %v11342_v16 = vadd.f32 %v11228_v30, %v11146_v34  ;;  %v11349_v34 = vadd.f32 %v11221_v49, %v11128_v9  ;;  %v11351_v30 = vpop.f32.mrf.mxu0 }
 0x21a   :  { %v11338_v13 = vrot.slane %v5381_v60, 4  ;;  %v5410_v11 = vrot.slane %v5409_v57, 4  ;;  %9331 = vmatprep.mubr.bf16.mxu0 %v8277_v38  ;;  %v5389_v62 = vshrl.u32 %v5272_v4, 16  ;;  %v5392_v47 = vshll.u32 %v5272_v4, 16  ;;  %9360 = vmatmul.mubr.bf16.vlgmr.msra.gmra.mxu1 %v9649_v41  ;;  %v5282_v12 = vld [vmem:[#allocation2 + $0x80] sm:$0xf] }
 0x21b   :  { %12661 = vst [vmem:[#allocation6_spill] sm:$0xff] %v11342_v16  ;;  %v5398_v59 = vshll.u32 %v5273_v63, 16  ;;  %v5428_v36 = vrot.slane %v5426_v17, 5  ;;  %v5423_v42 = vor.u32 %v5422_v26, %v5419_v10  ;;  %9380 = vmatpush3.bf16.msra.mxu0 %v9647_v15  ;;  %9408 = vmatpush3.bf16.msra.mxu1 %v11284_v20  ;;  %v5433_v40 = vrot.slane %v5431_v51, 4  ;;  %12662 = vst [vmem:[#allocation7_spill] sm:$0xff] %v11351_v30  ;;  %v9653_v20 = vld [vmem:[%s12645_s2 + $0x358] sm:$0xff]  }
 0x21c   :  { %v5436_v60 = vrot.slane %v5434_v53, 5  ;;  %v5391_v23 = vrot.slane %v5389_v62, 4  ;;  %v5394_v25 = vrot.slane %v5392_v47, 5  ;;  %v5415_v17 = vsel %vm9771_vm3, %v5410_v11, %v5414_v50  ;;  %9363 = vmatprep.mubr.bf16.mxu1 %v9650_v48  ;;  %9381 = vmatprep.subr.bf16.mxu0 %v9651_v0  ;;  %v9654_v9 = vld [vmem:[%s12645_s2 + $0x328] sm:$0xff]   ;;  %v5283_v53 = vld [vmem:[#allocation2 + $0x84] sm:$0x1] }
 0x21d   :  { %v5440_v15 = vshll.u32 %v11331_v1, 16  ;;  %v5424_v49 = vrot.slane %v5423_v42, 4  ;;  %9409 = vmatprep.subr.bf16.mxu1 %v9652_v14  ;;  %v5445_v41 = vshrl.u32 %v5280_v7, 16  ;;  %v5448_v51 = vshll.u32 %v5280_v7, 16  ;;  %v5284_v26 = vld [vmem:[#allocation2 + $0x88] sm:$0xf] }
 0x21e   :  { %v5437_v57 = vor.u32 %v5436_v60, %v5433_v40  ;;  %v5395_v38 = vor.u32 %v5394_v25, %v5391_v23  ;;  %v5400_v50 = vrot.slane %v5398_v59, 5  ;;  %v5454_v10 = vshll.u32 %v5281_v37, 16  ;;  %v11362_v1 = vpop.f32.mrf.mxu1  ;;  %v11368_v47 = vld [vmem:[#allocation2 + $0x8c] sm:$0x1]  ;;  %v11373_v7 = vld [vmem:[%s12645_s2 + $0x350] sm:$0xff]  }
 0x21f   :  { %v5459_v48 = vshrl.u32 %v5282_v12, 16  ;;  %12663 = vst [vmem:[#allocation8_spill] sm:$0xff] %v11362_v1  ;;  %v5429_v4 = vsel %vm9771_vm3, %v5424_v49, %v5428_v36  ;;  %9382 = vmatpush3.bf16.msra.mxu0 %v9651_v0  ;;  %9410 = vmatpush3.bf16.msra.mxu1 %v9652_v14  ;;  %v5447_v11 = vrot.slane %v5445_v41, 4  ;;  %v5450_v62 = vrot.slane %v5448_v51, 5  ;;  %v11375_v59 = vpop.f32.mrf.mxu0  ;;  %v9655_v37 = vld [vmem:[#allocation2 + $0x40] ss:$8 sps:$4 sm:$0xff]  }
 0x220   :  { %v11366_v63 = vrot.slane %v5437_v57, 4  ;;  %12664 = vst [vmem:[#allocation9_spill] sm:$0xff] %v11375_v59  ;;  %v5387_v36 = vsel %vm9771_vm3, %v11338_v13, %v11322_v31  ;;  %v5396_v0 = vrot.slane %v5395_v38, 4  ;;  %v8279_v14 = vcombine.low %v5415_v17, %v5429_v4  ;;  %9383 = vmatprep.subr.bf16.mxu0 %v9653_v20  ;;  %9411 = vmatprep.subr.bf16.mxu1 %v9654_v9  ;;  %v9656_v40 = vld [vmem:[#allocation2 + $0x60] ss:$8 sps:$4 sm:$0xff]   ;;  %v11383_v23 = vpop.f32.mrf.mxu1 }
 0x221   :  { %v11381_v42 = vrot.slane %v5440_v15, 5  ;;  %v1015_v60 = vld [vmem:[#allocation2 + $0x98] sm:$0x1]  ;;  %12665 = vst [vmem:[#allocation10_spill] sm:$0xff] %v11383_v23  ;;  %v5451_v25 = vor.u32 %v5450_v62, %v5447_v11  ;;  %v5461_v49 = vrot.slane %v5459_v48, 4  ;;  %v5462_v57 = vshll.u32 %v5282_v12, 16  ;;  %v11388_v13 = vpop.f32.mrf.mxu0 }
 0x222   :  { %v5468_v41 = vshll.u32 %v5283_v53, 16  ;;  %v9658_v51 = vld [vmem:[%s12645_s2 + $0x320] sm:$0xff]   ;;  %v1077_v31 = vld [vmem:[#allocation2 + $0x9c] sm:$0x1]  ;;  %12666 = vst [vmem:[#allocation11_spill] sm:$0xff] %v11388_v13  ;;  %v5401_v17 = vsel %vm9771_vm3, %v5396_v0, %v5400_v50  ;;  %v11392_v15 = vrot.slane %v5454_v10, 5  ;;  %9364 = vmatmul.mubr.bf16.gmra.mxu1 %v9655_v37  ;;  %v11404_v48 = vpop.f32.mrf.mxu1 }
 0x223   :  { %v5473_v38 = vshrl.u32 %v5284_v26, 16  ;;  %v5476_v4 = vshll.u32 %v5284_v26, 16  ;;  %v5286_v30 = vld [vmem:[#allocation2 + $0x90] sm:$0xf]  ;;  %v11397_v12 = vld [vmem:[%s12645_s2 + $0x348] sm:$0xff]   ;;  %v11402_v53 = vld [vmem:[%s12645_s2 + $0x318] sm:$0xff]   ;;  %v8278_v11 = vcombine.low %v5387_v36, %v5401_v17  ;;  %v5443_v50 = vsel %vm9771_vm3, %v11366_v63, %v11381_v42  ;;  %9384 = vmatpush3.bf16.msra.mxu0 %v9653_v20  ;;  %9412 = vmatpush3.bf16.msra.mxu1 %v9654_v9  ;;  %v11412_v37 = vpop.f32.mrf.mxu0 }
 0x224   :  { %12667 = vst [vmem:[#allocation12_spill] sm:$0xff] %v11404_v48  ;;  %v5452_v10 = vrot.slane %v5451_v25, 4  ;;  %v5464_v26 = vrot.slane %v5462_v57, 5  ;;  %v5287_v62 = vld [vmem:[#allocation2 + $0x94] sm:$0x1]  ;;  %12668 = vst [vmem:[#allocation13_spill] sm:$0xff] %v11412_v37  ;;  %9367 = vmatprep.mubr.bf16.mxu1 %v9656_v40  ;;  %9385 = vmatprep.subr.bf16.mxu0 %v11373_v7  ;;  %v11420_v20 = vpop.f32.mrf.mxu1 }
 0x225   :  { %v11410_v0 = vld [vmem:[#allocation2 + $0xc] sm:$0x1]  ;;  %v5475_v3 = vrot.slane %v5473_v38, 4  ;;  %v5478_v23 = vrot.slane %v5476_v4, 5  ;;  %v5482_v27 = vshll.u32 %v11368_v47, 16  ;;  %v1016_v36 = vsel %vm10039_vm6, 0, %v1015_v60  ;;  %9332 = vmatmul.mubr.bf16.gmra.mxu0 %v8278_v11  ;;  %9413 = vmatprep.subr.bf16.mxu1 %v9658_v51 }
 0x226   :  { %v11418_v63 = vld [vmem:[#allocation2 + $0x14] sm:$0x1]  ;;  %v6380_v42 = vld [vmem:[#allocation2 + $0x8] sm:$0xe]  ;;  %12669 = vst [vmem:[#allocation14_spill] sm:$0xff] %v11420_v20  ;;  %v5465_v9 = vor.u32 %v5464_v26, %v5461_v49  ;;  %v5470_v25 = vrot.slane %v5468_v41, 5  ;;  %9335 = vmatprep.mubr.bf16.mxu0 %v8279_v14  ;;  %v5457_v19 = vsel %vm9771_vm3, %v5452_v10, %v11392_v15  ;;  %v11436_v14 = vpop.f32.mrf.mxu1 }
 0x227   :  { %1017 = vst [vmem:[#allocation2 + $0x98] sm:$0x1] %v1016_v36  ;;  %v1078_v57 = vsel %vm10049_vm8, 0, %v1077_v31  ;;  %v5487_v47 = vshrl.u32 %v5286_v30, 16  ;;  %v6381_v40 = vld [vmem:[#allocation2 + $0x10] sm:$0xe]  ;;  %v5479_v60 = vor.u32 %v5478_v23, %v5475_v3  ;;  %v11434_v31 = vpop.f32.mrf.mxu0  ;;  %9386 = vmatpush3.bf16.msra.mxu0 %v11373_v7  ;;  %9414 = vmatpush3.bf16.msra.mxu1 %v9658_v51  ;;  %v8280_v51 = vcombine.low %v5443_v50, %v5457_v19 }
 0x228   :  { %1079 = vst [vmem:[#allocation2 + $0x9c] sm:$0x1] %v1078_v57  ;;  %v5490_v17 = vshll.u32 %v5286_v30, 16  ;;  %v5496_v38 = vshll.u32 %v5287_v62, 16  ;;  %v9661_v4 = vld [vmem:[#allocation2 + $0x70] ss:$8 sps:$4 sm:$0xff]   ;;  %9387 = vmatprep.subr.bf16.mxu0 %v11397_v12  ;;  %9415 = vmatprep.subr.bf16.mxu1 %v11402_v53  ;;  %v11447_v7 = vpop.f32.mrf.mxu1 }
 0x229   :  { %v11430_v49 = vld [vmem:[%s12645_s2 + $0x340] sm:$0xff]   ;;  %v11432_v41 = vld [vmem:[#allocation2 + $0x1c] sm:$0x1]  ;;  %12670 = vst [vmem:[#allocation15_spill] sm:$0xff] %v11434_v31  ;;  %12671 = vst [vmem:[#allocation16_spill] sm:$0xff] %v11436_v14  ;;  %v5466_v11 = vrot.slane %v5465_v9, 4 }
 0x22a   :  { %v5489_v3 = vrot.slane %v5487_v47, 4  ;;  %v8371_v30 = vrot.slane %v6380_v42, 9  ;;  %v6430_v23 = vrot.slane %v11410_v0, 5  ;;  %v9664_v15 = vld [vmem:[%s12645_s2 + $0x310] sm:$0xff]   ;;  %v6383_v10 = vld [vmem:[#allocation2 + $0x20] sm:$0xe]  ;;  %9368 = vmatmul.mubr.bf16.gmra.mxu1 %v9661_v4 }
 0x22b   :  { %v5480_v26 = vrot.slane %v5479_v60, 4  ;;  %v5484_v62 = vrot.slane %v5482_v27, 5  ;;  %v5492_v36 = vrot.slane %v5490_v17, 5  ;;  %v8372_v9 = vrot.slane %v6381_v40, 9  ;;  %v11445_v57 = vld [vmem:[#allocation2 + $0x24] sm:$0x1]  ;;  %9388 = vmatpush3.bf16.msra.mxu0 %v11397_v12  ;;  %9416 = vmatpush3.bf16.msra.mxu1 %v11402_v53 }
 0x22c   :  { %12672 = vst [vmem:[#allocation17_spill] sm:$0xff] %v11447_v7  ;;  %v5471_v42 = vsel %vm9771_vm3, %v5466_v11, %v5470_v25  ;;  %v6434_v47 = vrot.slane %v11418_v63, 5  ;;  %v9662_v14 = vld [vmem:[#allocation2 + $0x80] ss:$8 sps:$4 sm:$0xff]   ;;  %v8373_v20 = vrot.slane %v6382_v22, 9  ;;  %v11454_v17 = vrot.slane %v5496_v38, 5  ;;  %v11464_v25 = vpop.f32.mrf.mxu0  ;;  %v11466_v11 = vpop.f32.mrf.mxu1  ;;  %9389 = vmatprep.subr.bf16.mxu0 %v11430_v49  ;;  %9417 = vmatprep.subr.bf16.mxu1 %v9664_v15 }
 0x22d   :  { %v11452_v60 = vld [vmem:[#allocation2 + $0x28] sm:$0xe]  ;;  %v5493_v27 = vor.u32 %v5492_v36, %v5489_v3  ;;  %v6438_v40 = vrot.slane %v11432_v41, 5  ;;  %v8374_v31 = vrot.slane %v6383_v10, 9  ;;  %v11462_v19 = vld [vmem:[#allocation2 + $0x2c] sm:$0x1]  ;;  %v5485_v22 = vsel %vm9771_vm3, %v5480_v26, %v5484_v62  ;;  %9371 = vmatprep.mubr.bf16.mxu1 %v9662_v14  ;;  %9336 = vmatmul.mubr.bf16.gmra.mxu0 %v8280_v51 }
 0x22e   :  { %v11460_v50 = vld [vmem:[%s12645_s2 + $0x308] sm:$0xff]   ;;  %12673 = vst [vmem:[#allocation18_spill] sm:$0xff] %v11464_v25  ;;  %12674 = vst [vmem:[#allocation19_spill] sm:$0xff] %v11466_v11  ;;  %v11473_v38 = vsel %vm10604_vm13, %v8371_v30, %v6430_v23  ;;  %v11477_v4 = vsel %vm10604_vm13, %v8372_v9, %v6434_v47  ;;  %v6442_v3 = vrot.slane %v11445_v57, 5  ;;  %v11484_v10 = vld [vmem:[%s12645_s2 + $0x3b8] sm:$0xff]   ;;  %v8281_v62 = vcombine.low %v5471_v42, %v5485_v22  ;;  %v11494_v9 = vpop.f32.mrf.mxu0  ;;  %v11496_v47 = vpop.f32.mrf.mxu1 }
 0x22f   :  { %v11486_v26 = vld [vmem:[#allocation2 + $0x34] sm:$0x1]  ;;  %v6385_v12 = vld [vmem:[#allocation2 + $0x30] sm:$0xe]  ;;  %v5288_v36 = vld [vmem:[#allocation2 + $0x98] sm:$0xf]  ;;  %v11500_v42 = vsel %vm10604_vm13, %v8373_v20, %v6438_v40  ;;  %v11513_v23 = vadd.f32 %v11243_v6, %v11158_v28  ;;  %9390 = vmatpush3.bf16.msra.mxu0 %v11430_v49  ;;  %9418 = vmatpush3.bf16.msra.mxu1 %v9664_v15 }
 0x230   :  { %v11488_v30 = vrot.slane %v5493_v27, 4  ;;  %v8375_v53 = vrot.slane %v11452_v60, 9  ;;  %12675 = vst [vmem:[#allocation20_spill] sm:$0xff] %v11494_v9  ;;  %12676 = vst [vmem:[#allocation21_spill] sm:$0xff] %v11496_v47  ;;  %v5289_v11 = vld [vmem:[#allocation2 + $0x9c] sm:$0x1]  ;;  %v11504_v14 = vsel %vm10604_vm13, %v8374_v31, %v6442_v3  ;;  %9339 = vmatprep.mubr.bf16.mxu0 %v8281_v62  ;;  %v11515_v20 = vpop.f32.mrf.mxu0  ;;  %v11517_v40 = vpop.f32.mrf.mxu1  ;;  %9419 = vmatprep.subr.bf16.mxu1 %v11460_v50 }
 0x231   :  { %v5501_v7 = vshrl.u32 %v5288_v36, 16  ;;  %v5504_v25 = vshll.u32 %v5288_v36, 16  ;;  %v6107_v27 = vld [vmem:[#allocation2 + $0x8] sm:$0xf]  ;;  %v5510_v51 = vshll.u32 %v5289_v11, 16  ;;  %v6446_v22 = vrot.slane %v11462_v19, 5  ;;  %9439 = vmatprep.subr.bf16.mxu0 %v11484_v10 }
 0x232   :  { %v5499_v60 = vsel %vm9771_vm3, %v11488_v30, %v11454_v17  ;;  %v6109_v36 = vld [vmem:[#allocation2 + $0x10] sm:$0xf]  ;;  %12677 = vst [vmem:[#allocation22_spill] sm:$0xff] %v11513_v23  ;;  %12678 = vst [vmem:[#allocation23_spill] sm:$0xff] %v11515_v20  ;;  %v8376_v62 = vrot.slane %v6385_v12, 9  ;;  %v6450_v17 = vrot.slane %v11486_v26, 5  ;;  %v11530_v15 = vpop.f32.mrf.mxu0  ;;  %v11532_v12 = vpop.f32.mrf.mxu1 }
 0x233   :  { %12679 = vst [vmem:[#allocation24_spill] sm:$0xff] %v11517_v40  ;;  %v5503_v31 = vrot.slane %v5501_v7, 4  ;;  %v5506_v3 = vrot.slane %v5504_v25, 5  ;;  %v11521_v11 = vld [vmem:[#allocation2 + $0x3c] sm:$0x1]  ;;  %v5512_v47 = vrot.slane %v5510_v51, 5  ;;  %v11537_v48 = vsel %vm10604_vm13, %v8375_v53, %v6446_v22  ;;  %9420 = vmatpush3.bf16.msra.mxu1 %v11460_v50 }
 0x234   :  { %v6386_v30 = vld [vmem:[#allocation2 + $0x38] sm:$0xe]  ;;  %v6140_v7 = vshrl.u32 %v6107_v27, 16  ;;  %v6143_v25 = vshll.u32 %v6107_v27, 16  ;;  %v9668_v49 = vld [vmem:[%s12645_s2 + $0x300] sm:$0xff]   ;;  %12680 = vst [vmem:[#allocation25_spill] sm:$0xff] %v11530_v15  ;;  %v11541_v27 = vsel %vm10604_vm13, %v8376_v62, %v6450_v17 }
 0x235   :  { %v9667_v6 = vld [vmem:[#allocation2 + $0x90] ss:$8 sps:$4 sm:$0xff]   ;;  %12681 = vst [vmem:[#allocation26_spill] sm:$0xff] %v11532_v12  ;;  %v5507_v40 = vor.u32 %v5506_v3, %v5503_v31  ;;  %v6149_v51 = vshll.u32 %v11410_v0, 16  ;;  %v6154_v20 = vshrl.u32 %v6109_v36, 16  ;;  %v6157_v28 = vshll.u32 %v6109_v36, 16  ;;  %v11547_v31 = vpop.f32.mrf.mxu0  ;;  %v11549_v0 = vpop.f32.mrf.mxu1  ;;  %9421 = vmatprep.subr.bf16.mxu1 %v9668_v49 }
 0x236   :  { %v6387_v9 = vld [vmem:[#allocation2 + $0x40] sm:$0xe]  ;;  %9372 = vmatmul.mubr.bf16.gmra.mxu1 %v9667_v6  ;;  %v6142_v37 = vrot.slane %v6140_v7, 4  ;;  %v6145_v23 = vrot.slane %v6143_v25, 5  ;;  %v11543_v15 = vld [vmem:[#allocation2 + $0x44] sm:$0x1] }
 0x237   :  { %v11545_v12 = vld [vmem:[#allocation2 + $0x5c] sm:$0x1]  ;;  %12682 = vst [vmem:[#allocation27_spill] sm:$0xff] %v11547_v31  ;;  %12683 = vst [vmem:[#allocation28_spill] sm:$0xff] %v11549_v0  ;;  %v5508_v36 = vrot.slane %v5507_v40, 4  ;;  %v6156_v3 = vrot.slane %v6154_v20, 4  ;;  %v11559_v40 = vpop.f32.mrf.mxu0  ;;  %v11561_v50 = vpop.f32.mrf.mxu1  ;;  %9422 = vmatpush3.bf16.msra.mxu1 %v9668_v49 }
 0x238   :  { %v6159_v53 = vrot.slane %v6157_v28, 5  ;;  %v6163_v22 = vshll.u32 %v11418_v63, 16  ;;  %v6388_v6 = vld [vmem:[#allocation2 + $0x58] sm:$0xe]  ;;  %v6146_v62 = vor.u32 %v6145_v23, %v6142_v37  ;;  %v8377_v17 = vrot.slane %v6386_v30, 9  ;;  %12684 = vst [vmem:[#allocation29_spill] sm:$0xff] %v11559_v40 }
 0x239   :  { %v6454_v7 = vrot.slane %v11521_v11, 5  ;;  %v8378_v25 = vrot.slane %v6387_v9, 9  ;;  %v11557_v31 = vld [vmem:[%s12645_s2 + $0x3f8] sm:$0xff]   ;;  %v6389_v0 = vld [vmem:[#allocation2 + $0x60] sm:$0xe]  ;;  %v5513_v63 = vsel %vm9771_vm3, %v5508_v36, %v5512_v47  ;;  %v6151_v20 = vrot.slane %v6149_v51, 5  ;;  %v11568_v58 = vpop.f32.mrf.mxu0  ;;  %v11570_v59 = vpop.f32.mrf.mxu1 }
 0x23a   :  { %v6160_v37 = vor.u32 %v6159_v53, %v6156_v3  ;;  %v6458_v23 = vrot.slane %v11543_v15, 5  ;;  %v11566_v30 = vld [vmem:[#allocation2 + $0x64] sm:$0x1]  ;;  %v6111_v9 = vld [vmem:[#allocation2 + $0x18] sm:$0xf]  ;;  %v8282_v28 = vcombine.low %v5499_v60, %v5513_v63  ;;  %v6147_v13 = vrot.slane %v6146_v62, 4  ;;  %9471 = vmatprep.subr.bf16.mxu1 %v11557_v31 }
 0x23b   :  { %v6165_v16 = vrot.slane %v6163_v22, 5  ;;  %v8379_v1 = vrot.slane %v6388_v6, 9  ;;  %12685 = vst [vmem:[#allocation30_spill] sm:$0xff] %v11570_v59  ;;  %v6462_v51 = vrot.slane %v11545_v12, 5  ;;  %v8380_v36 = vrot.slane %v6389_v0, 9  ;;  %v11585_v6 = vpop.f32.mrf.mxu0  ;;  %v11587_v62 = vpop.f32.mrf.mxu1 }
 0x23c   :  { %v6161_v40 = vrot.slane %v6160_v37, 4  ;;  %v11574_v47 = vsel %vm10604_vm13, %v8378_v25, %v6458_v23  ;;  %v6113_v3 = vld [vmem:[#allocation2 + $0x20] sm:$0xf]  ;;  %9340 = vmatmul.mubr.bf16.gmra.mxu0 %v8282_v28  ;;  %v8405_v60 = vcombine.low %v11537_v48, %v11541_v27  ;;  %v11581_v53 = vsel %vm10604_vm13, %v8377_v17, %v6454_v7  ;;  %12686 = vst [vmem:[#allocation31_spill] sm:$0xff] %v11587_v62  ;;  %v6115_v25 = vld [vmem:[#allocation2 + $0x28] sm:$0xf] }
 0x23d   :  { %v6466_v49 = vrot.slane %v11566_v30, 5  ;;  %v6168_v22 = vshrl.u32 %v6111_v9, 16  ;;  %v12687_v0 = vcombine.low %v11473_v38, %v11477_v4  ;;  %v6152_v48 = vsel %vm9771_vm3, %v6147_v13, %v6151_v20  ;;  %v6117_v38 = vld [vmem:[#allocation2 + $0x30] sm:$0xf]  ;;  %v11602_v4 = vpop.f32.mrf.mxu1 }
 0x23e   :  { %v6166_v27 = vsel %vm9771_vm3, %v6161_v40, %v6165_v16  ;;  %v6171_v7 = vshll.u32 %v6111_v9, 16  ;;  %v11600_v37 = vsel %vm10604_vm13, %v8379_v1, %v6462_v51  ;;  %v6182_v28 = vshrl.u32 %v6113_v3, 16  ;;  %12688 = vst [vmem:[#allocation32_spill] sm:$0xff] %v11602_v4  ;;  %v11610_v51 = vpop.f32.mrf.mxu0 }
 0x23f   :  { %9391 = vmatprep.mubr.bf16.mxu0 %v12687_v0  ;;  %v8419_v63 = vcombine.low %v6152_v48, %v6166_v27  ;;  %v6170_v23 = vrot.slane %v6168_v22, 4  ;;  %v11606_v13 = vsel %vm10604_vm13, %v8380_v36, %v6466_v49  ;;  %v6177_v40 = vshll.u32 %v11432_v41, 16  ;;  %12689 = vst [vmem:[#allocation33_spill] sm:$0xff] %v11610_v51  ;;  %v11612_v22 = vpop.f32.mrf.mxu1  ;;  %v11615_v49 = vld [vmem:[#allocation2 + $0x6c] sm:$0x1]  ;;  %v9669_v41 = vld [vmem:[%s12645_s2 + $0x3b0] sm:$0xff]  }
 0x240   :  { %v6173_v16 = vrot.slane %v6171_v7, 5  ;;  %v6185_v20 = vshll.u32 %v6113_v3, 16  ;;  %v6184_v9 = vrot.slane %v6182_v28, 4  ;;  %v6191_v0 = vshll.u32 %v11445_v57, 16  ;;  %12690 = vst [vmem:[#allocation34_spill] sm:$0xff] %v11612_v22 }
 0x241   :  { %9423 = vmatprep.mubr.bf16.mxu1 %v8419_v63  ;;  %v6196_v48 = vshrl.u32 %v6115_v25, 16  ;;  %v6199_v1 = vshll.u32 %v6115_v25, 16  ;;  %v6205_v4 = vshll.u32 %v11462_v19, 16  ;;  %v6210_v36 = vshrl.u32 %v6117_v38, 16  ;;  %v11622_v63 = vld [vmem:[#allocation2 + $0x74] sm:$0x1] }
 0x242   :  { %v6174_v27 = vor.u32 %v6173_v16, %v6170_v23  ;;  %v6187_v17 = vrot.slane %v6185_v20, 5  ;;  %v6213_v25 = vshll.u32 %v6117_v38, 16  ;;  %v6390_v28 = vld [vmem:[#allocation2 + $0x68] sm:$0xe]  ;;  %v11624_v23 = vpop.f32.mrf.mxu0  ;;  %v11626_v16 = vpop.f32.mrf.mxu1  ;;  %v6179_v20 = vrot.slane %v6177_v40, 5 }
 0x243   :  { %v6198_v3 = vrot.slane %v6196_v48, 4  ;;  %v6201_v7 = vrot.slane %v6199_v1, 5  ;;  %12691 = vst [vmem:[#allocation35_spill] sm:$0xff] %v11624_v23  ;;  %12692 = vst [vmem:[#allocation36_spill] sm:$0xff] %v11626_v16  ;;  %v6212_v62 = vrot.slane %v6210_v36, 4  ;;  %v12693_v59 = vcombine.low %v11500_v42, %v11504_v14  ;;  %v11634_v38 = vld [vmem:[%s12645_s2 + $0x3a8] sm:$0xff]  }
 0x244   :  { %v6175_v19 = vrot.slane %v6174_v27, 4  ;;  %v6188_v22 = vor.u32 %v6187_v17, %v6184_v9  ;;  %v6391_v51 = vld [vmem:[#allocation2 + $0x70] sm:$0xe]  ;;  %v6193_v48 = vrot.slane %v6191_v0, 5  ;;  %v6215_v57 = vrot.slane %v6213_v25, 5  ;;  %v11639_v40 = vpop.f32.mrf.mxu0  ;;  %v11643_v27 = vpop.f32.mrf.mxu1 }
 0x245   :  { %9392 = vmatmul.mubr.bf16.vlgmr.msra.gmra.mxu0 %v12693_v59  ;;  %v6202_v1 = vor.u32 %v6201_v7, %v6198_v3  ;;  %v6219_v23 = vshll.u32 %v11486_v26, 16  ;;  %v11637_v16 = vld [vmem:[#allocation2 + $0x7c] sm:$0x1]  ;;  %v6207_v42 = vrot.slane %v6205_v4, 5  ;;  %v8381_v59 = vrot.slane %v6390_v28, 9  ;;  %12694 = vst [vmem:[#allocation37_spill] sm:$0xff] %v11643_v27 }
 0x246   :  { %9395 = vmatprep.mubr.bf16.mxu0 %v8405_v60  ;;  %9440 = vmatpush3.bf16.msra.mxu0 %v11484_v10  ;;  %v6189_v17 = vrot.slane %v6188_v22, 4  ;;  %v6470_v14 = vrot.slane %v11615_v49, 5  ;;  %v6392_v9 = vld [vmem:[#allocation2 + $0x78] sm:$0xe]  ;;  %v6216_v36 = vor.u32 %v6215_v57, %v6212_v62  ;;  %v11647_v26 = vadd.f32 %v11252_v43, %v11177_v55  ;;  %v11649_v7 = vld [vmem:[#allocation2 + $0x84] sm:$0x1]  ;;  %v11651_v10 = vpop.f32.mrf.mxu0 }
 0x247   :  { %9441 = vmatprep.subr.bf16.mxu0 %v9669_v41  ;;  %v6203_v0 = vrot.slane %v6202_v1, 4  ;;  %v8382_v3 = vrot.slane %v6391_v51, 9  ;;  %v6393_v60 = vld [vmem:[#allocation2 + $0x80] sm:$0xe]  ;;  %v6180_v4 = vsel %vm9771_vm3, %v6175_v19, %v6179_v20  ;;  %v6221_v25 = vrot.slane %v6219_v23, 5  ;;  %v9673_v55 = vld [vmem:[%s12645_s2 + $0x3f0] sm:$0xff]  }
 0x248   :  { %v6194_v22 = vsel %vm9771_vm3, %v6189_v17, %v6193_v48  ;;  %v6474_v28 = vrot.slane %v11622_v63, 5  ;;  %v6119_v62 = vld [vmem:[#allocation2 + $0x38] sm:$0xf]  ;;  %v6217_v1 = vrot.slane %v6216_v36, 4  ;;  %v11663_v43 = vsel %vm10604_vm13, %v8381_v59, %v6470_v14  ;;  %v11665_v27 = vpop.f32.mrf.mxu0  ;;  %v6121_v17 = vld [vmem:[#allocation2 + $0x40] sm:$0xf]  ;;  %v11673_v36 = vpop.f32.mrf.mxu1 }
 0x249   :  { %v8420_v57 = vcombine.low %v6180_v4, %v6194_v22  ;;  %v8383_v51 = vrot.slane %v6392_v9, 9  ;;  %v6478_v19 = vrot.slane %v11637_v16, 5  ;;  %v8384_v20 = vrot.slane %v6393_v60, 9  ;;  %v9672_v14 = vld [vmem:[%s12645_s2 + $0x3a0] sm:$0xff]   ;;  %v6123_v60 = vld [vmem:[#allocation2 + $0x58] sm:$0xf] }
 0x24a   :  { %9442 = vmatpush3.bf16.msra.mxu0 %v9669_v41  ;;  %v11669_v23 = vsel %vm10604_vm13, %v8382_v3, %v6474_v28  ;;  %v6482_v48 = vrot.slane %v11649_v7, 5  ;;  %v6208_v59 = vsel %vm9771_vm3, %v6203_v0, %v6207_v42  ;;  %v6222_v41 = vsel %vm9771_vm3, %v6217_v1, %v6221_v25  ;;  %v11683_v4 = vpop.f32.mrf.mxu0  ;;  %v9675_v42 = vld [vmem:[%s12645_s2 + $0x3e8] sm:$0xff]  }
 0x24b   :  { %9443 = vmatprep.subr.bf16.mxu0 %v11634_v38  ;;  %9424 = vmatmul.mubr.bf16.vlgmr.msra.gmra.mxu1 %v8420_v57  ;;  %v6224_v9 = vshrl.u32 %v6119_v62, 16  ;;  %v6227_v3 = vshll.u32 %v6119_v62, 16  ;;  %v8421_v22 = vcombine.low %v6208_v59, %v6222_v41  ;;  %v8408_v28 = vcombine.low %v11663_v43, %v11669_v23  ;;  %v6125_v23 = vld [vmem:[#allocation2 + $0x60] sm:$0xf] }
 0x24c   :  { %9472 = vmatpush3.bf16.msra.mxu1 %v11557_v31  ;;  %v11693_v0 = vadd.f32 %v11266_v8, %v11183_v5  ;;  %v11697_v25 = vsel %vm10604_vm13, %v8384_v20, %v6482_v48  ;;  %v12695_v62 = vcombine.low %v11581_v53, %v11574_v47  ;;  %v6233_v1 = vshll.u32 %v11521_v11, 16  ;;  %v11703_v59 = vpop.f32.mrf.mxu0  ;;  %v11712_v48 = vpop.f32.mrf.mxu1  ;;  %v9674_v11 = vld [vmem:[%s12645_s2 + $0x398] sm:$0xff]  }
 0x24d   :  { %9473 = vmatprep.subr.bf16.mxu1 %v9673_v55  ;;  %v6226_v31 = vrot.slane %v6224_v9, 4  ;;  %v6229_v57 = vrot.slane %v6227_v3, 5  ;;  %v6238_v43 = vshrl.u32 %v6121_v17, 16  ;;  %12696 = vst [vmem:[#allocation38_spill] sm:$0xff] %v11703_v59  ;;  %v12697_v5 = vcombine.low %v11600_v37, %v11606_v13  ;;  %9427 = vmatprep.mubr.bf16.mxu1 %v8421_v22  ;;  %v9677_v3 = vld [vmem:[%s12645_s2 + $0x3e0] sm:$0xff]  }
 0x24e   :  { %9396 = vmatmul.mubr.bf16.gmra.mxu0 %v12695_v62  ;;  %v6479_v8 = vsel %vm10604_vm13, %v8383_v51, %v6478_v19  ;;  %v6241_v47 = vshll.u32 %v6121_v17, 16  ;;  %v6247_v53 = vshll.u32 %v11543_v15, 16  ;;  %v6252_v20 = vshrl.u32 %v6123_v60, 16  ;;  %v11718_v9 = vpop.f32.mrf.mxu0  ;;  %v11724_v22 = vld [vmem:[#allocation2 + $0x8c] sm:$0x1] }
 0x24f   :  { %9399 = vmatprep.mubr.bf16.mxu0 %v12697_v5  ;;  %9444 = vmatpush3.bf16.msra.mxu0 %v11634_v38  ;;  %v6230_v41 = vor.u32 %v6229_v57, %v6226_v31  ;;  %v6240_v37 = vrot.slane %v6238_v43, 4  ;;  %v6255_v13 = vshll.u32 %v6123_v60, 16  ;;  %v6261_v38 = vshll.u32 %v11545_v12, 16  ;;  %12698 = vst [vmem:[#allocation39_spill] sm:$0xff] %v11718_v9  ;;  %v6394_v12 = vld [vmem:[#allocation2 + $0x88] sm:$0xe]  ;;  %v11732_v9 = vpop.f32.mrf.mxu1 }
 0x250   :  { %9445 = vmatprep.subr.bf16.mxu0 %v9672_v14  ;;  %9474 = vmatpush3.bf16.msra.mxu1 %v9673_v55  ;;  %v8409_v51 = vcombine.low %v6479_v8, %v11697_v25  ;;  %v6243_v15 = vrot.slane %v6241_v47, 5  ;;  %v6254_v19 = vrot.slane %v6252_v20, 4  ;;  %v6266_v17 = vshrl.u32 %v6125_v23, 16  ;;  %v11726_v43 = vpop.f32.mrf.mxu0  ;;  %v9676_v47 = vld [vmem:[%s12645_s2 + $0x390] sm:$0xff]  }
 0x251   :  { %9475 = vmatprep.subr.bf16.mxu1 %v9675_v42  ;;  %v6231_v62 = vrot.slane %v6230_v41, 4  ;;  %v6235_v31 = vrot.slane %v6233_v1, 5  ;;  %v6257_v60 = vrot.slane %v6255_v13, 5  ;;  %v6269_v57 = vshll.u32 %v6125_v23, 16  ;;  %12699 = vst [vmem:[#allocation40_spill] sm:$0xff] %v11726_v43 }
 0x252   :  { %v6244_v55 = vor.u32 %v6243_v15, %v6240_v37  ;;  %v6249_v25 = vrot.slane %v6247_v53, 5  ;;  %v6268_v5 = vrot.slane %v6266_v17, 4  ;;  %v6275_v8 = vshll.u32 %v11566_v30, 16  ;;  %v6395_v20 = vld [vmem:[#allocation2 + $0x90] sm:$0xe]  ;;  %v11740_v37 = vpop.f32.mrf.mxu0 }
 0x253   :  { %9446 = vmatpush3.bf16.msra.mxu0 %v9672_v14  ;;  %v6258_v1 = vor.u32 %v6257_v60, %v6254_v19  ;;  %v6263_v41 = vrot.slane %v6261_v38, 5  ;;  %v6271_v23 = vrot.slane %v6269_v57, 5  ;;  %v11736_v13 = vadd.f32 %v11277_v56, %v11193_v54  ;;  %v11738_v14 = vld [vmem:[#allocation2 + $0x94] sm:$0x1]  ;;  %v6127_v53 = vld [vmem:[#allocation2 + $0x68] sm:$0xf]  ;;  %v11748_v19 = vpop.f32.mrf.mxu1 }
 0x254   :  { %9447 = vmatprep.subr.bf16.mxu0 %v9674_v11  ;;  %12700 = vst [vmem:[#allocation41_spill] sm:$0xff] %v11740_v37  ;;  %v6236_v30 = vsel %vm9771_vm3, %v6231_v62, %v6235_v31  ;;  %v6245_v15 = vrot.slane %v6244_v55, 4  ;;  %9476 = vmatpush3.bf16.msra.mxu1 %v9675_v42  ;;  %v11746_v17 = vadd.f32 %v11286_v52, %v11210_v32  ;;  %v8385_v38 = vrot.slane %v6394_v12, 9  ;;  %v9679_v62 = vld [vmem:[%s12645_s2 + $0x3d8] sm:$0xff]   ;;  %v11754_v31 = vpop.f32.mrf.mxu0  ;;  %v6129_v42 = vld [vmem:[#allocation2 + $0x70] sm:$0xf] }
 0x255   :  { %v6259_v54 = vrot.slane %v6258_v1, 4  ;;  %v6272_v56 = vor.u32 %v6271_v23, %v6268_v5  ;;  %9477 = vmatprep.subr.bf16.mxu1 %v9677_v3  ;;  %v6486_v60 = vrot.slane %v11724_v22, 5  ;;  %v8386_v57 = vrot.slane %v6395_v20, 9  ;;  %12701 = vst [vmem:[#allocation42_spill] sm:$0xff] %v11754_v31 }
 0x256   :  { %9400 = vmatmul.mubr.bf16.gmra.mxu0 %v8408_v28  ;;  %v6250_v32 = vsel %vm9771_vm3, %v6245_v15, %v6249_v25  ;;  %v6277_v52 = vrot.slane %v6275_v8, 5  ;;  %v6490_v28 = vrot.slane %v11738_v14, 5  ;;  %v6280_v12 = vshrl.u32 %v6127_v53, 16 }
 0x257   :  { %9403 = vmatprep.mubr.bf16.mxu0 %v8409_v51  ;;  %9448 = vmatpush3.bf16.msra.mxu0 %v9674_v11  ;;  %v8422_v55 = vcombine.low %v6236_v30, %v6250_v32  ;;  %v6264_v5 = vsel %vm9771_vm3, %v6259_v54, %v6263_v41  ;;  %v6273_v20 = vrot.slane %v6272_v56, 4  ;;  %v11763_v1 = vadd.f32 %v11290_v24, %v11223_v46  ;;  %v9678_v51 = vld [vmem:[%s12645_s2 + $0x388] sm:$0xff]   ;;  %v11768_v11 = vpop.f32.mrf.mxu0  ;;  %v6863_v30 = vld [vmem:[#allocation2 + $0x10] sm:$0xf]  ;;  %v11776_v24 = vpop.f32.mrf.mxu1 }
 0x258   :  { %9449 = vmatprep.subr.bf16.mxu0 %v9676_v47  ;;  %12702 = vst [vmem:[#allocation43_spill] sm:$0xff] %v11768_v11  ;;  %9478 = vmatpush3.bf16.msra.mxu1 %v9677_v3  ;;  %v6491_v25 = vsel %vm10604_vm13, %v8386_v57, %v6490_v28  ;;  %v6282_v8 = vrot.slane %v6280_v12, 4  ;;  %v6283_v23 = vshll.u32 %v6127_v53, 16  ;;  %v6289_v41 = vshll.u32 %v11615_v49, 16  ;;  %v9681_v46 = vld [vmem:[%s12645_s2 + $0x3d0] sm:$0xff]   ;;  %12703 = vst [vmem:[#allocation44_spill] sm:$0xff] %v11776_v24 }
 0x259   :  { %9428 = vmatmul.mubr.bf16.gmra.mxu1 %v8422_v55  ;;  %v6278_v15 = vsel %vm9771_vm3, %v6273_v20, %v6277_v52  ;;  %v6487_v3 = vsel %vm10604_vm13, %v8385_v38, %v6486_v60  ;;  %9479 = vmatprep.subr.bf16.mxu1 %v9679_v62  ;;  %v6294_v54 = vshrl.u32 %v6129_v42, 16  ;;  %v6297_v56 = vshll.u32 %v6129_v42, 16  ;;  %v11782_v53 = vld [vmem:[#allocation2 + $0x14] sm:$0x1]  ;;  %v6865_v49 = vld [vmem:[#allocation2 + $0x18] sm:$0xf]  ;;  %v11784_v57 = vpop.f32.mrf.mxu0 }
 0x25a   :  { %12704 = vst [vmem:[#allocation45_spill] sm:$0xff] %v11784_v57  ;;  %v8423_v32 = vcombine.low %v6264_v5, %v6278_v15  ;;  %v8410_v28 = vcombine.low %v6487_v3, %v6491_v25  ;;  %v6285_v12 = vrot.slane %v6283_v23, 5  ;;  %v6303_v55 = vshll.u32 %v11622_v63, 16  ;;  %v9680_v52 = vld [vmem:[%s12645_s2 + $0x380] sm:$0xff]   ;;  %v11790_v20 = vld [vmem:[#allocation2 + $0x1c] sm:$0x1]  ;;  %v11793_v63 = vpop.f32.mrf.mxu1 }
 0x25b   :  { %9450 = vmatpush3.bf16.msra.mxu0 %v9676_v47  ;;  %v6296_v38 = vrot.slane %v6294_v54, 4  ;;  %v6299_v60 = vrot.slane %v6297_v56, 5  ;;  %v6896_v42 = vshrl.u32 %v6863_v30, 16  ;;  %v6899_v11 = vshll.u32 %v6863_v30, 16  ;;  %v6131_v25 = vld [vmem:[#allocation2 + $0x78] sm:$0xf]  ;;  %v11798_v56 = vpop.f32.mrf.mxu0 }
 0x25c   :  { %9451 = vmatprep.subr.bf16.mxu0 %v9678_v51  ;;  %9431 = vmatprep.mubr.bf16.mxu1 %v8423_v32  ;;  %v6286_v31 = vor.u32 %v6285_v12, %v6282_v8  ;;  %v6291_v57 = vrot.slane %v6289_v41, 5  ;;  %v6905_v47 = vshll.u32 %v11782_v53, 16  ;;  %v6910_v5 = vshrl.u32 %v6865_v49, 16  ;;  %12705 = vst [vmem:[#allocation46_spill] sm:$0xff] %v11793_v63  ;;  %v9682_v30 = vld [vmem:[%s12645_s2 + $0x3c8] sm:$0xff]   ;;  %12706 = vst [vmem:[#allocation47_spill] sm:$0xff] %v11798_v56 }
 0x25d   :  { %9480 = vmatpush3.bf16.msra.mxu1 %v9679_v62  ;;  %v6300_v23 = vor.u32 %v6299_v60, %v6296_v38  ;;  %v6898_v15 = vrot.slane %v6896_v42, 4  ;;  %v6901_v3 = vrot.slane %v6899_v11, 5  ;;  %v6913_v54 = vshll.u32 %v6865_v49, 16  ;;  %v6133_v38 = vld [vmem:[#allocation2 + $0x80] sm:$0xf] }
 0x25e   :  { %9404 = vmatmul.mubr.bf16.gmra.mxu0 %v8410_v28  ;;  %9481 = vmatprep.subr.bf16.mxu1 %v9681_v46  ;;  %v6287_v8 = vrot.slane %v6286_v31, 4  ;;  %v6305_v41 = vrot.slane %v6303_v55, 5  ;;  %v6912_v32 = vrot.slane %v6910_v5, 4  ;;  %v6919_v62 = vshll.u32 %v11790_v20, 16  ;;  %v11804_v31 = vpop.f32.mrf.mxu1  ;;  %v7333_v63 = vld [vmem:[#allocation2 + $0x30] sm:$0xe] }
 0x25f   :  { %9452 = vmatpush3.bf16.msra.mxu0 %v9678_v51  ;;  %v6301_v12 = vrot.slane %v6300_v23, 4  ;;  %v6902_v37 = vor.u32 %v6901_v3, %v6898_v15  ;;  %v6915_v28 = vrot.slane %v6913_v54, 5  ;;  %v6308_v60 = vshrl.u32 %v6131_v25, 16  ;;  %12707 = vst [vmem:[#allocation48_spill] sm:$0xff] %v11804_v31  ;;  %v11808_v15 = vpop.f32.mrf.mxu0 }
 0x260   :  { %9453 = vmatprep.subr.bf16.mxu0 %v9680_v52  ;;  %v6292_v11 = vsel %vm9771_vm3, %v6287_v8, %v6291_v57  ;;  %v6907_v49 = vrot.slane %v6905_v47, 5  ;;  %v6311_v42 = vshll.u32 %v6131_v25, 16  ;;  %v6317_v43 = vshll.u32 %v11637_v16, 16  ;;  %12708 = vst [vmem:[#allocation49_spill] sm:$0xff] %v11808_v15  ;;  %v9683_v16 = vld [vmem:[%s12645_s2 + $0x3c0] sm:$0xff]  }
 0x261   :  { %9482 = vmatpush3.bf16.msra.mxu1 %v9681_v46  ;;  %v6306_v51 = vsel %vm9771_vm3, %v6301_v12, %v6305_v41  ;;  %v6903_v55 = vrot.slane %v6902_v37, 4  ;;  %v6916_v5 = vor.u32 %v6915_v28, %v6912_v32  ;;  %v6310_v23 = vrot.slane %v6308_v60, 4  ;;  %v11813_v46 = vpop.f32.mrf.mxu1  ;;  %v6867_v41 = vld [vmem:[#allocation2 + $0x20] sm:$0xf]  ;;  %v11822_v28 = vld [vmem:[#allocation2 + $0x24] sm:$0x1] }
 0x262   :  { %9483 = vmatprep.subr.bf16.mxu1 %v9682_v30  ;;  %v8424_v3 = vcombine.low %v6292_v11, %v6306_v51  ;;  %v6921_v54 = vrot.slane %v6919_v62, 5  ;;  %v6313_v56 = vrot.slane %v6311_v42, 5  ;;  %v6322_v57 = vshrl.u32 %v6133_v38, 16  ;;  %12709 = vst [vmem:[#allocation50_spill] sm:$0xff] %v11813_v46  ;;  %v6869_v60 = vld [vmem:[#allocation2 + $0x28] sm:$0xf] }
 0x263   :  { %9454 = vmatpush3.bf16.msra.mxu0 %v9680_v52  ;;  %v6908_v47 = vsel %vm9771_vm3, %v6903_v55, %v6907_v49  ;;  %v6917_v37 = vrot.slane %v6916_v5, 4  ;;  %v6325_v25 = vshll.u32 %v6133_v38, 16  ;;  %v6331_v8 = vshll.u32 %v11649_v7, 16  ;;  %v11838_v55 = vpop.f32.mrf.mxu1 }
 0x264   :  { %v11820_v32 = vadd.f32 %v11310_v44, %v11230_v18  ;;  %9432 = vmatmul.mubr.bf16.gmra.mxu1 %v8424_v3  ;;  %v6314_v52 = vor.u32 %v6313_v56, %v6310_v23  ;;  %v6319_v62 = vrot.slane %v6317_v43, 5  ;;  %v6324_v12 = vrot.slane %v6322_v57, 4  ;;  %v11834_v18 = vld [vmem:[#allocation2 + $0x2c] sm:$0x1]  ;;  %v11836_v44 = vpop.f32.mrf.mxu0  ;;  %12711 = vst [vmem:[#allocation52_spill] sm:$0xff] %v11838_v55 }
 0x265   :  { %v6922_v11 = vsel %vm9771_vm3, %v6917_v37, %v6921_v54  ;;  %v6327_v49 = vrot.slane %v6325_v25, 5  ;;  %v11828_v38 = vadd.f32 %v11315_v39, %v11254_v33  ;;  %v11832_v7 = vadd.f32 %v11327_v35, %v11268_v61  ;;  %9484 = vmatpush3.bf16.msra.mxu1 %v9682_v30  ;;  %12710 = vst [vmem:[#allocation51_spill] sm:$0xff] %v11836_v44  ;;  %v6135_v3 = vld [vmem:[#allocation2 + $0x88] sm:$0xf] }
 0x266   :  { %v8451_v43 = vcombine.low %v6908_v47, %v6922_v11  ;;  %v6315_v56 = vrot.slane %v6314_v52, 4  ;;  %v6333_v42 = vrot.slane %v6331_v8, 5  ;;  %v6924_v51 = vshrl.u32 %v6867_v41, 16  ;;  %9485 = vmatprep.subr.bf16.mxu1 %v9683_v16  ;;  %v12712_v47 = vld [vmem:[#allocation9_spill] sm:$0xff]  ;;  %v11850_v52 = vpop.f32.mrf.mxu0 }
 0x267   :  { %v6328_v5 = vor.u32 %v6327_v49, %v6324_v12  ;;  %v6927_v23 = vshll.u32 %v6867_v41, 16  ;;  %v6933_v33 = vshll.u32 %v11822_v28, 16  ;;  %v6938_v39 = vshrl.u32 %v6869_v60, 16  ;;  %v6137_v41 = vld [vmem:[#allocation2 + $0x90] sm:$0xf]  ;;  %12713 = vst [vmem:[#allocation9_spill] sm:$0xff] %v11850_v52 }
 0x268   :  { %9455 = vmatprep.mubr.bf16.mxu0 %v8451_v43  ;;  %v11843_v61 = vadd.f32 %v11344_v2, %v11288_v21  ;;  %v6926_v35 = vrot.slane %v6924_v51, 4  ;;  %v6941_v30 = vshll.u32 %v6869_v60, 16  ;;  %v6947_v54 = vshll.u32 %v11834_v18, 16  ;;  %v11854_v60 = vpop.f32.mrf.mxu1 }
 0x269   :  { %v6329_v57 = vrot.slane %v6328_v5, 4  ;;  %v11848_v37 = vadd.f32 %v12712_v47, %v11349_v34  ;;  %v6929_v25 = vrot.slane %v6927_v23, 5  ;;  %v6940_v8 = vrot.slane %v6938_v39, 4  ;;  %9486 = vmatpush3.bf16.msra.mxu1 %v9683_v16  ;;  %12714 = vst [vmem:[#allocation53_spill] sm:$0xff] %v11854_v60  ;;  %v6871_v5 = vld [vmem:[#allocation2 + $0x30] sm:$0xf] }
 0x26a   :  { %v6320_v12 = vsel %vm9771_vm3, %v6315_v56, %v6319_v62  ;;  %v6935_v21 = vrot.slane %v6933_v33, 5  ;;  %v6943_v2 = vrot.slane %v6941_v30, 5  ;;  %v6336_v11 = vshrl.u32 %v6135_v3, 16  ;;  %v11859_v33 = vld [vmem:[#allocation2 + $0x34] sm:$0x1]  ;;  %v11861_v30 = vpop.f32.mrf.mxu0 }
 0x26b   :  { %v6334_v49 = vsel %vm9771_vm3, %v6329_v57, %v6333_v42  ;;  %v6930_v43 = vor.u32 %v6929_v25, %v6926_v35  ;;  %v6949_v34 = vrot.slane %v6947_v54, 5  ;;  %v6339_v51 = vshll.u32 %v6135_v3, 16  ;;  %12715 = vst [vmem:[#allocation54_spill] sm:$0xff] %v11861_v30  ;;  %v11864_v54 = vpop.f32.mrf.mxu1  ;;  %v12717_v57 = vld [vmem:[#allocation3_spill] sm:$0xff]  ;;  %v12718_v25 = vld [vmem:[#allocation8_spill] sm:$0xff] }
 0x26c   :  { %v8425_v23 = vcombine.low %v6320_v12, %v6334_v49  ;;  %v6944_v39 = vor.u32 %v6943_v2, %v6940_v8  ;;  %v6338_v16 = vrot.slane %v6336_v11, 4  ;;  %v6350_v47 = vshrl.u32 %v6137_v41, 16  ;;  %12716 = vst [vmem:[#allocation55_spill] sm:$0xff] %v11864_v54 }
 0x26d   :  { %v6931_v52 = vrot.slane %v6930_v43, 4  ;;  %v6341_v44 = vrot.slane %v6339_v51, 5  ;;  %v6345_v62 = vshll.u32 %v11724_v22, 16  ;;  %v6353_v56 = vshll.u32 %v6137_v41, 16  ;;  %v6873_v22 = vld [vmem:[#allocation2 + $0x38] sm:$0xf] }
 0x26e   :  { %9435 = vmatprep.mubr.bf16.mxu1 %v8425_v23  ;;  %v6945_v15 = vrot.slane %v6944_v39, 4  ;;  %v6352_v42 = vrot.slane %v6350_v47, 4  ;;  %v6359_v35 = vshll.u32 %v11738_v14, 16  ;;  %v6952_v3 = vshrl.u32 %v6871_v5, 16  ;;  %v11874_v43 = vld [vmem:[#allocation2 + $0x3c] sm:$0x1] }
 0x26f   :  { %v11868_v8 = vadd.f32 %v12718_v25, %v12717_v57  ;;  %v6342_v12 = vor.u32 %v6341_v44, %v6338_v16  ;;  %v6355_v2 = vrot.slane %v6353_v56, 5  ;;  %v6955_v41 = vshll.u32 %v6871_v5, 16  ;;  %v7329_v25 = vld [vmem:[#allocation2 + $0x10] sm:$0xe]  ;;  %v11877_v44 = vpop.f32.mrf.mxu0 }
 0x270   :  { %v6936_v11 = vsel %vm9771_vm3, %v6931_v52, %v6935_v21  ;;  %v6950_v49 = vsel %vm9771_vm3, %v6945_v15, %v6949_v34  ;;  %v6954_v14 = vrot.slane %v6952_v3, 4  ;;  %v6961_v51 = vshll.u32 %v11859_v33, 16  ;;  %12719 = vst [vmem:[#allocation3_spill] sm:$0xff] %v11877_v44  ;;  %v7330_v52 = vld [vmem:[#allocation2 + $0x18] sm:$0xe]  ;;  %v11879_v21 = vpop.f32.mrf.mxu1 }
 0x271   :  { %v8452_v23 = vcombine.low %v6936_v11, %v6950_v49  ;;  %v6343_v39 = vrot.slane %v6342_v12, 4  ;;  %v6356_v47 = vor.u32 %v6355_v2, %v6352_v42  ;;  %v6957_v57 = vrot.slane %v6955_v41, 5  ;;  %12720 = vst [vmem:[#allocation8_spill] sm:$0xff] %v11879_v21  ;;  %v11887_v49 = vpop.f32.mrf.mxu0  ;;  %v12735_v44 = vld [vmem:[#allocation14_spill] sm:$0xff]  ;;  %v12736_v21 = vld [vmem:[#allocation16_spill] sm:$0xff] }
 0x272   :  { %v6347_v16 = vrot.slane %v6345_v62, 5  ;;  %v6361_v5 = vrot.slane %v6359_v35, 5  ;;  %v6966_v56 = vshrl.u32 %v6873_v22, 16  ;;  %v6969_v30 = vshll.u32 %v6873_v22, 16  ;;  %12721 = vst [vmem:[#allocation56_spill] sm:$0xff] %v11887_v49  ;;  %v12734_v49 = vld [vmem:[#allocation7_spill] sm:$0xff] }
 0x273   :  { %9456 = vmatmul.mubr.bf16.vlgmr.msra.gmra.mxu0 %v8452_v23  ;;  %v6357_v15 = vrot.slane %v6356_v47, 4  ;;  %v6958_v34 = vor.u32 %v6957_v57, %v6954_v14  ;;  %v6963_v3 = vrot.slane %v6961_v51, 5  ;;  %v6975_v54 = vshll.u32 %v11874_v43, 16  ;;  %v12722_v51 = vld [vmem:[#allocation6_spill] sm:$0xff]  ;;  %v12723_v47 = vld [vmem:[#allocation11_spill] sm:$0xff] }
 0x274   :  { %v6348_v42 = vsel %vm9771_vm3, %v6343_v39, %v6347_v16  ;;  %v6968_v12 = vrot.slane %v6966_v56, 4  ;;  %v6971_v2 = vrot.slane %v6969_v30, 5  ;;  %v8467_v41 = vrot.slane %v7329_v25, 9  ;;  %v6875_v16 = vld [vmem:[#allocation2 + $0x40] sm:$0xf]  ;;  %v11894_v30 = vpop.f32.mrf.mxu1  ;;  %v12725_v56 = vld [vmem:[#allocation4_spill] sm:$0xff] }
 0x275   :  { %v6362_v62 = vsel %vm9771_vm3, %v6357_v15, %v6361_v5  ;;  %v6959_v35 = vrot.slane %v6958_v34, 4  ;;  %v7379_v22 = vrot.slane %v11782_v53, 5  ;;  %v8468_v11 = vrot.slane %v7330_v52, 9  ;;  %12724 = vst [vmem:[#allocation6_spill] sm:$0xff] %v11894_v30  ;;  %v12726_v52 = vld [vmem:[#allocation10_spill] sm:$0xff] }
 0x276   :  { %v8426_v23 = vcombine.low %v6348_v42, %v6362_v62  ;;  %v6972_v14 = vor.u32 %v6971_v2, %v6968_v12  ;;  %v11891_v57 = vadd.f32 %v12723_v47, %v12722_v51  ;;  %v7383_v39 = vrot.slane %v11790_v20, 5  ;;  %v11904_v34 = vld [vmem:[#allocation2 + $0x44] sm:$0x1]  ;;  %v6877_v42 = vld [vmem:[#allocation2 + $0x48] sm:$0xf]  ;;  %v12727_v2 = vld [vmem:[#allocation22_spill] sm:$0xff] }
 0x277   :  { %v6964_v25 = vsel %vm9771_vm3, %v6959_v35, %v6963_v3  ;;  %v6977_v5 = vrot.slane %v6975_v54, 5  ;;  %v7380_v53 = vsel %vm10604_vm13, %v8467_v41, %v7379_v22  ;;  %v11902_v15 = vadd.f32 %v12726_v52, %v12725_v56  ;;  %v12728_v62 = vld [vmem:[#allocation13_spill] sm:$0xff]  ;;  %v12730_v3 = vld [vmem:[#allocation12_spill] sm:$0xff]  ;;  %v12731_v22 = vld [vmem:[#allocation15_spill] sm:$0xff] }
 0x278   :  { %9436 = vmatmul.mubr.bf16.gmra.mxu1 %v8426_v23  ;;  %v6973_v12 = vrot.slane %v6972_v14, 4  ;;  %v7384_v20 = vsel %vm10604_vm13, %v8468_v11, %v7383_v39  ;;  %v11910_v51 = vadd.f32 %v12728_v62, %v12727_v2  ;;  %v12729_v54 = vld [vmem:[#allocation5_spill] sm:$0xff]  ;;  %v11918_v47 = vadd.f32 %v12731_v22, %v11647_v26  ;;  %v6879_v23 = vld [vmem:[#allocation2 + $0x60] sm:$0xf]  ;;  %v11920_v14 = vpop.f32.mrf.mxu0  ;;  %v11924_v39 = vld [vmem:[#allocation2 + $0x4c] sm:$0x1] }
 0x279   :  { %v11914_v35 = vadd.f32 %v12730_v3, %v12729_v54  ;;  %v8499_v41 = vcombine.low %v7380_v53, %v7384_v20  ;;  %v6980_v56 = vshrl.u32 %v6875_v16, 16  ;;  %v6983_v52 = vshll.u32 %v6875_v16, 16  ;;  %12732 = vst [vmem:[#allocation11_spill] sm:$0xff] %v11920_v14  ;;  %v11927_v3 = vpop.f32.mrf.mxu1  ;;  %v11930_v22 = vld [vmem:[#allocation2 + $0x64] sm:$0x1] }
 0x27a   :  { %v6978_v11 = vsel %vm9771_vm3, %v6973_v12, %v6977_v5  ;;  %v6989_v2 = vshll.u32 %v11904_v34, 16  ;;  %v6994_v62 = vshrl.u32 %v6877_v42, 16  ;;  %v6997_v54 = vshll.u32 %v6877_v42, 16  ;;  %12733 = vst [vmem:[#allocation4_spill] sm:$0xff] %v11927_v3  ;;  %v6881_v42 = vld [vmem:[#allocation2 + $0x68] sm:$0xf]  ;;  %v11942_v3 = vpop.f32.mrf.mxu0 }
 0x27b   :  { %v8453_v53 = vcombine.low %v6964_v25, %v6978_v11  ;;  %9487 = vmatprep.mubr.bf16.mxu1 %v8499_v41  ;;  %v6982_v26 = vrot.slane %v6980_v56, 4  ;;  %v6985_v20 = vrot.slane %v6983_v52, 5  ;;  %v7003_v16 = vshll.u32 %v11924_v39, 16  ;;  %v11940_v56 = vld [vmem:[#allocation2 + $0x6c] sm:$0x1]  ;;  %12737 = vst [vmem:[#allocation10_spill] sm:$0xff] %v11942_v3 }
 0x27c   :  { %v11934_v30 = vadd.f32 %v12735_v44, %v12734_v49  ;;  %v6996_v5 = vrot.slane %v6994_v62, 4  ;;  %v6999_v12 = vrot.slane %v6997_v54, 5  ;;  %v11938_v60 = vadd.f32 %v12736_v21, %v11848_v37  ;;  %v7331_v62 = vld [vmem:[#allocation2 + $0x20] sm:$0xe]  ;;  %v11947_v37 = vpop.f32.mrf.mxu1  ;;  %v7334_v3 = vld [vmem:[#allocation2 + $0x38] sm:$0xe] }
 0x27d   :  { %9459 = vmatprep.mubr.bf16.mxu0 %v8453_v53  ;;  %v6986_v25 = vor.u32 %v6985_v20, %v6982_v26  ;;  %v6991_v41 = vrot.slane %v6989_v2, 5  ;;  %v7008_v52 = vshrl.u32 %v6879_v23, 16  ;;  %v7011_v11 = vshll.u32 %v6879_v23, 16  ;;  %12738 = vst [vmem:[#allocation22_spill] sm:$0xff] %v11947_v37  ;;  %v12739_v26 = vld [vmem:[#allocation18_spill] sm:$0xff] }
 0x27e   :  { %v7000_v55 = vor.u32 %v6999_v12, %v6996_v5  ;;  %v7005_v46 = vrot.slane %v7003_v16, 5  ;;  %v8565_v44 = vpack.c.bf16 %v11938_v60, %v11938_v60  ;;  %v7017_v49 = vshll.u32 %v11930_v22, 16  ;;  %v7332_v12 = vld [vmem:[#allocation2 + $0x28] sm:$0xe]  ;;  %v11957_v31 = vpop.f32.mrf.mxu1 }
 0x27f   :  { %v6987_v21 = vrot.slane %v6986_v25, 4  ;;  %v7010_v54 = vrot.slane %v7008_v52, 4  ;;  %v7013_v53 = vrot.slane %v7011_v11, 5  ;;  %v7022_v2 = vshrl.u32 %v6881_v42, 16  ;;  %12740 = vst [vmem:[#allocation13_spill] sm:$0xff] %v11957_v31 }
 0x280   :  { %v11951_v20 = vadd.f32 %v12739_v26, %v11693_v0  ;;  %v7001_v23 = vrot.slane %v7000_v55, 4  ;;  %2896 = vst [vmem:[%s12646_s3 + $0x20] sm:$0xf] %v8565_v44  ;;  %v7025_v16 = vshll.u32 %v6881_v42, 16  ;;  %v7031_v5 = vshll.u32 %v11940_v56, 16  ;;  %v11961_v0 = vpop.f32.mrf.mxu0 }
 0x281   :  { %v6992_v25 = vsel %vm9771_vm3, %v6987_v21, %v6991_v41  ;;  %v7014_v52 = vor.u32 %v7013_v53, %v7010_v54  ;;  %v7024_v11 = vrot.slane %v7022_v2, 4  ;;  %v8469_v37 = vrot.slane %v7331_v62, 9  ;;  %12741 = vst [vmem:[#allocation5_spill] sm:$0xff] %v11961_v0  ;;  %v11967_v41 = vpop.f32.mrf.mxu1 }
 0x282   :  { %v7006_v55 = vsel %vm9771_vm3, %v7001_v23, %v7005_v46  ;;  %v7019_v26 = vrot.slane %v7017_v49, 5  ;;  %v7027_v44 = vrot.slane %v7025_v16, 5  ;;  %v7387_v42 = vrot.slane %v11822_v28, 5  ;;  %12742 = vst [vmem:[#allocation12_spill] sm:$0xff] %v11967_v41  ;;  %v11976_v23 = vpop.f32.mrf.mxu0 }
 0x283   :  { %v8454_v14 = vcombine.low %v6992_v25, %v7006_v55  ;;  %v7015_v24 = vrot.slane %v7014_v52, 4  ;;  %v8470_v31 = vrot.slane %v7332_v12, 9  ;;  %v7391_v59 = vrot.slane %v11834_v18, 5  ;;  %12743 = vst [vmem:[#allocation15_spill] sm:$0xff] %v11976_v23  ;;  %v12744_v12 = vld [vmem:[#allocation17_spill] sm:$0xff]  ;;  %v11993_v25 = vpop.f32.mrf.mxu1 }
 0x284   :  { %v7028_v21 = vor.u32 %v7027_v44, %v7024_v11  ;;  %v7033_v62 = vrot.slane %v7031_v5, 5  ;;  %v7388_v54 = vsel %vm10604_vm13, %v8469_v37, %v7387_v42  ;;  %v8471_v53 = vrot.slane %v7333_v63, 9  ;;  %12747 = vst [vmem:[#allocation7_spill] sm:$0xff] %v11993_v25  ;;  %v12003_v55 = vld [vmem:[#allocation2 + $0x74] sm:$0x1] }
 0x285   :  { %9460 = vmatmul.mubr.bf16.gmra.mxu0 %v8454_v14  ;;  %v7020_v46 = vsel %vm9771_vm3, %v7015_v24, %v7019_v26  ;;  %v7392_v28 = vsel %vm10604_vm13, %v8470_v31, %v7391_v59  ;;  %v7395_v49 = vrot.slane %v11859_v33, 5  ;;  %v8472_v2 = vrot.slane %v7334_v3, 9  ;;  %v12745_v24 = vld [vmem:[#allocation20_spill] sm:$0xff]  ;;  %v12746_v31 = vld [vmem:[#allocation19_spill] sm:$0xff]  ;;  %v6883_v3 = vld [vmem:[#allocation2 + $0x70] sm:$0xf] }
 0x286   :  { %v7029_v18 = vrot.slane %v7028_v21, 4  ;;  %v8500_v16 = vcombine.low %v7388_v54, %v7392_v28  ;;  %v7399_v5 = vrot.slane %v11874_v43, 5  ;;  %v2754_v37 = vadd.f32 %v12744_v12, %v11891_v57  ;;  %v6885_v26 = vld [vmem:[#allocation2 + $0x78] sm:$0xf]  ;;  %v12025_v12 = vpop.f32.mrf.mxu1 }
 0x287   :  { %v2794_v63 = vmul.f32 %v11938_v60, %v11938_v60  ;;  %v11985_v14 = vadd.f32 %v12745_v24, %v11736_v13  ;;  %v7396_v59 = vsel %vm10604_vm13, %v8471_v53, %v7395_v49  ;;  %v11991_v33 = vadd.f32 %v12746_v31, %v11910_v51  ;;  %v12748_v13 = vld [vmem:[#allocation23_spill] sm:$0xff]  ;;  %v12005_v51 = vld [vmem:[#allocation2 + $0x7c] sm:$0x1]  ;;  %v12013_v53 = vpop.f32.mrf.mxu0  ;;  %12752 = vst [vmem:[#allocation16_spill] sm:$0xff] %v12025_v12 }
 0x288   :  { %v7034_v43 = vsel %vm9771_vm3, %v7029_v18, %v7033_v62  ;;  %9488 = vmatmul.mubr.bf16.vlgmr.msra.gmra.mxu1 %v8500_v16  ;;  %v7400_v57 = vsel %vm10604_vm13, %v8472_v2, %v7399_v5  ;;  %v8563_v52 = vpack.c.bf16 %v2754_v37, %v2754_v37  ;;  %v12001_v11 = vadd.f32 %v12748_v13, %v11746_v17  ;;  %v12749_v62 = vld [vmem:[#allocation25_spill] sm:$0xff] }
 0x289   :  { %v8455_v44 = vcombine.low %v7020_v46, %v7034_v43  ;;  %v8501_v42 = vcombine.low %v7396_v59, %v7400_v57  ;;  %v8566_v21 = vpack.c.bf16 %v11991_v33, %v11991_v33  ;;  %v12011_v54 = vadd.f32 %v12749_v62, %v11763_v1  ;;  %12750 = vst [vmem:[#allocation14_spill] sm:$0xff] %v12013_v53  ;;  %v12751_v17 = vld [vmem:[#allocation21_spill] sm:$0xff]  ;;  %v12027_v24 = vpop.f32.mrf.mxu0  ;;  %v6887_v43 = vld [vmem:[#allocation2 + $0x80] sm:$0xf] }
 0x28a   :  { %v2792_v28 = vmul.f32 %v2754_v37, %v2754_v37  ;;  %2894 = vst [vmem:[%s12646_s3] sm:$0xf] %v8563_v52  ;;  %v2755_v49 = vadd.f32 %v12751_v17, %v11918_v47  ;;  %v7036_v2 = vshrl.u32 %v6883_v3, 16  ;;  %v7039_v46 = vshll.u32 %v6883_v3, 16  ;;  %12753 = vst [vmem:[#allocation18_spill] sm:$0xff] %v12027_v24  ;;  %v12755_v17 = vld [vmem:[#allocation24_spill] sm:$0xff] }
 0x28b   :  { %9463 = vmatprep.mubr.bf16.mxu0 %v8455_v44  ;;  %9491 = vmatprep.mubr.bf16.mxu1 %v8501_v42  ;;  %2897 = vst [vmem:[%s12646_s3 + $0x30] sm:$0xf] %v8566_v21  ;;  %v7045_v1 = vshll.u32 %v12003_v55, 16  ;;  %v7050_v18 = vshrl.u32 %v6885_v26, 16  ;;  %v7053_v16 = vshll.u32 %v6885_v26, 16  ;;  %v7059_v5 = vshll.u32 %v12005_v51, 16  ;;  %v12035_v26 = vpop.f32.mrf.mxu1  ;;  %v12047_v24 = vpop.f32.mrf.mxu0 }
 0x28c   :  { %v2770_v59 = vadd.f32 %v2755_v49, %v2754_v37  ;;  %v2793_v47 = vmul.f32 %v2755_v49, %v2755_v49  ;;  %v8564_v31 = vpack.c.bf16 %v2755_v49, %v2755_v49  ;;  %v7038_v3 = vrot.slane %v7036_v2, 4  ;;  %v12033_v42 = vld [vmem:[#allocation2 + $0x84] sm:$0x1]  ;;  %12754 = vst [vmem:[#allocation17_spill] sm:$0xff] %v12035_v26  ;;  %12756 = vst [vmem:[#allocation20_spill] sm:$0xff] %v12047_v24 }
 0x28d   :  { %v12031_v57 = vmul.f32 %v11991_v33, %v11991_v33  ;;  %v7041_v52 = vrot.slane %v7039_v46, 5  ;;  %v7052_v13 = vrot.slane %v7050_v18, 4  ;;  %v7055_v44 = vrot.slane %v7053_v16, 5  ;;  %v6889_v18 = vld [vmem:[#allocation2 + $0x88] sm:$0xf] }
 0x28e   :  { %v2771_v21 = vadd.f32 %v2770_v59, %v11938_v60  ;;  %v2808_v62 = vadd.f32 %v2793_v47, %v2792_v28  ;;  %2895 = vst [vmem:[%s12646_s3 + $0x10] sm:$0xf] %v8564_v31  ;;  %v7047_v37 = vrot.slane %v7045_v1, 5  ;;  %v12043_v49 = vadd.f32 %v12755_v17, %v11951_v20  ;;  %v12045_v16 = vld [vmem:[#allocation2 + $0x8c] sm:$0x1]  ;;  %v12052_v31 = vpop.f32.mrf.mxu1 }
 0x28f   :  { %v7042_v2 = vor.u32 %v7041_v52, %v7038_v3  ;;  %v7056_v46 = vor.u32 %v7055_v44, %v7052_v13  ;;  %v7064_v25 = vshrl.u32 %v6887_v43, 16  ;;  %v7067_v41 = vshll.u32 %v6887_v43, 16  ;;  %v7335_v47 = vld [vmem:[#allocation2 + $0x40] sm:$0xe]  ;;  %12757 = vst [vmem:[#allocation19_spill] sm:$0xff] %v12052_v31 }
 0x290   :  { %v2809_v60 = vadd.f32 %v2808_v62, %v2794_v63  ;;  %v7061_v28 = vrot.slane %v7059_v5, 5  ;;  %v8569_v59 = vpack.c.bf16 %v12043_v49, %v12043_v49  ;;  %v7073_v1 = vshll.u32 %v12033_v42, 16  ;;  %v12758_v44 = vld [vmem:[#allocation27_spill] sm:$0xff]  ;;  %v7336_v62 = vld [vmem:[#allocation2 + $0x48] sm:$0xe] }
 0x291   :  { %v7043_v20 = vrot.slane %v7042_v2, 4  ;;  %v7057_v3 = vrot.slane %v7056_v46, 4  ;;  %v7066_v52 = vrot.slane %v7064_v25, 4  ;;  %v7069_v13 = vrot.slane %v7067_v41, 5  ;;  %v7337_v46 = vld [vmem:[#allocation2 + $0x60] sm:$0xe] }
 0x292   :  { %v12056_v17 = vadd.f32 %v12758_v44, %v11820_v32  ;;  %2900 = vst [vmem:[%s12646_s3 + $0x60] sm:$0xf] %v8569_v59  ;;  %v7078_v63 = vshrl.u32 %v6889_v18, 16  ;;  %v7081_v5 = vshll.u32 %v6889_v18, 16  ;;  %v7087_v43 = vshll.u32 %v12045_v16, 16  ;;  %v12066_v32 = vpop.f32.mrf.mxu0  ;;  %v12068_v18 = vpop.f32.mrf.mxu1 }
 0x293   :  { %v7048_v24 = vsel %vm9771_vm3, %v7043_v20, %v7047_v37  ;;  %v7062_v25 = vsel %vm9771_vm3, %v7057_v3, %v7061_v28  ;;  %v7070_v41 = vor.u32 %v7069_v13, %v7066_v52  ;;  %v8473_v2 = vrot.slane %v7335_v47, 9  ;;  %v7338_v31 = vld [vmem:[#allocation2 + $0x68] sm:$0xe] }
 0x294   :  { %v8456_v44 = vcombine.low %v7048_v24, %v7062_v25  ;;  %v7075_v53 = vrot.slane %v7073_v1, 5  ;;  %v7080_v23 = vrot.slane %v7078_v63, 4  ;;  %v7083_v59 = vrot.slane %v7081_v5, 5 }
 0x295   :  { %v7071_v26 = vrot.slane %v7070_v41, 4  ;;  %v7403_v12 = vrot.slane %v11904_v34, 5  ;;  %v8474_v0 = vrot.slane %v7336_v62, 9  ;;  %v7407_v37 = vrot.slane %v11924_v39, 5  ;;  %v12079_v34 = vpop.f32.mrf.mxu0 }
 0x296   :  { %9464 = vmatmul.mubr.bf16.gmra.mxu0 %v8456_v44  ;;  %v7084_v28 = vor.u32 %v7083_v59, %v7080_v23  ;;  %v7089_v20 = vrot.slane %v7087_v43, 5  ;;  %v8475_v47 = vrot.slane %v7337_v46, 9  ;;  %v7411_v3 = vrot.slane %v11930_v22, 5  ;;  %v12084_v22 = vpop.f32.mrf.mxu1  ;;  %v12108_v59 = vld [vmem:[#allocation2 + $0x94] sm:$0x1] }
 0x297   :  { %v7076_v24 = vsel %vm9771_vm3, %v7071_v26, %v7075_v53  ;;  %v7404_v1 = vsel %vm10604_vm13, %v8473_v2, %v7403_v12  ;;  %v7408_v52 = vsel %vm10604_vm13, %v8474_v0, %v7407_v37  ;;  %v8476_v13 = vrot.slane %v7338_v31, 9  ;;  %v12759_v12 = vld [vmem:[#allocation26_spill] sm:$0xff]  ;;  %v12092_v43 = vpop.f32.mrf.mxu0  ;;  %v12761_v2 = vld [vmem:[#allocation28_spill] sm:$0xff] }
 0x298   :  { %v7085_v63 = vrot.slane %v7084_v28, 4  ;;  %v8502_v39 = vcombine.low %v7404_v1, %v7408_v52  ;;  %v7412_v23 = vsel %vm10604_vm13, %v8475_v47, %v7411_v3  ;;  %v7415_v5 = vrot.slane %v11940_v56, 5  ;;  %v12760_v56 = vld [vmem:[#allocation29_spill] sm:$0xff]  ;;  %v6893_v47 = vld [vmem:[#allocation2 + $0x98] sm:$0xf] }
 0x299   :  { %v2798_v53 = vmul.f32 %v12043_v49, %v12043_v49  ;;  %v2758_v26 = vadd.f32 %v12759_v12, %v11985_v14  ;;  %v2772_v0 = vadd.f32 %v2771_v21, %v11991_v33  ;;  %v2810_v31 = vadd.f32 %v2809_v60, %v12031_v57  ;;  %v6891_v33 = vld [vmem:[#allocation2 + $0x90] sm:$0xf]  ;;  %v12106_v21 = vpop.f32.mrf.mxu1  ;;  %v12110_v37 = vpop.f32.mrf.mxu0 }
 0x29a   :  { %v7090_v62 = vsel %vm9771_vm3, %v7085_v63, %v7089_v20  ;;  %9492 = vmatmul.mubr.bf16.gmra.mxu1 %v8502_v39  ;;  %v12098_v25 = vadd.f32 %v12760_v56, %v11828_v38  ;;  %v7416_v41 = vsel %vm10604_vm13, %v8476_v13, %v7415_v5  ;;  %v12104_v14 = vadd.f32 %v12761_v2, %v12001_v11  ;;  %v7339_v63 = vld [vmem:[#allocation2 + $0x70] sm:$0xe] }
 0x29b   :  { %v8457_v57 = vcombine.low %v7076_v24, %v7090_v62  ;;  %v8503_v60 = vcombine.low %v7412_v23, %v7416_v41  ;;  %v2773_v46 = vadd.f32 %v2772_v0, %v2758_v26  ;;  %v2796_v44 = vmul.f32 %v2758_v26, %v2758_v26  ;;  %v12120_v3 = vpop.f32.mrf.mxu1 }
 0x29c   :  { %v8567_v38 = vpack.c.bf16 %v2758_v26, %v2758_v26  ;;  %v12114_v28 = vadd.f32 %v11568_v58, %v11832_v7  ;;  %v8570_v11 = vpack.c.bf16 %v12104_v14, %v12104_v14  ;;  %v2759_v20 = vadd.f32 %v11561_v50, %v12011_v54  ;;  %v12137_v26 = vpop.f32.mrf.mxu0 }
 0x29d   :  { %9467 = vmatprep.mubr.bf16.mxu0 %v8457_v57  ;;  %9495 = vmatprep.mubr.bf16.mxu1 %v8503_v60  ;;  %v2811_v24 = vadd.f32 %v2810_v31, %v2796_v44  ;;  %v12124_v1 = vadd.f32 %v11585_v6, %v11843_v61  ;;  %v7092_v52 = vshrl.u32 %v6891_v33, 16  ;;  %v7095_v13 = vshll.u32 %v6891_v33, 16  ;;  %v12133_v39 = vpop.f32.mrf.mxu1  ;;  %v12135_v6 = vld [vmem:[#allocation2 + $0x9c] sm:$0x1]  ;;  %v7340_v44 = vld [vmem:[#allocation2 + $0x78] sm:$0xe] }
 0x29e   :  { %2898 = vst [vmem:[%s12646_s3 + $0x40] sm:$0xf] %v8567_v38  ;;  %2901 = vst [vmem:[%s12646_s3 + $0x70] sm:$0xf] %v8570_v11  ;;  %v2774_v58 = vadd.f32 %v2773_v46, %v2759_v20  ;;  %v2797_v50 = vmul.f32 %v2759_v20, %v2759_v20  ;;  %v8568_v7 = vpack.c.bf16 %v2759_v20, %v2759_v20  ;;  %v7101_v54 = vshll.u32 %v12108_v59, 16  ;;  %v12762_v60 = vld [vmem:[#allocation30_spill] sm:$0xff] }
 0x29f   :  { %v7094_v61 = vrot.slane %v7092_v52, 4  ;;  %v7097_v23 = vrot.slane %v7095_v13, 5  ;;  %v7106_v5 = vshrl.u32 %v6893_v47, 16  ;;  %v7109_v12 = vshll.u32 %v6893_v47, 16  ;;  %v12146_v41 = vpop.f32.mrf.mxu1  ;;  %v7341_v47 = vld [vmem:[#allocation2 + $0x80] sm:$0xe] }
 0x2a0   :  { %v2799_v0 = vmul.f32 %v12104_v14, %v12104_v14  ;;  %v2775_v31 = vadd.f32 %v2774_v58, %v12043_v49  ;;  %v2812_v62 = vadd.f32 %v2811_v24, %v2797_v50  ;;  %2899 = vst [vmem:[%s12646_s3 + $0x50] sm:$0xf] %v8568_v7  ;;  %v7115_v56 = vshll.u32 %v12135_v6, 16  ;;  %v7342_v7 = vld [vmem:[#allocation2 + $0x88] sm:$0xe] }
 0x2a1   :  { %v7098_v2 = vor.u32 %v7097_v23, %v7094_v61  ;;  %v7108_v33 = vrot.slane %v7106_v5, 4  ;;  %v7111_v57 = vrot.slane %v7109_v12, 5  ;;  %v12150_v46 = vadd.f32 %v12762_v60, %v12056_v17  ;;  %v12153_v24 = vpop.f32.mrf.mxu1  ;;  %v12157_v61 = vpop.f32.mrf.mxu0  ;;  %v12763_v17 = vld [vmem:[#allocation33_spill] sm:$0xff] }
 0x2a2   :  { %v2813_v38 = vadd.f32 %v2812_v62, %v2798_v53  ;;  %v7103_v11 = vrot.slane %v7101_v54, 5  ;;  %v8477_v49 = vrot.slane %v7339_v63, 9  ;;  %v7419_v20 = vrot.slane %v12003_v55, 5 }
 0x2a3   :  { %v7099_v52 = vrot.slane %v7098_v2, 4  ;;  %v7112_v13 = vor.u32 %v7111_v57, %v7108_v33  ;;  %v7117_v58 = vrot.slane %v7115_v56, 5  ;;  %v8573_v50 = vpack.c.bf16 %v12150_v46, %v12150_v46  ;;  %v12164_v63 = vpop.f32.mrf.mxu1  ;;  %v12764_v57 = vld [vmem:[#allocation31_spill] sm:$0xff] }
 0x2a4   :  { %v2526_v23 = vadd.f32 %v12763_v17, %v11868_v8  ;;  %v7420_v53 = vsel %vm10604_vm13, %v8477_v49, %v7419_v20  ;;  %v8478_v54 = vrot.slane %v7340_v44, 9  ;;  %v7423_v55 = vrot.slane %v12005_v51, 5  ;;  %v12172_v8 = vpop.f32.mrf.mxu0 }
 0x2a5   :  { %v7104_v5 = vsel %vm9771_vm3, %v7099_v52, %v7103_v11  ;;  %v7113_v12 = vrot.slane %v7112_v13, 4  ;;  %2904 = vst [vmem:[%s12646_s3 + $0xa0] sm:$0xf] %v8573_v50  ;;  %v8479_v62 = vrot.slane %v7341_v47, 9  ;;  %v7427_v56 = vrot.slane %v12033_v42, 5  ;;  %v12179_v44 = vpop.f32.mrf.mxu1 }
 0x2a6   :  { %v7424_v2 = vsel %vm10604_vm13, %v8478_v54, %v7423_v55  ;;  %v8480_v33 = vrot.slane %v7342_v7, 9  ;;  %v7431_v51 = vrot.slane %v12045_v16, 5  ;;  %v2762_v60 = vadd.f32 %v12764_v57, %v12098_v25  ;;  %v12186_v47 = vpop.f32.mrf.mxu0  ;;  %v7343_v25 = vld [vmem:[#allocation2 + $0x90] sm:$0xe] }
 0x2a7   :  { %v7118_v11 = vsel %vm9771_vm3, %v7113_v12, %v7117_v58  ;;  %v8504_v49 = vcombine.low %v7420_v53, %v7424_v2  ;;  %v7428_v42 = vsel %vm10604_vm13, %v8479_v62, %v7427_v56  ;;  %v2776_v20 = vadd.f32 %v2775_v31, %v12104_v14  ;;  %v7344_v53 = vld [vmem:[#allocation2 + $0x98] sm:$0xe]  ;;  %v12765_v14 = vld [vmem:[#allocation35_spill] sm:$0xff]  ;;  %v12200_v62 = vpop.f32.mrf.mxu1  ;;  %v12768_v2 = vld [vmem:[#allocation36_spill] sm:$0xff] }
 0x2a8   :  { %v8458_v52 = vcombine.low %v7104_v5, %v7118_v11  ;;  %v7432_v16 = vsel %vm10604_vm13, %v8480_v33, %v7431_v51  ;;  %v2800_v13 = vmul.f32 %v2762_v60, %v2762_v60  ;;  %v2814_v50 = vadd.f32 %v2813_v38, %v2799_v0  ;;  %v12192_v54 = vpop.f32.mrf.mxu0  ;;  %v12766_v5 = vld [vmem:[#allocation32_spill] sm:$0xff]  ;;  %v12767_v0 = vld [vmem:[#allocation34_spill] sm:$0xff] }
 0x2a9   :  { %v2802_v7 = vmul.f32 %v12150_v46, %v12150_v46  ;;  %9496 = vmatmul.mubr.bf16.gmra.mxu1 %v8504_v49  ;;  %v8505_v29 = vcombine.low %v7428_v42, %v7432_v16  ;;  %v2777_v58 = vadd.f32 %v2776_v20, %v2762_v60  ;;  %v8571_v17 = vpack.c.bf16 %v2762_v60, %v2762_v60  ;;  %v12211_v49 = vpop.f32.mrf.mxu1 }
 0x2aa   :  { %9468 = vmatmul.mubr.bf16.gmra.mxu0 %v8458_v52  ;;  %v2524_v31 = vadd.f32 %v12765_v14, %v11902_v15  ;;  %v2815_v55 = vadd.f32 %v2814_v50, %v2800_v13  ;;  %v2765_v12 = vadd.f32 %v12766_v5, %v12114_v28  ;;  %v2763_v38 = vadd.f32 %v12767_v0, %v12124_v1  ;;  %v12209_v57 = vpop.f32.mrf.mxu0  ;;  %v12769_v13 = vld [vmem:[#allocation37_spill] sm:$0xff] }
 0x2ab   :  { %9499 = vmatprep.mubr.bf16.mxu1 %v8505_v29  ;;  %2902 = vst [vmem:[%s12646_s3 + $0x80] sm:$0xf] %v8571_v17  ;;  %v2527_v56 = vadd.f32 %v11639_v40, %v11914_v35  ;;  %v2768_v33 = vadd.f32 %v12768_v2, %v2526_v23  ;;  %v8481_v15 = vrot.slane %v7343_v25, 9  ;;  %v7435_v51 = vrot.slane %v12108_v59, 5 }
 0x2ac   :  { %v8574_v28 = vpack.c.bf16 %v2765_v12, %v2765_v12  ;;  %v2778_v60 = vadd.f32 %v2777_v58, %v2763_v38  ;;  %v2801_v1 = vmul.f32 %v2763_v38, %v2763_v38  ;;  %v8482_v11 = vrot.slane %v7344_v53, 9  ;;  %v12217_v35 = vpop.f32.mrf.mxu0 }
 0x2ad   :  { %v2525_v42 = vadd.f32 %v11651_v10, %v11934_v30  ;;  %v8572_v20 = vpack.c.bf16 %v2763_v38, %v2763_v38  ;;  %v8577_v52 = vpack.c.bf16 %v2768_v33, %v2768_v33  ;;  %v7436_v40 = vsel %vm10604_vm13, %v8481_v15, %v7435_v51 }
 0x2ae   :  { %2905 = vst [vmem:[%s12646_s3 + $0xb0] sm:$0xf] %v8574_v28  ;;  %v2779_v59 = vadd.f32 %v2778_v60, %v12150_v46  ;;  %v2816_v23 = vadd.f32 %v2815_v55, %v2801_v1  ;;  %v7439_v16 = vrot.slane %v12135_v6, 5  ;;  %v2766_v50 = vadd.f32 %v12769_v13, %v2524_v31  ;;  %v12233_v25 = vpop.f32.mrf.mxu0  ;;  %v12235_v46 = vpop.f32.mrf.mxu1 }
 0x2af   :  { %2903 = vst [vmem:[%s12646_s3 + $0x90] sm:$0xf] %v8572_v20  ;;  %2908 = vst [vmem:[%s12646_s3 + $0xe0] sm:$0xf] %v8577_v52  ;;  %v2769_v10 = vadd.f32 %v11673_v36, %v2527_v56  ;;  %v2767_v30 = vadd.f32 %v11712_v48, %v2525_v42  ;;  %v2803_v29 = vmul.f32 %v2765_v12, %v2765_v12  ;;  %v12771_v42 = vld [vmem:[#allocation44_spill] sm:$0xff]  ;;  %v12772_v52 = vld [vmem:[#allocation11_spill] sm:$0xff] }
 0x2b0   :  { %v2817_v6 = vadd.f32 %v2816_v23, %v2802_v7  ;;  %v7440_v58 = vsel %vm10604_vm13, %v8482_v11, %v7439_v16  ;;  %v2780_v17 = vadd.f32 %v2779_v59, %v2765_v12  ;;  %v2804_v14 = vmul.f32 %v2766_v50, %v2766_v50  ;;  %v12239_v5 = vpop.f32.mrf.mxu0  ;;  %v12247_v45 = vpop.f32.mrf.mxu1  ;;  %v12770_v11 = vld [vmem:[#allocation38_spill] sm:$0xff] }
 0x2b1   :  { %v8506_v53 = vcombine.low %v7436_v40, %v7440_v58  ;;  %v8575_v31 = vpack.c.bf16 %v2766_v50, %v2766_v50  ;;  %v8578_v55 = vpack.c.bf16 %v2769_v10, %v2769_v10  ;;  %v2805_v38 = vmul.f32 %v2767_v30, %v2767_v30  ;;  %v12773_v59 = vld [vmem:[#allocation10_spill] sm:$0xff]  ;;  %v12778_v58 = vld [vmem:[#allocation48_spill] sm:$0xff] }
 0x2b2   :  { %v2781_v0 = vadd.f32 %v2780_v17, %v2766_v50  ;;  %v2818_v36 = vadd.f32 %v2817_v6, %v2803_v29  ;;  %v8576_v48 = vpack.c.bf16 %v2767_v30, %v2767_v30  ;;  %v12249_v7 = vpop.f32.mrf.mxu0  ;;  %v3615_v2 = vadd.f32 %v11732_v9, %v11665_v27  ;;  %v12264_v16 = vpop.f32.mrf.mxu1  ;;  %v12777_v6 = vld [vmem:[#allocation40_spill] sm:$0xff] }
 0x2b3   :  { %9500 = vmatmul.mubr.bf16.gmra.mxu1 %v8506_v53  ;;  %2906 = vst [vmem:[%s12646_s3 + $0xc0] sm:$0xf] %v8575_v31  ;;  %2909 = vst [vmem:[%s12646_s3 + $0xf0] sm:$0xf] %v8578_v55  ;;  %v3607_v15 = vadd.f32 %v11748_v19, %v11683_v4  ;;  %v2806_v28 = vmul.f32 %v2768_v33, %v2768_v33  ;;  %v3618_v20 = vadd.f32 %v12771_v42, %v12770_v11  ;;  %v12774_v19 = vld [vmem:[#allocation5_spill] sm:$0xff]  ;;  %v12779_v53 = vld [vmem:[#allocation16_spill] sm:$0xff] }
 0x2b4   :  { %v2819_v12 = vadd.f32 %v2818_v36, %v2804_v14  ;;  %v2782_v56 = vadd.f32 %v2781_v0, %v2767_v30  ;;  %2907 = vst [vmem:[%s12646_s3 + $0xd0] sm:$0xf] %v8576_v48  ;;  %v12258_v51 = vpop.f32.mrf.mxu0  ;;  %v4121_v40 = vadd.f32 %v12772_v52, %v3615_v2  ;;  %v2807_v27 = vmul.f32 %v2769_v10, %v2769_v10  ;;  %v12775_v30 = vld [vmem:[#allocation39_spill] sm:$0xff]  ;;  %v12780_v31 = vld [vmem:[#allocation17_spill] sm:$0xff]  ;;  %v12277_v0 = vpop.f32.mrf.mxu1  ;;  %v12782_v48 = vld [vmem:[#allocation50_spill] sm:$0xff] }
 0x2b5   :  { %v4119_v23 = vadd.f32 %v12773_v59, %v3607_v15  ;;  %v4122_v50 = vadd.f32 %v12774_v19, %v3618_v20  ;;  %v3631_v17 = vadd.f32 %v12778_v58, %v12777_v6  ;;  %v12784_v15 = vld [vmem:[#allocation15_spill] sm:$0xff] }
 0x2b6   :  { %v2783_v60 = vadd.f32 %v2782_v56, %v2768_v33  ;;  %v2820_v1 = vadd.f32 %v2819_v12, %v2805_v38  ;;  %v12266_v13 = vpop.f32.mrf.mxu0  ;;  %v12776_v33 = vld [vmem:[#allocation46_spill] sm:$0xff]  ;;  %v4443_v14 = vadd.f32 %v12779_v53, %v4121_v40  ;;  %v12783_v56 = vld [vmem:[#allocation19_spill] sm:$0xff]  ;;  %v12288_v20 = vpop.f32.mrf.mxu1  ;;  %v12792_v53 = vld [vmem:[#allocation45_spill] sm:$0xff] }
 0x2b7   :  { %v3610_v29 = vadd.f32 %v12776_v33, %v12775_v30  ;;  %v4441_v55 = vadd.f32 %v12780_v31, %v4119_v23  ;;  %v4444_v2 = vadd.f32 %v12783_v56, %v4122_v50  ;;  %v12786_v40 = vld [vmem:[#allocation18_spill] sm:$0xff]  ;;  %v12789_v30 = vld [vmem:[#allocation43_spill] sm:$0xff]  ;;  %v12790_v33 = vld [vmem:[#allocation53_spill] sm:$0xff] }
 0x2b8   :  { %v12268_v9 = vadd.f32 %v2783_v60, %v2769_v10  ;;  %v2821_v4 = vadd.f32 %v2820_v1, %v2806_v28  ;;  %v12279_v36 = vpop.f32.mrf.mxu0  ;;  %v12781_v10 = vld [vmem:[#allocation41_spill] sm:$0xff]  ;;  %v12785_v60 = vld [vmem:[#allocation14_spill] sm:$0xff]  ;;  %v8581_v11 = vpack.c.bf16 %v4443_v14, %v4443_v14  ;;  %v3626_v6 = vadd.f32 %v12790_v33, %v12789_v30  ;;  %v12305_v58 = vpop.f32.mrf.mxu1  ;;  %v12793_v31 = vld [vmem:[#allocation55_spill] sm:$0xff] }
 0x2b9   :  { %v3623_v12 = vadd.f32 %v12782_v48, %v12781_v10  ;;  %v4120_v28 = vadd.f32 %v12784_v15, %v3610_v29  ;;  %v4125_v1 = vadd.f32 %v12785_v60, %v3631_v17  ;;  %v8579_v42 = vpack.c.bf16 %v4441_v55, %v4441_v55  ;;  %v12794_v48 = vld [vmem:[#allocation47_spill] sm:$0xff]  ;;  %v12796_v15 = vld [vmem:[#allocation49_spill] sm:$0xff]  ;;  %v12797_v60 = vld [vmem:[#allocation6_spill] sm:$0xff] }
 0x2ba   :  { %v12281_v38 = vadd.f32 %v2821_v4, %v2807_v27  ;;  %v12290_v52 = vpop.f32.mrf.mxu0  ;;  %v8582_v23 = vpack.c.bf16 %v4444_v2, %v4444_v2  ;;  %v12787_v27 = vld [vmem:[#allocation42_spill] sm:$0xff]  ;;  %v12788_v4 = vld [vmem:[#allocation52_spill] sm:$0xff]  ;;  %4583 = vst [vmem:[%s12646_s3 + $0x24] sm:$0xf] %v8581_v11  ;;  %v3647_v10 = vadd.f32 %v12793_v31, %v12792_v53  ;;  %v3650_v11 = vadd.f32 %v12797_v60, %v12796_v15 }
 0x2bb   :  { %v4123_v59 = vadd.f32 %v12786_v40, %v3623_v12  ;;  %v3634_v19 = vadd.f32 %v12788_v4, %v12787_v27  ;;  %4581 = vst [vmem:[%s12646_s3 + $0x4] sm:$0xf] %v8579_v42  ;;  %v4442_v50 = vadd.f32 %v12068_v18, %v4120_v28  ;;  %v4447_v29 = vadd.f32 %v12084_v22, %v4125_v1  ;;  %v12795_v12 = vld [vmem:[#allocation8_spill] sm:$0xff]  ;;  %v12799_v27 = vld [vmem:[#allocation51_spill] sm:$0xff] }
 0x2bc   :  { %v12307_v17 = vpop.f32.mrf.mxu0  ;;  %v3639_v56 = vadd.f32 %v12795_v12, %v12794_v48  ;;  %4584 = vst [vmem:[%s12646_s3 + $0x34] sm:$0xf] %v8582_v23  ;;  %v4479_v22 = vmul.f32 %v4441_v55, %v4441_v55  ;;  %v12800_v4 = vld [vmem:[#allocation4_spill] sm:$0xff]  ;;  %v4481_v33 = vmul.f32 %v4443_v14, %v4443_v14  ;;  %v4124_v12 = vadd.f32 %v12066_v32, %v3626_v6  ;;  %v12803_v23 = vld [vmem:[#allocation22_spill] sm:$0xff] }
 0x2bd   :  { %12791 = vst [vmem:[#allocation23_spill] sm:$0xff] %v12307_v17  ;;  %v4445_v18 = vadd.f32 %v12106_v21, %v4123_v59  ;;  %v4457_v28 = vadd.f32 %v4442_v50, %v4441_v55  ;;  %v4480_v1 = vmul.f32 %v4442_v50, %v4442_v50  ;;  %v8580_v42 = vpack.c.bf16 %v4442_v50, %v4442_v50  ;;  %v12801_v53 = vld [vmem:[#allocation20_spill] sm:$0xff]  ;;  %v12328_v55 = vpop.f32.mrf.mxu1  ;;  %v12802_v59 = vld [vmem:[#allocation9_spill] sm:$0xff] }
 0x2be   :  { %v12319_v40 = vpop.f32.mrf.mxu0  ;;  %v3642_v30 = vadd.f32 %v12800_v4, %v12799_v27  ;;  %v4126_v31 = vadd.f32 %v12801_v53, %v3634_v19  ;;  %v8585_v48 = vpack.c.bf16 %v4447_v29, %v4447_v29  ;;  %v3663_v50 = vadd.f32 %v12803_v23, %v12802_v59  ;;  %v12805_v27 = vld [vmem:[#allocation13_spill] sm:$0xff] }
 0x2bf   :  { %12798 = vst [vmem:[#allocation25_spill] sm:$0xff] %v12319_v40  ;;  %v4458_v15 = vadd.f32 %v4457_v28, %v4443_v14  ;;  %v4495_v60 = vadd.f32 %v4480_v1, %v4479_v22  ;;  %4582 = vst [vmem:[%s12646_s3 + $0x14] sm:$0xf] %v8580_v42  ;;  %v8583_v21 = vpack.c.bf16 %v4445_v18, %v4445_v18  ;;  %v12804_v40 = vld [vmem:[#allocation54_spill] sm:$0xff]  ;;  %v12343_v28 = vpop.f32.mrf.mxu1 }
 0x2c0   :  { %v3655_v4 = vadd.f32 %v12805_v27, %v12804_v40  ;;  %v4482_v17 = vmul.f32 %v4444_v2, %v4444_v2  ;;  %4587 = vst [vmem:[%s12646_s3 + $0x64] sm:$0xf] %v8585_v48  ;;  %v4448_v32 = vadd.f32 %v12120_v3, %v4126_v31  ;;  %v4129_v19 = vadd.f32 %v12079_v34, %v3647_v10  ;;  %v12345_v1 = vpop.f32.mrf.mxu0  ;;  %v12806_v48 = vld [vmem:[#allocation3_spill] sm:$0xff] }
 0x2c1   :  { %v4496_v14 = vadd.f32 %v4495_v60, %v4481_v33  ;;  %v4459_v6 = vadd.f32 %v4458_v15, %v4444_v2  ;;  %4585 = vst [vmem:[%s12646_s3 + $0x44] sm:$0xf] %v8583_v21  ;;  %v4446_v22 = vadd.f32 %v12133_v39, %v4124_v12  ;;  %v4127_v42 = vadd.f32 %v12092_v43, %v3639_v56  ;;  %v12349_v10 = vpop.f32.mrf.mxu1  ;;  %v12807_v15 = vld [vmem:[#allocation12_spill] sm:$0xff] }
 0x2c2   :  { %v4483_v40 = vmul.f32 %v4445_v18, %v4445_v18  ;;  %v4130_v53 = vadd.f32 %v12110_v37, %v3650_v11  ;;  %v8586_v3 = vpack.c.bf16 %v4448_v32, %v4448_v32  ;;  %v3666_v60 = vadd.f32 %v12807_v15, %v12806_v48  ;;  %v12365_v21 = vpop.f32.mrf.mxu0 }
 0x2c3   :  { %v4460_v33 = vadd.f32 %v4459_v6, %v4445_v18  ;;  %v4497_v31 = vadd.f32 %v4496_v14, %v4482_v17  ;;  %v4484_v34 = vmul.f32 %v4446_v22, %v4446_v22  ;;  %v8584_v2 = vpack.c.bf16 %v4446_v22, %v4446_v22  ;;  %v12363_v12 = vpop.f32.mrf.mxu1  ;;  %v12808_v6 = vld [vmem:[#allocation56_spill] sm:$0xff] }
 0x2c4   :  { %v4485_v39 = vmul.f32 %v4447_v29, %v4447_v29  ;;  %4588 = vst [vmem:[%s12646_s3 + $0x74] sm:$0xf] %v8586_v3  ;;  %v4451_v43 = vadd.f32 %v12146_v41, %v4129_v19  ;;  %v4449_v56 = vadd.f32 %v12153_v24, %v4127_v42  ;;  %v4128_v11 = vadd.f32 %v12137_v26, %v3642_v30 }
 0x2c5   :  { %v4498_v37 = vadd.f32 %v4497_v31, %v4483_v40  ;;  %v4461_v17 = vadd.f32 %v4460_v33, %v4446_v22  ;;  %4586 = vst [vmem:[%s12646_s3 + $0x54] sm:$0xf] %v8584_v2  ;;  %v4452_v18 = vadd.f32 %v12164_v63, %v4130_v53  ;;  %v4133_v59 = vadd.f32 %v12157_v61, %v3663_v50  ;;  %v12370_v19 = vpop.f32.mrf.mxu1  ;;  %v12809_v22 = vld [vmem:[#allocation7_spill] sm:$0xff]  ;;  %v12387_v40 = vpop.f32.mrf.mxu0 }
 0x2c6   :  { %v8589_v23 = vpack.c.bf16 %v4451_v43, %v4451_v43  ;;  %v4131_v41 = vadd.f32 %v12172_v8, %v3655_v4  ;;  %v8587_v24 = vpack.c.bf16 %v4449_v56, %v4449_v56  ;;  %v4134_v26 = vadd.f32 %v12186_v47, %v3666_v60 }
 0x2c7   :  { %v4462_v27 = vadd.f32 %v4461_v17, %v4447_v29  ;;  %v4499_v14 = vadd.f32 %v4498_v37, %v4484_v34  ;;  %v8590_v30 = vpack.c.bf16 %v4452_v18, %v4452_v18  ;;  %v3658_v63 = vadd.f32 %v12809_v22, %v12808_v6  ;;  %v12389_v53 = vpop.f32.mrf.mxu1 }
 0x2c8   :  { %4591 = vst [vmem:[%s12646_s3 + $0xa4] sm:$0xf] %v8589_v23  ;;  %4589 = vst [vmem:[%s12646_s3 + $0x84] sm:$0xf] %v8587_v24  ;;  %v4450_v61 = vadd.f32 %v12179_v44, %v4128_v11  ;;  %v4455_v8 = vadd.f32 %v12200_v62, %v4133_v59  ;;  %v4453_v47 = vadd.f32 %v12211_v49, %v4131_v41 }
 0x2c9   :  { %v4486_v29 = vmul.f32 %v4448_v32, %v4448_v32  ;;  %v4500_v50 = vadd.f32 %v4499_v14, %v4485_v39  ;;  %v4463_v4 = vadd.f32 %v4462_v27, %v4448_v32  ;;  %4592 = vst [vmem:[%s12646_s3 + $0xb4] sm:$0xf] %v8590_v30  ;;  %v4456_v42 = vadd.f32 %v12235_v46, %v4134_v26  ;;  %v12404_v60 = vpop.f32.mrf.mxu1 }
 0x2ca   :  { %v4487_v3 = vmul.f32 %v4449_v56, %v4449_v56  ;;  %v4132_v44 = vadd.f32 %v12192_v54, %v3658_v63  ;;  %v8588_v33 = vpack.c.bf16 %v4450_v61, %v4450_v61  ;;  %v8593_v62 = vpack.c.bf16 %v4455_v8, %v4455_v8  ;;  %v12402_v54 = vpop.f32.mrf.mxu0 }
 0x2cb   :  { %v4464_v31 = vadd.f32 %v4463_v4, %v4449_v56  ;;  %v4501_v49 = vadd.f32 %v4500_v50, %v4486_v29  ;;  %v4488_v34 = vmul.f32 %v4450_v61, %v4450_v61  ;;  %v8591_v2 = vpack.c.bf16 %v4453_v47, %v4453_v47  ;;  %v12415_v24 = vpop.f32.mrf.mxu1 }
 0x2cc   :  { %4590 = vst [vmem:[%s12646_s3 + $0x94] sm:$0xf] %v8588_v33  ;;  %4595 = vst [vmem:[%s12646_s3 + $0xe4] sm:$0xf] %v8593_v62  ;;  %v8594_v46 = vpack.c.bf16 %v4456_v42, %v4456_v42  ;;  %v4454_v32 = vadd.f32 %v12247_v45, %v4132_v44  ;;  %v4489_v56 = vmul.f32 %v4451_v43, %v4451_v43  ;;  %v2785_v45 = vrot.slane %v12268_v9, 4  ;;  %v12413_v41 = vpop.f32.mrf.mxu0 }
 0x2cd   :  { %v4502_v48 = vadd.f32 %v4501_v49, %v4487_v3  ;;  %v4465_v15 = vadd.f32 %v4464_v31, %v4450_v61  ;;  %4593 = vst [vmem:[%s12646_s3 + $0xc4] sm:$0xf] %v8591_v2  ;;  %v4490_v17 = vmul.f32 %v4452_v18, %v4452_v18  ;;  %v2823_v27 = vrot.slane %v12281_v38, 4 }
 0x2ce   :  { %4596 = vst [vmem:[%s12646_s3 + $0xf4] sm:$0xf] %v8594_v46  ;;  %v8592_v39 = vpack.c.bf16 %v4454_v32, %v4454_v32  ;;  %v4491_v26 = vmul.f32 %v4453_v47, %v4453_v47  ;;  %v2786_v6 = vadd.f32 %v2785_v45, %v12268_v9  ;;  %v4494_v31 = vmul.f32 %v4456_v42, %v4456_v42 }
 0x2cf   :  { %v4466_v37 = vadd.f32 %v4465_v15, %v4451_v43  ;;  %v4503_v11 = vadd.f32 %v4502_v48, %v4488_v34  ;;  %v4492_v43 = vmul.f32 %v4454_v32, %v4454_v32  ;;  %v2824_v50 = vadd.f32 %v2823_v27, %v12281_v38 }
 0x2d0   :  { %4594 = vst [vmem:[%s12646_s3 + $0xd4] sm:$0xf] %v8592_v39  ;;  %v2787_v62 = vrot.slane %v2786_v6, 2  ;;  %v5203_v9 = vadd.f32 %v12264_v16, %v12209_v57 }
 0x2d1   :  { %v4504_v59 = vadd.f32 %v4503_v11, %v4489_v56  ;;  %v4467_v23 = vadd.f32 %v4466_v37, %v4452_v18  ;;  %v4493_v18 = vmul.f32 %v4455_v8, %v4455_v8  ;;  %v2825_v2 = vrot.slane %v2824_v50, 2 }
 0x2d2   :  { %v9329_v61 = vpop.f32.mrf.mxu0  ;;  %v12419_v29 = vpop.f32.mrf.mxu1  ;;  %v2788_v39 = vadd.f32 %v2787_v62, %v2786_v6  ;;  %v5206_v11 = vadd.f32 %v12288_v20, %v12233_v25 }
 0x2d3   :  { %v4468_v14 = vadd.f32 %v4467_v23, %v4453_v47  ;;  %v4505_v30 = vadd.f32 %v4504_v59, %v4490_v17  ;;  %v5710_v15 = vadd.f32 %v9329_v61, %v5203_v9  ;;  %v2826_v57 = vadd.f32 %v2825_v2, %v2824_v50 }
 0x2d4   :  { %v5645_v44 = vpop.f32.mrf.mxu0  ;;  %v12422_v33 = vpop.f32.mrf.mxu1 }
 0x2d5   :  { %v4506_v22 = vadd.f32 %v4505_v30, %v4491_v26  ;;  %v4469_v63 = vadd.f32 %v4468_v14, %v4454_v32  ;;  %v5198_v14 = vadd.f32 %v12305_v58, %v12239_v5  ;;  %v2789_v30 = vrot.slane %v2788_v39, 1 }
 0x2d6   :  { %v12424_v34 = vpop.f32.mrf.mxu1  ;;  %v9330_v48 = vpop.f32.mrf.mxu0  ;;  %v2827_v61 = vrot.slane %v2826_v57, 1 }
 0x2d7   :  { %v4470_v4 = vadd.f32 %v4469_v63, %v4455_v8  ;;  %v4507_v3 = vadd.f32 %v4506_v22, %v4492_v43  ;;  %v5195_v8 = vadd.f32 %v12277_v0, %v12217_v35  ;;  %v5711_v26 = vadd.f32 %v9330_v48, %v5206_v11 }
 0x2d8   :  { %v12428_v38 = vpop.f32.mrf.mxu1  ;;  %v5648_v23 = vpop.f32.mrf.mxu0 }
 0x2d9   :  { %v4471_v47 = vadd.f32 %v4470_v4, %v4456_v42  ;;  %v4508_v49 = vadd.f32 %v4507_v3, %v4493_v18  ;;  %v5708_v45 = vadd.f32 %v5645_v44, %v5195_v8  ;;  %v5709_v63 = vadd.f32 %v5648_v23, %v5198_v14 }
 0x2da   :  { %v9361_v42 = vpop.f32.mrf.mxu1  ;;  %v2790_v3 = vadd.f32 %v2789_v30, %v2788_v39  ;;  %v5219_v8 = vadd.f32 %v12328_v55, %v12249_v7  ;;  %v5214_v30 = vadd.f32 %v12363_v12, %v12279_v36  ;;  %v12810_v36 = vld [vmem:[#allocation23_spill] sm:$0xff] }
 0x2db   :  { %v4472_v46 = vrot.slane %v4471_v47, 4  ;;  %v4509_v32 = vadd.f32 %v4508_v49, %v4494_v31  ;;  %v5952_v17 = vadd.f32 %v9361_v42, %v5710_v15  ;;  %v5227_v12 = vadd.f32 %v12389_v53, %v12810_v36 }
 0x2dc   :  { %v5887_v27 = vpop.f32.mrf.mxu1  ;;  %v5230_v53 = vadd.f32 %v12415_v24, %v12345_v1  ;;  %v5246_v36 = vadd.f32 %v12428_v38, %v12413_v41 }
 0x2dd   :  { %v4473_v56 = vadd.f32 %v4472_v46, %v4471_v47  ;;  %v4510_v37 = vrot.slane %v4509_v32, 4  ;;  %v8597_v35 = vpack.c.bf16 %v5952_v17, %v5952_v17  ;;  %v5950_v0 = vadd.f32 %v5887_v27, %v5708_v45 }
 0x2de   :  { %v9362_v22 = vpop.f32.mrf.mxu1  ;;  %v2828_v46 = vadd.f32 %v2827_v61, %v2826_v57  ;;  %v5211_v45 = vadd.f32 %v12343_v28, %v12258_v51 }
 0x2df   :  { %v4474_v16 = vrot.slane %v4473_v56, 2  ;;  %v4511_v59 = vadd.f32 %v4510_v37, %v4509_v32  ;;  %8341 = vst [vmem:[%s12646_s3 + $0x28] sm:$0xf] %v8597_v35  ;;  %v8595_v25 = vpack.c.bf16 %v5950_v0, %v5950_v0  ;;  %v5953_v20 = vadd.f32 %v9362_v22, %v5711_v26 }
 0x2e0   :  { %v5890_v4 = vpop.f32.mrf.mxu1  ;;  %v5988_v47 = vmul.f32 %v5950_v0, %v5950_v0 }
 0x2e1   :  { %v4475_v43 = vadd.f32 %v4474_v16, %v4473_v56  ;;  %v4512_v6 = vrot.slane %v4511_v59, 2  ;;  %8339 = vst [vmem:[%s12646_s3 + $0x8] sm:$0xf] %v8595_v25  ;;  %v8598_v5 = vpack.c.bf16 %v5953_v20, %v5953_v20  ;;  %v5951_v58 = vadd.f32 %v5890_v4, %v5709_v63 }
 0x2e2   :  { %v9365_v31 = vpop.f32.mrf.mxu1  ;;  %v5990_v56 = vmul.f32 %v5952_v17, %v5952_v17  ;;  %v5991_v23 = vmul.f32 %v5953_v20, %v5953_v20 }
 0x2e3   :  { %v4476_v50 = vrot.slane %v4475_v43, 1  ;;  %v4513_v18 = vadd.f32 %v4512_v6, %v4511_v59  ;;  %8342 = vst [vmem:[%s12646_s3 + $0x38] sm:$0xf] %v8598_v5  ;;  %v5966_v49 = vadd.f32 %v5951_v58, %v5950_v0  ;;  %v5989_v9 = vmul.f32 %v5951_v58, %v5951_v58 }
 0x2e4   :  { %v8596_v2 = vpack.c.bf16 %v5951_v58, %v5951_v58  ;;  %v5903_v15 = vpop.f32.mrf.mxu1 }
 0x2e5   :  { %v4477_v44 = vadd.f32 %v4476_v50, %v4475_v43  ;;  %v4514_v62 = vrot.slane %v4513_v18, 1  ;;  %v9333_v39 = vpop.f32.mrf.mxu0  ;;  %v5967_v37 = vadd.f32 %v5966_v49, %v5952_v17  ;;  %v6004_v42 = vadd.f32 %v5989_v9, %v5988_v47 }
 0x2e6   :  { %8340 = vst [vmem:[%s12646_s3 + $0x18] sm:$0xf] %v8596_v2  ;;  %v5714_v57 = vadd.f32 %v9333_v39, %v5219_v8  ;;  %v9366_v16 = vpop.f32.mrf.mxu1  ;;  %v5222_v17 = vadd.f32 %v12349_v10, %v12266_v13  ;;  %v5235_v13 = vadd.f32 %v12370_v19, %v12290_v52  ;;  %v12811_v19 = vld [vmem:[#allocation25_spill] sm:$0xff] }
 0x2e7   :  { %v12445_v32 = vadd.f32 %v4477_v44, %v2790_v3  ;;  %v4515_v48 = vadd.f32 %v4514_v62, %v4513_v18  ;;  %v5661_v59 = vpop.f32.mrf.mxu0  ;;  %v6005_v27 = vadd.f32 %v6004_v42, %v5990_v56  ;;  %v5968_v7 = vadd.f32 %v5967_v37, %v5953_v20 }
 0x2e8   :  { %v5712_v55 = vadd.f32 %v5661_v59, %v5211_v45  ;;  %v5956_v14 = vadd.f32 %v9365_v31, %v5714_v57  ;;  %v5906_v26 = vpop.f32.mrf.mxu1  ;;  %v5238_v2 = vadd.f32 %v12404_v60, %v12811_v19 }
 0x2e9   :  { %v12452_v11 = vadd.f32 %v4515_v48, %v2828_v46  ;;  %v9334_v35 = vpop.f32.mrf.mxu0  ;;  %v6006_v0 = vadd.f32 %v6005_v27, %v5991_v23 }
 0x2ea   :  { %v8601_v43 = vpack.c.bf16 %v5956_v14, %v5956_v14  ;;  %v5954_v6 = vadd.f32 %v5903_v15, %v5712_v55  ;;  %v9369_v51 = vpop.f32.mrf.mxu1  ;;  %v5715_v28 = vadd.f32 %v9334_v35, %v5222_v17  ;;  %v5994_v8 = vmul.f32 %v5956_v14, %v5956_v14 }
 0x2eb   :  { %v5664_v22 = vpop.f32.mrf.mxu0  ;;  %v5251_v17 = vadd.f32 %v12419_v29, %v12365_v21 }
 0x2ec   :  { %v5713_v63 = vadd.f32 %v5664_v22, %v5214_v30  ;;  %8345 = vst [vmem:[%s12646_s3 + $0x68] sm:$0xf] %v8601_v43  ;;  %v5969_v25 = vadd.f32 %v5968_v7, %v5954_v6  ;;  %v5992_v20 = vmul.f32 %v5954_v6, %v5954_v6  ;;  %v8599_v61 = vpack.c.bf16 %v5954_v6, %v5954_v6  ;;  %v5919_v50 = vpop.f32.mrf.mxu1 }
 0x2ed   :  { %v9337_v10 = vpop.f32.mrf.mxu0  ;;  %v5957_v18 = vadd.f32 %v9366_v16, %v5715_v28  ;;  %v5243_v28 = vadd.f32 %v12422_v33, %v12387_v40 }
 0x2ee   :  { %v6007_v4 = vadd.f32 %v6006_v0, %v5992_v20  ;;  %8343 = vst [vmem:[%s12646_s3 + $0x48] sm:$0xf] %v8599_v61  ;;  %v5955_v5 = vadd.f32 %v5906_v26, %v5713_v63  ;;  %v9370_v58 = vpop.f32.mrf.mxu1  ;;  %v5718_v3 = vadd.f32 %v9337_v10, %v5235_v13  ;;  %v5254_v13 = vadd.f32 %v12424_v34, %v12402_v54 }
 0x2ef   :  { %v5677_v44 = vpop.f32.mrf.mxu0  ;;  %v8602_v62 = vpack.c.bf16 %v5957_v18, %v5957_v18  ;;  %v5995_v57 = vmul.f32 %v5957_v18, %v5957_v18 }
 0x2f0   :  { %v5716_v31 = vadd.f32 %v5677_v44, %v5227_v12  ;;  %v5970_v47 = vadd.f32 %v5969_v25, %v5955_v5  ;;  %v5993_v49 = vmul.f32 %v5955_v5, %v5955_v5  ;;  %v8600_v9 = vpack.c.bf16 %v5955_v5, %v5955_v5  ;;  %v5922_v52 = vpop.f32.mrf.mxu1 }
 0x2f1   :  { %v9338_v46 = vpop.f32.mrf.mxu0  ;;  %8346 = vst [vmem:[%s12646_s3 + $0x78] sm:$0xf] %v8602_v62  ;;  %v5960_v48 = vadd.f32 %v9369_v51, %v5718_v3 }
 0x2f2   :  { %v5971_v15 = vadd.f32 %v5970_v47, %v5956_v14  ;;  %v6008_v39 = vadd.f32 %v6007_v4, %v5993_v49  ;;  %8344 = vst [vmem:[%s12646_s3 + $0x58] sm:$0xf] %v8600_v9  ;;  %v5958_v56 = vadd.f32 %v5919_v50, %v5716_v31  ;;  %v5719_v42 = vadd.f32 %v9338_v46, %v5238_v2 }
 0x2f3   :  { %v5680_v60 = vpop.f32.mrf.mxu0  ;;  %v8605_v45 = vpack.c.bf16 %v5960_v48, %v5960_v48  ;;  %v5998_v63 = vmul.f32 %v5960_v48, %v5960_v48 }
 0x2f4   :  { %v5717_v1 = vadd.f32 %v5680_v60, %v5230_v53  ;;  %v6009_v24 = vadd.f32 %v6008_v39, %v5994_v8  ;;  %v5972_v16 = vadd.f32 %v5971_v15, %v5957_v18  ;;  %v8603_v59 = vpack.c.bf16 %v5958_v56, %v5958_v56 }
 0x2f5   :  { %8349 = vst [vmem:[%s12646_s3 + $0xa8] sm:$0xf] %v8605_v45  ;;  %v5961_v23 = vadd.f32 %v9370_v58, %v5719_v42  ;;  %v5996_v7 = vmul.f32 %v5958_v56, %v5958_v56 }
 0x2f6   :  { %v9373_v37 = vpop.f32.mrf.mxu1  ;;  %v5973_v27 = vadd.f32 %v5972_v16, %v5958_v56  ;;  %v6010_v55 = vadd.f32 %v6009_v24, %v5995_v57  ;;  %v5959_v14 = vadd.f32 %v5922_v52, %v5717_v1  ;;  %8347 = vst [vmem:[%s12646_s3 + $0x88] sm:$0xf] %v8603_v59 }
 0x2f7   :  { %v8606_v35 = vpack.c.bf16 %v5961_v23, %v5961_v23  ;;  %v5999_v33 = vmul.f32 %v5961_v23, %v5961_v23 }
 0x2f8   :  { %v5935_v26 = vpop.f32.mrf.mxu1  ;;  %v6011_v30 = vadd.f32 %v6010_v55, %v5996_v7  ;;  %v5974_v43 = vadd.f32 %v5973_v27, %v5959_v14  ;;  %v5997_v6 = vmul.f32 %v5959_v14, %v5959_v14  ;;  %v8604_v51 = vpack.c.bf16 %v5959_v14, %v5959_v14 }
 0x2f9   :  { %8350 = vst [vmem:[%s12646_s3 + $0xb8] sm:$0xf] %v8606_v35 }
 0x2fa   :  { %v5975_v29 = vadd.f32 %v5974_v43, %v5960_v48  ;;  %v6012_v25 = vadd.f32 %v6011_v30, %v5997_v6  ;;  %8348 = vst [vmem:[%s12646_s3 + $0x98] sm:$0xf] %v8604_v51  ;;  %v9374_v20 = vpop.f32.mrf.mxu1 }
 0x2fc   :  { %v9341_v0 = vpop.f32.mrf.mxu0  ;;  %v6013_v10 = vadd.f32 %v6012_v25, %v5998_v63  ;;  %v5976_v18 = vadd.f32 %v5975_v29, %v5961_v23  ;;  %v5938_v44 = vpop.f32.mrf.mxu1 }
 0x2fd   :  { %v5722_v22 = vadd.f32 %v9341_v0, %v5251_v17 }
 0x2fe   :  { %v5693_v21 = vpop.f32.mrf.mxu0  ;;  %v6014_v3 = vadd.f32 %v6013_v10, %v5999_v33 }
 0x2ff   :  { %v5720_v61 = vadd.f32 %v5693_v21, %v5243_v28  ;;  %v5964_v50 = vadd.f32 %v9373_v37, %v5722_v22 }
 0x300   :  { %v9342_v40 = vpop.f32.mrf.mxu0 }
 0x301   :  { %v8609_v12 = vpack.c.bf16 %v5964_v50, %v5964_v50  ;;  %v5962_v4 = vadd.f32 %v5935_v26, %v5720_v61  ;;  %v5723_v5 = vadd.f32 %v9342_v40, %v5254_v13  ;;  %v6002_v48 = vmul.f32 %v5964_v50, %v5964_v50 }
 0x302   :  { %v5696_v58 = vpop.f32.mrf.mxu0 }
 0x303   :  { %v5721_v62 = vadd.f32 %v5696_v58, %v5246_v36  ;;  %8353 = vst [vmem:[%s12646_s3 + $0xe8] sm:$0xf] %v8609_v12  ;;  %v5977_v31 = vadd.f32 %v5976_v18, %v5962_v4  ;;  %v6000_v54 = vmul.f32 %v5962_v4, %v5962_v4  ;;  %v8607_v34 = vpack.c.bf16 %v5962_v4, %v5962_v4 }
 0x304   :  { %v5965_v49 = vadd.f32 %v9374_v20, %v5723_v5 }
 0x305   :  { %v12503_v47 = vpop.f32.mrf.mxu0  ;;  %v6015_v9 = vadd.f32 %v6014_v3, %v6000_v54  ;;  %8351 = vst [vmem:[%s12646_s3 + $0xc8] sm:$0xf] %v8607_v34  ;;  %v5963_v41 = vadd.f32 %v5938_v44, %v5721_v62 }
 0x306   :  { %v8610_v52 = vpack.c.bf16 %v5965_v49, %v5965_v49  ;;  %v6003_v37 = vmul.f32 %v5965_v49, %v5965_v49 }
 0x307   :  { %v12508_v38 = vpop.f32.mrf.mxu0  ;;  %v5978_v19 = vadd.f32 %v5977_v31, %v5963_v41  ;;  %v6001_v2 = vmul.f32 %v5963_v41, %v5963_v41  ;;  %v8608_v53 = vpack.c.bf16 %v5963_v41, %v5963_v41 }
 0x308   :  { %8354 = vst [vmem:[%s12646_s3 + $0xf8] sm:$0xf] %v8610_v52 }
 0x309   :  { %v9394_v46 = vpop.f32.mrf.mxu0  ;;  %v5979_v8 = vadd.f32 %v5978_v19, %v5964_v50  ;;  %v6016_v15 = vadd.f32 %v6015_v9, %v6001_v2  ;;  %8352 = vst [vmem:[%s12646_s3 + $0xd8] sm:$0xf] %v8608_v53 }
 0x30b   :  { %v6626_v39 = vpop.f32.mrf.mxu0  ;;  %v9425_v56 = vpop.f32.mrf.mxu1  ;;  %v5980_v42 = vadd.f32 %v5979_v8, %v5965_v49  ;;  %v6017_v60 = vadd.f32 %v6016_v15, %v6002_v48 }
 0x30c   :  { %v6809_v34 = vadd.f32 %v9425_v56, %v12503_v47 }
 0x30d   :  { %v6800_v57 = vpop.f32.mrf.mxu1  ;;  %v5981_v1 = vrot.slane %v5980_v42, 4  ;;  %v6018_v24 = vadd.f32 %v6017_v60, %v6003_v37 }
 0x30e   :  { %v12516_v45 = vpop.f32.mrf.mxu0  ;;  %v6801_v9 = vadd.f32 %v6800_v57, %v12508_v38 }
 0x30f   :  { %v5982_v59 = vadd.f32 %v5981_v1, %v5980_v42  ;;  %v6019_v23 = vrot.slane %v6018_v24, 4  ;;  %v9426_v27 = vpop.f32.mrf.mxu1 }
 0x310   :  { %v12518_v16 = vpop.f32.mrf.mxu0  ;;  %v6812_v19 = vadd.f32 %v9426_v27, %v9394_v46 }
 0x311   :  { %v5983_v7 = vrot.slane %v5982_v59, 2  ;;  %v6020_v55 = vadd.f32 %v6019_v23, %v6018_v24  ;;  %v6803_v35 = vpop.f32.mrf.mxu1 }
 0x312   :  { %v12520_v14 = vpop.f32.mrf.mxu0  ;;  %v6804_v15 = vadd.f32 %v6803_v35, %v6626_v39 }
 0x313   :  { %v5984_v26 = vadd.f32 %v5983_v7, %v5982_v59  ;;  %v6021_v17 = vrot.slane %v6020_v55, 2 }
 0x314   :  { %v12522_v43 = vpop.f32.mrf.mxu0 }
 0x315   :  { %v5985_v0 = vrot.slane %v5984_v26, 1  ;;  %v6022_v30 = vadd.f32 %v6021_v17, %v6020_v55 }
 0x316   :  { %v12527_v21 = vpop.f32.mrf.mxu0 }
 0x317   :  { %v5986_v6 = vadd.f32 %v5985_v0, %v5984_v26  ;;  %v6023_v51 = vrot.slane %v6022_v30, 1 }
 0x318   :  { %v12532_v20 = vpop.f32.mrf.mxu0 }
 0x319   :  { %v9429_v28 = vpop.f32.mrf.mxu1  ;;  %v12525_v22 = vadd.f32 %v5986_v6, %v12445_v32  ;;  %v6024_v63 = vadd.f32 %v6023_v51, %v6022_v30 }
 0x31a   :  { %v12534_v50 = vpop.f32.mrf.mxu0  ;;  %v6825_v35 = vadd.f32 %v9429_v28, %v12516_v45 }
 0x31b   :  { %v12530_v29 = vadd.f32 %v6024_v63, %v12452_v11  ;;  %v6816_v25 = vpop.f32.mrf.mxu1 }
 0x31c   :  { %v12538_v40 = vpop.f32.mrf.mxu0  ;;  %v6817_v6 = vadd.f32 %v6816_v25, %v12518_v16 }
 0x31d   :  { %v9430_v61 = vpop.f32.mrf.mxu1 }
 0x31e   :  { %v12542_v32 = vpop.f32.mrf.mxu0 }
 0x31f   :  { %v12536_v13 = vpop.f32.mrf.mxu1 }
 0x320   :  { %v12546_v18 = vpop.f32.mrf.mxu0 }
 0x322   :  { %v12550_v36 = vpop.f32.mrf.mxu0 }
 0x324   :  { %v12540_v33 = vpop.f32.mrf.mxu1  ;;  %v12554_v4 = vpop.f32.mrf.mxu0 }
 0x326   :  { %v12544_v10 = vpop.f32.mrf.mxu1 }
 0x328   :  { %v12548_v11 = vpop.f32.mrf.mxu1 }
 0x32a   :  { %v12552_v12 = vpop.f32.mrf.mxu1 }
 0x333   :  { %v9457_v58 = vpop.f32.mrf.mxu0 }
 0x334   :  { %v7315_v41 = vadd.f32 %v9457_v58, %v6809_v34  ;;  %v6828_v58 = vadd.f32 %v9430_v61, %v12520_v14 }
 0x335   :  { %v7250_v44 = vpop.f32.mrf.mxu0 }
 0x336   :  { %v7313_v2 = vadd.f32 %v7250_v44, %v6801_v9 }
 0x337   :  { %v9458_v31 = vpop.f32.mrf.mxu0 }
 0x338   :  { %v12556_v5 = vpop.f32.mrf.mxu1  ;;  %v7316_v37 = vadd.f32 %v9458_v31, %v6812_v19 }
 0x339   :  { %v7253_v49 = vpop.f32.mrf.mxu0 }
 0x33a   :  { %v12558_v3 = vpop.f32.mrf.mxu1  ;;  %v7314_v24 = vadd.f32 %v7253_v49, %v6804_v15 }
 0x33c   :  { %v12560_v62 = vpop.f32.mrf.mxu1 }
 0x33e   :  { %v12562_v54 = vpop.f32.mrf.mxu1 }
 0x345   :  { %v9461_v48 = vpop.f32.mrf.mxu0 }
 0x346   :  { %v7319_v51 = vadd.f32 %v9461_v48, %v6825_v35 }
 0x347   :  { %v7266_v38 = vpop.f32.mrf.mxu0 }
 0x348   :  { %v9489_v52 = vpop.f32.mrf.mxu1  ;;  %v7317_v34 = vadd.f32 %v7266_v38, %v6817_v6  ;;  %v6841_v38 = vadd.f32 %v12540_v33, %v12527_v21  ;;  %v6836_v21 = vadd.f32 %v12552_v12, %v12538_v40  ;;  %v6857_v40 = vadd.f32 %v12556_v5, %v12542_v32 }
 0x349   :  { %v7637_v53 = vadd.f32 %v9489_v52, %v7315_v41  ;;  %v9462_v27 = vpop.f32.mrf.mxu0  ;;  %v6820_v52 = vadd.f32 %v12536_v13, %v12522_v43  ;;  %v6860_v32 = vadd.f32 %v12560_v62, %v12550_v36 }
 0x34a   :  { %v7572_v8 = vpop.f32.mrf.mxu1 }
 0x34b   :  { %v8613_v42 = vpack.c.bf16 %v7637_v53, %v7637_v53  ;;  %v7635_v60 = vadd.f32 %v7572_v8, %v7313_v2  ;;  %v7269_v17 = vpop.f32.mrf.mxu0  ;;  %v7675_v0 = vmul.f32 %v7637_v53, %v7637_v53  ;;  %v7320_v2 = vadd.f32 %v9462_v27, %v6828_v58 }
 0x34c   :  { %v9490_v1 = vpop.f32.mrf.mxu1  ;;  %v7318_v8 = vadd.f32 %v7269_v17, %v6820_v52 }
 0x34d   :  { %8533 = vst [vmem:[%s12646_s3 + $0x2c] sm:$0xf] %v8613_v42  ;;  %v8611_v47 = vpack.c.bf16 %v7635_v60, %v7635_v60  ;;  %v7638_v56 = vadd.f32 %v9490_v1, %v7316_v37  ;;  %v7673_v7 = vmul.f32 %v7635_v60, %v7635_v60 }
 0x34e   :  { %v7575_v57 = vpop.f32.mrf.mxu1 }
 0x34f   :  { %8531 = vst [vmem:[%s12646_s3 + $0xc] sm:$0xf] %v8611_v47  ;;  %v8614_v46 = vpack.c.bf16 %v7638_v56, %v7638_v56  ;;  %v7636_v59 = vadd.f32 %v7575_v57, %v7314_v24  ;;  %v7676_v49 = vmul.f32 %v7638_v56, %v7638_v56 }
 0x351   :  { %8534 = vst [vmem:[%s12646_s3 + $0x3c] sm:$0xf] %v8614_v46  ;;  %v7674_v39 = vmul.f32 %v7636_v59, %v7636_v59  ;;  %v8612_v23 = vpack.c.bf16 %v7636_v59, %v7636_v59  ;;  %v7651_v55 = vadd.f32 %v7636_v59, %v7635_v60 }
 0x353   :  { %8532 = vst [vmem:[%s12646_s3 + $0x1c] sm:$0xf] %v8612_v23  ;;  %v7689_v26 = vadd.f32 %v7674_v39, %v7673_v7  ;;  %v7652_v30 = vadd.f32 %v7651_v55, %v7637_v53  ;;  %v6833_v39 = vadd.f32 %v12544_v10, %v12532_v20  ;;  %v6844_v7 = vadd.f32 %v12548_v11, %v12534_v50 }
 0x355   :  { %v7690_v63 = vadd.f32 %v7689_v26, %v7675_v0  ;;  %v7653_v41 = vadd.f32 %v7652_v30, %v7638_v56 }
 0x356   :  { %v9465_v44 = vpop.f32.mrf.mxu0 }
 0x357   :  { %v7691_v53 = vadd.f32 %v7690_v63, %v7676_v49  ;;  %v7323_v23 = vadd.f32 %v9465_v44, %v6841_v38 }
 0x358   :  { %v7282_v16 = vpop.f32.mrf.mxu0 }
 0x359   :  { %v7321_v26 = vadd.f32 %v7282_v16, %v6833_v39 }
 0x35a   :  { %v9493_v31 = vpop.f32.mrf.mxu1  ;;  %v9466_v60 = vpop.f32.mrf.mxu0 }
 0x35b   :  { %v7641_v9 = vadd.f32 %v9493_v31, %v7319_v51  ;;  %v7324_v6 = vadd.f32 %v9466_v60, %v6844_v7 }
 0x35c   :  { %v7588_v19 = vpop.f32.mrf.mxu1  ;;  %v7285_v46 = vpop.f32.mrf.mxu0 }
 0x35d   :  { %v8617_v45 = vpack.c.bf16 %v7641_v9, %v7641_v9  ;;  %v7639_v28 = vadd.f32 %v7588_v19, %v7317_v34  ;;  %v7679_v57 = vmul.f32 %v7641_v9, %v7641_v9  ;;  %v7322_v10 = vadd.f32 %v7285_v46, %v6836_v21 }
 0x35e   :  { %v9494_v25 = vpop.f32.mrf.mxu1  ;;  %v6849_v19 = vadd.f32 %v12558_v3, %v12546_v18  ;;  %v6852_v3 = vadd.f32 %v12562_v54, %v12554_v4 }
 0x35f   :  { %8537 = vst [vmem:[%s12646_s3 + $0x6c] sm:$0xf] %v8617_v45  ;;  %v7654_v14 = vadd.f32 %v7653_v41, %v7639_v28  ;;  %v7677_v61 = vmul.f32 %v7639_v28, %v7639_v28  ;;  %v8615_v48 = vpack.c.bf16 %v7639_v28, %v7639_v28  ;;  %v7642_v15 = vadd.f32 %v9494_v25, %v7320_v2 }
 0x360   :  { %v7591_v37 = vpop.f32.mrf.mxu1 }
 0x361   :  { %v7692_v42 = vadd.f32 %v7691_v53, %v7677_v61  ;;  %8535 = vst [vmem:[%s12646_s3 + $0x4c] sm:$0xf] %v8615_v48  ;;  %v8618_v43 = vpack.c.bf16 %v7642_v15, %v7642_v15  ;;  %v7640_v13 = vadd.f32 %v7591_v37, %v7318_v8  ;;  %v7680_v17 = vmul.f32 %v7642_v15, %v7642_v15 }
 0x363   :  { %8538 = vst [vmem:[%s12646_s3 + $0x7c] sm:$0xf] %v8618_v43  ;;  %v7655_v1 = vadd.f32 %v7654_v14, %v7640_v13  ;;  %v7678_v24 = vmul.f32 %v7640_v13, %v7640_v13  ;;  %v8616_v47 = vpack.c.bf16 %v7640_v13, %v7640_v13 }
 0x365   :  { %v7693_v56 = vadd.f32 %v7692_v42, %v7678_v24  ;;  %8536 = vst [vmem:[%s12646_s3 + $0x5c] sm:$0xf] %v8616_v47  ;;  %v7656_v59 = vadd.f32 %v7655_v1, %v7641_v9 }
 0x367   :  { %v7694_v27 = vadd.f32 %v7693_v56, %v7679_v57  ;;  %v7657_v30 = vadd.f32 %v7656_v59, %v7642_v15 }
 0x369   :  { %v9497_v55 = vpop.f32.mrf.mxu1  ;;  %v7695_v20 = vadd.f32 %v7694_v27, %v7680_v17 }
 0x36a   :  { %v9469_v35 = vpop.f32.mrf.mxu0  ;;  %v7645_v0 = vadd.f32 %v9497_v55, %v7323_v23 }
 0x36b   :  { %v7604_v33 = vpop.f32.mrf.mxu1  ;;  %v7327_v2 = vadd.f32 %v9469_v35, %v6857_v40 }
 0x36c   :  { %v8621_v51 = vpack.c.bf16 %v7645_v0, %v7645_v0  ;;  %v7298_v63 = vpop.f32.mrf.mxu0  ;;  %v7643_v58 = vadd.f32 %v7604_v33, %v7321_v26  ;;  %v7683_v5 = vmul.f32 %v7645_v0, %v7645_v0 }
 0x36d   :  { %v9498_v44 = vpop.f32.mrf.mxu1  ;;  %v7325_v16 = vadd.f32 %v7298_v63, %v6849_v19 }
 0x36e   :  { %8541 = vst [vmem:[%s12646_s3 + $0xac] sm:$0xf] %v8621_v51  ;;  %v7658_v50 = vadd.f32 %v7657_v30, %v7643_v58  ;;  %v7681_v11 = vmul.f32 %v7643_v58, %v7643_v58  ;;  %v8619_v31 = vpack.c.bf16 %v7643_v58, %v7643_v58  ;;  %v7646_v34 = vadd.f32 %v9498_v44, %v7324_v6  ;;  %v9470_v9 = vpop.f32.mrf.mxu0 }
 0x36f   :  { %v7607_v49 = vpop.f32.mrf.mxu1  ;;  %v7328_v48 = vadd.f32 %v9470_v9, %v6860_v32 }
 0x370   :  { %v7696_v12 = vadd.f32 %v7695_v20, %v7681_v11  ;;  %8539 = vst [vmem:[%s12646_s3 + $0x8c] sm:$0xf] %v8619_v31  ;;  %v8622_v41 = vpack.c.bf16 %v7646_v34, %v7646_v34  ;;  %v7644_v52 = vadd.f32 %v7607_v49, %v7322_v10  ;;  %v7301_v25 = vpop.f32.mrf.mxu0  ;;  %v7684_v37 = vmul.f32 %v7646_v34, %v7646_v34 }
 0x371   :  { %v7326_v62 = vadd.f32 %v7301_v25, %v6852_v3 }
 0x372   :  { %8542 = vst [vmem:[%s12646_s3 + $0xbc] sm:$0xf] %v8622_v41  ;;  %v7659_v45 = vadd.f32 %v7658_v50, %v7644_v52  ;;  %v7682_v28 = vmul.f32 %v7644_v52, %v7644_v52  ;;  %v8620_v53 = vpack.c.bf16 %v7644_v52, %v7644_v52 }
 0x373   :  { %v9501_v8 = vpop.f32.mrf.mxu1 }
 0x374   :  { %v7660_v14 = vadd.f32 %v7659_v45, %v7645_v0  ;;  %v7697_v61 = vadd.f32 %v7696_v12, %v7682_v28  ;;  %8540 = vst [vmem:[%s12646_s3 + $0x9c] sm:$0xf] %v8620_v53  ;;  %v7649_v18 = vadd.f32 %v9501_v8, %v7327_v2 }
 0x375   :  { %v7620_v15 = vpop.f32.mrf.mxu1 }
 0x376   :  { %v7698_v42 = vadd.f32 %v7697_v61, %v7683_v5  ;;  %v8625_v43 = vpack.c.bf16 %v7649_v18, %v7649_v18  ;;  %v7647_v36 = vadd.f32 %v7620_v15, %v7325_v16  ;;  %v7661_v13 = vadd.f32 %v7660_v14, %v7646_v34 }
 0x377   :  { %v9502_v60 = vpop.f32.mrf.mxu1  ;;  %v7687_v27 = vmul.f32 %v7649_v18, %v7649_v18 }
 0x378   :  { %8545 = vst [vmem:[%s12646_s3 + $0xec] sm:$0xf] %v8625_v43  ;;  %v7685_v1 = vmul.f32 %v7647_v36, %v7647_v36  ;;  %v7699_v24 = vadd.f32 %v7698_v42, %v7684_v37  ;;  %v8623_v47 = vpack.c.bf16 %v7647_v36, %v7647_v36  ;;  %v7650_v56 = vadd.f32 %v9502_v60, %v7328_v48 }
 0x379   :  { %v7662_v38 = vadd.f32 %v7661_v13, %v7647_v36  ;;  %v7623_v57 = vpop.f32.mrf.mxu1 }
 0x37a   :  { %v7700_v4 = vadd.f32 %v7699_v24, %v7685_v1  ;;  %8543 = vst [vmem:[%s12646_s3 + $0xcc] sm:$0xf] %v8623_v47  ;;  %v8626_v54 = vpack.c.bf16 %v7650_v56, %v7650_v56  ;;  %v7648_v46 = vadd.f32 %v7623_v57, %v7326_v62  ;;  %v7688_v26 = vmul.f32 %v7650_v56, %v7650_v56 }
 0x37c   :  { %8546 = vst [vmem:[%s12646_s3 + $0xfc] sm:$0xf] %v8626_v54  ;;  %v7663_v59 = vadd.f32 %v7662_v38, %v7648_v46  ;;  %v7686_v39 = vmul.f32 %v7648_v46, %v7648_v46  ;;  %v8624_v23 = vpack.c.bf16 %v7648_v46, %v7648_v46 }
 0x37e   :  { %v7664_v7 = vadd.f32 %v7663_v59, %v7649_v18  ;;  %v7701_v55 = vadd.f32 %v7700_v4, %v7686_v39  ;;  %8544 = vst [vmem:[%s12646_s3 + $0xdc] sm:$0xf] %v8624_v23 }
 0x380   :  { %v7665_v17 = vadd.f32 %v7664_v7, %v7650_v56  ;;  %v7702_v35 = vadd.f32 %v7701_v55, %v7687_v27 }
 0x382   :  { %v7666_v0 = vrot.slane %v7665_v17, 4  ;;  %v7703_v30 = vadd.f32 %v7702_v35, %v7688_v26 }
 0x384   :  { %v7667_v21 = vadd.f32 %v7666_v0, %v7665_v17  ;;  %v7704_v33 = vrot.slane %v7703_v30, 4 }
 0x386   :  { %v7668_v6 = vrot.slane %v7667_v21, 2  ;;  %v7705_v51 = vadd.f32 %v7704_v33, %v7703_v30 }
 0x388   :  { %v7669_v63 = vadd.f32 %v7668_v6, %v7667_v21  ;;  %v7706_v58 = vrot.slane %v7705_v51, 2 }
 0x38a   :  { %v7670_v20 = vrot.slane %v7669_v63, 1  ;;  %v7707_v10 = vadd.f32 %v7706_v58, %v7705_v51 }
 0x38c   :  { %v7671_v44 = vadd.f32 %v7670_v20, %v7669_v63  ;;  %v7708_v50 = vrot.slane %v7707_v10, 1 }
 0x38e   :  { %v7672_v11 = vadd.f32 %v7671_v44, %v12525_v22  ;;  %v7709_v31 = vadd.f32 %v7708_v50, %v7707_v10 }
 0x390   :  { %v7710_v34 = vadd.f32 %v7709_v31, %v12530_v29  ;;  %7791 = vst [vmem:[%s12647_s4] sm:$0x1] %v7672_v11 }
 0x392   :  { %7792 = vst [vmem:[%s12647_s4 + $0x1] sm:$0x1] %v7710_v34 }

</bundles_post_ra>
